<compile_context>
chip_gen: v5e
topology: v5e:2x2
jax: 0.10.0
libtpu: 0.0.40
codegen_flags: <defaults>
</compile_context>

<pallas_src>
import numpy as np
import jax
import jax.numpy as jnp
from jax.experimental import pallas as pl
from jax.experimental.pallas import tpu as pltpu

EPS = 1e-5

_NON_CENTER_TAPS = [(kh, kw) for kh in range(3) for kw in range(3) if (kh, kw) != (1, 1)]


# --------------------------------------------------------------------------------------
# Pass A: conv1 (3x3, pad 1) + 1x1 downsample conv (both pre-BN) + partial BN stats.
# --------------------------------------------------------------------------------------
def _conv1_dn_kernel(xpad_ref, w1_ref, wc_ref, y1_ref, idn_ref, st_ref):
    tb, Hp2, Wp2, Cip = xpad_ref.shape
    H, W = Hp2 - 2, Wp2 - 2
    Cop = y1_ref.shape[-1]
    N = tb * H * W

    # Centre tap does conv1-centre AND the 1x1 downsample in a single 2*Cop-wide dot
    # (fills the 256-wide MXU on v6e/v7x; same cost as a separate idn dot on v5e).
    xc = xpad_ref[:, 1:1 + H, 1:1 + W, :].reshape(N, Cip)
    ctr = jnp.dot(xc, wc_ref[...], preferred_element_type=jnp.float32)   # (N, 2*Cop)
    acc = ctr[:, :Cop]
    idn = ctr[:, Cop:]

    # Remaining 8 taps: accumulating dots over directly-sliced ref windows (no im2col).
    for t, (kh, kw) in enumerate(_NON_CENTER_TAPS):
        xs = xpad_ref[:, kh:kh + H, kw:kw + W, :].reshape(N, Cip)
        acc = acc + jnp.dot(xs, w1_ref[t], preferred_element_type=jnp.float32)

    # bf16 intermediates to HBM (halves traffic); stats taken from the f32 accumulator.
    y1_ref[...] = acc.reshape(tb, H, W, Cop).astype(jnp.bfloat16)
    idn_ref[...] = idn.reshape(tb, H, W, Cop).astype(jnp.bfloat16)

    # Per-tile BN partials: tile mean + centered M2 (no E[y^2]-E[y]^2 cancellation).
    inv_n = 1.0 / N
    m1 = jnp.sum(acc, axis=0, keepdims=True) * inv_n
    v1 = jnp.sum(jnp.square(acc - m1), axis=0, keepdims=True)
    mD = jnp.sum(idn, axis=0, keepdims=True) * inv_n
    vD = jnp.sum(jnp.square(idn - mD), axis=0, keepdims=True)
    st_ref[0] = jnp.concatenate([m1, v1, mD, vD], axis=0)      # (4, Cop)


# --------------------------------------------------------------------------------------
# Pass B: apply folded bn1 + ReLU, conv2 (3x3, pad 1) pre-BN, + partial BN stats.
# --------------------------------------------------------------------------------------
def _bn1_relu_conv2_kernel(y1_ref, s1_ref, o1_ref, w2_ref, y2_ref, st_ref, pad_ref):
    tb, H, W, Cop = y1_ref.shape
    N = tb * H * W

    s1 = s1_ref[...].reshape(1, 1, 1, Cop)
    o1 = o1_ref[...].reshape(1, 1, 1, Cop)
    a1 = jnp.maximum(y1_ref[...].astype(jnp.float32) * s1 + o1, 0.0).astype(jnp.bfloat16)

    # Padded-activation scratch: zero only the halo strips, store the interior once.
    pad_ref[:, 0:1, :, :] = jnp.zeros((tb, 1, W + 2, Cop), jnp.bfloat16)
    pad_ref[:, H + 1:H + 2, :, :] = jnp.zeros((tb, 1, W + 2, Cop), jnp.bfloat16)
    pad_ref[:, 1:H + 1, 0:1, :] = jnp.zeros((tb, H, 1, Cop), jnp.bfloat16)
    pad_ref[:, 1:H + 1, W + 1:W + 2, :] = jnp.zeros((tb, H, 1, Cop), jnp.bfloat16)
    # TODO(synk): interior store is sublane-offset (masked vst); a masked shifted-tap
    # formulation would remove the padded scratch entirely.
    pad_ref[:, 1:H + 1, 1:W + 1, :] = a1

    # conv2 as 9 accumulating tap dots over the padded scratch (no im2col scratch).
    acc = jnp.zeros((N, Cop), jnp.float32)
    for kh in range(3):
        for kw in range(3):
            tap = kh * 3 + kw
            xs = pad_ref[:, kh:kh + H, kw:kw + W, :].reshape(N, Cop)
            acc = acc + jnp.dot(xs, w2_ref[tap], preferred_element_type=jnp.float32)

    y2_ref[...] = acc.reshape(tb, H, W, Cop).astype(jnp.bfloat16)

    inv_n = 1.0 / N
    m = jnp.sum(acc, axis=0, keepdims=True) * inv_n
    v = jnp.sum(jnp.square(acc - m), axis=0, keepdims=True)
    st_ref[0] = jnp.concatenate([m, v], axis=0)                 # (2, Cop)


# --------------------------------------------------------------------------------------
# Host-side helpers
# --------------------------------------------------------------------------------------
def _round_up(x, m):
    return (x + m - 1) // m * m


def _vmem_limit_bytes():
    cap = 64 * 1024 * 1024                       # conservative fallback (v7x physical)
    try:
        info = pltpu.get_tpu_info()
        cap = int(getattr(info, "vmem_capacity_bytes", cap))
    except Exception:
        pass
    # Leave headroom: v5e/v6e (128 MiB) -> 96 MiB scoped limit, v7x (64 MiB) -> 48 MiB.
    return min(cap * 3 // 4, 96 * 1024 * 1024)


def _per_step_vmem(tb, H, W, Cip, Cop):
    # Conservative per-grid-step residency: every BlockSpec'd block counted x2
    # (double-buffering), plus scratch and live in-kernel f32/bf16 values.
    N = tb * H * W
    hp, wp = H + 2, W + 2
    pass_a = (2 * tb * hp * wp * Cip * 2                 # xpad in (bf16, x2)
              + 2 * (8 * Cip * Cop + 2 * Cip * Cop) * 2  # weights (bf16, x2)
              + 2 * 2 * N * Cop * 2                      # y1 + idn out (bf16, x2)
              + 2 * 4 * Cop * 4                          # stats out (f32, x2)
              + 4 * N * Cop * 4                          # live f32 acc / centre dot / temps
              + 2 * N * Cip * 2)                         # live bf16 tap slices
    pass_b = (2 * N * Cop * 2                            # y1 in (bf16, x2)
              + 2 * 9 * Cop * Cop * 2                    # w2 (bf16, x2)
              + 2 * N * Cop * 2                          # y2 out (bf16, x2)
              + 2 * 2 * Cop * 4                          # stats out
              + tb * hp * wp * Cop * 2                   # padded-activation scratch (bf16)
              + 3 * N * Cop * 4                          # live f32 acc / temps
              + 2 * N * Cop * 2)                         # live bf16 temps
    return max(pass_a, pass_b)


def _pick_tb(B, H, W, Cip, Cop, budget):
    # Cap tb <= B//2 so the grid has >=2 steps (v7x megacore sharding + pipeline overlap).
    cap = max(1, B // 2)
    best = 1
    for tb in range(1, cap + 1):
        if B % tb == 0 and _per_step_vmem(tb, H, W, Cip, Cop) <= budget:
            best = tb
    return best


def _fold_bn_stats(mean_t, m2_t, n_tile, gamma, beta):
    # Combine per-tile (mean, centered M2) with Chan's parallel-variance formula
    # (equal-size tiles), then fold into per-channel scale/offset.
    nb = mean_t.shape[0]
    gm = jnp.mean(mean_t, axis=0)
    var = (jnp.sum(m2_t, axis=0)
           + n_tile * jnp.sum(jnp.square(mean_t - gm), axis=0)) / (nb * n_tile)
    scale = gamma * jax.lax.rsqrt(var + EPS)
    offset = beta - gm * scale
    return scale, offset


def resnet_cell_forward(x_nchw, params):
    # TODO(synk): only stride=1 (module default) + training-mode BN are implemented.
    B, Cin, H, W = x_nchw.shape
    Cout = params["w1"].shape[-1]
    Cip, Cop = _round_up(Cin, 128), _round_up(Cout, 128)
    vmem_limit = _vmem_limit_bytes()
    tb = _pick_tb(B, H, W, Cip, Cop, budget=int(vmem_limit * 0.85))
    nb = B // tb
    Hp2, Wp2 = H + 2, W + 2
    n_tile = tb * H * W

    # ---- layout plumbing: NCHW -> NHWC, channel pad to lane multiple, halo pad, bf16 ----
    # TODO(synk): accepting NHWC at the module boundary would remove this HBM pass.
    x = jnp.transpose(x_nchw, (0, 2, 3, 1)).astype(jnp.bfloat16)
    x = jnp.pad(x, ((0, 0), (1, 1), (1, 1), (0, Cip - Cin)))

    w1p = jnp.pad(params["w1"].astype(jnp.float32),
                  ((0, 0), (0, 0), (0, Cip - Cin), (0, Cop - Cout))).reshape(9, Cip, Cop)
    wdp = jnp.pad(params["wd"].astype(jnp.float32),
                  ((0, Cip - Cin), (0, Cop - Cout)))
    w1_taps = jnp.concatenate([w1p[:4], w1p[5:]], axis=0).astype(jnp.bfloat16)  # 8 taps
    wc = jnp.concatenate([w1p[4], wdp], axis=1).astype(jnp.bfloat16)            # centre|wd
    w2p = jnp.pad(params["w2"].astype(jnp.float32),
                  ((0, 0), (0, 0), (0, Cop - Cout), (0, Cop - Cout))
                  ).reshape(9, Cop, Cop).astype(jnp.bfloat16)

    def padc(v):  # per-channel BN param -> (Cop,), zero-padded (padded channels inert)
        return jnp.pad(v.astype(jnp.float32), (0, Cop - v.shape[0]))

    g1, be1 = padc(params["g1"]), padc(params["be1"])
    g2, be2 = padc(params["g2"]), padc(params["be2"])
    gd, bed = padc(params["gd"]), padc(params["bed"])
    # Conv biases b1/b2/bd intentionally unused: training-mode BN's mean subtraction
    # cancels any per-channel constant added before it.

    cp = pltpu.CompilerParams(dimension_semantics=("parallel",),
                              vmem_limit_bytes=vmem_limit)

    bspec_xin = pl.BlockSpec((tb, Hp2, Wp2, Cip), lambda i: (i, 0, 0, 0))
    bspec_act = pl.BlockSpec((tb, H, W, Cop), lambda i: (i, 0, 0, 0))

    def full(shp):
        return pl.BlockSpec(shp, lambda i: (0,) * len(shp))

    # ---- pass A: conv1 + 1x1 downsample (pre-BN, bf16) + per-tile BN partial stats ----
    y1, idn, st_a = pl.pallas_call(
        _conv1_dn_kernel,
        out_shape=(jax.ShapeDtypeStruct((B, H, W, Cop), jnp.bfloat16),
                   jax.ShapeDtypeStruct((B, H, W, Cop), jnp.bfloat16),
                   jax.ShapeDtypeStruct((nb, 4, Cop), jnp.float32)),
        grid=(nb,),
        in_specs=[bspec_xin, full((8, Cip, Cop)), full((Cip, 2 * Cop))],
        out_specs=(bspec_act, bspec_act,
                   pl.BlockSpec((1, 4, Cop), lambda i: (i, 0, 0))),
        compiler_params=cp,
    )(x, w1_taps, wc)

    # Tiny per-channel reductions in XLA (nb x Cop), not activation-sized passes.
    s1v, o1v = _fold_bn_stats(st_a[:, 0, :], st_a[:, 1, :], n_tile, g1, be1)
    sdv, odv = _fold_bn_stats(st_a[:, 2, :], st_a[:, 3, :], n_tile, gd, bed)

    # ---- pass B: bn1-apply + ReLU + conv2 (pre-BN, bf16) + per-tile BN partial stats ----
    y2, st_b = pl.pallas_call(
        _bn1_relu_conv2_kernel,
        out_shape=(jax.ShapeDtypeStruct((B, H, W, Cop), jnp.bfloat16),
                   jax.ShapeDtypeStruct((nb, 2, Cop), jnp.float32)),
        grid=(nb,),
        in_specs=[bspec_act, full((1, Cop)), full((1, Cop)), full((9, Cop, Cop))],
        out_specs=(bspec_act, pl.BlockSpec((1, 2, Cop), lambda i: (i, 0, 0))),
        scratch_shapes=[pltpu.VMEM((tb, Hp2, Wp2, Cop), jnp.bfloat16)],
        compiler_params=cp,
    )(y1, s1v.reshape(1, Cop), o1v.reshape(1, Cop), w2p)

    s2v, o2v = _fold_bn_stats(st_b[:, 0, :], st_b[:, 1, :], n_tile, g2, be2)

    # ---- epilogue: bn2/bnD apply + residual add + ReLU (pure elementwise) ----
    # Plain JAX so XLA fuses it with the :Cout slice and the NCHW transpose in one pass.
    out = jnp.maximum(
        y2.astype(jnp.float32) * s2v + o2v + idn.astype(jnp.float32) * sdv + odv, 0.0)
    out = out[:, :, :, :Cout]
    return jnp.transpose(out, (0, 3, 1, 2))


# --------------------------------------------------------------------------------------
# Params / pure-JAX reference (training-mode BN, matches the PyTorch module)
# --------------------------------------------------------------------------------------
def init_params(key, cin, cout):
    ks = jax.random.split(key, 6)
    w1 = jax.random.normal(ks[0], (3, 3, cin, cout), jnp.float32) * 0.1
    b1 = jax.random.normal(ks[1], (cout,), jnp.float32) * 0.05
    w2 = jax.random.normal(ks[2], (3, 3, cout, cout), jnp.float32) * 0.1
    b2 = jax.random.normal(ks[3], (cout,), jnp.float32) * 0.05
    wd = jax.random.normal(ks[4], (cin, cout), jnp.float32) * 0.1
    bd = jax.random.normal(ks[5], (cout,), jnp.float32) * 0.05
    ones = jnp.ones((cout,), jnp.float32)
    zeros = jnp.zeros((cout,), jnp.float32)
    return dict(w1=w1, b1=b1, g1=ones, be1=zeros,
                w2=w2, b2=b2, g2=ones, be2=zeros,
                wd=wd, bd=bd, gd=ones, bed=zeros)


def reference_forward(x_nchw, p):
    x = jnp.transpose(x_nchw, (0, 2, 3, 1)).astype(jnp.float32)

    def conv(xx, w, b, k):
        pad = k // 2
        return jax.lax.conv_general_dilated(
            xx, w, window_strides=(1, 1),
            padding=((pad, pad), (pad, pad)),
            dimension_numbers=("NHWC", "HWIO", "NHWC")) + b

    def bn(y, g, be):
        m = jnp.mean(y, axis=(0, 1, 2), keepdims=True)
        v = jnp.mean((y - m) ** 2, axis=(0, 1, 2), keepdims=True)
        return (y - m) / jnp.sqrt(v + EPS) * g + be

    y = jax.nn.relu(bn(conv(x, p["w1"], p["b1"], 3), p["g1"], p["be1"]))
    y = bn(conv(y, p["w2"], p["b2"], 3), p["g2"], p["be2"])
    wd = p["wd"].reshape(1, 1, *p["wd"].shape)
    idn = bn(conv(x, wd, p["bd"], 1), p["gd"], p["bed"])
    out = jax.nn.relu(y + idn)
    return jnp.transpose(out, (0, 3, 1, 2))


if __name__ == "__main__":
    key = jax.random.PRNGKey(0)
    kx, kp = jax.random.split(key)
    B, Cin, Cout, H, W = 2, 4, 8, 16, 16
    x = jax.random.normal(kx, (B, Cin, H, W), jnp.float32)
    params = init_params(kp, Cin, Cout)

    fwd = jax.jit(resnet_cell_forward)
    out = jax.block_until_ready(fwd(x, params))
    assert out.shape == (B, Cout, H, W)

    ref = reference_forward(x, params)
    # bf16 MXU operands + bf16 intermediates vs. f32 reference -> modest tolerance
    np.testing.assert_allclose(np.asarray(out), np.asarray(ref), rtol=4e-2, atol=4e-2)
    print("KERNEL_OK")
</pallas_src>

<mosaic_0001>
module attributes {stable_mosaic.version = 11 : i64} {
  func.func @_conv1_dn_kernel(%arg0: i32, %arg1: memref<1x18x18x128xbf16, #tpu.memory_space<vmem>>, %arg2: memref<8x128x128xbf16, #tpu.memory_space<vmem>>, %arg3: memref<128x256xbf16, #tpu.memory_space<vmem>>, %arg4: memref<1x16x16x128xbf16, #tpu.memory_space<vmem>>, %arg5: memref<1x16x16x128xbf16, #tpu.memory_space<vmem>>, %arg6: memref<1x4x128xf32, #tpu.memory_space<vmem>>) attributes {dimension_semantics = [#tpu.dimension_semantics<parallel>], iteration_bounds = array<i64: 2>, scalar_prefetch = 0 : i64, scratch_operands = 0 : i64, tpu.core_type = #tpu.core_type<tc>, window_params = [{transform_indices = @transform_0, window_bounds = array<i64: 1, 18, 18, 128>}, {pipeline_mode = #tpu.pipeline_mode<synchronous>, transform_indices = @transform_1, window_bounds = array<i64: 8, 128, 128>}, {pipeline_mode = #tpu.pipeline_mode<synchronous>, transform_indices = @transform_2, window_bounds = array<i64: 128, 256>}, {transform_indices = @transform_3, window_bounds = array<i64: 1, 16, 16, 128>}, {transform_indices = @transform_4, window_bounds = array<i64: 1, 16, 16, 128>}, {transform_indices = @transform_5, window_bounds = array<i64: 1, 4, 128>}]} {
    %c0 = arith.constant 0 : index
    %c1 = arith.constant 1 : index
    %c1_0 = arith.constant 1 : index
    %c0_1 = arith.constant 0 : index
    %0 = vector.load %arg1[%c0, %c1, %c1_0, %c0_1] : memref<1x18x18x128xbf16, #tpu.memory_space<vmem>>, vector<1x16x16x128xbf16>
    %1 = vector.shape_cast %0 : vector<1x16x16x128xbf16> to vector<256x128xbf16>
    %c0_2 = arith.constant 0 : index
    %c0_3 = arith.constant 0 : index
    %2 = vector.load %arg3[%c0_2, %c0_3] : memref<128x256xbf16, #tpu.memory_space<vmem>>, vector<128x256xbf16>
    %cst = arith.constant dense<0.000000e+00> : vector<256x256xf32>
    %3 = tpu.matmul %1, %2, %cst {dimension_numbers = #tpu.dot_dimension_numbers<[1], [0], [0], [1], [0, 0, 1, 1], [], []>} : vector<256x128xbf16>, vector<128x256xbf16>, vector<256x256xf32> -> vector<256x256xf32>
    %4 = vector.extract_strided_slice %3 {offsets = [0, 0], sizes = [256, 128], strides = [1, 1]} : vector<256x256xf32> to vector<256x128xf32>
    %5 = vector.extract_strided_slice %3 {offsets = [0, 128], sizes = [256, 128], strides = [1, 1]} : vector<256x256xf32> to vector<256x128xf32>
    %c0_4 = arith.constant 0 : index
    %c0_5 = arith.constant 0 : index
    %c0_6 = arith.constant 0 : index
    %c0_7 = arith.constant 0 : index
    %6 = vector.load %arg1[%c0_4, %c0_5, %c0_6, %c0_7] : memref<1x18x18x128xbf16, #tpu.memory_space<vmem>>, vector<1x16x16x128xbf16>
    %7 = vector.shape_cast %6 : vector<1x16x16x128xbf16> to vector<256x128xbf16>
    %c0_8 = arith.constant 0 : index
    %c0_9 = arith.constant 0 : index
    %c0_10 = arith.constant 0 : index
    %8 = vector.load %arg2[%c0_8, %c0_9, %c0_10] : memref<8x128x128xbf16, #tpu.memory_space<vmem>>, vector<1x128x128xbf16>
    %9 = vector.shape_cast %8 : vector<1x128x128xbf16> to vector<128x128xbf16>
    %cst_11 = arith.constant dense<0.000000e+00> : vector<256x128xf32>
    %10 = tpu.matmul %7, %9, %cst_11 {dimension_numbers = #tpu.dot_dimension_numbers<[1], [0], [0], [1], [0, 0, 1, 1], [], []>} : vector<256x128xbf16>, vector<128x128xbf16>, vector<256x128xf32> -> vector<256x128xf32>
    %11 = arith.addf %4, %10 : vector<256x128xf32>
    %c0_12 = arith.constant 0 : index
    %c0_13 = arith.constant 0 : index
    %c1_14 = arith.constant 1 : index
    %c0_15 = arith.constant 0 : index
    %12 = vector.load %arg1[%c0_12, %c0_13, %c1_14, %c0_15] : memref<1x18x18x128xbf16, #tpu.memory_space<vmem>>, vector<1x16x16x128xbf16>
    %13 = vector.shape_cast %12 : vector<1x16x16x128xbf16> to vector<256x128xbf16>
    %c1_16 = arith.constant 1 : index
    %c0_17 = arith.constant 0 : index
    %c0_18 = arith.constant 0 : index
    %14 = vector.load %arg2[%c1_16, %c0_17, %c0_18] : memref<8x128x128xbf16, #tpu.memory_space<vmem>>, vector<1x128x128xbf16>
    %15 = vector.shape_cast %14 : vector<1x128x128xbf16> to vector<128x128xbf16>
    %cst_19 = arith.constant dense<0.000000e+00> : vector<256x128xf32>
    %16 = tpu.matmul %13, %15, %cst_19 {dimension_numbers = #tpu.dot_dimension_numbers<[1], [0], [0], [1], [0, 0, 1, 1], [], []>} : vector<256x128xbf16>, vector<128x128xbf16>, vector<256x128xf32> -> vector<256x128xf32>
    %17 = arith.addf %11, %16 : vector<256x128xf32>
    %c0_20 = arith.constant 0 : index
    %c0_21 = arith.constant 0 : index
    %c2 = arith.constant 2 : index
    %c0_22 = arith.constant 0 : index
    %18 = vector.load %arg1[%c0_20, %c0_21, %c2, %c0_22] : memref<1x18x18x128xbf16, #tpu.memory_space<vmem>>, vector<1x16x16x128xbf16>
    %19 = vector.shape_cast %18 : vector<1x16x16x128xbf16> to vector<256x128xbf16>
    %c2_23 = arith.constant 2 : index
    %c0_24 = arith.constant 0 : index
    %c0_25 = arith.constant 0 : index
    %20 = vector.load %arg2[%c2_23, %c0_24, %c0_25] : memref<8x128x128xbf16, #tpu.memory_space<vmem>>, vector<1x128x128xbf16>
    %21 = vector.shape_cast %20 : vector<1x128x128xbf16> to vector<128x128xbf16>
    %cst_26 = arith.constant dense<0.000000e+00> : vector<256x128xf32>
    %22 = tpu.matmul %19, %21, %cst_26 {dimension_numbers = #tpu.dot_dimension_numbers<[1], [0], [0], [1], [0, 0, 1, 1], [], []>} : vector<256x128xbf16>, vector<128x128xbf16>, vector<256x128xf32> -> vector<256x128xf32>
    %23 = arith.addf %17, %22 : vector<256x128xf32>
    %c0_27 = arith.constant 0 : index
    %c1_28 = arith.constant 1 : index
    %c0_29 = arith.constant 0 : index
    %c0_30 = arith.constant 0 : index
    %24 = vector.load %arg1[%c0_27, %c1_28, %c0_29, %c0_30] : memref<1x18x18x128xbf16, #tpu.memory_space<vmem>>, vector<1x16x16x128xbf16>
    %25 = vector.shape_cast %24 : vector<1x16x16x128xbf16> to vector<256x128xbf16>
    %c3 = arith.constant 3 : index
    %c0_31 = arith.constant 0 : index
    %c0_32 = arith.constant 0 : index
    %26 = vector.load %arg2[%c3, %c0_31, %c0_32] : memref<8x128x128xbf16, #tpu.memory_space<vmem>>, vector<1x128x128xbf16>
    %27 = vector.shape_cast %26 : vector<1x128x128xbf16> to vector<128x128xbf16>
    %cst_33 = arith.constant dense<0.000000e+00> : vector<256x128xf32>
    %28 = tpu.matmul %25, %27, %cst_33 {dimension_numbers = #tpu.dot_dimension_numbers<[1], [0], [0], [1], [0, 0, 1, 1], [], []>} : vector<256x128xbf16>, vector<128x128xbf16>, vector<256x128xf32> -> vector<256x128xf32>
    %29 = arith.addf %23, %28 : vector<256x128xf32>
    %c0_34 = arith.constant 0 : index
    %c1_35 = arith.constant 1 : index
    %c2_36 = arith.constant 2 : index
    %c0_37 = arith.constant 0 : index
    %30 = vector.load %arg1[%c0_34, %c1_35, %c2_36, %c0_37] : memref<1x18x18x128xbf16, #tpu.memory_space<vmem>>, vector<1x16x16x128xbf16>
    %31 = vector.shape_cast %30 : vector<1x16x16x128xbf16> to vector<256x128xbf16>
    %c4 = arith.constant 4 : index
    %c0_38 = arith.constant 0 : index
    %c0_39 = arith.constant 0 : index
    %32 = vector.load %arg2[%c4, %c0_38, %c0_39] : memref<8x128x128xbf16, #tpu.memory_space<vmem>>, vector<1x128x128xbf16>
    %33 = vector.shape_cast %32 : vector<1x128x128xbf16> to vector<128x128xbf16>
    %cst_40 = arith.constant dense<0.000000e+00> : vector<256x128xf32>
    %34 = tpu.matmul %31, %33, %cst_40 {dimension_numbers = #tpu.dot_dimension_numbers<[1], [0], [0], [1], [0, 0, 1, 1], [], []>} : vector<256x128xbf16>, vector<128x128xbf16>, vector<256x128xf32> -> vector<256x128xf32>
    %35 = arith.addf %29, %34 : vector<256x128xf32>
    %c0_41 = arith.constant 0 : index
    %c2_42 = arith.constant 2 : index
    %c0_43 = arith.constant 0 : index
    %c0_44 = arith.constant 0 : index
    %36 = vector.load %arg1[%c0_41, %c2_42, %c0_43, %c0_44] : memref<1x18x18x128xbf16, #tpu.memory_space<vmem>>, vector<1x16x16x128xbf16>
    %37 = vector.shape_cast %36 : vector<1x16x16x128xbf16> to vector<256x128xbf16>
    %c5 = arith.constant 5 : index
    %c0_45 = arith.constant 0 : index
    %c0_46 = arith.constant 0 : index
    %38 = vector.load %arg2[%c5, %c0_45, %c0_46] : memref<8x128x128xbf16, #tpu.memory_space<vmem>>, vector<1x128x128xbf16>
    %39 = vector.shape_cast %38 : vector<1x128x128xbf16> to vector<128x128xbf16>
    %cst_47 = arith.constant dense<0.000000e+00> : vector<256x128xf32>
    %40 = tpu.matmul %37, %39, %cst_47 {dimension_numbers = #tpu.dot_dimension_numbers<[1], [0], [0], [1], [0, 0, 1, 1], [], []>} : vector<256x128xbf16>, vector<128x128xbf16>, vector<256x128xf32> -> vector<256x128xf32>
    %41 = arith.addf %35, %40 : vector<256x128xf32>
    %c0_48 = arith.constant 0 : index
    %c2_49 = arith.constant 2 : index
    %c1_50 = arith.constant 1 : index
    %c0_51 = arith.constant 0 : index
    %42 = vector.load %arg1[%c0_48, %c2_49, %c1_50, %c0_51] : memref<1x18x18x128xbf16, #tpu.memory_space<vmem>>, vector<1x16x16x128xbf16>
    %43 = vector.shape_cast %42 : vector<1x16x16x128xbf16> to vector<256x128xbf16>
    %c6 = arith.constant 6 : index
    %c0_52 = arith.constant 0 : index
    %c0_53 = arith.constant 0 : index
    %44 = vector.load %arg2[%c6, %c0_52, %c0_53] : memref<8x128x128xbf16, #tpu.memory_space<vmem>>, vector<1x128x128xbf16>
    %45 = vector.shape_cast %44 : vector<1x128x128xbf16> to vector<128x128xbf16>
    %cst_54 = arith.constant dense<0.000000e+00> : vector<256x128xf32>
    %46 = tpu.matmul %43, %45, %cst_54 {dimension_numbers = #tpu.dot_dimension_numbers<[1], [0], [0], [1], [0, 0, 1, 1], [], []>} : vector<256x128xbf16>, vector<128x128xbf16>, vector<256x128xf32> -> vector<256x128xf32>
    %47 = arith.addf %41, %46 : vector<256x128xf32>
    %c0_55 = arith.constant 0 : index
    %c2_56 = arith.constant 2 : index
    %c2_57 = arith.constant 2 : index
    %c0_58 = arith.constant 0 : index
    %48 = vector.load %arg1[%c0_55, %c2_56, %c2_57, %c0_58] : memref<1x18x18x128xbf16, #tpu.memory_space<vmem>>, vector<1x16x16x128xbf16>
    %49 = vector.shape_cast %48 : vector<1x16x16x128xbf16> to vector<256x128xbf16>
    %c7 = arith.constant 7 : index
    %c0_59 = arith.constant 0 : index
    %c0_60 = arith.constant 0 : index
    %50 = vector.load %arg2[%c7, %c0_59, %c0_60] : memref<8x128x128xbf16, #tpu.memory_space<vmem>>, vector<1x128x128xbf16>
    %51 = vector.shape_cast %50 : vector<1x128x128xbf16> to vector<128x128xbf16>
    %cst_61 = arith.constant dense<0.000000e+00> : vector<256x128xf32>
    %52 = tpu.matmul %49, %51, %cst_61 {dimension_numbers = #tpu.dot_dimension_numbers<[1], [0], [0], [1], [0, 0, 1, 1], [], []>} : vector<256x128xbf16>, vector<128x128xbf16>, vector<256x128xf32> -> vector<256x128xf32>
    %53 = arith.addf %47, %52 : vector<256x128xf32>
    %54 = vector.shape_cast %53 : vector<256x128xf32> to vector<1x16x16x128xf32>
    %55 = arith.truncf %54 : vector<1x16x16x128xf32> to vector<1x16x16x128xbf16>
    %c0_62 = arith.constant 0 : index
    %c0_63 = arith.constant 0 : index
    %c0_64 = arith.constant 0 : index
    %c0_65 = arith.constant 0 : index
    %56 = vector.load %arg4[%c0_62, %c0_63, %c0_64, %c0_65] : memref<1x16x16x128xbf16, #tpu.memory_space<vmem>>, vector<1x16x16x128xbf16>
    tpu.vector_store %arg4[%c0_62, %c0_63, %c0_64, %c0_65], %55 {strides = array<i32>} : memref<1x16x16x128xbf16, #tpu.memory_space<vmem>>, vector<1x16x16x128xbf16>,
    %57 = vector.shape_cast %5 : vector<256x128xf32> to vector<1x16x16x128xf32>
    %58 = arith.truncf %57 : vector<1x16x16x128xf32> to vector<1x16x16x128xbf16>
    %c0_66 = arith.constant 0 : index
    %c0_67 = arith.constant 0 : index
    %c0_68 = arith.constant 0 : index
    %c0_69 = arith.constant 0 : index
    %59 = vector.load %arg5[%c0_66, %c0_67, %c0_68, %c0_69] : memref<1x16x16x128xbf16, #tpu.memory_space<vmem>>, vector<1x16x16x128xbf16>
    tpu.vector_store %arg5[%c0_66, %c0_67, %c0_68, %c0_69], %58 {strides = array<i32>} : memref<1x16x16x128xbf16, #tpu.memory_space<vmem>>, vector<1x16x16x128xbf16>,
    %cst_70 = arith.constant dense<0.000000e+00> : vector<128xf32>
    %60 = vector.multi_reduction <add>, %53, %cst_70 [0] : vector<256x128xf32> to vector<128xf32>
    %61 = vector.shape_cast %60 : vector<128xf32> to vector<1x128xf32>
    %cst_71 = arith.constant 3.906250e-03 : f32
    %62 = vector.broadcast %cst_71 : f32 to vector<1x128xf32>
    %63 = arith.mulf %61, %62 : vector<1x128xf32>
    %64 = vector.broadcast %63 : vector<1x128xf32> to vector<256x128xf32>
    %65 = arith.subf %53, %64 : vector<256x128xf32>
    %66 = arith.mulf %65, %65 : vector<256x128xf32>
    %cst_72 = arith.constant dense<0.000000e+00> : vector<128xf32>
    %67 = vector.multi_reduction <add>, %66, %cst_72 [0] : vector<256x128xf32> to vector<128xf32>
    %68 = vector.shape_cast %67 : vector<128xf32> to vector<1x128xf32>
    %cst_73 = arith.constant dense<0.000000e+00> : vector<128xf32>
    %69 = vector.multi_reduction <add>, %5, %cst_73 [0] : vector<256x128xf32> to vector<128xf32>
    %70 = vector.shape_cast %69 : vector<128xf32> to vector<1x128xf32>
    %cst_74 = arith.constant 3.906250e-03 : f32
    %71 = vector.broadcast %cst_74 : f32 to vector<1x128xf32>
    %72 = arith.mulf %70, %71 : vector<1x128xf32>
    %73 = vector.broadcast %72 : vector<1x128xf32> to vector<256x128xf32>
    %74 = arith.subf %5, %73 : vector<256x128xf32>
    %75 = arith.mulf %74, %74 : vector<256x128xf32>
    %cst_75 = arith.constant dense<0.000000e+00> : vector<128xf32>
    %76 = vector.multi_reduction <add>, %75, %cst_75 [0] : vector<256x128xf32> to vector<128xf32>
    %77 = vector.shape_cast %76 : vector<128xf32> to vector<1x128xf32>
    %78 = tpu.concatenate %63, %68, %72, %77 in 0 : vector<1x128xf32>, vector<1x128xf32>, vector<1x128xf32>, vector<1x128xf32> -> vector<4x128xf32>
    %c0_76 = arith.constant 0 : index
    %c0_77 = arith.constant 0 : index
    %c0_78 = arith.constant 0 : index
    %79 = vector.load %arg6[%c0_76, %c0_77, %c0_78] : memref<1x4x128xf32, #tpu.memory_space<vmem>>, vector<1x4x128xf32>
    %80 = vector.shape_cast %79 : vector<1x4x128xf32> to vector<4x128xf32>
    %81 = vector.shape_cast %78 : vector<4x128xf32> to vector<1x4x128xf32>
    tpu.vector_store %arg6[%c0_76, %c0_77, %c0_78], %81 {strides = array<i32>} : memref<1x4x128xf32, #tpu.memory_space<vmem>>, vector<1x4x128xf32>,
    return
  }
  func.func @transform_0(%arg0: i32) -> (i32, i32, i32, i32) {
    %c0_i32 = arith.constant 0 : i32
    %c0_i32_0 = arith.constant 0 : i32
    %c0_i32_1 = arith.constant 0 : i32
    %c0_i32_2 = arith.constant 0 : i32
    return %arg0, %c0_i32, %c0_i32_0, %c0_i32_1 : i32, i32, i32, i32
  }
  func.func @transform_1(%arg0: i32) -> (i32, i32, i32) {
    %c0_i32 = arith.constant 0 : i32
    %c0_i32_0 = arith.constant 0 : i32
    %c0_i32_1 = arith.constant 0 : i32
    %c0_i32_2 = arith.constant 0 : i32
    return %c0_i32, %c0_i32_0, %c0_i32_1 : i32, i32, i32
  }
  func.func @transform_2(%arg0: i32) -> (i32, i32) {
    %c0_i32 = arith.constant 0 : i32
    %c0_i32_0 = arith.constant 0 : i32
    %c0_i32_1 = arith.constant 0 : i32
    return %c0_i32, %c0_i32_0 : i32, i32
  }
  func.func @transform_3(%arg0: i32) -> (i32, i32, i32, i32) {
    %c0_i32 = arith.constant 0 : i32
    %c0_i32_0 = arith.constant 0 : i32
    %c0_i32_1 = arith.constant 0 : i32
    %c0_i32_2 = arith.constant 0 : i32
    return %arg0, %c0_i32, %c0_i32_0, %c0_i32_1 : i32, i32, i32, i32
  }
  func.func @transform_4(%arg0: i32) -> (i32, i32, i32, i32) {
    %c0_i32 = arith.constant 0 : i32
    %c0_i32_0 = arith.constant 0 : i32
    %c0_i32_1 = arith.constant 0 : i32
    %c0_i32_2 = arith.constant 0 : i32
    return %arg0, %c0_i32, %c0_i32_0, %c0_i32_1 : i32, i32, i32, i32
  }
  func.func @transform_5(%arg0: i32) -> (i32, i32, i32) {
    %c0_i32 = arith.constant 0 : i32
    %c0_i32_0 = arith.constant 0 : i32
    %c0_i32_1 = arith.constant 0 : i32
    return %arg0, %c0_i32, %c0_i32_0 : i32, i32, i32
  }
}

module attributes {stable_mosaic.version = 11 : i64} {
  func.func @_bn1_relu_conv2_kernel(%arg0: i32, %arg1: memref<1x16x16x128xbf16, #tpu.memory_space<vmem>>, %arg2: memref<1x128xf32, #tpu.memory_space<vmem>>, %arg3: memref<1x128xf32, #tpu.memory_space<vmem>>, %arg4: memref<9x128x128xbf16, #tpu.memory_space<vmem>>, %arg5: memref<1x16x16x128xbf16, #tpu.memory_space<vmem>>, %arg6: memref<1x2x128xf32, #tpu.memory_space<vmem>>, %arg7: memref<1x18x18x128xbf16, #tpu.memory_space<vmem>>) attributes {dimension_semantics = [#tpu.dimension_semantics<parallel>], iteration_bounds = array<i64: 2>, scalar_prefetch = 0 : i64, scratch_operands = 1 : i64, tpu.core_type = #tpu.core_type<tc>, window_params = [{transform_indices = @transform_0, window_bounds = array<i64: 1, 16, 16, 128>}, {pipeline_mode = #tpu.pipeline_mode<synchronous>, transform_indices = @transform_1, window_bounds = array<i64: 1, 128>}, {pipeline_mode = #tpu.pipeline_mode<synchronous>, transform_indices = @transform_2, window_bounds = array<i64: 1, 128>}, {pipeline_mode = #tpu.pipeline_mode<synchronous>, transform_indices = @transform_3, window_bounds = array<i64: 9, 128, 128>}, {transform_indices = @transform_4, window_bounds = array<i64: 1, 16, 16, 128>}, {transform_indices = @transform_5, window_bounds = array<i64: 1, 2, 128>}]} {
    %c0 = arith.constant 0 : index
    %c0_0 = arith.constant 0 : index
    %0 = vector.load %arg2[%c0, %c0_0] : memref<1x128xf32, #tpu.memory_space<vmem>>, vector<1x128xf32>
    %1 = vector.shape_cast %0 : vector<1x128xf32> to vector<1x1x1x128xf32>
    %c0_1 = arith.constant 0 : index
    %c0_2 = arith.constant 0 : index
    %2 = vector.load %arg3[%c0_1, %c0_2] : memref<1x128xf32, #tpu.memory_space<vmem>>, vector<1x128xf32>
    %3 = vector.shape_cast %2 : vector<1x128xf32> to vector<1x1x1x128xf32>
    %c0_3 = arith.constant 0 : index
    %c0_4 = arith.constant 0 : index
    %c0_5 = arith.constant 0 : index
    %c0_6 = arith.constant 0 : index
    %4 = vector.load %arg1[%c0_3, %c0_4, %c0_5, %c0_6] : memref<1x16x16x128xbf16, #tpu.memory_space<vmem>>, vector<1x16x16x128xbf16>
    %5 = arith.extf %4 : vector<1x16x16x128xbf16> to vector<1x16x16x128xf32>
    %6 = vector.broadcast %1 : vector<1x1x1x128xf32> to vector<1x16x16x128xf32>
    %7 = arith.mulf %5, %6 : vector<1x16x16x128xf32>
    %8 = vector.broadcast %3 : vector<1x1x1x128xf32> to vector<1x16x16x128xf32>
    %9 = arith.addf %7, %8 : vector<1x16x16x128xf32>
    %cst = arith.constant 0.000000e+00 : f32
    %10 = vector.broadcast %cst : f32 to vector<1x16x16x128xf32>
    %11 = arith.maximumf %9, %10 : vector<1x16x16x128xf32>
    %12 = arith.truncf %11 : vector<1x16x16x128xf32> to vector<1x16x16x128xbf16>
    %cst_7 = arith.constant 0.000000e+00 : bf16
    %13 = vector.broadcast %cst_7 : bf16 to vector<1x1x18x128xbf16>
    %c0_8 = arith.constant 0 : index
    %c0_9 = arith.constant 0 : index
    %c0_10 = arith.constant 0 : index
    %c0_11 = arith.constant 0 : index
    %14 = vector.load %arg7[%c0_8, %c0_9, %c0_10, %c0_11] : memref<1x18x18x128xbf16, #tpu.memory_space<vmem>>, vector<1x1x18x128xbf16>
    tpu.vector_store %arg7[%c0_8, %c0_9, %c0_10, %c0_11], %13 {strides = array<i32>} : memref<1x18x18x128xbf16, #tpu.memory_space<vmem>>, vector<1x1x18x128xbf16>,
    %cst_12 = arith.constant 0.000000e+00 : bf16
    %15 = vector.broadcast %cst_12 : bf16 to vector<1x1x18x128xbf16>
    %c0_13 = arith.constant 0 : index
    %c17 = arith.constant 17 : index
    %c0_14 = arith.constant 0 : index
    %c0_15 = arith.constant 0 : index
    %16 = vector.load %arg7[%c0_13, %c17, %c0_14, %c0_15] : memref<1x18x18x128xbf16, #tpu.memory_space<vmem>>, vector<1x1x18x128xbf16>
    tpu.vector_store %arg7[%c0_13, %c17, %c0_14, %c0_15], %15 {strides = array<i32>} : memref<1x18x18x128xbf16, #tpu.memory_space<vmem>>, vector<1x1x18x128xbf16>,
    %cst_16 = arith.constant 0.000000e+00 : bf16
    %17 = vector.broadcast %cst_16 : bf16 to vector<1x16x1x128xbf16>
    %c0_17 = arith.constant 0 : index
    %c1 = arith.constant 1 : index
    %c0_18 = arith.constant 0 : index
    %c0_19 = arith.constant 0 : index
    %18 = vector.load %arg7[%c0_17, %c1, %c0_18, %c0_19] : memref<1x18x18x128xbf16, #tpu.memory_space<vmem>>, vector<1x16x1x128xbf16>
    tpu.vector_store %arg7[%c0_17, %c1, %c0_18, %c0_19], %17 {strides = array<i32>} : memref<1x18x18x128xbf16, #tpu.memory_space<vmem>>, vector<1x16x1x128xbf16>,
    %cst_20 = arith.constant 0.000000e+00 : bf16
    %19 = vector.broadcast %cst_20 : bf16 to vector<1x16x1x128xbf16>
    %c0_21 = arith.constant 0 : index
    %c1_22 = arith.constant 1 : index
    %c17_23 = arith.constant 17 : index
    %c0_24 = arith.constant 0 : index
    %20 = vector.load %arg7[%c0_21, %c1_22, %c17_23, %c0_24] : memref<1x18x18x128xbf16, #tpu.memory_space<vmem>>, vector<1x16x1x128xbf16>
    tpu.vector_store %arg7[%c0_21, %c1_22, %c17_23, %c0_24], %19 {strides = array<i32>} : memref<1x18x18x128xbf16, #tpu.memory_space<vmem>>, vector<1x16x1x128xbf16>,
    %c0_25 = arith.constant 0 : index
    %c1_26 = arith.constant 1 : index
    %c1_27 = arith.constant 1 : index
    %c0_28 = arith.constant 0 : index
    %21 = vector.load %arg7[%c0_25, %c1_26, %c1_27, %c0_28] : memref<1x18x18x128xbf16, #tpu.memory_space<vmem>>, vector<1x16x16x128xbf16>
    tpu.vector_store %arg7[%c0_25, %c1_26, %c1_27, %c0_28], %12 {strides = array<i32>} : memref<1x18x18x128xbf16, #tpu.memory_space<vmem>>, vector<1x16x16x128xbf16>,
    %cst_29 = arith.constant 0.000000e+00 : f32
    %22 = vector.broadcast %cst_29 : f32 to vector<256x128xf32>
    %c0_30 = arith.constant 0 : index
    %c0_31 = arith.constant 0 : index
    %c0_32 = arith.constant 0 : index
    %c0_33 = arith.constant 0 : index
    %23 = vector.load %arg7[%c0_30, %c0_31, %c0_32, %c0_33] : memref<1x18x18x128xbf16, #tpu.memory_space<vmem>>, vector<1x16x16x128xbf16>
    %24 = vector.shape_cast %23 : vector<1x16x16x128xbf16> to vector<256x128xbf16>
    %c0_34 = arith.constant 0 : index
    %c0_35 = arith.constant 0 : index
    %c0_36 = arith.constant 0 : index
    %25 = vector.load %arg4[%c0_34, %c0_35, %c0_36] : memref<9x128x128xbf16, #tpu.memory_space<vmem>>, vector<1x128x128xbf16>
    %26 = vector.shape_cast %25 : vector<1x128x128xbf16> to vector<128x128xbf16>
    %cst_37 = arith.constant dense<0.000000e+00> : vector<256x128xf32>
    %27 = tpu.matmul %24, %26, %cst_37 {dimension_numbers = #tpu.dot_dimension_numbers<[1], [0], [0], [1], [0, 0, 1, 1], [], []>} : vector<256x128xbf16>, vector<128x128xbf16>, vector<256x128xf32> -> vector<256x128xf32>
    %28 = arith.addf %22, %27 : vector<256x128xf32>
    %c0_38 = arith.constant 0 : index
    %c0_39 = arith.constant 0 : index
    %c1_40 = arith.constant 1 : index
    %c0_41 = arith.constant 0 : index
    %29 = vector.load %arg7[%c0_38, %c0_39, %c1_40, %c0_41] : memref<1x18x18x128xbf16, #tpu.memory_space<vmem>>, vector<1x16x16x128xbf16>
    %30 = vector.shape_cast %29 : vector<1x16x16x128xbf16> to vector<256x128xbf16>
    %c1_42 = arith.constant 1 : index
    %c0_43 = arith.constant 0 : index
    %c0_44 = arith.constant 0 : index
    %31 = vector.load %arg4[%c1_42, %c0_43, %c0_44] : memref<9x128x128xbf16, #tpu.memory_space<vmem>>, vector<1x128x128xbf16>
    %32 = vector.shape_cast %31 : vector<1x128x128xbf16> to vector<128x128xbf16>
    %cst_45 = arith.constant dense<0.000000e+00> : vector<256x128xf32>
    %33 = tpu.matmul %30, %32, %cst_45 {dimension_numbers = #tpu.dot_dimension_numbers<[1], [0], [0], [1], [0, 0, 1, 1], [], []>} : vector<256x128xbf16>, vector<128x128xbf16>, vector<256x128xf32> -> vector<256x128xf32>
    %34 = arith.addf %28, %33 : vector<256x128xf32>
    %c0_46 = arith.constant 0 : index
    %c0_47 = arith.constant 0 : index
    %c2 = arith.constant 2 : index
    %c0_48 = arith.constant 0 : index
    %35 = vector.load %arg7[%c0_46, %c0_47, %c2, %c0_48] : memref<1x18x18x128xbf16, #tpu.memory_space<vmem>>, vector<1x16x16x128xbf16>
    %36 = vector.shape_cast %35 : vector<1x16x16x128xbf16> to vector<256x128xbf16>
    %c2_49 = arith.constant 2 : index
    %c0_50 = arith.constant 0 : index
    %c0_51 = arith.constant 0 : index
    %37 = vector.load %arg4[%c2_49, %c0_50, %c0_51] : memref<9x128x128xbf16, #tpu.memory_space<vmem>>, vector<1x128x128xbf16>
    %38 = vector.shape_cast %37 : vector<1x128x128xbf16> to vector<128x128xbf16>
    %cst_52 = arith.constant dense<0.000000e+00> : vector<256x128xf32>
    %39 = tpu.matmul %36, %38, %cst_52 {dimension_numbers = #tpu.dot_dimension_numbers<[1], [0], [0], [1], [0, 0, 1, 1], [], []>} : vector<256x128xbf16>, vector<128x128xbf16>, vector<256x128xf32> -> vector<256x128xf32>
    %40 = arith.addf %34, %39 : vector<256x128xf32>
    %c0_53 = arith.constant 0 : index
    %c1_54 = arith.constant 1 : index
    %c0_55 = arith.constant 0 : index
    %c0_56 = arith.constant 0 : index
    %41 = vector.load %arg7[%c0_53, %c1_54, %c0_55, %c0_56] : memref<1x18x18x128xbf16, #tpu.memory_space<vmem>>, vector<1x16x16x128xbf16>
    %42 = vector.shape_cast %41 : vector<1x16x16x128xbf16> to vector<256x128xbf16>
    %c3 = arith.constant 3 : index
    %c0_57 = arith.constant 0 : index
    %c0_58 = arith.constant 0 : index
    %43 = vector.load %arg4[%c3, %c0_57, %c0_58] : memref<9x128x128xbf16, #tpu.memory_space<vmem>>, vector<1x128x128xbf16>
    %44 = vector.shape_cast %43 : vector<1x128x128xbf16> to vector<128x128xbf16>
    %cst_59 = arith.constant dense<0.000000e+00> : vector<256x128xf32>
    %45 = tpu.matmul %42, %44, %cst_59 {dimension_numbers = #tpu.dot_dimension_numbers<[1], [0], [0], [1], [0, 0, 1, 1], [], []>} : vector<256x128xbf16>, vector<128x128xbf16>, vector<256x128xf32> -> vector<256x128xf32>
    %46 = arith.addf %40, %45 : vector<256x128xf32>
    %c0_60 = arith.constant 0 : index
    %c1_61 = arith.constant 1 : index
    %c1_62 = arith.constant 1 : index
    %c0_63 = arith.constant 0 : index
    %47 = vector.load %arg7[%c0_60, %c1_61, %c1_62, %c0_63] : memref<1x18x18x128xbf16, #tpu.memory_space<vmem>>, vector<1x16x16x128xbf16>
    %48 = vector.shape_cast %47 : vector<1x16x16x128xbf16> to vector<256x128xbf16>
    %c4 = arith.constant 4 : index
    %c0_64 = arith.constant 0 : index
    %c0_65 = arith.constant 0 : index
    %49 = vector.load %arg4[%c4, %c0_64, %c0_65] : memref<9x128x128xbf16, #tpu.memory_space<vmem>>, vector<1x128x128xbf16>
    %50 = vector.shape_cast %49 : vector<1x128x128xbf16> to vector<128x128xbf16>
    %cst_66 = arith.constant dense<0.000000e+00> : vector<256x128xf32>
    %51 = tpu.matmul %48, %50, %cst_66 {dimension_numbers = #tpu.dot_dimension_numbers<[1], [0], [0], [1], [0, 0, 1, 1], [], []>} : vector<256x128xbf16>, vector<128x128xbf16>, vector<256x128xf32> -> vector<256x128xf32>
    %52 = arith.addf %46, %51 : vector<256x128xf32>
    %c0_67 = arith.constant 0 : index
    %c1_68 = arith.constant 1 : index
    %c2_69 = arith.constant 2 : index
    %c0_70 = arith.constant 0 : index
    %53 = vector.load %arg7[%c0_67, %c1_68, %c2_69, %c0_70] : memref<1x18x18x128xbf16, #tpu.memory_space<vmem>>, vector<1x16x16x128xbf16>
    %54 = vector.shape_cast %53 : vector<1x16x16x128xbf16> to vector<256x128xbf16>
    %c5 = arith.constant 5 : index
    %c0_71 = arith.constant 0 : index
    %c0_72 = arith.constant 0 : index
    %55 = vector.load %arg4[%c5, %c0_71, %c0_72] : memref<9x128x128xbf16, #tpu.memory_space<vmem>>, vector<1x128x128xbf16>
    %56 = vector.shape_cast %55 : vector<1x128x128xbf16> to vector<128x128xbf16>
    %cst_73 = arith.constant dense<0.000000e+00> : vector<256x128xf32>
    %57 = tpu.matmul %54, %56, %cst_73 {dimension_numbers = #tpu.dot_dimension_numbers<[1], [0], [0], [1], [0, 0, 1, 1], [], []>} : vector<256x128xbf16>, vector<128x128xbf16>, vector<256x128xf32> -> vector<256x128xf32>
    %58 = arith.addf %52, %57 : vector<256x128xf32>
    %c0_74 = arith.constant 0 : index
    %c2_75 = arith.constant 2 : index
    %c0_76 = arith.constant 0 : index
    %c0_77 = arith.constant 0 : index
    %59 = vector.load %arg7[%c0_74, %c2_75, %c0_76, %c0_77] : memref<1x18x18x128xbf16, #tpu.memory_space<vmem>>, vector<1x16x16x128xbf16>
    %60 = vector.shape_cast %59 : vector<1x16x16x128xbf16> to vector<256x128xbf16>
    %c6 = arith.constant 6 : index
    %c0_78 = arith.constant 0 : index
    %c0_79 = arith.constant 0 : index
    %61 = vector.load %arg4[%c6, %c0_78, %c0_79] : memref<9x128x128xbf16, #tpu.memory_space<vmem>>, vector<1x128x128xbf16>
    %62 = vector.shape_cast %61 : vector<1x128x128xbf16> to vector<128x128xbf16>
    %cst_80 = arith.constant dense<0.000000e+00> : vector<256x128xf32>
    %63 = tpu.matmul %60, %62, %cst_80 {dimension_numbers = #tpu.dot_dimension_numbers<[1], [0], [0], [1], [0, 0, 1, 1], [], []>} : vector<256x128xbf16>, vector<128x128xbf16>, vector<256x128xf32> -> vector<256x128xf32>
    %64 = arith.addf %58, %63 : vector<256x128xf32>
    %c0_81 = arith.constant 0 : index
    %c2_82 = arith.constant 2 : index
    %c1_83 = arith.constant 1 : index
    %c0_84 = arith.constant 0 : index
    %65 = vector.load %arg7[%c0_81, %c2_82, %c1_83, %c0_84] : memref<1x18x18x128xbf16, #tpu.memory_space<vmem>>, vector<1x16x16x128xbf16>
    %66 = vector.shape_cast %65 : vector<1x16x16x128xbf16> to vector<256x128xbf16>
    %c7 = arith.constant 7 : index
    %c0_85 = arith.constant 0 : index
    %c0_86 = arith.constant 0 : index
    %67 = vector.load %arg4[%c7, %c0_85, %c0_86] : memref<9x128x128xbf16, #tpu.memory_space<vmem>>, vector<1x128x128xbf16>
    %68 = vector.shape_cast %67 : vector<1x128x128xbf16> to vector<128x128xbf16>
    %cst_87 = arith.constant dense<0.000000e+00> : vector<256x128xf32>
    %69 = tpu.matmul %66, %68, %cst_87 {dimension_numbers = #tpu.dot_dimension_numbers<[1], [0], [0], [1], [0, 0, 1, 1], [], []>} : vector<256x128xbf16>, vector<128x128xbf16>, vector<256x128xf32> -> vector<256x128xf32>
    %70 = arith.addf %64, %69 : vector<256x128xf32>
    %c0_88 = arith.constant 0 : index
    %c2_89 = arith.constant 2 : index
    %c2_90 = arith.constant 2 : index
    %c0_91 = arith.constant 0 : index
    %71 = vector.load %arg7[%c0_88, %c2_89, %c2_90, %c0_91] : memref<1x18x18x128xbf16, #tpu.memory_space<vmem>>, vector<1x16x16x128xbf16>
    %72 = vector.shape_cast %71 : vector<1x16x16x128xbf16> to vector<256x128xbf16>
    %c8 = arith.constant 8 : index
    %c0_92 = arith.constant 0 : index
    %c0_93 = arith.constant 0 : index
    %73 = vector.load %arg4[%c8, %c0_92, %c0_93] : memref<9x128x128xbf16, #tpu.memory_space<vmem>>, vector<1x128x128xbf16>
    %74 = vector.shape_cast %73 : vector<1x128x128xbf16> to vector<128x128xbf16>
    %cst_94 = arith.constant dense<0.000000e+00> : vector<256x128xf32>
    %75 = tpu.matmul %72, %74, %cst_94 {dimension_numbers = #tpu.dot_dimension_numbers<[1], [0], [0], [1], [0, 0, 1, 1], [], []>} : vector<256x128xbf16>, vector<128x128xbf16>, vector<256x128xf32> -> vector<256x128xf32>
    %76 = arith.addf %70, %75 : vector<256x128xf32>
    %77 = vector.shape_cast %76 : vector<256x128xf32> to vector<1x16x16x128xf32>
    %78 = arith.truncf %77 : vector<1x16x16x128xf32> to vector<1x16x16x128xbf16>
    %c0_95 = arith.constant 0 : index
    %c0_96 = arith.constant 0 : index
    %c0_97 = arith.constant 0 : index
    %c0_98 = arith.constant 0 : index
    %79 = vector.load %arg5[%c0_95, %c0_96, %c0_97, %c0_98] : memref<1x16x16x128xbf16, #tpu.memory_space<vmem>>, vector<1x16x16x128xbf16>
    tpu.vector_store %arg5[%c0_95, %c0_96, %c0_97, %c0_98], %78 {strides = array<i32>} : memref<1x16x16x128xbf16, #tpu.memory_space<vmem>>, vector<1x16x16x128xbf16>,
    %cst_99 = arith.constant dense<0.000000e+00> : vector<128xf32>
    %80 = vector.multi_reduction <add>, %76, %cst_99 [0] : vector<256x128xf32> to vector<128xf32>
    %81 = vector.shape_cast %80 : vector<128xf32> to vector<1x128xf32>
    %cst_100 = arith.constant 3.906250e-03 : f32
    %82 = vector.broadcast %cst_100 : f32 to vector<1x128xf32>
    %83 = arith.mulf %81, %82 : vector<1x128xf32>
    %84 = vector.broadcast %83 : vector<1x128xf32> to vector<256x128xf32>
    %85 = arith.subf %76, %84 : vector<256x128xf32>
    %86 = arith.mulf %85, %85 : vector<256x128xf32>
    %cst_101 = arith.constant dense<0.000000e+00> : vector<128xf32>
    %87 = vector.multi_reduction <add>, %86, %cst_101 [0] : vector<256x128xf32> to vector<128xf32>
    %88 = vector.shape_cast %87 : vector<128xf32> to vector<1x128xf32>
    %89 = tpu.concatenate %83, %88 in 0 : vector<1x128xf32>, vector<1x128xf32> -> vector<2x128xf32>
    %c0_102 = arith.constant 0 : index
    %c0_103 = arith.constant 0 : index
    %c0_104 = arith.constant 0 : index
    %90 = vector.load %arg6[%c0_102, %c0_103, %c0_104] : memref<1x2x128xf32, #tpu.memory_space<vmem>>, vector<1x2x128xf32>
    %91 = vector.shape_cast %90 : vector<1x2x128xf32> to vector<2x128xf32>
    %92 = vector.shape_cast %89 : vector<2x128xf32> to vector<1x2x128xf32>
    tpu.vector_store %arg6[%c0_102, %c0_103, %c0_104], %92 {strides = array<i32>} : memref<1x2x128xf32, #tpu.memory_space<vmem>>, vector<1x2x128xf32>,
    return
  }
  func.func @transform_0(%arg0: i32) -> (i32, i32, i32, i32) {
    %c0_i32 = arith.constant 0 : i32
    %c0_i32_0 = arith.constant 0 : i32
    %c0_i32_1 = arith.constant 0 : i32
    %c0_i32_2 = arith.constant 0 : i32
    return %arg0, %c0_i32, %c0_i32_0, %c0_i32_1 : i32, i32, i32, i32
  }
  func.func @transform_1(%arg0: i32) -> (i32, i32) {
    %c0_i32 = arith.constant 0 : i32
    %c0_i32_0 = arith.constant 0 : i32
    %c0_i32_1 = arith.constant 0 : i32
    return %c0_i32, %c0_i32_0 : i32, i32
  }
  func.func @transform_2(%arg0: i32) -> (i32, i32) {
    %c0_i32 = arith.constant 0 : i32
    %c0_i32_0 = arith.constant 0 : i32
    %c0_i32_1 = arith.constant 0 : i32
    return %c0_i32, %c0_i32_0 : i32, i32
  }
  func.func @transform_3(%arg0: i32) -> (i32, i32, i32) {
    %c0_i32 = arith.constant 0 : i32
    %c0_i32_0 = arith.constant 0 : i32
    %c0_i32_1 = arith.constant 0 : i32
    %c0_i32_2 = arith.constant 0 : i32
    return %c0_i32, %c0_i32_0, %c0_i32_1 : i32, i32, i32
  }
  func.func @transform_4(%arg0: i32) -> (i32, i32, i32, i32) {
    %c0_i32 = arith.constant 0 : i32
    %c0_i32_0 = arith.constant 0 : i32
    %c0_i32_1 = arith.constant 0 : i32
    %c0_i32_2 = arith.constant 0 : i32
    return %arg0, %c0_i32, %c0_i32_0, %c0_i32_1 : i32, i32, i32, i32
  }
  func.func @transform_5(%arg0: i32) -> (i32, i32, i32) {
    %c0_i32 = arith.constant 0 : i32
    %c0_i32_0 = arith.constant 0 : i32
    %c0_i32_1 = arith.constant 0 : i32
    return %arg0, %c0_i32, %c0_i32_0 : i32, i32, i32
  }
}

</mosaic_0001>

<bundles_post_ra>
// kernel: resnet_cell_forward.3
= control target key start
LH: loop header
LB: loop body
LE: loop exit
PB: predicated region body
PF: predicated region fallthrough
CT: control target
= control target key end

     0   :  { %s6534_s18 = smov 0   ;;  %s8193_s0 = inlined_call_operand.vmem [shape: bf16[2,16,16,128], index: 0, kind: input, shape index: {}]   ;;  %s8194_s1 = inlined_call_operand.vmem [shape: f32[1,128], index: 1, kind: input, shape index: {}]   ;;  %s8195_s2 = inlined_call_operand.vmem [shape: f32[1,128], index: 2, kind: input, shape index: {}]   ;;  %s8196_s3 = inlined_call_operand.vmem [shape: bf16[9,128,128], index: 3, kind: input, shape index: {}]   ;;  %s8197_s4 = inlined_call_operand.vmem [shape: bf16[2,16,16,128], index: 4, kind: output, shape index: {0}]   ;;  %s8198_s5 = inlined_call_operand.vmem [shape: f32[2,2,128], index: 5, kind: output, shape index: {1}]  }
   0x1 LB: > { %s5434_s19 = sadd.s32 4294967295, %s6501_s18   ;;  %p5438_p0 = scmp.ge.s32.totalorder %s6501_s18, 1  ;;  %s6501_s18 = sphi %s6534_s18, %s16_s18  }
   0x2   : > { %p190_p1 = scmp.lt.s32.totalorder %s6501_s18, 3 }
   0x4   : > { %p191_p2 = pnand %p5438_p0, %p190_p1 }
   0x6   : > { %194 = sbr.rel (%p191_p2) target bundleno = 947 (0x3b3), region = 36 }
   0xb   : > { %v6135_v0 = vld [vmem:[%s8196_s3 + $0x78] sm:$0xff]  ;;  %p222_p3 = scmp.lt.s32.totalorder %s5434_s19, 1  ;;  %vm445_vm0 = vcmask 1040384   ;;  %vm446_vm1 = vsmask.f32 256  ;;  %v6134_v1 = vld [vmem:[%s8196_s3 + $0x70] sm:$0xff] }
   0xc   : > { %6398 = vmatpush.bf16.msra.mxu1 %v6135_v0  ;;  %6399 = vmatpush.bf16.msra.mxu2 %v6135_v0  ;;  %vm6553_vm2 = vmand %vm445_vm0, %vm446_vm1  ;;  %v457_v3 = vld [vmem:[#allocation2 + $0x30] sm:$0x1]  ;;  %vm496_vm3 = vsmask.f32 7938  ;;  %v6567_v4 = vld [vmem:[%s8194_s1] ss:$0 sm:$0xff] }
   0xd   : > { %s8242_s19 = smov (!%p222_p3, %s5434_s19), 1  ;;  %6400 = vmatpush.bf16.msra.mxu3 %v6135_v0  ;;  %1562 = vmatpush.bf16.msra.mxu0 %v6135_v0  ;;  %v458_v5 = vsel %vm6553_vm2, 0, %v457_v3  ;;  %vm6573_vm4 = vmand %vm445_vm0, %vm496_vm3  ;;  %v507_v7 = vld [vmem:[#allocation2 + $0x38] sm:$0x1]  ;;  %v6133_v8 = vld [vmem:[%s8196_s3 + $0x68] sm:$0xff]  ;;  %v6503_v22 = vmov 0  }
   0xe   : > { %s6102_s24 = sshll.u32 %s8242_s19, 7  ;;  %459 = vst [vmem:[#allocation2 + $0x30] sm:$0x1] %v458_v5  ;;  %v508_v10 = vsel %vm6573_vm4, 0, %v507_v7  ;;  %v6586_v13 = vld [vmem:[%s8195_s2] ss:$0 sm:$0xff] }
   0xf   : > { %s6562_s27 = scalar_lea.vmem %s8193_s0, %s6102_s24  ;;  %509 = vst [vmem:[#allocation2 + $0x38] sm:$0x1] %v508_v10  ;;  %v469_v18 = vld [vmem:[#allocation2 + $0x60] sm:$0x1]  ;;  %v519_v19 = vld [vmem:[#allocation2 + $0x68] sm:$0x1]  ;;  %s7805_s9 = scalar_lea.vmem %s8197_s4, %s6102_s24 }
  0x10   : > { %6401 = vmatpush.bf16.msra.mxu1 %v6134_v1  ;;  %6402 = vmatpush.bf16.msra.mxu2 %v6134_v1  ;;  %v6370_v9 = vld [vmem:[%s6562_s27 + $0x18] sm:$0xff]   ;;  %437 = vst [vmem:[#allocation2] sm:$0xf] %v6503_v22  ;;  %v470_v25 = vsel %vm6553_vm2, 0, %v469_v18  ;;  %v520_v26 = vsel %vm6573_vm4, 0, %v519_v19  ;;  %v6132_v28 = vld [vmem:[%s8196_s3 + $0x60] sm:$0xff] }
  0x11   : > { %6403 = vmatpush.bf16.msra.mxu3 %v6134_v1  ;;  %1563 = vmatpush.bf16.msra.mxu0 %v6134_v1  ;;  %v6238_v11 = vunpack.c.l.bf16 %v6370_v9  ;;  %v6239_v12 = vunpack.c.h.bf16 %v6370_v9  ;;  %v6374_v14 = vld [vmem:[%s6562_s27 + $0x38] sm:$0xff]   ;;  %v481_v27 = vld [vmem:[#allocation2 + $0x90] sm:$0x1]  ;;  %vm868_vm5 = vcmask 1043456   ;;  %471 = vst [vmem:[#allocation2 + $0x60] sm:$0x1] %v470_v25 }
  0x12   : > { %v6378_v15 = vld [vmem:[%s6562_s27 + $0x58] sm:$0xff]   ;;  %v6254_v16 = vunpack.c.l.bf16 %v6374_v14  ;;  %v6255_v17 = vunpack.c.h.bf16 %v6374_v14  ;;  %v6604_v32 = vld [vmem:[%s6562_s27 + $0x20] sm:$0xff]   ;;  %vm546_vm6 = vsmask.f32 4368  ;;  %521 = vst [vmem:[#allocation2 + $0x68] sm:$0x1] %v520_v26  ;;  %vm6646_vm8 = vmand %vm868_vm5, %vm496_vm3 }
  0x13   : > { %v6270_v20 = vunpack.c.l.bf16 %v6378_v15  ;;  %v6271_v21 = vunpack.c.h.bf16 %v6378_v15  ;;  %v312_v23 = vmul.f32 %v6567_v4, %v6238_v11  ;;  %v313_v24 = vmul.f32 %v6567_v4, %v6239_v12  ;;  %v531_v36 = vld [vmem:[#allocation2 + $0x98] sm:$0x1]  ;;  %438 = vst [vmem:[#allocation2 + $0x4] sm:$0xf] %v6503_v22  ;;  %v6130_v59 = vld [vmem:[%s8196_s3 + $0x50] sm:$0xff]  ;;  %vm6634_vm7 = vmor %vm446_vm1, %vm546_vm6  ;;  %s5443_s24 = sshll.u32 %s8242_s19, 1 }
  0x14   : > { %6404 = vmatpush.bf16.msra.mxu1 %v6133_v8  ;;  %6405 = vmatpush.bf16.msra.mxu2 %v6133_v8  ;;  %v320_v29 = vmul.f32 %v6567_v4, %v6254_v16  ;;  %v321_v30 = vmul.f32 %v6567_v4, %v6255_v17  ;;  %v482_v40 = vsel %vm6553_vm2, 0, %v481_v27  ;;  %v6242_v44 = vunpack.c.l.bf16 %v6604_v32  ;;  %v6131_v45 = vld [vmem:[%s8196_s3 + $0x58] sm:$0xff]  ;;  %439 = vst [vmem:[#allocation2 + $0x8] sm:$0x1] %v6503_v22  ;;  %v6129_v15 = vld [vmem:[%s8196_s3 + $0x48] sm:$0xff]  ;;  %v6208_v6 = vld [vmem:[%s8196_s3 + $0x1c0] sm:$0xff]  ;;  %s235_s12 = scalar_lea.vmem %s8198_s5, %s5443_s24 }
  0x15   : > { %v328_v31 = vmul.f32 %v6567_v4, %v6270_v20  ;;  %6406 = vmatpush.bf16.msra.mxu3 %v6133_v8  ;;  %1564 = vmatpush.bf16.msra.mxu0 %v6133_v8  ;;  %v347_v33 = vadd.f32 %v6586_v13, %v312_v23  ;;  %v348_v34 = vadd.f32 %v6586_v13, %v313_v24  ;;  %v532_v49 = vsel %vm6573_vm4, 0, %v531_v36  ;;  %v891_v0 = vld [vmem:[#allocation2 + $0x30] sm:$0xf] }
  0x16   : > { %v329_v35 = vmul.f32 %v6567_v4, %v6271_v21  ;;  %v355_v37 = vadd.f32 %v6586_v13, %v320_v29  ;;  %v356_v38 = vadd.f32 %v6586_v13, %v321_v30  ;;  %483 = vst [vmem:[#allocation2 + $0x90] sm:$0x1] %v482_v40  ;;  %v6243_v54 = vunpack.c.h.bf16 %v6604_v32  ;;  %v895_v11 = vld [vmem:[#allocation2 + $0x38] sm:$0x1]  ;;  %v6142_v32 = vld [vmem:[%s8196_s3 + $0xb0] sm:$0xff] }
  0x17   : > { %v363_v39 = vadd.f32 %v6586_v13, %v328_v31  ;;  %v379_v41 = vmax.f32 %v347_v33, 0.0  ;;  %v380_v42 = vmax.f32 %v348_v34, 0.0  ;;  %533 = vst [vmem:[#allocation2 + $0x98] sm:$0x1] %v532_v49  ;;  %v6622_v53 = vld [vmem:[#allocation2] sm:$0xf] }
  0x18   : > { %v364_v43 = vadd.f32 %v6586_v13, %v329_v35  ;;  %6407 = vmatpush.bf16.msra.mxu1 %v6132_v28  ;;  %6408 = vmatpush.bf16.msra.mxu2 %v6132_v28  ;;  %v387_v46 = vmax.f32 %v355_v37, 0.0  ;;  %v388_v47 = vmax.f32 %v356_v38, 0.0  ;;  %v1050_v58 = vshrl.u32 %v6622_v53, 16  ;;  %v919_v19 = vld [vmem:[#allocation2 + $0x60] sm:$0xf] }
  0x19   : > { %v395_v48 = vmax.f32 %v363_v39, 0.0  ;;  %6409 = vmatpush.bf16.msra.mxu3 %v6132_v28  ;;  %1565 = vmatpush.bf16.msra.mxu0 %v6132_v28  ;;  %v411_v50 = vpack.c.bf16 %v379_v41, %v379_v41  ;;  %v412_v51 = vpack.c.bf16 %v380_v42, %v380_v42  ;;  %vm1046_vm9 = vsmask.f32 3328  ;;  %v923_v27 = vld [vmem:[#allocation2 + $0x68] sm:$0x1] }
  0x1a   : > { %v396_v52 = vmax.f32 %v364_v43, 0.0  ;;  %v419_v55 = vpack.c.bf16 %v387_v46, %v387_v46  ;;  %v420_v56 = vpack.c.bf16 %v388_v47, %v388_v47  ;;  %v6651_v21 = vrot.slane %v1050_v58, 4  ;;  %441 = vst [vmem:[#allocation2 + $0xcc] sm:$0xf] %v6503_v22  ;;  %v6655_v33 = vld [vmem:[#allocation2 + $0x3c] sm:$0x1] }
  0x1b   : > { %v6625_v57 = vpack.c.bf16 %v395_v48, %v395_v48  ;;  %v600_v60 = vshrl.u32 %v411_v50, 16  ;;  %v603_v61 = vshll.u32 %v411_v50, 16  ;;  %v608_v62 = vshrl.u32 %v412_v51, 16  ;;  %442 = vst [vmem:[#allocation2 + $0xd0] sm:$0xf] %v6503_v22  ;;  %v6128_v46 = vld [vmem:[%s8196_s3 + $0x40] sm:$0xff] }
  0x1c   : > { %v611_v63 = vshll.u32 %v412_v51, 16  ;;  %6410 = vmatpush.bf16.msra.mxu1 %v6131_v45  ;;  %6411 = vmatpush.bf16.msra.mxu2 %v6131_v45  ;;  %v668_v1 = vshrl.u32 %v419_v55, 16  ;;  %v671_v3 = vshll.u32 %v419_v55, 16  ;;  %v676_v5 = vshrl.u32 %v420_v56, 16  ;;  %v983_v38 = vld [vmem:[#allocation2 + $0x4] sm:$0xf] }
  0x1d   : > { %v679_v7 = vshll.u32 %v420_v56, 16  ;;  %6412 = vmatpush.bf16.msra.mxu3 %v6131_v45  ;;  %1566 = vmatpush.bf16.msra.mxu0 %v6131_v45  ;;  %v602_v9 = vrot.slane %v600_v60, 7  ;;  %v610_v10 = vrot.slane %v608_v62, 7  ;;  %v6638_v12 = vpack.c.bf16 %v396_v52, %v396_v52  ;;  %v1030_v39 = vld [vmem:[#allocation2 + $0x8] sm:$0x1]  ;;  %v6687_v62 = vld [vmem:[%s6562_s27 + $0x40] sm:$0xff]  }
  0x1e   : > { %v736_v14 = vshrl.u32 %v6625_v57, 16  ;;  %v670_v17 = vrot.slane %v668_v1, 7  ;;  %v678_v18 = vrot.slane %v676_v5, 7  ;;  %v739_v20 = vshll.u32 %v6625_v57, 16  ;;  %v947_v45 = vld [vmem:[#allocation2 + $0x90] sm:$0xf] }
  0x1f   : > { %v605_v23 = vor.u32 %v603_v61, %v602_v9  ;;  %v606_v24 = vrot.slane %v602_v9, 4  ;;  %v613_v25 = vor.u32 %v611_v63, %v610_v10  ;;  %v615_v26 = vrot.slane %v610_v10, 4  ;;  %v951_v50 = vld [vmem:[#allocation2 + $0x98] sm:$0x1]  ;;  %443 = vst [vmem:[#allocation2 + $0xd4] sm:$0x1] %v6503_v22 }
  0x20   : > { %vm1047_vm10 = vsmask.f32 7440  ;;  %6413 = vmatpush.bf16.msra.mxu1 %v6130_v59  ;;  %6414 = vmatpush.bf16.msra.mxu2 %v6130_v59  ;;  %v673_v28 = vor.u32 %v671_v3, %v670_v17  ;;  %v674_v29 = vrot.slane %v670_v17, 4  ;;  %v681_v30 = vor.u32 %v679_v7, %v678_v18  ;;  %v6167_v5 = vld [vmem:[%s8196_s3 + $0xf8] sm:$0xff] }
  0x21   : > { %v683_v31 = vrot.slane %v678_v18, 4  ;;  %6415 = vmatpush.bf16.msra.mxu3 %v6130_v59  ;;  %1567 = vmatpush.bf16.msra.mxu0 %v6130_v59  ;;  %v614_v34 = vsel %vm6634_vm7, %v606_v24, %v613_v25  ;;  %v892_v35 = vsel %vm6646_vm8, %v605_v23, %v891_v0  ;;  %v896_v36 = vsel %vm6553_vm2, %v615_v26, %v895_v11  ;;  %v6143_v59 = vld [vmem:[%s8196_s3 + $0xb8] sm:$0xff]  ;;  %vm6727_vm11 = vmor %vm1046_vm9, %vm1047_vm10 }
  0x22   : > { %v738_v37 = vrot.slane %v736_v14, 7  ;;  %893 = vst [vmem:[#allocation2 + $0x30] sm:$0xf] %v892_v35  ;;  %v682_v40 = vsel %vm6634_vm7, %v674_v29, %v681_v30  ;;  %v920_v41 = vsel %vm6646_vm8, %v673_v28, %v919_v19  ;;  %v744_v43 = vshrl.u32 %v6638_v12, 16  ;;  %v6127_v9 = vld [vmem:[%s8196_s3 + $0x38] sm:$0xff]  ;;  %v6708_v14 = vld [vmem:[%s6562_s27 + $0x60] sm:$0xff]  }
  0x23   : > { %v924_v42 = vsel %vm6553_vm2, %v683_v31, %v923_v27  ;;  %894 = vst [vmem:[#allocation2 + $0x34] sm:$0xf] %v614_v34  ;;  %v747_v49 = vshll.u32 %v6638_v12, 16  ;;  %v1053_v51 = vshll.u32 %v6622_v53, 16  ;;  %v1059_v55 = vshll.u32 %v983_v38, 16  ;;  %v6175_v10 = vld [vmem:[%s8196_s3 + $0x138] sm:$0xff] }
  0x24   : > { %v741_v47 = vor.u32 %v739_v20, %v738_v37  ;;  %v742_v48 = vrot.slane %v738_v37, 4  ;;  %6416 = vmatpush.bf16.msra.mxu1 %v6129_v15  ;;  %6417 = vmatpush.bf16.msra.mxu2 %v6129_v15  ;;  %897 = vst [vmem:[#allocation2 + $0x38] sm:$0x1] %v896_v36  ;;  %v746_v52 = vrot.slane %v744_v43, 7  ;;  %v1063_v56 = vshrl.u32 %v983_v38, 16  ;;  %v6126_v38 = vld [vmem:[%s8196_s3 + $0x30] sm:$0xff] }
  0x25   : > { %v1069_v57 = vshll.u32 %v1030_v39, 16  ;;  %6418 = vmatpush.bf16.msra.mxu3 %v6129_v15  ;;  %1568 = vmatpush.bf16.msra.mxu0 %v6129_v15  ;;  %921 = vst [vmem:[#allocation2 + $0x60] sm:$0xf] %v920_v41  ;;  %v1055_v60 = vrot.slane %v1053_v51, 5  ;;  %v314_v53 = vmul.f32 %v6567_v4, %v6242_v44  ;;  %v461_v61 = vsel %vm6553_vm2, 0, %v6655_v33 }
  0x26   : > { %v948_v58 = vsel %vm6646_vm8, %v741_v47, %v947_v45  ;;  %922 = vst [vmem:[#allocation2 + $0x64] sm:$0xf] %v682_v40  ;;  %v749_v63 = vor.u32 %v747_v49, %v746_v52  ;;  %v751_v0 = vrot.slane %v746_v52, 4  ;;  %v1061_v1 = vrot.slane %v1059_v55, 5 }
  0x27   : > { %v1065_v3 = vrot.slane %v1063_v56, 4  ;;  %925 = vst [vmem:[#allocation2 + $0x68] sm:$0x1] %v924_v42  ;;  %v1056_v7 = vor.u32 %v1055_v60, %v6651_v21  ;;  %v6693_v44 = vrot.slane %v1069_v57, 5  ;;  %v315_v11 = vmul.f32 %v6567_v4, %v6243_v54  ;;  %v6166_v54 = vld [vmem:[%s8196_s3 + $0xf0] sm:$0xff] }
  0x28   : > { %v6705_v12 = vadd.f32 %v6586_v13, %v314_v53  ;;  %6419 = vmatpush.bf16.msra.mxu1 %v6128_v46  ;;  %6420 = vmatpush.bf16.msra.mxu2 %v6128_v46  ;;  %v750_v15 = vsel %vm6634_vm7, %v742_v48, %v749_v63  ;;  %949 = vst [vmem:[#allocation2 + $0x90] sm:$0xf] %v948_v58  ;;  %v6258_v24 = vunpack.c.l.bf16 %v6687_v62  ;;  %v6259_v29 = vunpack.c.h.bf16 %v6687_v62 }
  0x29   : > { %v952_v17 = vsel %vm6553_vm2, %v751_v0, %v951_v50  ;;  %v1066_v18 = vor.u32 %v1065_v3, %v1061_v1  ;;  %6421 = vmatpush.bf16.msra.mxu3 %v6128_v46  ;;  %1569 = vmatpush.bf16.msra.mxu0 %v6128_v46  ;;  %v990_v19 = vld [vmem:[#allocation2 + $0x30] sm:$0xf]  ;;  %950 = vst [vmem:[#allocation2 + $0x94] sm:$0xf] %v750_v15  ;;  %v1057_v20 = vrot.slane %v1056_v7, 4  ;;  %v6274_v30 = vunpack.c.l.bf16 %v6708_v14 }
  0x2a   : > { %v6721_v21 = vadd.f32 %v6586_v13, %v315_v11  ;;  %v381_v23 = vmax.f32 %v6705_v12, 0.0  ;;  %v991_v25 = vld [vmem:[#allocation2 + $0x34] sm:$0xf]  ;;  %v1146_v27 = vshrl.u32 %v990_v19, 16  ;;  %v1149_v28 = vshll.u32 %v990_v19, 16 }
  0x2b   : > { %953 = vst [vmem:[#allocation2 + $0x98] sm:$0x1] %v952_v17  ;;  %v1034_v31 = vld [vmem:[#allocation2 + $0x38] sm:$0x1]  ;;  %v1155_v34 = vshll.u32 %v991_v25, 16  ;;  %v1159_v35 = vshrl.u32 %v991_v25, 16  ;;  %v1062_v36 = vsel %vm6727_vm11, %v1057_v20, %v1061_v1 }
  0x2c   : > { %2176 = vmatpush.bf16.msrb.mxu2 %v6143_v59  ;;  %v6735_v37 = vrot.slane %v1066_v18, 4  ;;  %1795 = vmatpush.bf16.msrb.mxu1 %v6127_v9  ;;  %v1148_v39 = vrot.slane %v1146_v27, 4  ;;  %v1151_v40 = vrot.slane %v1149_v28, 5  ;;  %v1165_v41 = vshll.u32 %v1034_v31, 16  ;;  %v998_v42 = vld [vmem:[#allocation2 + $0x60] sm:$0xf] }
  0x2d   : > { %2490 = vmatpush.bf16.msrb.mxu3 %v6167_v5  ;;  %3172 = vmatpush.bf16.msrb.mxu0 %v6175_v10  ;;  %v6740_v43 = vunpack.c.l.b16 %v1062_v36  ;;  %v1157_v45 = vrot.slane %v1155_v34, 5  ;;  %v1161_v46 = vrot.slane %v1159_v35, 4  ;;  %v999_v47 = vld [vmem:[#allocation2 + $0x64] sm:$0xf]  ;;  %v1242_v48 = vshrl.u32 %v998_v42, 16 }
  0x2e   : > { %v1245_v49 = vshll.u32 %v998_v42, 16  ;;  %v1152_v50 = vor.u32 %v1151_v40, %v1148_v39  ;;  %v1167_v51 = vrot.slane %v1165_v41, 5  ;;  %v1038_v52 = vld [vmem:[#allocation2 + $0x68] sm:$0x1]  ;;  %v1251_v55 = vshll.u32 %v999_v47, 16 }
  0x2f   : > { %v1255_v56 = vshrl.u32 %v999_v47, 16  ;;  %v1162_v57 = vor.u32 %v1161_v46, %v1157_v45  ;;  %v1244_v58 = vrot.slane %v1242_v48, 4  ;;  %v1261_v60 = vshll.u32 %v1038_v52, 16  ;;  %v1006_v53 = vld [vmem:[#allocation2 + $0x90] sm:$0xf] }
  0x30   : > { %2177 = vmatpush.bf16.msrb.mxu2 %v6142_v32  ;;  %v1247_v59 = vrot.slane %v1245_v49, 5  ;;  %1796 = vmatpush.bf16.msrb.mxu1 %v6126_v38  ;;  %v1153_v63 = vrot.slane %v1152_v50, 4  ;;  %v1253_v0 = vrot.slane %v1251_v55, 5  ;;  %v1007_v3 = vld [vmem:[#allocation2 + $0x94] sm:$0xf]  ;;  %v1338_v5 = vshrl.u32 %v1006_v53, 16 }
  0x31   : > { %2491 = vmatpush.bf16.msrb.mxu3 %v6166_v54  ;;  %v1257_v1 = vrot.slane %v1255_v56, 4  ;;  %v1163_v7 = vrot.slane %v1162_v57, 4  ;;  %v1263_v10 = vrot.slane %v1261_v60, 5  ;;  %v1341_v11 = vshll.u32 %v1006_v53, 16  ;;  %462 = vst [vmem:[#allocation2 + $0x3c] sm:$0x1] %v461_v61 }
  0x32   : > { %v1248_v9 = vor.u32 %v1247_v59, %v1244_v58  ;;  %v1158_v15 = vsel %vm6727_vm11, %v1153_v63, %v1157_v45  ;;  %v1042_v18 = vld [vmem:[#allocation2 + $0x98] sm:$0x1]  ;;  %v1340_v32 = vrot.slane %v1338_v5, 4  ;;  %v1347_v54 = vshll.u32 %v1007_v3, 16  ;;  %v510_v40 = vld [vmem:[#allocation2 + $0x44] sm:$0x1] }
  0x33   : > { %v1258_v17 = vor.u32 %v1257_v1, %v1253_v0  ;;  %v1168_v19 = vsel %vm6727_vm11, %v1163_v7, %v1167_v51  ;;  %v1458_v20 = vunpack.c.l.b16 %v1158_v15  ;;  %v1343_v27 = vrot.slane %v1341_v11, 5 }
  0x34   : > { %v1249_v25 = vrot.slane %v1248_v9, 4  ;;  %v1459_v28 = vunpack.c.l.b16 %v1168_v19  ;;  %v1349_v34 = vrot.slane %v1347_v54, 5  ;;  %v1351_v35 = vshrl.u32 %v1007_v3, 16 }
  0x35   : > { %v1259_v31 = vrot.slane %v1258_v17, 4  ;;  %v1344_v38 = vor.u32 %v1343_v27, %v1340_v32  ;;  %v1357_v22 = vshll.u32 %v1042_v18, 16  ;;  %v1072_v39 = vsel %vm6727_vm11, %v6735_v37, %v6693_v44  ;;  %v472_v37 = vld [vmem:[#allocation2 + $0x6c] sm:$0x1] }
  0x36   : > { %v1254_v36 = vsel %vm6727_vm11, %v1249_v25, %v1253_v0  ;;  %v1486_v41 = vpack.c.b16 %v1459_v28, %v1458_v20  ;;  %v1353_v42 = vrot.slane %v1351_v35, 4  ;;  %v1451_v48 = vunpack.c.l.b16 %v1072_v39  ;;  %v484_v20 = vld [vmem:[#allocation2 + $0x9c] sm:$0x1]  ;;  %v6225_v35 = vld [vmem:[%s6562_s27] sm:$0xff]  }
  0x37   : > { %v1264_v33 = vsel %vm6727_vm11, %v1259_v31, %v1263_v10  ;;  %v1466_v61 = vunpack.c.l.b16 %v1254_v36  ;;  %v1345_v46 = vrot.slane %v1344_v38, 4  ;;  %v1359_v47 = vrot.slane %v1357_v22, 5 }
  0x38   : > { %v1467_v45 = vunpack.c.l.b16 %v1264_v33  ;;  %1590 = vmatmul.bf16.vlgmr.msra.gmra.mxu1 %v1486_v41  ;;  %v1354_v49 = vor.u32 %v1353_v42, %v1349_v34  ;;  %v382_v50 = vmax.f32 %v6721_v21, 0.0  ;;  %v413_v51 = vpack.c.bf16 %v381_v23, %v381_v23  ;;  %v522_v23 = vld [vmem:[#allocation2 + $0x74] sm:$0x1]  ;;  %v898_v7 = vld [vmem:[#allocation2 + $0x3c] sm:$0xf] }
  0x39   : > { %v511_v44 = vsel %vm6573_vm4, 0, %v510_v40  ;;  %v1350_v55 = vsel %vm6727_vm11, %v1345_v46, %v1349_v34  ;;  %v1482_v56 = vpack.c.b16 %v1451_v48, %v6740_v43  ;;  %v322_v57 = vmul.f32 %v6567_v4, %v6258_v24 }
  0x3a   : > { %v1490_v52 = vpack.c.b16 %v1467_v45, %v1466_v61  ;;  %512 = vst [vmem:[#allocation2 + $0x44] sm:$0x1] %v511_v44  ;;  %v1355_v21 = vrot.slane %v1354_v49, 4  ;;  %v1474_v58 = vunpack.c.l.b16 %v1350_v55  ;;  %v414_v12 = vpack.c.bf16 %v382_v50, %v382_v50  ;;  %v448_v61 = vld [vmem:[#allocation2 + $0xc] sm:$0x1] }
  0x3b   : > { %v617_v59 = vshrl.u32 %v413_v51, 16  ;;  %1570 = vmatmul.bf16.vlgmr.msra.gmra.mxu0 %v1482_v56  ;;  %v620_v60 = vshll.u32 %v413_v51, 16  ;;  %v323_v53 = vmul.f32 %v6567_v4, %v6259_v29  ;;  %v357_v63 = vadd.f32 %v6586_v13, %v322_v57 }
  0x3c   : > { %1610 = vmatmul.bf16.vlgmr.msra.gmra.mxu2 %v1490_v52  ;;  %v473_v43 = vsel %vm6553_vm2, 0, %v472_v37  ;;  %v1360_v24 = vsel %vm6727_vm11, %v1355_v21, %v1359_v47  ;;  %v625_v1 = vshrl.u32 %v414_v12, 16  ;;  %v628_v3 = vshll.u32 %v414_v12, 16 }
  0x3d   : > { %v619_v0 = vrot.slane %v617_v59, 7  ;;  %474 = vst [vmem:[#allocation2 + $0x6c] sm:$0x1] %v473_v43  ;;  %v1475_v5 = vunpack.c.l.b16 %v1360_v24  ;;  %v358_v9 = vadd.f32 %v6586_v13, %v323_v53  ;;  %v389_v10 = vmax.f32 %v357_v63, 0.0  ;;  %v6141_v43 = vld [vmem:[%s8196_s3 + $0xa8] sm:$0xff] }
  0x3e   : > { %v523_v62 = vsel %vm6573_vm4, 0, %v522_v23  ;;  %v627_v15 = vrot.slane %v625_v1, 7  ;;  %v6275_v17 = vunpack.c.h.bf16 %v6708_v14  ;;  %v330_v19 = vmul.f32 %v6567_v4, %v6274_v30  ;;  %v534_v14 = vld [vmem:[#allocation2 + $0xa4] sm:$0x1]  ;;  %v6810_v24 = vld [vmem:[%s6562_s27 + $0x28] sm:$0xff]   ;;  %2178 = vmatpush.bf16.msrb.mxu2 %v6141_v43 }
  0x3f   : > { %v622_v29 = vor.u32 %v620_v60, %v619_v0  ;;  %v623_v11 = vrot.slane %v619_v0, 4  ;;  %524 = vst [vmem:[#allocation2 + $0x74] sm:$0x1] %v523_v62  ;;  %v1494_v18 = vpack.c.b16 %v1475_v5, %v1474_v58  ;;  %v390_v32 = vmax.f32 %v358_v9, 0.0 }
  0x40   : > { %v421_v54 = vpack.c.bf16 %v389_v10, %v389_v10  ;;  %v630_v25 = vor.u32 %v628_v3, %v627_v15  ;;  %v632_v27 = vrot.slane %v627_v15, 4  ;;  %v331_v34 = vmul.f32 %v6567_v4, %v6275_v17 }
  0x41   : > { %v899_v28 = vsel %vm6646_vm8, %v622_v29, %v898_v7  ;;  %v902_v31 = vld [vmem:[#allocation2 + $0x44] sm:$0x1]  ;;  %1630 = vmatmul.bf16.vlgmr.msra.gmra.mxu3 %v1494_v18  ;;  %v422_v36 = vpack.c.bf16 %v390_v32, %v390_v32  ;;  %v365_v39 = vadd.f32 %v6586_v13, %v330_v19  ;;  %v485_v33 = vsel %vm6553_vm2, 0, %v484_v20 }
  0x42   : > { %900 = vst [vmem:[#allocation2 + $0x3c] sm:$0xf] %v899_v28  ;;  %v685_v38 = vshrl.u32 %v421_v54, 16  ;;  %v688_v22 = vshll.u32 %v421_v54, 16  ;;  %v631_v30 = vsel %vm6634_vm7, %v623_v11, %v630_v25  ;;  %v903_v40 = vsel %vm6553_vm2, %v632_v27, %v902_v31 }
  0x43   : > { %v366_v41 = vadd.f32 %v6586_v13, %v331_v34  ;;  %901 = vst [vmem:[#allocation2 + $0x40] sm:$0xf] %v631_v30  ;;  %v693_v45 = vshrl.u32 %v422_v36, 16  ;;  %v696_v46 = vshll.u32 %v422_v36, 16  ;;  %v397_v47 = vmax.f32 %v365_v39, 0.0 }
  0x44   : > { %v687_v42 = vrot.slane %v685_v38, 7  ;;  %904 = vst [vmem:[#allocation2 + $0x44] sm:$0x1] %v903_v40  ;;  %v926_v48 = vld [vmem:[#allocation2 + $0x6c] sm:$0xf]  ;;  %v535_v50 = vsel %vm6573_vm4, 0, %v534_v14  ;;  %v6226_v51 = vunpack.c.l.bf16 %v6225_v35  ;;  %v6227_v44 = vunpack.c.h.bf16 %v6225_v35 }
  0x45   : > { %v398_v49 = vmax.f32 %v366_v41, 0.0  ;;  %v695_v55 = vrot.slane %v693_v45, 7  ;;  %v429_v56 = vpack.c.bf16 %v397_v47, %v397_v47  ;;  %486 = vst [vmem:[#allocation2 + $0x9c] sm:$0x1] %v485_v33  ;;  %v449_v59 = vsel %vm6553_vm2, 0, %v448_v61 }
  0x46   : > { %v690_v37 = vor.u32 %v688_v22, %v687_v42  ;;  %v691_v52 = vrot.slane %v687_v42, 4  ;;  %v930_v57 = vld [vmem:[#allocation2 + $0x74] sm:$0x1]  ;;  %536 = vst [vmem:[#allocation2 + $0xa4] sm:$0x1] %v535_v50  ;;  %v306_v58 = vmul.f32 %v6567_v4, %v6226_v51  ;;  %v307_v12 = vmul.f32 %v6567_v4, %v6227_v44 }
  0x47   : > { %v430_v21 = vpack.c.bf16 %v398_v49, %v398_v49  ;;  %v698_v23 = vor.u32 %v696_v46, %v695_v55  ;;  %v700_v60 = vrot.slane %v695_v55, 4  ;;  %v753_v63 = vshrl.u32 %v429_v56, 16  ;;  %450 = vst [vmem:[#allocation2 + $0xc] sm:$0x1] %v449_v59  ;;  %v498_v42 = vld [vmem:[#allocation2 + $0x14] sm:$0x1] }
  0x48   : > { %v927_v53 = vsel %vm6646_vm8, %v690_v37, %v926_v48  ;;  %v756_v1 = vshll.u32 %v429_v56, 16  ;;  %v341_v5 = vadd.f32 %v6586_v13, %v306_v58  ;;  %v342_v7 = vadd.f32 %v6586_v13, %v307_v12 }
  0x49   : > { %v992_v0 = vld [vmem:[#allocation2 + $0x3c] sm:$0xf]  ;;  %928 = vst [vmem:[#allocation2 + $0x6c] sm:$0xf] %v927_v53  ;;  %v761_v3 = vshrl.u32 %v430_v21, 16  ;;  %v699_v62 = vsel %vm6634_vm7, %v691_v52, %v698_v23  ;;  %v931_v29 = vsel %vm6553_vm2, %v700_v60, %v930_v57  ;;  %v755_v15 = vrot.slane %v753_v63, 7 }
  0x4a   : > { %v1170_v9 = vshrl.u32 %v992_v0, 16  ;;  %v1173_v10 = vshll.u32 %v992_v0, 16  ;;  %v993_v11 = vld [vmem:[#allocation2 + $0x40] sm:$0xf]  ;;  %929 = vst [vmem:[#allocation2 + $0x70] sm:$0xf] %v699_v62  ;;  %v6246_v18 = vunpack.c.l.bf16 %v6810_v24  ;;  %v6247_v32 = vunpack.c.h.bf16 %v6810_v24 }
  0x4b   : > { %v763_v17 = vrot.slane %v761_v3, 7  ;;  %v1035_v54 = vld [vmem:[#allocation2 + $0x44] sm:$0x1]  ;;  %v1179_v25 = vshll.u32 %v993_v11, 16  ;;  %v1183_v27 = vshrl.u32 %v993_v11, 16  ;;  %v758_v31 = vor.u32 %v756_v1, %v755_v15  ;;  %v6165_v60 = vld [vmem:[%s8196_s3 + $0xe8] sm:$0xff] }
  0x4c   : > { %v1172_v19 = vrot.slane %v1170_v9, 4  ;;  %v1175_v20 = vrot.slane %v1173_v10, 5  ;;  %v1189_v28 = vshll.u32 %v1035_v54, 16  ;;  %932 = vst [vmem:[#allocation2 + $0x74] sm:$0x1] %v931_v29  ;;  %v759_v34 = vrot.slane %v755_v15, 4  ;;  %2492 = vmatpush.bf16.msrb.mxu3 %v6165_v60 }
  0x4d   : > { %v764_v35 = vshll.u32 %v430_v21, 16  ;;  %v1181_v38 = vrot.slane %v1179_v25, 5  ;;  %v1185_v22 = vrot.slane %v1183_v27, 4  ;;  %v768_v39 = vrot.slane %v763_v17, 4  ;;  %v954_v14 = vld [vmem:[#allocation2 + $0x9c] sm:$0xf] }
  0x4e   : > { %v1176_v36 = vor.u32 %v1175_v20, %v1172_v19  ;;  %v1191_v30 = vrot.slane %v1189_v28, 5  ;;  %v955_v41 = vsel %vm6646_vm8, %v758_v31, %v954_v14  ;;  %v958_v33 = vld [vmem:[#allocation2 + $0xa4] sm:$0x1]  ;;  %v373_v61 = vmax.f32 %v341_v5, 0.0  ;;  %v6174_v3 = vld [vmem:[%s8196_s3 + $0x130] sm:$0xff]  ;;  %v6125_v62 = vld [vmem:[%s8196_s3 + $0x28] sm:$0xff] }
  0x4f   : > { %v766_v40 = vor.u32 %v764_v35, %v763_v17  ;;  %v1186_v46 = vor.u32 %v1185_v22, %v1181_v38  ;;  %956 = vst [vmem:[#allocation2 + $0x9c] sm:$0xf] %v955_v41  ;;  %v959_v48 = vsel %vm6553_vm2, %v768_v39, %v958_v33  ;;  %v374_v49 = vmax.f32 %v342_v7, 0.0  ;;  %v6140_v29 = vld [vmem:[%s8196_s3 + $0xa0] sm:$0xff]  ;;  %3173 = vmatpush.bf16.msrb.mxu0 %v6174_v3  ;;  %v6173_v20 = vld [vmem:[%s8196_s3 + $0x128] sm:$0xff] }
  0x50   : > { %v1177_v45 = vrot.slane %v1176_v36, 4  ;;  %v1000_v47 = vld [vmem:[#allocation2 + $0x6c] sm:$0xf]  ;;  %960 = vst [vmem:[#allocation2 + $0xa4] sm:$0x1] %v959_v48  ;;  %v405_v37 = vpack.c.bf16 %v373_v61, %v373_v61  ;;  %v499_v21 = vsel %vm6573_vm4, 0, %v498_v42  ;;  %1797 = vmatpush.bf16.msrb.mxu1 %v6125_v62  ;;  %2179 = vmatpush.bf16.msrb.mxu2 %v6140_v29  ;;  %v316_v35 = vmul.f32 %v6567_v4, %v6246_v18 }
  0x51   : > { %v1266_v50 = vshrl.u32 %v1000_v47, 16  ;;  %v1269_v51 = vshll.u32 %v1000_v47, 16  ;;  %v767_v44 = vsel %vm6634_vm7, %v759_v34, %v766_v40  ;;  %v1187_v55 = vrot.slane %v1186_v46, 4  ;;  %v1001_v56 = vld [vmem:[#allocation2 + $0x70] sm:$0xf]  ;;  %v6164_v11 = vld [vmem:[%s8196_s3 + $0xe0] sm:$0xff] }
  0x52   : > { %v1182_v52 = vsel %vm6727_vm11, %v1177_v45, %v1181_v38  ;;  %957 = vst [vmem:[#allocation2 + $0xa0] sm:$0xf] %v767_v44  ;;  %v406_v57 = vpack.c.bf16 %v374_v49, %v374_v49  ;;  %v1275_v23 = vshll.u32 %v1001_v56, 16  ;;  %v1279_v43 = vshrl.u32 %v1001_v56, 16  ;;  %v6124_v34 = vld [vmem:[%s8196_s3 + $0x20] sm:$0xff]  ;;  %2493 = vmatpush.bf16.msrb.mxu3 %v6164_v11  ;;  %v6376_v60 = vld [vmem:[%s6562_s27 + $0x48] sm:$0xff]  }
  0x53   : > { %v1460_v58 = vunpack.c.l.b16 %v1182_v52  ;;  %v1268_v12 = vrot.slane %v1266_v50, 4  ;;  %v1271_v59 = vrot.slane %v1269_v51, 5  ;;  %500 = vst [vmem:[#allocation2 + $0x14] sm:$0x1] %v499_v21  ;;  %v1192_v53 = vsel %vm6727_vm11, %v1187_v55, %v1191_v30  ;;  %v1039_v63 = vld [vmem:[#allocation2 + $0x74] sm:$0x1]  ;;  %3174 = vmatpush.bf16.msrb.mxu0 %v6173_v20 }
  0x54   : > { %v549_v0 = vshrl.u32 %v405_v37, 16  ;;  %v552_v1 = vshll.u32 %v405_v37, 16  ;;  %v1461_v5 = vunpack.c.l.b16 %v1192_v53  ;;  %v1277_v9 = vrot.slane %v1275_v23, 5  ;;  %v870_v30 = vld [vmem:[#allocation2 + $0xc] sm:$0xf]  ;;  %1798 = vmatpush.bf16.msrb.mxu1 %v6124_v34 }
  0x55   : > { %v1272_v7 = vor.u32 %v1271_v59, %v1268_v12  ;;  %v1285_v10 = vshll.u32 %v1039_v63, 16  ;;  %v1281_v15 = vrot.slane %v1279_v43, 4  ;;  %v557_v54 = vshrl.u32 %v406_v57, 16  ;;  %v513_v21 = vld [vmem:[#allocation2 + $0x50] sm:$0x1]  ;;  %v6380_v11 = vld [vmem:[%s6562_s27 + $0x68] sm:$0xff]  }
  0x56   : > { %v551_v17 = vrot.slane %v549_v0, 7  ;;  %v560_v19 = vshll.u32 %v406_v57, 16  ;;  %v1487_v25 = vpack.c.b16 %v1461_v5, %v1460_v58  ;;  %v1008_v31 = vld [vmem:[#allocation2 + $0x9c] sm:$0xf]  ;;  %v463_v57 = vld [vmem:[#allocation2 + $0x48] sm:$0x1]  ;;  %v317_v43 = vmul.f32 %v6567_v4, %v6247_v32 }
  0x57   : > { %v1273_v27 = vrot.slane %v1272_v7, 4  ;;  %v1287_v28 = vrot.slane %v1285_v10, 5  ;;  %v1282_v36 = vor.u32 %v1281_v15, %v1277_v9  ;;  %v1043_v38 = vld [vmem:[#allocation2 + $0xa4] sm:$0x1]  ;;  %v1362_v22 = vshrl.u32 %v1008_v31, 16 }
  0x58   : > { %v1365_v39 = vshll.u32 %v1008_v31, 16  ;;  %v554_v14 = vor.u32 %v552_v1, %v551_v17  ;;  %1595 = vmatmul.bf16.gmra.mxu1 %v1487_v25  ;;  %v1381_v33 = vshll.u32 %v1043_v38, 16  ;;  %v555_v61 = vrot.slane %v551_v17, 4  ;;  %v475_v1 = vld [vmem:[#allocation2 + $0x78] sm:$0x1] }
  0x59   : > { %v1278_v40 = vsel %vm6727_vm11, %v1273_v27, %v1277_v9  ;;  %v1009_v41 = vld [vmem:[#allocation2 + $0xa0] sm:$0xf]  ;;  %v559_v42 = vrot.slane %v557_v54, 7  ;;  %v1283_v45 = vrot.slane %v1282_v36, 4  ;;  %v1364_v47 = vrot.slane %v1362_v22, 4 }
  0x5a   : > { %v1468_v46 = vunpack.c.l.b16 %v1278_v40  ;;  %v1367_v48 = vrot.slane %v1365_v39, 5  ;;  %v1371_v18 = vshll.u32 %v1009_v41, 16  ;;  %v1375_v49 = vshrl.u32 %v1009_v41, 16  ;;  %v874_v44 = vld [vmem:[#allocation2 + $0x14] sm:$0x1] }
  0x5b   : > { %v1383_v50 = vrot.slane %v1381_v33, 5  ;;  %v562_v51 = vor.u32 %v560_v19, %v559_v42  ;;  %v1288_v37 = vsel %vm6727_vm11, %v1283_v45, %v1287_v28  ;;  %v564_v55 = vrot.slane %v559_v42, 4  ;;  %v525_v10 = vld [vmem:[#allocation2 + $0x80] sm:$0x1] }
  0x5c   : > { %v1368_v52 = vor.u32 %v1367_v48, %v1364_v47  ;;  %v871_v56 = vsel %vm6646_vm8, %v554_v14, %v870_v30  ;;  %v1469_v58 = vunpack.c.l.b16 %v1288_v37  ;;  %v1373_v12 = vrot.slane %v1371_v18, 5 }
  0x5d   : > { %v1377_v59 = vrot.slane %v1375_v49, 4  ;;  %v563_v23 = vsel %vm6634_vm7, %v555_v61, %v562_v51  ;;  %872 = vst [vmem:[#allocation2 + $0xc] sm:$0xf] %v871_v56  ;;  %v875_v63 = vsel %vm6553_vm2, %v564_v55, %v874_v44  ;;  %v351_v0 = vadd.f32 %v6586_v13, %v316_v35 }
  0x5e   : > { %v1369_v53 = vrot.slane %v1368_v52, 4  ;;  %873 = vst [vmem:[#allocation2 + $0x10] sm:$0xf] %v563_v23  ;;  %v1491_v3 = vpack.c.b16 %v1469_v58, %v1468_v46  ;;  %v464_v7 = vsel %vm6553_vm2, 0, %v463_v57  ;;  %v514_v9 = vsel %vm6573_vm4, 0, %v513_v21 }
  0x5f   : > { %v1378_v5 = vor.u32 %v1377_v59, %v1373_v12  ;;  %876 = vst [vmem:[#allocation2 + $0x14] sm:$0x1] %v875_v63  ;;  %v352_v24 = vadd.f32 %v6586_v13, %v317_v43  ;;  %v383_v29 = vmax.f32 %v351_v0, 0.0  ;;  %v6262_v32 = vunpack.c.l.bf16 %v6376_v60 }
  0x60   : > { %v1374_v62 = vsel %vm6727_vm11, %v1369_v53, %v1373_v12  ;;  %465 = vst [vmem:[#allocation2 + $0x48] sm:$0x1] %v464_v7  ;;  %1615 = vmatmul.bf16.gmra.mxu2 %v1491_v3  ;;  %v6263_v54 = vunpack.c.h.bf16 %v6376_v60  ;;  %v476_v19 = vsel %vm6553_vm2, 0, %v475_v1  ;;  %v526_v28 = vsel %vm6573_vm4, 0, %v525_v10  ;;  %v6894_v1 = vld [vmem:[%s8194_s1] ss:$0 sm:$0xff] }
  0x61   : > { %v1379_v15 = vrot.slane %v1378_v5, 4  ;;  %v1476_v17 = vunpack.c.l.b16 %v1374_v62  ;;  %515 = vst [vmem:[#allocation2 + $0x50] sm:$0x1] %v514_v9  ;;  %v384_v20 = vmax.f32 %v352_v24, 0.0  ;;  %v415_v25 = vpack.c.bf16 %v383_v29, %v383_v29 }
  0x62   : > { %v324_v27 = vmul.f32 %v6567_v4, %v6262_v32  ;;  %477 = vst [vmem:[#allocation2 + $0x78] sm:$0x1] %v476_v19  ;;  %v325_v34 = vmul.f32 %v6567_v4, %v6263_v54  ;;  %v6278_v35 = vunpack.c.l.bf16 %v6380_v11  ;;  %v6279_v36 = vunpack.c.h.bf16 %v6380_v11  ;;  %v6907_v32 = vld [vmem:[%s8195_s2] ss:$0 sm:$0xff] }
  0x63   : > { %v1384_v31 = vsel %vm6727_vm11, %v1379_v15, %v1383_v50  ;;  %527 = vst [vmem:[#allocation2 + $0x80] sm:$0x1] %v526_v28  ;;  %v416_v39 = vpack.c.bf16 %v384_v20, %v384_v20  ;;  %v634_v14 = vshrl.u32 %v415_v25, 16  ;;  %v637_v30 = vshll.u32 %v415_v25, 16  ;;  %v487_v15 = vld [vmem:[#allocation2 + $0xa8] sm:$0x1] }
  0x64   : > { %v1477_v38 = vunpack.c.l.b16 %v1384_v31  ;;  %v984_v22 = vld [vmem:[#allocation2 + $0xc] sm:$0xf]  ;;  %v359_v61 = vadd.f32 %v6586_v13, %v324_v27  ;;  %v360_v42 = vadd.f32 %v6586_v13, %v325_v34  ;;  %v332_v3 = vmul.f32 %v6894_v1, %v6278_v35 }
  0x65   : > { %v985_v40 = vld [vmem:[#allocation2 + $0x10] sm:$0xf]  ;;  %v1074_v41 = vshrl.u32 %v984_v22, 16  ;;  %v1077_v33 = vshll.u32 %v984_v22, 16  ;;  %v636_v4 = vrot.slane %v634_v14, 7  ;;  %v642_v51 = vshrl.u32 %v416_v39, 16 }
  0x66   : > { %v1495_v45 = vpack.c.b16 %v1477_v38, %v1476_v17  ;;  %v1031_v46 = vld [vmem:[#allocation2 + $0x14] sm:$0x1]  ;;  %v1083_v47 = vshll.u32 %v985_v40, 16  ;;  %v1087_v48 = vshrl.u32 %v985_v40, 16  ;;  %v645_v12 = vshll.u32 %v416_v39, 16  ;;  %v6368_v27 = vld [vmem:[%s6562_s27 + $0x8] sm:$0xff]  }
  0x67   : > { %v1076_v18 = vrot.slane %v1074_v41, 4  ;;  %v1079_v49 = vrot.slane %v1077_v33, 5  ;;  %v1093_v50 = vshll.u32 %v1031_v46, 16  ;;  %v905_v44 = vld [vmem:[#allocation2 + $0x48] sm:$0xf]  ;;  %v639_v55 = vor.u32 %v637_v30, %v636_v4 }
  0x68   : > { %1635 = vmatmul.bf16.gmra.mxu3 %v1495_v45  ;;  %v1085_v37 = vrot.slane %v1083_v47, 5  ;;  %v1089_v52 = vrot.slane %v1087_v48, 4  ;;  %v640_v56 = vrot.slane %v636_v4, 4  ;;  %v644_v58 = vrot.slane %v642_v51, 7  ;;  %v909_v23 = vld [vmem:[#allocation2 + $0x50] sm:$0x1] }
  0x69   : > { %v1080_v57 = vor.u32 %v1079_v49, %v1076_v18  ;;  %v1095_v21 = vrot.slane %v1093_v50, 5  ;;  %v906_v59 = vsel %vm6646_vm8, %v639_v55, %v905_v44  ;;  %v391_v60 = vmax.f32 %v359_v61, 0.0  ;;  %v537_v17 = vld [vmem:[#allocation2 + $0xb0] sm:$0x1]  ;;  %v933_v38 = vld [vmem:[#allocation2 + $0x78] sm:$0xf] }
  0x6a   : > { %v1090_v13 = vor.u32 %v1089_v52, %v1085_v37  ;;  %v392_v53 = vmax.f32 %v360_v42, 0.0  ;;  %v647_v43 = vor.u32 %v645_v12, %v644_v58  ;;  %v649_v0 = vrot.slane %v644_v58, 4  ;;  %907 = vst [vmem:[#allocation2 + $0x48] sm:$0xf] %v906_v59  ;;  %v937_v41 = vld [vmem:[#allocation2 + $0x80] sm:$0x1] }
  0x6b   : > { %v1081_v63 = vrot.slane %v1080_v57, 4  ;;  %v423_v7 = vpack.c.bf16 %v391_v60, %v391_v60  ;;  %v333_v10 = vmul.f32 %v6894_v1, %v6279_v36  ;;  %v367_v11 = vadd.f32 %v6907_v32, %v332_v3  ;;  %v6139_v55 = vld [vmem:[%s8196_s3 + $0x98] sm:$0xff] }
  0x6c   : > { %v1091_v5 = vrot.slane %v1090_v13, 4  ;;  %v424_v9 = vpack.c.bf16 %v392_v53, %v392_v53  ;;  %v648_v24 = vsel %vm6634_vm7, %v640_v56, %v647_v43  ;;  %v910_v29 = vsel %vm6553_vm2, %v649_v0, %v909_v23  ;;  %2180 = vmatpush.bf16.msrb.mxu2 %v6139_v55  ;;  %v501_v43 = vld [vmem:[#allocation2 + $0x20] sm:$0x1] }
  0x6d   : > { %v1086_v62 = vsel %vm6727_vm11, %v1081_v63, %v1085_v37  ;;  %908 = vst [vmem:[#allocation2 + $0x4c] sm:$0xf] %v648_v24  ;;  %v702_v20 = vshrl.u32 %v423_v7, 16  ;;  %v705_v25 = vshll.u32 %v423_v7, 16  ;;  %v368_v35 = vadd.f32 %v6907_v32, %v333_v10  ;;  %v451_v63 = vld [vmem:[#allocation2 + $0x18] sm:$0x1] }
  0x6e   : > { %v1096_v54 = vsel %vm6727_vm11, %v1091_v5, %v1095_v21  ;;  %v1452_v19 = vunpack.c.l.b16 %v1086_v62  ;;  %911 = vst [vmem:[#allocation2 + $0x50] sm:$0x1] %v910_v29  ;;  %v710_v31 = vshrl.u32 %v424_v9, 16  ;;  %v713_v34 = vshll.u32 %v424_v9, 16 }
  0x6f   : > { %v1453_v28 = vunpack.c.l.b16 %v1096_v54  ;;  %v704_v36 = vrot.slane %v702_v20, 7  ;;  %v399_v22 = vmax.f32 %v367_v11, 0.0  ;;  %v488_v39 = vsel %vm6553_vm2, 0, %v487_v15 }
  0x70   : > { %v538_v14 = vsel %vm6573_vm4, 0, %v537_v17  ;;  %v712_v40 = vrot.slane %v710_v31, 7  ;;  %v400_v33 = vmax.f32 %v368_v35, 0.0  ;;  %489 = vst [vmem:[#allocation2 + $0xa8] sm:$0x1] %v488_v39  ;;  %v6230_v61 = vunpack.c.l.bf16 %v6368_v27 }
  0x71   : > { %v1483_v30 = vpack.c.b16 %v1453_v28, %v1452_v19  ;;  %v994_v42 = vld [vmem:[#allocation2 + $0x48] sm:$0xf]  ;;  %v707_v45 = vor.u32 %v705_v25, %v704_v36  ;;  %v708_v46 = vrot.slane %v704_v36, 4  ;;  %v431_v47 = vpack.c.bf16 %v399_v22, %v399_v22  ;;  %539 = vst [vmem:[#allocation2 + $0xb0] sm:$0x1] %v538_v14 }
  0x72   : > { %v6231_v48 = vunpack.c.h.bf16 %v6368_v27  ;;  %v1194_v4 = vshrl.u32 %v994_v42, 16  ;;  %v1197_v18 = vshll.u32 %v994_v42, 16  ;;  %v715_v49 = vor.u32 %v713_v34, %v712_v40 }
  0x73   : > { %1575 = vmatmul.bf16.gmra.mxu0 %v1483_v30  ;;  %v717_v50 = vrot.slane %v712_v40, 4  ;;  %v934_v51 = vsel %vm6646_vm8, %v707_v45, %v933_v38  ;;  %v432_v44 = vpack.c.bf16 %v400_v33, %v400_v33  ;;  %v770_v37 = vshrl.u32 %v431_v47, 16 }
  0x74   : > { %v773_v52 = vshll.u32 %v431_v47, 16  ;;  %v995_v56 = vld [vmem:[#allocation2 + $0x4c] sm:$0xf]  ;;  %v1196_v57 = vrot.slane %v1194_v4, 4  ;;  %v1199_v21 = vrot.slane %v1197_v18, 5  ;;  %v716_v58 = vsel %vm6634_vm7, %v708_v46, %v715_v49 }
  0x75   : > { %935 = vst [vmem:[#allocation2 + $0x78] sm:$0xf] %v934_v51  ;;  %v938_v12 = vsel %vm6553_vm2, %v717_v50, %v937_v41  ;;  %v1036_v13 = vld [vmem:[#allocation2 + $0x50] sm:$0x1]  ;;  %v1203_v59 = vshll.u32 %v995_v56, 16  ;;  %v1207_v23 = vshrl.u32 %v995_v56, 16  ;;  %v308_v60 = vmul.f32 %v6894_v1, %v6230_v61 }
  0x76   : > { %936 = vst [vmem:[#allocation2 + $0x7c] sm:$0xf] %v716_v58  ;;  %v309_v53 = vmul.f32 %v6894_v1, %v6231_v48  ;;  %v1200_v0 = vor.u32 %v1199_v21, %v1196_v57  ;;  %v1213_v3 = vshll.u32 %v1036_v13, 16  ;;  %v772_v5 = vrot.slane %v770_v37, 7  ;;  %v6163_v57 = vld [vmem:[%s8196_s3 + $0xd8] sm:$0xff]  ;;  %v6172_v21 = vld [vmem:[%s8196_s3 + $0x120] sm:$0xff] }
  0x77   : > { %939 = vst [vmem:[#allocation2 + $0x80] sm:$0x1] %v938_v12  ;;  %v778_v7 = vshrl.u32 %v432_v44, 16  ;;  %v1205_v9 = vrot.slane %v1203_v59, 5  ;;  %v1209_v10 = vrot.slane %v1207_v23, 4  ;;  %v781_v62 = vshll.u32 %v432_v44, 16  ;;  %2494 = vmatpush.bf16.msrb.mxu3 %v6163_v57  ;;  %3175 = vmatpush.bf16.msrb.mxu0 %v6172_v21 }
  0x78   : > { %v961_v24 = vld [vmem:[#allocation2 + $0xa8] sm:$0xf]  ;;  %v343_v29 = vadd.f32 %v6907_v32, %v308_v60  ;;  %v1201_v11 = vrot.slane %v1200_v0, 4  ;;  %v1215_v15 = vrot.slane %v1213_v3, 5  ;;  %v775_v17 = vor.u32 %v773_v52, %v772_v5  ;;  %v965_v34 = vld [vmem:[#allocation2 + $0xb0] sm:$0x1] }
  0x79   : > { %v776_v54 = vrot.slane %v772_v5, 4  ;;  %v1210_v19 = vor.u32 %v1209_v10, %v1205_v9  ;;  %v780_v20 = vrot.slane %v778_v7, 7  ;;  %v344_v25 = vadd.f32 %v6907_v32, %v309_v53  ;;  %v6373_v44 = vld [vmem:[%s6562_s27 + $0x30] sm:$0xff]   ;;  %v6123_v23 = vld [vmem:[%s8196_s3 + $0x18] sm:$0xff] }
  0x7a   : > { %v375_v27 = vmax.f32 %v343_v29, 0.0  ;;  %v1206_v28 = vsel %vm6727_vm11, %v1201_v11, %v1205_v9  ;;  %v962_v31 = vsel %vm6646_vm8, %v775_v17, %v961_v24  ;;  %v452_v35 = vsel %vm6553_vm2, 0, %v451_v63  ;;  %v6138_v60 = vld [vmem:[%s8196_s3 + $0x90] sm:$0xff]  ;;  %v6171_v5 = vld [vmem:[%s8196_s3 + $0x118] sm:$0xff]  ;;  %1799 = vmatpush.bf16.msrb.mxu1 %v6123_v23 }
  0x7b   : > { %v502_v36 = vsel %vm6573_vm4, 0, %v501_v43  ;;  %v1211_v38 = vrot.slane %v1210_v19, 4  ;;  %v1462_v22 = vunpack.c.l.b16 %v1206_v28  ;;  %v783_v14 = vor.u32 %v781_v62, %v780_v20  ;;  %963 = vst [vmem:[#allocation2 + $0xa8] sm:$0xf] %v962_v31  ;;  %v6162_v3 = vld [vmem:[%s8196_s3 + $0xd0] sm:$0xff]  ;;  %2181 = vmatpush.bf16.msrb.mxu2 %v6138_v60  ;;  %3176 = vmatpush.bf16.msrb.mxu0 %v6171_v5 }
  0x7c   : > { %v1002_v39 = vld [vmem:[#allocation2 + $0x78] sm:$0xf]  ;;  %v785_v30 = vrot.slane %v780_v20, 4  ;;  %v376_v61 = vmax.f32 %v344_v25, 0.0  ;;  %v407_v42 = vpack.c.bf16 %v375_v27, %v375_v27  ;;  %453 = vst [vmem:[#allocation2 + $0x18] sm:$0x1] %v452_v35  ;;  %v6250_v62 = vunpack.c.l.bf16 %v6373_v44  ;;  %2495 = vmatpush.bf16.msrb.mxu3 %v6162_v3 }
  0x7d   : > { %v1003_v40 = vld [vmem:[#allocation2 + $0x7c] sm:$0xf]  ;;  %v1290_v41 = vshrl.u32 %v1002_v39, 16  ;;  %v1293_v33 = vshll.u32 %v1002_v39, 16  ;;  %v1216_v45 = vsel %vm6727_vm11, %v1211_v38, %v1215_v15  ;;  %v784_v4 = vsel %vm6634_vm7, %v776_v54, %v783_v14  ;;  %503 = vst [vmem:[#allocation2 + $0x20] sm:$0x1] %v502_v36 }
  0x7e   : > { %v1040_v46 = vld [vmem:[#allocation2 + $0x80] sm:$0x1]  ;;  %v1299_v47 = vshll.u32 %v1003_v40, 16  ;;  %v1303_v48 = vshrl.u32 %v1003_v40, 16  ;;  %v1463_v18 = vunpack.c.l.b16 %v1216_v45  ;;  %964 = vst [vmem:[#allocation2 + $0xac] sm:$0xf] %v784_v4  ;;  %v966_v55 = vsel %vm6553_vm2, %v785_v30, %v965_v34 }
  0x7f   : > { %v1292_v49 = vrot.slane %v1290_v41, 4  ;;  %v1295_v50 = vrot.slane %v1293_v33, 5  ;;  %v1309_v51 = vshll.u32 %v1040_v46, 16  ;;  %v408_v56 = vpack.c.bf16 %v376_v61, %v376_v61  ;;  %967 = vst [vmem:[#allocation2 + $0xb0] sm:$0x1] %v966_v55  ;;  %v6122_v54 = vld [vmem:[%s8196_s3 + $0x10] sm:$0xff] }
  0x80   : > { %v1301_v37 = vrot.slane %v1299_v47, 5  ;;  %v1305_v52 = vrot.slane %v1303_v48, 4  ;;  %v1488_v58 = vpack.c.b16 %v1463_v18, %v1462_v22  ;;  %v566_v59 = vshrl.u32 %v407_v42, 16  ;;  %v466_v41 = vld [vmem:[#allocation2 + $0x54] sm:$0x1]  ;;  %1800 = vmatpush.bf16.msrb.mxu1 %v6122_v54 }
  0x81   : > { %v1296_v12 = vor.u32 %v1295_v50, %v1292_v49  ;;  %v1311_v13 = vrot.slane %v1309_v51, 5  ;;  %v569_v63 = vshll.u32 %v407_v42, 16  ;;  %v574_v43 = vshrl.u32 %v408_v56, 16  ;;  %v516_v47 = vld [vmem:[#allocation2 + $0x5c] sm:$0x1]  ;;  %v6377_v50 = vld [vmem:[%s6562_s27 + $0x50] sm:$0xff]  }
  0x82   : > { %v1306_v53 = vor.u32 %v1305_v52, %v1301_v37  ;;  %v577_v0 = vshll.u32 %v408_v56, 16  ;;  %1600 = vmatmul.bf16.gmra.mxu1 %v1488_v58  ;;  %v1010_v9 = vld [vmem:[#allocation2 + $0xa8] sm:$0xf]  ;;  %v568_v10 = vrot.slane %v566_v59, 7  ;;  %v6251_v24 = vunpack.c.h.bf16 %v6373_v44  ;;  %v478_v55 = vld [vmem:[#allocation2 + $0x84] sm:$0x1] }
  0x83   : > { %v1297_v7 = vrot.slane %v1296_v12, 4  ;;  %v1386_v11 = vshrl.u32 %v1010_v9, 16  ;;  %v1389_v15 = vshll.u32 %v1010_v9, 16  ;;  %v576_v17 = vrot.slane %v574_v43, 7  ;;  %v877_v27 = vld [vmem:[#allocation2 + $0x18] sm:$0xf] }
  0x84   : > { %v1307_v29 = vrot.slane %v1306_v53, 4  ;;  %v571_v20 = vor.u32 %v569_v63, %v568_v10  ;;  %v572_v25 = vrot.slane %v568_v10, 4  ;;  %v318_v28 = vmul.f32 %v6894_v1, %v6250_v62  ;;  %v881_v40 = vld [vmem:[#allocation2 + $0x20] sm:$0x1]  ;;  %v528_v12 = vld [vmem:[#allocation2 + $0x8c] sm:$0x1] }
  0x85   : > { %v1302_v19 = vsel %vm6727_vm11, %v1297_v7, %v1301_v37  ;;  %v1011_v35 = vld [vmem:[#allocation2 + $0xac] sm:$0xf]  ;;  %v1388_v36 = vrot.slane %v1386_v11, 4  ;;  %v1391_v38 = vrot.slane %v1389_v15, 5  ;;  %v579_v30 = vor.u32 %v577_v0, %v576_v17  ;;  %v6989_v53 = vld [vmem:[%s6562_s27 + $0x70] sm:$0xff]  }
  0x86   : > { %v1312_v31 = vsel %vm6727_vm11, %v1307_v29, %v1311_v13  ;;  %v1470_v34 = vunpack.c.l.b16 %v1302_v19  ;;  %v1395_v39 = vshll.u32 %v1011_v35, 16  ;;  %v1399_v14 = vshrl.u32 %v1011_v35, 16  ;;  %v1044_v33 = vld [vmem:[#allocation2 + $0xb0] sm:$0x1] }
  0x87   : > { %v1471_v22 = vunpack.c.l.b16 %v1312_v31  ;;  %v1392_v61 = vor.u32 %v1391_v38, %v1388_v36  ;;  %v581_v42 = vrot.slane %v576_v17, 4  ;;  %v878_v45 = vsel %vm6646_vm8, %v571_v20, %v877_v27 }
  0x88   : > { %v319_v46 = vmul.f32 %v6894_v1, %v6251_v24  ;;  %v1397_v4 = vrot.slane %v1395_v39, 5  ;;  %v1401_v18 = vrot.slane %v1399_v14, 4  ;;  %v1405_v49 = vshll.u32 %v1044_v33, 16  ;;  %879 = vst [vmem:[#allocation2 + $0x18] sm:$0xf] %v878_v45 }
  0x89   : > { %v1492_v48 = vpack.c.b16 %v1471_v22, %v1470_v34  ;;  %v1393_v51 = vrot.slane %v1392_v61, 4  ;;  %v580_v44 = vsel %vm6634_vm7, %v572_v25, %v579_v30  ;;  %v882_v37 = vsel %vm6553_vm2, %v581_v42, %v881_v40 }
  0x8a   : > { %v353_v52 = vadd.f32 %v6907_v32, %v318_v28  ;;  %v1402_v56 = vor.u32 %v1401_v18, %v1397_v4  ;;  %v1407_v57 = vrot.slane %v1405_v49, 5  ;;  %880 = vst [vmem:[#allocation2 + $0x1c] sm:$0xf] %v580_v44  ;;  %v354_v21 = vadd.f32 %v6907_v32, %v319_v46 }
  0x8b   : > { %1620 = vmatmul.bf16.gmra.mxu2 %v1492_v48  ;;  %v467_v58 = vsel %vm6553_vm2, 0, %v466_v41  ;;  %v1398_v13 = vsel %vm6727_vm11, %v1393_v51, %v1397_v4  ;;  %883 = vst [vmem:[#allocation2 + $0x20] sm:$0x1] %v882_v37  ;;  %v517_v23 = vsel %vm6573_vm4, 0, %v516_v47  ;;  %v6266_v60 = vunpack.c.l.bf16 %v6377_v50 }
  0x8c   : > { %v385_v59 = vmax.f32 %v353_v52, 0.0  ;;  %v1403_v63 = vrot.slane %v1402_v56, 4  ;;  %v1478_v43 = vunpack.c.l.b16 %v1398_v13  ;;  %v386_v0 = vmax.f32 %v354_v21, 0.0  ;;  %468 = vst [vmem:[#allocation2 + $0x54] sm:$0x1] %v467_v58 }
  0x8d   : > { %v6267_v3 = vunpack.c.h.bf16 %v6377_v50  ;;  %518 = vst [vmem:[#allocation2 + $0x5c] sm:$0x1] %v517_v23  ;;  %v326_v7 = vmul.f32 %v6894_v1, %v6266_v60  ;;  %v479_v9 = vsel %vm6553_vm2, 0, %v478_v55  ;;  %v529_v10 = vsel %vm6573_vm4, 0, %v528_v12  ;;  %v540_v23 = vld [vmem:[#allocation2 + $0xbc] sm:$0x1] }
  0x8e   : > { %v417_v5 = vpack.c.bf16 %v385_v59, %v385_v59  ;;  %v1408_v62 = vsel %vm6727_vm11, %v1403_v63, %v1407_v57  ;;  %v418_v24 = vpack.c.bf16 %v386_v0, %v386_v0  ;;  %480 = vst [vmem:[#allocation2 + $0x84] sm:$0x1] %v479_v9  ;;  %v6282_v11 = vunpack.c.l.bf16 %v6989_v53  ;;  %v490_v59 = vld [vmem:[#allocation2 + $0xb4] sm:$0x1] }
  0x8f   : > { %v327_v29 = vmul.f32 %v6894_v1, %v6267_v3  ;;  %v1479_v15 = vunpack.c.l.b16 %v1408_v62  ;;  %v986_v17 = vld [vmem:[#allocation2 + $0x18] sm:$0xf]  ;;  %v361_v20 = vadd.f32 %v6907_v32, %v326_v7  ;;  %530 = vst [vmem:[#allocation2 + $0x8c] sm:$0x1] %v529_v10  ;;  %v6283_v12 = vunpack.c.h.bf16 %v6989_v53  ;;  %v6369_v10 = vld [vmem:[%s6562_s27 + $0x10] sm:$0xff]  }
  0x90   : > { %v651_v54 = vshrl.u32 %v417_v5, 16  ;;  %v654_v19 = vshll.u32 %v417_v5, 16  ;;  %v1098_v25 = vshrl.u32 %v986_v17, 16  ;;  %v1101_v27 = vshll.u32 %v986_v17, 16 }
  0x91   : > { %v659_v28 = vshrl.u32 %v418_v24, 16  ;;  %v662_v31 = vshll.u32 %v418_v24, 16  ;;  %v1496_v34 = vpack.c.b16 %v1479_v15, %v1478_v43  ;;  %v7001_v35 = vld [vmem:[#allocation2 + $0x1c] sm:$0xf]  ;;  %v362_v38 = vadd.f32 %v6907_v32, %v327_v29 }
  0x92   : > { %v653_v36 = vrot.slane %v651_v54, 7  ;;  %v393_v22 = vmax.f32 %v361_v20, 0.0  ;;  %v7004_v39 = vld [vmem:[#allocation2 + $0x20] sm:$0x1]  ;;  %v1100_v14 = vrot.slane %v1098_v25, 4  ;;  %v1103_v30 = vrot.slane %v1101_v27, 5 }
  0x93   : > { %v1107_v40 = vshll.u32 %v7001_v35, 16  ;;  %v1111_v41 = vshrl.u32 %v7001_v35, 16  ;;  %1640 = vmatmul.bf16.gmra.mxu3 %v1496_v34  ;;  %v1117_v33 = vshll.u32 %v7004_v39, 16  ;;  %v661_v45 = vrot.slane %v659_v28, 7  ;;  %v912_v46 = vld [vmem:[#allocation2 + $0x54] sm:$0xf] }
  0x94   : > { %v656_v61 = vor.u32 %v654_v19, %v653_v36  ;;  %v657_v42 = vrot.slane %v653_v36, 4  ;;  %v1104_v47 = vor.u32 %v1103_v30, %v1100_v14  ;;  %v916_v18 = vld [vmem:[#allocation2 + $0x5c] sm:$0x1]  ;;  %v394_v49 = vmax.f32 %v362_v38, 0.0 }
  0x95   : > { %v1109_v48 = vrot.slane %v1107_v40, 5  ;;  %v1113_v4 = vrot.slane %v1111_v41, 4  ;;  %v1119_v50 = vrot.slane %v1117_v33, 5  ;;  %v664_v51 = vor.u32 %v662_v31, %v661_v45  ;;  %v940_v17 = vld [vmem:[#allocation2 + $0x84] sm:$0xf] }
  0x96   : > { %v666_v44 = vrot.slane %v661_v45, 4  ;;  %v913_v37 = vsel %vm6646_vm8, %v656_v61, %v912_v46  ;;  %v1105_v52 = vrot.slane %v1104_v47, 4  ;;  %v425_v56 = vpack.c.bf16 %v393_v22, %v393_v22  ;;  %v944_v27 = vld [vmem:[#allocation2 + $0x8c] sm:$0x1] }
  0x97   : > { %v1114_v55 = vor.u32 %v1113_v4, %v1109_v48  ;;  %914 = vst [vmem:[#allocation2 + $0x54] sm:$0xf] %v913_v37  ;;  %v426_v57 = vpack.c.bf16 %v394_v49, %v394_v49  ;;  %v665_v21 = vsel %vm6634_vm7, %v657_v42, %v664_v51  ;;  %v334_v13 = vmul.f32 %v6894_v1, %v6282_v11  ;;  %v6137_v47 = vld [vmem:[%s8196_s3 + $0x88] sm:$0xff]  ;;  %v454_v4 = vld [vmem:[#allocation2 + $0x24] sm:$0x1] }
  0x98   : > { %v917_v58 = vsel %vm6553_vm2, %v666_v44, %v916_v18  ;;  %v1110_v60 = vsel %vm6727_vm11, %v1105_v52, %v1109_v48  ;;  %915 = vst [vmem:[#allocation2 + $0x58] sm:$0xf] %v665_v21  ;;  %v719_v43 = vshrl.u32 %v425_v56, 16  ;;  %v722_v0 = vshll.u32 %v425_v56, 16  ;;  %2182 = vmatpush.bf16.msrb.mxu2 %v6137_v47 }
  0x99   : > { %v1115_v63 = vrot.slane %v1114_v55, 4  ;;  %v1454_v3 = vunpack.c.l.b16 %v1110_v60  ;;  %918 = vst [vmem:[#allocation2 + $0x5c] sm:$0x1] %v917_v58  ;;  %v727_v5 = vshrl.u32 %v426_v57, 16  ;;  %v730_v7 = vshll.u32 %v426_v57, 16 }
  0x9a   : > { %v335_v9 = vmul.f32 %v6894_v1, %v6283_v12  ;;  %v721_v62 = vrot.slane %v719_v43, 7  ;;  %v369_v24 = vadd.f32 %v6907_v32, %v334_v13  ;;  %v491_v29 = vsel %vm6553_vm2, 0, %v490_v59 }
  0x9b   : > { %v1120_v53 = vsel %vm6727_vm11, %v1115_v63, %v1119_v50  ;;  %v729_v15 = vrot.slane %v727_v5, 7  ;;  %492 = vst [vmem:[#allocation2 + $0xb4] sm:$0x1] %v491_v29  ;;  %v541_v19 = vsel %vm6573_vm4, 0, %v540_v23  ;;  %v6234_v31 = vunpack.c.l.bf16 %v6369_v10 }
  0x9c   : > { %v1455_v11 = vunpack.c.l.b16 %v1120_v53  ;;  %v370_v54 = vadd.f32 %v6907_v32, %v335_v9  ;;  %v724_v20 = vor.u32 %v722_v0, %v721_v62  ;;  %v725_v25 = vrot.slane %v721_v62, 4  ;;  %542 = vst [vmem:[#allocation2 + $0xbc] sm:$0x1] %v541_v19 }
  0x9d   : > { %v401_v28 = vmax.f32 %v369_v24, 0.0  ;;  %v732_v38 = vor.u32 %v730_v7, %v729_v15  ;;  %v734_v22 = vrot.slane %v729_v15, 4  ;;  %v6235_v48 = vunpack.c.h.bf16 %v6369_v10 }
  0x9e   : > { %v1484_v34 = vpack.c.b16 %v1455_v11, %v1454_v3  ;;  %v996_v36 = vld [vmem:[#allocation2 + $0x54] sm:$0xf]  ;;  %v402_v14 = vmax.f32 %v370_v54, 0.0  ;;  %v941_v41 = vsel %vm6646_vm8, %v724_v20, %v940_v17  ;;  %v310_v60 = vmul.f32 %v6894_v1, %v6234_v31 }
  0x9f   : > { %v1218_v30 = vshrl.u32 %v996_v36, 16  ;;  %v1221_v40 = vshll.u32 %v996_v36, 16  ;;  %v433_v33 = vpack.c.bf16 %v401_v28, %v401_v28  ;;  %v7031_v61 = vld [vmem:[#allocation2 + $0x58] sm:$0xf]  ;;  %v733_v42 = vsel %vm6634_vm7, %v725_v25, %v732_v38  ;;  %942 = vst [vmem:[#allocation2 + $0x84] sm:$0xf] %v941_v41 }
  0xa0   : > { %1580 = vmatmul.bf16.gmra.mxu0 %v1484_v34  ;;  %v945_v45 = vsel %vm6553_vm2, %v734_v22, %v944_v27  ;;  %v434_v46 = vpack.c.bf16 %v402_v14, %v402_v14  ;;  %v7040_v18 = vld [vmem:[#allocation2 + $0x5c] sm:$0x1]  ;;  %v1227_v51 = vshll.u32 %v7031_v61, 16  ;;  %v1231_v44 = vshrl.u32 %v7031_v61, 16  ;;  %943 = vst [vmem:[#allocation2 + $0x88] sm:$0xf] %v733_v42 }
  0xa1   : > { %v1220_v49 = vrot.slane %v1218_v30, 4  ;;  %v1223_v50 = vrot.slane %v1221_v40, 5  ;;  %v1237_v37 = vshll.u32 %v7040_v18, 16  ;;  %v787_v52 = vshrl.u32 %v433_v33, 16  ;;  %946 = vst [vmem:[#allocation2 + $0x8c] sm:$0x1] %v945_v45 }
  0xa2   : > { %v790_v55 = vshll.u32 %v433_v33, 16  ;;  %v795_v56 = vshrl.u32 %v434_v46, 16  ;;  %v1229_v21 = vrot.slane %v1227_v51, 5  ;;  %v1233_v58 = vrot.slane %v1231_v44, 4  ;;  %v968_v0 = vld [vmem:[#allocation2 + $0xb4] sm:$0xf] }
  0xa3   : > { %v1224_v57 = vor.u32 %v1223_v50, %v1220_v49  ;;  %v798_v12 = vshll.u32 %v434_v46, 16  ;;  %v1239_v13 = vrot.slane %v1237_v37, 5  ;;  %v789_v59 = vrot.slane %v787_v52, 7  ;;  %v972_v62 = vld [vmem:[#allocation2 + $0xbc] sm:$0x1]  ;;  %v6170_v49 = vld [vmem:[%s8196_s3 + $0x110] sm:$0xff] }
  0xa4   : > { %v797_v23 = vrot.slane %v795_v56, 7  ;;  %v1234_v43 = vor.u32 %v1233_v58, %v1229_v21  ;;  %v311_v3 = vmul.f32 %v6894_v1, %v6235_v48  ;;  %v455_v5 = vsel %vm6553_vm2, 0, %v454_v4  ;;  %v504_v25 = vld [vmem:[#allocation2 + $0x2c] sm:$0x1]  ;;  %v6136_v56 = vld [vmem:[%s8196_s3 + $0x80] sm:$0xff]  ;;  %3177 = vmatpush.bf16.msrb.mxu0 %v6170_v49 }
  0xa5   : > { %v1225_v63 = vrot.slane %v1224_v57, 4  ;;  %v792_v7 = vor.u32 %v790_v55, %v789_v59  ;;  %v793_v9 = vrot.slane %v789_v59, 4  ;;  %456 = vst [vmem:[#allocation2 + $0x24] sm:$0x1] %v455_v5  ;;  %v345_v15 = vadd.f32 %v6907_v32, %v310_v60  ;;  %v6161_v4 = vld [vmem:[%s8196_s3 + $0xc8] sm:$0xff]  ;;  %v6160_v57 = vld [vmem:[%s8196_s3 + $0xc0] sm:$0xff]  ;;  %2183 = vmatpush.bf16.msrb.mxu2 %v6136_v56 }
  0xa6   : > { %v800_v10 = vor.u32 %v798_v12, %v797_v23  ;;  %v802_v53 = vrot.slane %v797_v23, 4  ;;  %v1235_v29 = vrot.slane %v1234_v43, 4  ;;  %v1004_v11 = vld [vmem:[#allocation2 + $0x84] sm:$0xf]  ;;  %v346_v17 = vadd.f32 %v6907_v32, %v311_v3  ;;  %v6121_v37 = vld [vmem:[%s8196_s3 + $0x8] sm:$0xff]  ;;  %2496 = vmatpush.bf16.msrb.mxu3 %v6161_v4 }
  0xa7   : > { %v1230_v24 = vsel %vm6727_vm11, %v1225_v63, %v1229_v21  ;;  %v1314_v1 = vshrl.u32 %v1004_v11, 16  ;;  %v1317_v19 = vshll.u32 %v1004_v11, 16  ;;  %v1005_v28 = vld [vmem:[#allocation2 + $0x88] sm:$0xf]  ;;  %v969_v31 = vsel %vm6646_vm8, %v792_v7, %v968_v0  ;;  %1801 = vmatpush.bf16.msrb.mxu1 %v6121_v37  ;;  %v6120_v23 = vld [vmem:[%s8196_s3] sm:$0xff] }
  0xa8   : > { %v1464_v54 = vunpack.c.l.b16 %v1230_v24  ;;  %v801_v20 = vsel %vm6634_vm7, %v793_v9, %v800_v10  ;;  %v1240_v27 = vsel %vm6727_vm11, %v1235_v29, %v1239_v13  ;;  %v973_v34 = vsel %vm6553_vm2, %v802_v53, %v972_v62  ;;  %v1041_v38 = vld [vmem:[#allocation2 + $0x8c] sm:$0x1]  ;;  %970 = vst [vmem:[#allocation2 + $0xb4] sm:$0xf] %v969_v31  ;;  %v6207_v10 = vld [vmem:[%s8196_s3 + $0x1b8] sm:$0xff] }
  0xa9   : > { %971 = vst [vmem:[#allocation2 + $0xb8] sm:$0xf] %v801_v20  ;;  %v377_v36 = vmax.f32 %v345_v15, 0.0  ;;  %v1465_v32 = vunpack.c.l.b16 %v1240_v27  ;;  %v1316_v22 = vrot.slane %v1314_v1, 4  ;;  %v1319_v14 = vrot.slane %v1317_v19, 5  ;;  %v6169_v59 = vld [vmem:[%s8196_s3 + $0x108] sm:$0xff]  ;;  %3913 = vmatpush.bf16.msra.mxu2 %v6207_v10 }
  0xaa   : > { %v1323_v30 = vshll.u32 %v1005_v28, 16  ;;  %v1327_v40 = vshrl.u32 %v1005_v28, 16  ;;  %v1333_v41 = vshll.u32 %v1041_v38, 16  ;;  %v378_v33 = vmax.f32 %v346_v17, 0.0  ;;  %974 = vst [vmem:[#allocation2 + $0xbc] sm:$0x1] %v973_v34  ;;  %2497 = vmatpush.bf16.msrb.mxu3 %v6160_v57  ;;  %3178 = vmatpush.bf16.msrb.mxu0 %v6169_v59 }
  0xab   : > { %v409_v42 = vpack.c.bf16 %v377_v36, %v377_v36  ;;  %v1489_v45 = vpack.c.b16 %v1465_v32, %v1464_v54  ;;  %v1320_v46 = vor.u32 %v1319_v14, %v1316_v22  ;;  %v505_v48 = vsel %vm6573_vm4, 0, %v504_v25  ;;  %1802 = vmatpush.bf16.msrb.mxu1 %v6120_v23  ;;  %v6168_v19 = vld [vmem:[%s8196_s3 + $0x100] sm:$0xff]  ;;  %v2611_v57 = vld [vmem:[#allocation2 + $0xc] sm:$0xf]  ;;  %v6223_v59 = vld [vmem:[%s8196_s3 + $0x238] sm:$0xff] }
  0xac   : > { %v1325_v47 = vrot.slane %v1323_v30, 5  ;;  %v1329_v50 = vrot.slane %v1327_v40, 4  ;;  %v410_v51 = vpack.c.bf16 %v378_v33, %v378_v33  ;;  %506 = vst [vmem:[#allocation2 + $0x2c] sm:$0x1] %v505_v48  ;;  %v1335_v58 = vrot.slane %v1333_v41, 5 }
  0xad   : > { %v583_v44 = vshrl.u32 %v409_v42, 16  ;;  %1605 = vmatmul.bf16.gmra.mxu1 %v1489_v45  ;;  %v1321_v52 = vrot.slane %v1320_v46, 4  ;;  %v586_v55 = vshll.u32 %v409_v42, 16  ;;  %vm1932_vm12 = vcmask 1042432   ;;  %v884_v9 = vld [vmem:[#allocation2 + $0x24] sm:$0xf] }
  0xae   : > { %v1330_v21 = vor.u32 %v1329_v50, %v1325_v47  ;;  %v591_v13 = vshrl.u32 %v410_v51, 16  ;;  %v594_v43 = vshll.u32 %v410_v51, 16  ;;  %vm1933_vm13 = vcmask 1046532   ;;  %v1884_v22 = vld [vmem:[#allocation2] sm:$0xe]  ;;  %3179 = vmatpush.bf16.msrb.mxu0 %v6168_v19 }
  0xaf   : > { %v585_v12 = vrot.slane %v583_v44, 7  ;;  %v1326_v60 = vsel %vm6727_vm11, %v1321_v52, %v1325_v47  ;;  %v1012_v53 = vld [vmem:[#allocation2 + $0xb4] sm:$0xf]  ;;  %v6435_v45 = vld [vmem:[#allocation2 + $0x4] sm:$0xf]  ;;  %v5588_v48 = vrot.slane %v1884_v22, 9  ;;  %vm7102_vm14 = vmor %vm1932_vm12, %vm1933_vm13 }
  0xb0   : > { %v1013_v63 = vld [vmem:[#allocation2 + $0xb8] sm:$0xf]  ;;  %v1331_v0 = vrot.slane %v1330_v21, 4  ;;  %v1472_v3 = vunpack.c.l.b16 %v1326_v60  ;;  %v593_v29 = vrot.slane %v591_v13, 7  ;;  %v1410_v17 = vshrl.u32 %v1012_v53, 16  ;;  %v6104_v52 = vld [vmem:[#allocation2] sm:$0xff] }
  0xb1   : > { %v1419_v5 = vshll.u32 %v1013_v63, 16  ;;  %v1423_v7 = vshrl.u32 %v1013_v63, 16  ;;  %v588_v62 = vor.u32 %v586_v55, %v585_v12  ;;  %v589_v24 = vrot.slane %v585_v12, 4  ;;  %v1045_v15 = vld [vmem:[#allocation2 + $0xbc] sm:$0x1] }
  0xb2   : > { %v1336_v11 = vsel %vm6727_vm11, %v1331_v0, %v1335_v58  ;;  %v1413_v54 = vshll.u32 %v1012_v53, 16  ;;  %v1429_v27 = vshll.u32 %v1045_v15, 16  ;;  %v596_v28 = vor.u32 %v594_v43, %v593_v29  ;;  %v6436_v51 = vld [vmem:[#allocation2 + $0x8] sm:$0x1]  ;;  %v6215_v12 = vld [vmem:[%s8196_s3 + $0x1f8] sm:$0xff]  ;;  %5021 = vmatpush.bf16.msra.mxu0 %v6223_v59 }
  0xb3   : > { %v1421_v1 = vrot.slane %v1419_v5, 5  ;;  %v1473_v20 = vunpack.c.l.b16 %v1336_v11  ;;  %v1425_v25 = vrot.slane %v1423_v7, 4  ;;  %v888_v31 = vld [vmem:[#allocation2 + $0x2c] sm:$0x1]  ;;  %v1412_v34 = vrot.slane %v1410_v17, 4  ;;  %v6183_v13 = vld [vmem:[%s8196_s3 + $0x178] sm:$0xff]  ;;  %4595 = vmatpush.bf16.msra.mxu3 %v6215_v12 }
  0xb4   : > { %v1415_v36 = vrot.slane %v1413_v54, 5  ;;  %v598_v32 = vrot.slane %v593_v29, 4  ;;  %v885_v38 = vsel %vm6646_vm8, %v588_v62, %v884_v9  ;;  %v1431_v40 = vrot.slane %v1429_v27, 5  ;;  %v2612_v63 = vld [vmem:[#allocation2 + $0x10] sm:$0xf]  ;;  %3598 = vmatpush.bf16.msra.mxu1 %v6183_v13 }
  0xb5   : > { %v1493_v14 = vpack.c.b16 %v1473_v20, %v1472_v3  ;;  %v1426_v30 = vor.u32 %v1425_v25, %v1421_v1  ;;  %v597_v41 = vsel %vm6634_vm7, %v589_v24, %v596_v28  ;;  %886 = vst [vmem:[#allocation2 + $0x24] sm:$0xf] %v885_v38  ;;  %v1937_v46 = vrot.slane %v6435_v45, 5  ;;  %v2613_v38 = vld [vmem:[#allocation2 + $0x14] sm:$0x1] }
  0xb6   : > { %v1416_v33 = vor.u32 %v1415_v36, %v1412_v34  ;;  %887 = vst [vmem:[#allocation2 + $0x28] sm:$0xf] %v597_v41  ;;  %v889_v42 = vsel %vm6553_vm2, %v598_v32, %v888_v31  ;;  %v1940_v44 = vrot.slane %v6436_v51, 5  ;;  %v2660_v7 = vshrl.u32 %v2611_v57, 16  ;;  %v2614_v12 = vld [vmem:[#allocation2 + $0x18] sm:$0xf] }
  0xb7   : > { %1625 = vmatmul.bf16.gmra.mxu2 %v1493_v14  ;;  %v1427_v47 = vrot.slane %v1426_v30, 4  ;;  %890 = vst [vmem:[#allocation2 + $0x2c] sm:$0x1] %v889_v42  ;;  %v1939_v50 = vrot.slane %v1937_v46, 4  ;;  %v1938_v58 = vsel %vm7102_vm14, %v5588_v48, %v1937_v46  ;;  %v2663_v24 = vshll.u32 %v2611_v57, 16  ;;  %v6144_v57 = vld [vmem:[#allocation2 + $0xc] sm:$0xff] }
  0xb8   : > { %v1417_v4 = vrot.slane %v1416_v33, 4  ;;  %v2064_v62 = vunpack.c.l.b16 %v1938_v58  ;;  %v2669_v19 = vshll.u32 %v2612_v63, 16  ;;  %v2673_v20 = vshrl.u32 %v2612_v63, 16  ;;  %v1885_v42 = vld [vmem:[#allocation2 + $0xc] sm:$0xe] }
  0xb9   : > { %v1432_v37 = vsel %vm6727_vm11, %v1427_v47, %v1431_v40  ;;  %v1941_v60 = vsel %vm7102_vm14, %v1939_v50, %v1940_v44  ;;  %v2662_v31 = vrot.slane %v2660_v7, 4  ;;  %v2665_v34 = vrot.slane %v2663_v24, 5  ;;  %v6437_v40 = vld [vmem:[#allocation2 + $0x10] sm:$0xf]  ;;  %v1886_v13 = vld [vmem:[#allocation2 + $0x18] sm:$0xe] }
  0xba   : > { %v1422_v55 = vsel %vm6727_vm11, %v1417_v4, %v1421_v1  ;;  %v1481_v56 = vunpack.c.l.b16 %v1432_v37  ;;  %v2065_v17 = vunpack.c.l.b16 %v1941_v60  ;;  %v2671_v14 = vrot.slane %v2669_v19, 5  ;;  %v6438_v37 = vld [vmem:[#allocation2 + $0x14] sm:$0x1]  ;;  %v6462_v2 = vld [vmem:[#allocation2 + $0xbc] sm:$0x1] }
  0xbb   : > { %v1480_v21 = vunpack.c.l.b16 %v1422_v55  ;;  %v2675_v30 = vrot.slane %v2673_v20, 4  ;;  %v1944_v41 = vrot.slane %v6437_v40, 5  ;;  %v2666_v47 = vor.u32 %v2665_v34, %v2662_v31 }
  0xbc   : > { %v988_v23 = vld [vmem:[#allocation2 + $0x24] sm:$0xf]  ;;  %v2096_v32 = vpack.c.b16 %v2065_v17, %v2064_v62  ;;  %v2679_v48 = vshll.u32 %v2613_v38, 16  ;;  %v5589_v51 = vrot.slane %v1885_v42, 9  ;;  %v1951_v59 = vrot.slane %v7001_v35, 5 }
  0xbd   : > { %v1497_v43 = vpack.c.b16 %v1481_v56, %v1480_v21  ;;  %v7123_v0 = vld [vmem:[#allocation2 + $0x28] sm:$0xf]  ;;  %v1122_v3 = vshrl.u32 %v988_v23, 16  ;;  %v1125_v5 = vshll.u32 %v988_v23, 16  ;;  %1803 = vmatmul.bf16.vlgmr.msrb.gmra.mxu1 %v6104_v52  ;;  %v2676_v50 = vor.u32 %v2675_v30, %v2671_v14  ;;  %v6105_v56 = vld [vmem:[#allocation2 + $0xc] sm:$0xff] }
  0xbe   : > { %v7125_v9 = vld [vmem:[#allocation2 + $0x2c] sm:$0x1]  ;;  %v1131_v10 = vshll.u32 %v7123_v0, 16  ;;  %v1135_v53 = vshrl.u32 %v7123_v0, 16  ;;  %v1946_v44 = vrot.slane %v1944_v41, 4  ;;  %v1947_v52 = vrot.slane %v6438_v37, 5 }
  0xbf   : > { %1645 = vmatmul.bf16.gmra.mxu3 %v1497_v43  ;;  %v1124_v29 = vrot.slane %v1122_v3, 4  ;;  %v1127_v11 = vrot.slane %v1125_v5, 5  ;;  %v1141_v15 = vshll.u32 %v7125_v9, 16  ;;  %v2667_v21 = vrot.slane %v2666_v47, 4  ;;  %v2615_v5 = vld [vmem:[#allocation2 + $0x1c] sm:$0xf] }
  0xc0   : > { %v1133_v54 = vrot.slane %v1131_v10, 5  ;;  %v1137_v1 = vrot.slane %v1135_v53, 4  ;;  %v2681_v58 = vrot.slane %v2679_v48, 5  ;;  %v1954_v23 = vrot.slane %v7004_v39, 5  ;;  %v2616_v38 = vld [vmem:[#allocation2 + $0x20] sm:$0x1] }
  0xc1   : > { %v1128_v25 = vor.u32 %v1127_v11, %v1124_v29  ;;  %v1143_v28 = vrot.slane %v1141_v15, 5  ;;  %v2677_v60 = vrot.slane %v2676_v50, 4  ;;  %v1945_v63 = vsel %vm7102_vm14, %v5589_v51, %v1944_v41  ;;  %v6206_v15 = vld [vmem:[%s8196_s3 + $0x1b0] sm:$0xff]  ;;  %v6106_v41 = vld [vmem:[#allocation2 + $0x18] sm:$0xff]  ;;  %v2617_v42 = vld [vmem:[#allocation2 + $0x24] sm:$0xf] }
  0xc2   : > { %v1138_v27 = vor.u32 %v1137_v1, %v1133_v54  ;;  %v1948_v43 = vsel %vm7102_vm14, %v1946_v44, %v1947_v52  ;;  %v5590_v3 = vrot.slane %v1886_v13, 9  ;;  %v1953_v7 = vrot.slane %v1951_v59, 4  ;;  %3914 = vmatpush.bf16.msra.mxu2 %v6206_v15  ;;  %v6222_v47 = vld [vmem:[%s8196_s3 + $0x230] sm:$0xff]  ;;  %v2618_v51 = vld [vmem:[#allocation2 + $0x28] sm:$0xf] }
  0xc3   : > { %v1129_v36 = vrot.slane %v1128_v25, 4  ;;  %v2672_v10 = vsel %vm6727_vm11, %v2667_v21, %v2671_v14  ;;  %v2684_v53 = vshrl.u32 %v2614_v12, 16  ;;  %v2687_v62 = vshll.u32 %v2614_v12, 16  ;;  %5022 = vmatpush.bf16.msra.mxu0 %v6222_v47  ;;  %v1888_v47 = vld [vmem:[#allocation2 + $0x30] sm:$0xe] }
  0xc4   : > { %v1139_v22 = vrot.slane %v1138_v27, 4  ;;  %v1952_v35 = vsel %vm7102_vm14, %v5590_v3, %v1951_v59  ;;  %v2066_v39 = vunpack.c.l.b16 %v1945_v63  ;;  %v2067_v24 = vunpack.c.l.b16 %v1948_v43  ;;  %v2619_v59 = vld [vmem:[#allocation2 + $0x2c] sm:$0x1]  ;;  %v1887_v43 = vld [vmem:[#allocation2 + $0x24] sm:$0xe] }
  0xc5   : > { %v1134_v33 = vsel %vm6727_vm11, %v1129_v36, %v1133_v54  ;;  %v1955_v29 = vsel %vm7102_vm14, %v1953_v7, %v1954_v23  ;;  %v2068_v11 = vunpack.c.l.b16 %v1952_v35  ;;  %v2682_v17 = vsel %vm6727_vm11, %v2677_v60, %v2681_v58 }
  0xc6   : > { %v1144_v45 = vsel %vm6727_vm11, %v1139_v22, %v1143_v28  ;;  %v1456_v46 = vunpack.c.l.b16 %v1134_v33  ;;  %v2693_v54 = vshll.u32 %v2615_v5, 16  ;;  %v2697_v1 = vshrl.u32 %v2615_v5, 16  ;;  %v6145_v33 = vld [vmem:[#allocation2 + $0x18] sm:$0xff] }
  0xc7   : > { %v1457_v4 = vunpack.c.l.b16 %v1144_v45  ;;  %2184 = vmatmul.bf16.vlgmr.msrb.gmra.mxu2 %v2096_v32  ;;  %v2069_v19 = vunpack.c.l.b16 %v1955_v29  ;;  %v3060_v25 = vunpack.c.l.b16 %v2672_v10  ;;  %v3061_v27 = vunpack.c.l.b16 %v2682_v17  ;;  %v6214_v45 = vld [vmem:[%s8196_s3 + $0x1f0] sm:$0xff]  ;;  %v6146_v29 = vld [vmem:[#allocation2 + $0x24] sm:$0xff] }
  0xc8   : > { %v2097_v28 = vpack.c.b16 %v2067_v24, %v2066_v39  ;;  %v2686_v31 = vrot.slane %v2684_v53, 4  ;;  %v2689_v34 = vrot.slane %v2687_v62, 5  ;;  %v2695_v36 = vrot.slane %v2693_v54, 5  ;;  %4596 = vmatpush.bf16.msra.mxu3 %v6214_v45  ;;  %v6107_v39 = vld [vmem:[#allocation2 + $0x24] sm:$0xff]  ;;  %v2620_v54 = vld [vmem:[#allocation2 + $0x30] sm:$0xf] }
  0xc9   : > { %v1485_v55 = vpack.c.b16 %v1457_v4, %v1456_v46  ;;  %v2098_v20 = vpack.c.b16 %v2069_v19, %v2068_v11  ;;  %v2699_v32 = vrot.slane %v2697_v1, 4  ;;  %v3092_v22 = vpack.c.b16 %v3061_v27, %v3060_v25  ;;  %v6182_v46 = vld [vmem:[%s8196_s3 + $0x170] sm:$0xff] }
  0xca   : > { %v2690_v14 = vor.u32 %v2689_v34, %v2686_v31  ;;  %v2703_v40 = vshll.u32 %v2616_v38, 16  ;;  %v2708_v44 = vshrl.u32 %v2617_v42, 16  ;;  %v2711_v37 = vshll.u32 %v2617_v42, 16  ;;  %3599 = vmatpush.bf16.msra.mxu1 %v6182_v46  ;;  %v2621_v1 = vld [vmem:[#allocation2 + $0x34] sm:$0xf]  ;;  %v7177_v38 = vpop.f32.mrf.mxu1 }
  0xcb   : > { %1585 = vmatmul.bf16.gmra.mxu0 %v1485_v55  ;;  %v2700_v30 = vor.u32 %v2699_v32, %v2695_v36  ;;  %v1958_v63 = vrot.slane %v7123_v0, 5  ;;  %v2727_v7 = vshll.u32 %v2619_v59, 16  ;;  %v5591_v53 = vrot.slane %v1887_v43, 9  ;;  %v6439_v45 = vld [vmem:[#allocation2 + $0x34] sm:$0xf]  ;;  %v6221_v59 = vld [vmem:[%s8196_s3 + $0x228] sm:$0xff] }
  0xcc   : > { %v2691_v48 = vrot.slane %v2690_v14, 4  ;;  %v2705_v50 = vrot.slane %v2703_v40, 5  ;;  %v2710_v21 = vrot.slane %v2708_v44, 4  ;;  %v2713_v58 = vrot.slane %v2711_v37, 5  ;;  %5023 = vmatpush.bf16.msra.mxu0 %v6221_v59 }
  0xcd   : > { %1808 = vmatmul.bf16.gmra.mxu1 %v6105_v56  ;;  %v2701_v4 = vrot.slane %v2700_v30, 4  ;;  %v2717_v56 = vshll.u32 %v2618_v51, 16  ;;  %v1960_v62 = vrot.slane %v1958_v63, 4  ;;  %v1961_v35 = vrot.slane %v7125_v9, 5 }
  0xce   : > { %v2696_v52 = vsel %vm6727_vm11, %v2691_v48, %v2695_v36  ;;  %v2714_v3 = vor.u32 %v2713_v58, %v2710_v21  ;;  %v2729_v15 = vrot.slane %v2727_v7, 5  ;;  %v1959_v17 = vsel %vm7102_vm14, %v5591_v53, %v1958_v63  ;;  %v2623_v21 = vld [vmem:[#allocation2 + $0x3c] sm:$0xf]  ;;  %v7194_v53 = vpop.f32.mrf.mxu2 }
  0xcf   : > { %2498 = vmatmul.bf16.vlgmr.msrb.gmra.mxu3 %v6144_v57  ;;  %v2706_v55 = vsel %vm6727_vm11, %v2701_v4, %v2705_v50  ;;  %v2721_v57 = vshrl.u32 %v2618_v51, 16  ;;  %v3062_v12 = vunpack.c.l.b16 %v2696_v52  ;;  %v2719_v23 = vrot.slane %v2717_v56, 5  ;;  %v6440_v52 = vld [vmem:[#allocation2 + $0x38] sm:$0x1]  ;;  %v6108_v56 = vld [vmem:[#allocation2 + $0x30] sm:$0xff] }
  0xd0   : > { %v3063_v13 = vunpack.c.l.b16 %v2706_v55  ;;  %v2715_v24 = vrot.slane %v2714_v3, 4  ;;  %v1962_v0 = vsel %vm7102_vm14, %v1960_v62, %v1961_v35  ;;  %v2070_v9 = vunpack.c.l.b16 %v1959_v17 }
  0xd1   : > { %v2723_v60 = vrot.slane %v2721_v57, 4  ;;  %v2732_v25 = vshrl.u32 %v2620_v54, 16  ;;  %v2735_v27 = vshll.u32 %v2620_v54, 16  ;;  %v2741_v34 = vshll.u32 %v2621_v1, 16  ;;  %v6147_v57 = vld [vmem:[#allocation2 + $0x30] sm:$0xff] }
  0xd2   : > { %v3093_v5 = vpack.c.b16 %v3063_v13, %v3062_v12  ;;  %v2720_v19 = vsel %vm6727_vm11, %v2715_v24, %v2719_v23  ;;  %v2745_v36 = vshrl.u32 %v2621_v1, 16  ;;  %v1965_v46 = vrot.slane %v6439_v45, 5  ;;  %v6213_v12 = vld [vmem:[%s8196_s3 + $0x1e8] sm:$0xff]  ;;  %v7192_v3 = vpop.f32.mrf.mxu1  ;;  %v6109_v45 = vld [vmem:[#allocation2 + $0x3c] sm:$0xff] }
  0xd3   : > { %v2724_v10 = vor.u32 %v2723_v60, %v2719_v23  ;;  %v3064_v32 = vunpack.c.l.b16 %v2720_v19  ;;  %v2734_v30 = vrot.slane %v2732_v25, 4  ;;  %v2737_v40 = vrot.slane %v2735_v27, 5  ;;  %v6181_v13 = vld [vmem:[%s8196_s3 + $0x168] sm:$0xff]  ;;  %4597 = vmatpush.bf16.msra.mxu3 %v6213_v12  ;;  %v2625_v19 = vld [vmem:[#allocation2 + $0x44] sm:$0x1] }
  0xd4   : > { %v2747_v42 = vrot.slane %v2745_v36, 4  ;;  %v5592_v44 = vrot.slane %v1888_v47, 9  ;;  %v1967_v37 = vrot.slane %v1965_v46, 4  ;;  %v1968_v55 = vrot.slane %v6440_v52, 5  ;;  %3600 = vmatpush.bf16.msra.mxu1 %v6181_v13  ;;  %v6441_v27 = vld [vmem:[#allocation2 + $0x40] sm:$0xf]  ;;  %v7202_v36 = vpop.f32.mrf.mxu3 }
  0xd5   : > { %v2725_v11 = vrot.slane %v2724_v10, 4  ;;  %v2738_v4 = vor.u32 %v2737_v40, %v2734_v30  ;;  %v2756_v7 = vshrl.u32 %v2623_v21, 16  ;;  %v2759_v10 = vshll.u32 %v2623_v21, 16  ;;  %v6148_v47 = vld [vmem:[#allocation2 + $0x3c] sm:$0xff] }
  0xd6   : > { %v1966_v63 = vsel %vm7102_vm14, %v5592_v44, %v1965_v46  ;;  %v1969_v43 = vsel %vm7102_vm14, %v1967_v37, %v1968_v55  ;;  %v7204_v30 = vpop.f32.mrf.mxu2  ;;  %v2626_v37 = vld [vmem:[#allocation2 + $0x48] sm:$0xf]  ;;  %v2627_v55 = vld [vmem:[#allocation2 + $0x4c] sm:$0xf]  ;;  %v6204_v13 = vld [vmem:[%s8196_s3 + $0x1a0] sm:$0xff] }
  0xd7   : > { %2189 = vmatmul.bf16.gmra.mxu2 %v2097_v28  ;;  %v6205_v28 = vld [vmem:[%s8196_s3 + $0x1a8] sm:$0xff]  ;;  %v2730_v31 = vsel %vm6727_vm11, %v2725_v11, %v2729_v15  ;;  %v2739_v23 = vrot.slane %v2738_v4, 4  ;;  %v2072_v62 = vunpack.c.l.b16 %v1966_v63  ;;  %v2073_v35 = vunpack.c.l.b16 %v1969_v43 }
  0xd8   : > { %3915 = vmatpush.bf16.msra.mxu2 %v6205_v28  ;;  %v2758_v15 = vrot.slane %v2756_v7, 4  ;;  %v2761_v17 = vrot.slane %v2759_v10, 5  ;;  %v1972_v28 = vrot.slane %v6441_v27, 5  ;;  %v2783_v12 = vshll.u32 %v2626_v37, 16 }
  0xd9   : > { %v2100_v1 = vpack.c.b16 %v2073_v35, %v2072_v62  ;;  %v2793_v63 = vshrl.u32 %v2627_v55, 16 }
  0xda   : > { %v7200_v25 = vpop.f32.mrf.mxu1  ;;  %v2785_v35 = vrot.slane %v2783_v12, 5 }
  0xdb   : > { %3180 = vmatmul.bf16.vlgmr.msrb.gmra.mxu0 %v3092_v22  ;;  %v3065_v22 = vunpack.c.l.b16 %v2730_v31  ;;  %v1889_v31 = vld [vmem:[#allocation2 + $0x3c] sm:$0xe] }
  0xdc   : > { %v5593_v40 = vrot.slane %v1889_v31, 9  ;;  %3916 = vmatpush.bf16.msra.mxu2 %v6204_v13  ;;  %v6444_v31 = vld [vmem:[#allocation2 + $0x50] sm:$0x1] }
  0xdd   : > { %1813 = vmatmul.bf16.gmra.mxu1 %v6106_v41  ;;  %v2622_v41 = vld [vmem:[#allocation2 + $0x38] sm:$0x1]  ;;  %v3094_v48 = vpack.c.b16 %v3065_v22, %v3064_v32  ;;  %v2775_v22 = vshll.u32 %v2625_v19, 16 }
  0xde   : > { %v2751_v50 = vshll.u32 %v2622_v41, 16  ;;  %v1974_v41 = vrot.slane %v1972_v28, 4 }
  0xdf   : > { %2503 = vmatmul.bf16.gmra.mxu3 %v6145_v33  ;;  %v2743_v33 = vrot.slane %v2741_v34, 5  ;;  %v2762_v34 = vor.u32 %v2761_v17, %v2758_v15  ;;  %v1890_v17 = vld [vmem:[#allocation2 + $0x48] sm:$0xe] }
  0xe0   : > { %v2753_v58 = vrot.slane %v2751_v50, 5  ;;  %v2777_v50 = vrot.slane %v2775_v22, 5  ;;  %v5594_v27 = vrot.slane %v1890_v17, 9  ;;  %v6149_v22 = vld [vmem:[#allocation2 + $0x48] sm:$0xff]  ;;  %v1891_v17 = vld [vmem:[#allocation2 + $0x54] sm:$0xe] }
  0xe1   : > { %v2748_v51 = vor.u32 %v2747_v42, %v2743_v33  ;;  %v2763_v46 = vrot.slane %v2762_v34, 4  ;;  %v1982_v34 = vrot.slane %v6444_v31, 5  ;;  %v1989_v31 = vrot.slane %v7040_v18, 5 }
  0xe2   : > { %v7212_v52 = vpop.f32.mrf.mxu1 }
  0xe3   : > { %v2749_v60 = vrot.slane %v2748_v51, 4  ;;  %v1973_v51 = vsel %vm7102_vm14, %v5593_v40, %v1972_v28  ;;  %v2629_v40 = vld [vmem:[#allocation2 + $0x54] sm:$0xf] }
  0xe5   : > { %v2754_v24 = vsel %vm6727_vm11, %v2749_v60, %v2753_v58  ;;  %v2780_v58 = vshrl.u32 %v2626_v37, 16  ;;  %v2789_v60 = vshll.u32 %v2627_v55, 16  ;;  %v2804_v37 = vshrl.u32 %v2629_v40, 16 }
  0xe6   : > { %v3067_v54 = vunpack.c.l.b16 %v2754_v24  ;;  %v2807_v55 = vshll.u32 %v2629_v40, 16 }
  0xe7   : > { %2194 = vmatmul.bf16.gmra.mxu2 %v2098_v20  ;;  %v2071_v20 = vunpack.c.l.b16 %v1962_v0  ;;  %v2782_v62 = vrot.slane %v2780_v58, 4  ;;  %v2791_v24 = vrot.slane %v2789_v60, 5 }
  0xe9   : > { %v2099_v14 = vpack.c.b16 %v2071_v20, %v2070_v9  ;;  %v2786_v19 = vor.u32 %v2785_v35, %v2782_v62 }
  0xeb   : > { %3185 = vmatmul.bf16.gmra.mxu0 %v3093_v5  ;;  %v2624_v5 = vld [vmem:[#allocation2 + $0x40] sm:$0xf] }
  0xec   : > { %v2769_v11 = vshrl.u32 %v2624_v5, 16 }
  0xed   : > { %1818 = vmatmul.bf16.gmra.mxu1 %v6107_v39  ;;  %v2744_v39 = vsel %vm6727_vm11, %v2739_v23, %v2743_v33  ;;  %v6442_v33 = vld [vmem:[#allocation2 + $0x44] sm:$0x1]  ;;  %v7221_v23 = vpop.f32.mrf.mxu3 }
  0xee   : > { %v3066_v0 = vunpack.c.l.b16 %v2744_v39  ;;  %v2771_v20 = vrot.slane %v2769_v11, 4  ;;  %v1975_v42 = vrot.slane %v6442_v33, 5  ;;  %v2628_v39 = vld [vmem:[#allocation2 + $0x50] sm:$0x1]  ;;  %v6443_v11 = vld [vmem:[#allocation2 + $0x4c] sm:$0xf] }
  0xef   : > { %2508 = vmatmul.bf16.gmra.mxu3 %v6146_v29  ;;  %v2765_v29 = vshll.u32 %v2624_v5, 16  ;;  %v7223_v5 = vpop.f32.mrf.mxu2  ;;  %v1979_v15 = vrot.slane %v6443_v11, 5 }
  0xf0   : > { %v3095_v32 = vpack.c.b16 %v3067_v54, %v3066_v0  ;;  %v1976_v44 = vsel %vm7102_vm14, %v1974_v41, %v1975_v42  ;;  %v2630_v41 = vld [vmem:[#allocation2 + $0x58] sm:$0xf]  ;;  %v6212_v42 = vld [vmem:[%s8196_s3 + $0x1e0] sm:$0xff] }
  0xf1   : > { %v2767_v9 = vrot.slane %v2765_v29, 5  ;;  %v2075_v21 = vunpack.c.l.b16 %v1976_v44  ;;  %v2795_v29 = vrot.slane %v2793_v63, 4  ;;  %v1981_v28 = vrot.slane %v1979_v15, 4  ;;  %4598 = vmatpush.bf16.msra.mxu3 %v6212_v42  ;;  %v2632_v42 = vld [vmem:[#allocation2 + $0x60] sm:$0xf] }
  0xf2   : > { %v2806_v63 = vrot.slane %v2804_v37, 4  ;;  %v2831_v37 = vshll.u32 %v2632_v42, 16 }
  0xf3   : > { %v1983_v44 = vsel %vm7102_vm14, %v1981_v28, %v1982_v34  ;;  %v6111_v34 = vld [vmem:[#allocation2 + $0x54] sm:$0xff] }
  0xf4   : > { %v2077_v58 = vunpack.c.l.b16 %v1983_v44  ;;  %v2828_v44 = vshrl.u32 %v2632_v42, 16  ;;  %v6151_v42 = vld [vmem:[#allocation2 + $0x60] sm:$0xff] }
  0xf7   : > { %2199 = vmatmul.bf16.gmra.mxu2 %v2099_v14  ;;  %v2772_v14 = vor.u32 %v2771_v20, %v2767_v9  ;;  %v2796_v20 = vor.u32 %v2795_v29, %v2791_v24  ;;  %v2631_v29 = vld [vmem:[#allocation2 + $0x5c] sm:$0x1] }
  0xf9   : > { %v2773_v4 = vrot.slane %v2772_v14, 4  ;;  %v7229_v14 = vpop.f32.mrf.mxu3 }
  0xfb   : > { %3190 = vmatmul.bf16.gmra.mxu0 %v3094_v48  ;;  %v7206_v48 = vpop.f32.mrf.mxu0  ;;  %v2778_v59 = vsel %vm6727_vm11, %v2773_v4, %v2777_v50  ;;  %v2797_v4 = vrot.slane %v2796_v20, 4  ;;  %v7240_v50 = vpop.f32.mrf.mxu2 }
  0xfc   : > { %v3069_v7 = vunpack.c.l.b16 %v2778_v59 }
  0xfd   : > { %1823 = vmatmul.bf16.gmra.mxu1 %v6108_v56  ;;  %v2768_v56 = vsel %vm6727_vm11, %v2763_v46, %v2767_v9  ;;  %v2799_v9 = vshll.u32 %v2628_v39, 16  ;;  %v6220_v46 = vld [vmem:[%s8196_s3 + $0x220] sm:$0xff] }
  0xfe   : > { %v3068_v43 = vunpack.c.l.b16 %v2768_v56  ;;  %v2813_v56 = vshll.u32 %v2630_v41, 16  ;;  %5024 = vmatpush.bf16.msra.mxu0 %v6220_v46 }
  0xff   : > { %2513 = vmatmul.bf16.gmra.mxu3 %v6147_v57  ;;  %v2074_v57 = vunpack.c.l.b16 %v1973_v51  ;;  %v7227_v54 = vpop.f32.mrf.mxu1  ;;  %v2801_v33 = vrot.slane %v2799_v9, 5  ;;  %v1980_v51 = vsel %vm7102_vm14, %v5594_v27, %v1979_v15  ;;  %v1986_v15 = vrot.slane %v7031_v61, 5  ;;  %v6150_v61 = vld [vmem:[#allocation2 + $0x54] sm:$0xff] }
 0x100   : > { %v5595_v27 = vrot.slane %v1891_v17, 9  ;;  %v2634_v17 = vld [vmem:[#allocation2 + $0x68] sm:$0x1] }
 0x101   : > { %v2101_v10 = vpack.c.b16 %v2075_v21, %v2074_v57  ;;  %v2817_v57 = vshrl.u32 %v2630_v41, 16  ;;  %v2076_v21 = vunpack.c.l.b16 %v1980_v51  ;;  %v2802_v59 = vsel %vm6727_vm11, %v2797_v4, %v2801_v33  ;;  %v7254_v11 = vpop.f32.mrf.mxu3 }
 0x102   : > { %v3071_v35 = vunpack.c.l.b16 %v2802_v59  ;;  %v1988_v28 = vrot.slane %v1986_v15, 4 }
 0x103   : > { %v7225_v0 = vpop.f32.mrf.mxu0  ;;  %v2102_v39 = vpack.c.b16 %v2077_v58, %v2076_v21 }
 0x104   : > { %v1990_v46 = vsel %vm7102_vm14, %v1988_v28, %v1989_v31  ;;  %v2847_v28 = vshll.u32 %v2634_v17, 16 }
 0x107   : > { %2204 = vmatmul.bf16.gmra.mxu2 %v2100_v1  ;;  %v3096_v1 = vpack.c.b16 %v3069_v7, %v3068_v43  ;;  %v7252_v60 = vpop.f32.mrf.mxu1  ;;  %v2809_v43 = vrot.slane %v2807_v55, 5  ;;  %v2815_v7 = vrot.slane %v2813_v56, 5  ;;  %v2079_v56 = vunpack.c.l.b16 %v1990_v46 }
 0x10b   : > { %3195 = vmatmul.bf16.gmra.mxu0 %v3095_v32  ;;  %v6110_v32 = vld [vmem:[#allocation2 + $0x48] sm:$0xff]  ;;  %v7246_v12 = vpop.f32.mrf.mxu0 }
 0x10d   : > { %1828 = vmatmul.bf16.gmra.mxu1 %v6109_v45  ;;  %v6180_v45 = vld [vmem:[%s8196_s3 + $0x160] sm:$0xff] }
 0x10e   : > { %3601 = vmatpush.bf16.msra.mxu1 %v6180_v45  ;;  %v7257_v9 = vpop.f32.mrf.mxu2  ;;  %v1987_v45 = vsel %vm7102_vm14, %v5595_v27, %v1986_v15 }
 0x10f   : > { %2518 = vmatmul.bf16.gmra.mxu3 %v6148_v47  ;;  %v2787_v47 = vrot.slane %v2786_v19, 4  ;;  %v2823_v19 = vshll.u32 %v2631_v29, 16  ;;  %v2078_v55 = vunpack.c.l.b16 %v1987_v45  ;;  %v6445_v29 = vld [vmem:[#allocation2 + $0x64] sm:$0xf] }
 0x110   : > { %v1993_v15 = vrot.slane %v6445_v29, 5 }
 0x111   : > { %v2792_v13 = vsel %vm6727_vm11, %v2787_v47, %v2791_v24  ;;  %v2825_v41 = vrot.slane %v2823_v19, 5  ;;  %v2633_v47 = vld [vmem:[#allocation2 + $0x64] sm:$0xf] }
 0x112   : > { %v3070_v62 = vunpack.c.l.b16 %v2792_v13  ;;  %v2841_v21 = vshrl.u32 %v2633_v47, 16 }
 0x114   : > { %v3097_v20 = vpack.c.b16 %v3071_v35, %v3070_v62  ;;  %v2843_v35 = vrot.slane %v2841_v21, 4 }
 0x116   : > { %v7272_v51 = vpop.f32.mrf.mxu3  ;;  %v7274_v58 = vpop.f32.mrf.mxu2 }
 0x117   : > { %2209 = vmatmul.bf16.gmra.mxu2 %v2101_v10  ;;  %v2819_v10 = vrot.slane %v2817_v57, 4  ;;  %v2837_v57 = vshll.u32 %v2633_v47, 16  ;;  %v2635_v47 = vld [vmem:[#allocation2 + $0x6c] sm:$0xf] }
 0x119   : > { %v2820_v24 = vor.u32 %v2819_v10, %v2815_v7  ;;  %v2833_v10 = vrot.slane %v2831_v37, 5  ;;  %v2839_v62 = vrot.slane %v2837_v57, 5  ;;  %v6211_v37 = vld [vmem:[%s8196_s3 + $0x1d8] sm:$0xff]  ;;  %v2849_v57 = vrot.slane %v2847_v28, 5 }
 0x11a   : > { %4599 = vmatpush.bf16.msra.mxu3 %v6211_v37 }
 0x11b   : > { %3200 = vmatmul.bf16.gmra.mxu0 %v3096_v1  ;;  %v2810_v1 = vor.u32 %v2809_v43, %v2806_v63  ;;  %v2821_v40 = vrot.slane %v2820_v24, 4  ;;  %v2830_v63 = vrot.slane %v2828_v44, 4  ;;  %v2636_v44 = vld [vmem:[#allocation2 + $0x70] sm:$0xf] }
 0x11d   : > { %1833 = vmatmul.bf16.gmra.mxu1 %v6110_v32  ;;  %v7260_v32 = vpop.f32.mrf.mxu0  ;;  %v2826_v4 = vsel %vm6727_vm11, %v2821_v40, %v2825_v41  ;;  %v2834_v19 = vor.u32 %v2833_v10, %v2830_v63  ;;  %v6203_v41 = vld [vmem:[%s8196_s3 + $0x198] sm:$0xff]  ;;  %v2855_v63 = vshll.u32 %v2635_v47, 16  ;;  %v2865_v10 = vshrl.u32 %v2636_v44, 16 }
 0x11e   : > { %v3073_v59 = vunpack.c.l.b16 %v2826_v4  ;;  %v7280_v27 = vpop.f32.mrf.mxu3  ;;  %3917 = vmatpush.bf16.msra.mxu2 %v6203_v41 }
 0x11f   : > { %2523 = vmatmul.bf16.gmra.mxu3 %v6149_v22  ;;  %v2811_v22 = vrot.slane %v2810_v1, 4  ;;  %v1892_v1 = vld [vmem:[#allocation2 + $0x60] sm:$0xe]  ;;  %8211 = vst [vmem:[#allocation3_spill] sm:$0xff] %v7280_v27  ;;  %v2857_v28 = vrot.slane %v2855_v63, 5  ;;  %v6113_v63 = vld [vmem:[#allocation2 + $0x6c] sm:$0xff] }
 0x120   : > { %v5596_v31 = vrot.slane %v1892_v1, 9  ;;  %v6219_v1 = vld [vmem:[%s8196_s3 + $0x218] sm:$0xff] }
 0x121   : > { %v2816_v18 = vsel %vm6727_vm11, %v2811_v22, %v2815_v7  ;;  %v2103_v7 = vpack.c.b16 %v2079_v56, %v2078_v55  ;;  %v6446_v22 = vld [vmem:[#allocation2 + $0x68] sm:$0x1]  ;;  %v6179_v55 = vld [vmem:[%s8196_s3 + $0x158] sm:$0xff]  ;;  %5025 = vmatpush.bf16.msra.mxu0 %v6219_v1 }
 0x122   : > { %v3072_v13 = vunpack.c.l.b16 %v2816_v18  ;;  %v1996_v40 = vrot.slane %v6446_v22, 5  ;;  %v2835_v18 = vrot.slane %v2834_v19, 4  ;;  %v1994_v21 = vsel %vm7102_vm14, %v5596_v31, %v1993_v15  ;;  %3602 = vmatpush.bf16.msra.mxu1 %v6179_v55 }
 0x124   : > { %v3098_v24 = vpack.c.b16 %v3073_v59, %v3072_v13  ;;  %v2852_v59 = vshrl.u32 %v2635_v47, 16  ;;  %v2840_v17 = vsel %vm6727_vm11, %v2835_v18, %v2839_v62  ;;  %v1893_v47 = vld [vmem:[#allocation2 + $0x6c] sm:$0xe] }
 0x125   : > { %v3074_v22 = vunpack.c.l.b16 %v2840_v17  ;;  %v6152_v17 = vld [vmem:[#allocation2 + $0x6c] sm:$0xff] }
 0x127   : > { %2214 = vmatmul.bf16.gmra.mxu2 %v2102_v39  ;;  %v7278_v39 = vpop.f32.mrf.mxu0 }
 0x12a   : > { %v7262_v33 = vpop.f32.mrf.mxu1 }
 0x12b   : > { %3205 = vmatmul.bf16.gmra.mxu0 %v3097_v20  ;;  %v2844_v20 = vor.u32 %v2843_v35, %v2839_v62  ;;  %v2080_v35 = vunpack.c.l.b16 %v1994_v21 }
 0x12d   : > { %1838 = vmatmul.bf16.gmra.mxu1 %v6111_v34  ;;  %v1995_v34 = vrot.slane %v1993_v15, 4  ;;  %v2845_v56 = vrot.slane %v2844_v20, 4  ;;  %v2854_v20 = vrot.slane %v2852_v59, 4 }
 0x12f   : > { %2528 = vmatmul.bf16.gmra.mxu3 %v6150_v61  ;;  %v6112_v61 = vld [vmem:[#allocation2 + $0x60] sm:$0xff]  ;;  %v1997_v13 = vsel %vm7102_vm14, %v1995_v34, %v1996_v40  ;;  %v2850_v15 = vsel %vm6727_vm11, %v2845_v56, %v2849_v57  ;;  %v2867_v34 = vrot.slane %v2865_v10, 4  ;;  %v2858_v18 = vor.u32 %v2857_v28, %v2854_v20  ;;  %v2638_v28 = vld [vmem:[#allocation2 + $0x78] sm:$0xf] }
 0x130   : > { %v2081_v29 = vunpack.c.l.b16 %v1997_v13  ;;  %v3075_v40 = vunpack.c.l.b16 %v2850_v15  ;;  %v5597_v57 = vrot.slane %v1893_v47, 9  ;;  %v6448_v13 = vld [vmem:[#allocation2 + $0x74] sm:$0x1]  ;;  %v2879_v47 = vshll.u32 %v2638_v28, 16 }
 0x131   : > { %v2003_v59 = vrot.slane %v6448_v13, 5  ;;  %v2859_v10 = vrot.slane %v2858_v18, 4 }
 0x132   : > { %v7276_v43 = vpop.f32.mrf.mxu1  ;;  %v2104_v41 = vpack.c.b16 %v2081_v29, %v2080_v35  ;;  %v3099_v37 = vpack.c.b16 %v3075_v40, %v3074_v22 }
 0x137   : > { %2219 = vmatmul.bf16.gmra.mxu2 %v2103_v7  ;;  %v2861_v7 = vshll.u32 %v2636_v44, 16 }
 0x139   : > { %v2863_v31 = vrot.slane %v2861_v7, 5 }
 0x13a   : > { %v7285_v45 = vpop.f32.mrf.mxu2  ;;  %v1804_v46 = vpop.f32.mrf.mxu1 }
 0x13b   : > { %3210 = vmatmul.bf16.gmra.mxu0 %v3098_v24  ;;  %v1805_v4 = vadd.f32 %v1804_v46, %v7206_v48  ;;  %v7298_v48 = vpop.f32.mrf.mxu0  ;;  %v2868_v44 = vor.u32 %v2867_v34, %v2863_v31  ;;  %v2639_v34 = vld [vmem:[#allocation2 + $0x7c] sm:$0xf] }
 0x13c   : > { %v2885_v18 = vshll.u32 %v2639_v34, 16 }
 0x13d   : > { %1843 = vmatmul.bf16.gmra.mxu1 %v6112_v61  ;;  %v2637_v61 = vld [vmem:[#allocation2 + $0x74] sm:$0x1]  ;;  %v2869_v35 = vrot.slane %v2868_v44, 4 }
 0x13e   : > { %v2871_v55 = vshll.u32 %v2637_v61, 16  ;;  %v2864_v61 = vsel %vm6727_vm11, %v2859_v10, %v2863_v31  ;;  %v2881_v31 = vrot.slane %v2879_v47, 5  ;;  %v2887_v10 = vrot.slane %v2885_v18, 5  ;;  %v6114_v18 = vld [vmem:[#allocation2 + $0x78] sm:$0xff] }
 0x13f   : > { %2533 = vmatmul.bf16.gmra.mxu3 %v6151_v42  ;;  %v6447_v42 = vld [vmem:[#allocation2 + $0x70] sm:$0xf] }
 0x140   : > { %v2000_v46 = vrot.slane %v6447_v42, 5  ;;  %v2873_v15 = vrot.slane %v2871_v55, 5  ;;  %v2876_v42 = vshrl.u32 %v2638_v28, 16 }
 0x142   : > { %v7307_v24 = vpop.f32.mrf.mxu3  ;;  %v7309_v19 = vpop.f32.mrf.mxu2  ;;  %v2002_v21 = vrot.slane %v2000_v46, 4  ;;  %v2001_v40 = vsel %vm7102_vm14, %v5597_v57, %v2000_v46  ;;  %v3076_v46 = vunpack.c.l.b16 %v2864_v61 }
 0x143   : > { %8212 = vst [vmem:[#allocation4_spill] sm:$0xff] %v7307_v24  ;;  %v1806_v62 = vpop.f32.mrf.mxu1  ;;  %v2082_v44 = vunpack.c.l.b16 %v2001_v40 }
 0x144   : > { %v1807_v57 = vadd.f32 %v1806_v62, %v7225_v0 }
 0x147   : > { %2224 = vmatmul.bf16.gmra.mxu2 %v2104_v41  ;;  %v2004_v41 = vsel %vm7102_vm14, %v2002_v21, %v2003_v59 }
 0x148   : > { %v7311_v56 = vpop.f32.mrf.mxu0 }
 0x14a   : > { %v7313_v7 = vpop.f32.mrf.mxu3  ;;  %v2185_v29 = vpop.f32.mrf.mxu2 }
 0x14b   : > { %8213 = vst [vmem:[#allocation5_spill] sm:$0xff] %v7313_v7  ;;  %3215 = vmatmul.bf16.gmra.mxu0 %v3099_v37  ;;  %v2265_v1 = vadd.f32 %v2185_v29, %v1805_v4  ;;  %v1809_v20 = vpop.f32.mrf.mxu1  ;;  %v2874_v4 = vsel %vm6727_vm11, %v2869_v35, %v2873_v15  ;;  %v2083_v37 = vunpack.c.l.b16 %v2004_v41  ;;  %v2640_v35 = vld [vmem:[#allocation2 + $0x80] sm:$0x1]  ;;  %v6449_v15 = vld [vmem:[#allocation2 + $0x7c] sm:$0xf] }
 0x14c   : > { %v1810_v22 = vadd.f32 %v1809_v20, %v7246_v12  ;;  %v2889_v12 = vshrl.u32 %v2639_v34, 16  ;;  %v3077_v21 = vunpack.c.l.b16 %v2874_v4  ;;  %v2007_v40 = vrot.slane %v6449_v15, 5  ;;  %v1894_v34 = vld [vmem:[#allocation2 + $0x78] sm:$0xe] }
 0x14d   : > { %1848 = vmatmul.bf16.gmra.mxu1 %v6113_v63  ;;  %v2878_v63 = vrot.slane %v2876_v42, 4  ;;  %v2895_v0 = vshll.u32 %v2640_v35, 16  ;;  %v5598_v4 = vrot.slane %v1894_v34, 9  ;;  %v6450_v42 = vld [vmem:[#allocation2 + $0x80] sm:$0x1]  ;;  %v6210_v35 = vld [vmem:[%s8196_s3 + $0x1d0] sm:$0xff] }
 0x14e   : > { %v2891_v28 = vrot.slane %v2889_v12, 4  ;;  %v3100_v24 = vpack.c.b16 %v3077_v21, %v3076_v46  ;;  %v2009_v27 = vrot.slane %v2007_v40, 4  ;;  %v2010_v47 = vrot.slane %v6450_v42, 5  ;;  %v6153_v12 = vld [vmem:[#allocation2 + $0x78] sm:$0xff]  ;;  %v2641_v46 = vld [vmem:[#allocation2 + $0x84] sm:$0xf]  ;;  %4600 = vmatpush.bf16.msra.mxu3 %v6210_v35 }
 0x14f   : > { %2538 = vmatmul.bf16.gmra.mxu3 %v6152_v17  ;;  %v2105_v17 = vpack.c.b16 %v2083_v37, %v2082_v44  ;;  %v2882_v41 = vor.u32 %v2881_v31, %v2878_v63  ;;  %v2897_v63 = vrot.slane %v2895_v0, 5  ;;  %v2008_v34 = vsel %vm7102_vm14, %v5598_v4, %v2007_v40 }
 0x150   : > { %v7324_v55 = vpop.f32.mrf.mxu0  ;;  %v2892_v61 = vor.u32 %v2891_v28, %v2887_v10  ;;  %v2642_v28 = vld [vmem:[#allocation2 + $0x88] sm:$0xf] }
 0x151   : > { %v2913_v42 = vshrl.u32 %v2642_v28, 16 }
 0x152   : > { %v2499_v13 = vpop.f32.mrf.mxu3  ;;  %v2187_v59 = vpop.f32.mrf.mxu2 }
 0x153   : > { %v2579_v29 = vadd.f32 %v2499_v13, %v2265_v1  ;;  %v2266_v20 = vadd.f32 %v2187_v59, %v1807_v57  ;;  %v1811_v7 = vpop.f32.mrf.mxu1  ;;  %v6202_v1 = vld [vmem:[%s8196_s3 + $0x190] sm:$0xff]  ;;  %v2883_v57 = vrot.slane %v2882_v41, 4  ;;  %v2893_v59 = vrot.slane %v2892_v61, 4 }
 0x154   : > { %3918 = vmatpush.bf16.msra.mxu2 %v6202_v1  ;;  %v2909_v61 = vshll.u32 %v2642_v28, 16  ;;  %v1812_v4 = vadd.f32 %v1811_v7, %v7260_v32  ;;  %v2643_v32 = vld [vmem:[#allocation2 + $0x8c] sm:$0x1] }
 0x155   : > { %v2888_v41 = vsel %vm6727_vm11, %v2883_v57, %v2887_v10  ;;  %v2898_v0 = vsel %vm6727_vm11, %v2893_v59, %v2897_v63 }
 0x156   : > { %v3078_v10 = vunpack.c.l.b16 %v2888_v41  ;;  %v2919_v41 = vshll.u32 %v2643_v32, 16 }
 0x157   : > { %2229 = vmatmul.bf16.gmra.mxu2 %v2105_v17 }
 0x158   : > { %v3181_v62 = vpop.f32.mrf.mxu0 }
 0x159   : > { %v7330_v44 = vadd.f32 %v3181_v62, %v2579_v29  ;;  %v6178_v29 = vld [vmem:[%s8196_s3 + $0x150] sm:$0xff] }
 0x15a   : > { %v2501_v37 = vpop.f32.mrf.mxu3  ;;  %v2190_v13 = vpop.f32.mrf.mxu2  ;;  %3603 = vmatpush.bf16.msra.mxu1 %v6178_v29  ;;  %v6451_v29 = vld [vmem:[#allocation2 + $0x88] sm:$0xf] }
 0x15b   : > { %3220 = vmatmul.bf16.gmra.mxu0 %v3100_v24  ;;  %v2580_v21 = vadd.f32 %v2501_v37, %v2266_v20  ;;  %v2267_v31 = vadd.f32 %v2190_v13, %v1810_v22  ;;  %v1814_v17 = vpop.f32.mrf.mxu1  ;;  %v2011_v24 = vsel %vm7102_vm14, %v2009_v27, %v2010_v47  ;;  %v2900_v22 = vshrl.u32 %v2641_v46, 16  ;;  %v6218_v27 = vld [vmem:[%s8196_s3 + $0x210] sm:$0xff] }
 0x15c   : > { %v1815_v15 = vadd.f32 %v1814_v17, %v7278_v39  ;;  %v2903_v20 = vshll.u32 %v2641_v46, 16  ;;  %v2084_v39 = vunpack.c.l.b16 %v2008_v34  ;;  %v2085_v62 = vunpack.c.l.b16 %v2011_v24  ;;  %5026 = vmatpush.bf16.msra.mxu0 %v6218_v27  ;;  %v1895_v24 = vld [vmem:[#allocation2 + $0x84] sm:$0xe] }
 0x15d   : > { %1853 = vmatmul.bf16.gmra.mxu1 %v6114_v18  ;;  %v2902_v47 = vrot.slane %v2900_v22, 4  ;;  %v3079_v37 = vunpack.c.l.b16 %v2898_v0  ;;  %v2911_v13 = vrot.slane %v2909_v61, 5  ;;  %v2915_v17 = vrot.slane %v2913_v42, 4 }
 0x15e   : > { %v2905_v1 = vrot.slane %v2903_v20, 5  ;;  %v2106_v63 = vpack.c.b16 %v2085_v62, %v2084_v39  ;;  %v2014_v34 = vrot.slane %v6451_v29, 5  ;;  %v5599_v0 = vrot.slane %v1895_v24, 9  ;;  %v6115_v39 = vld [vmem:[#allocation2 + $0x84] sm:$0xff] }
 0x15f   : > { %2543 = vmatmul.bf16.gmra.mxu3 %v6153_v12  ;;  %v2916_v22 = vor.u32 %v2915_v17, %v2911_v13 }
 0x160   : > { %v3183_v40 = vpop.f32.mrf.mxu0  ;;  %v2906_v7 = vor.u32 %v2905_v1, %v2902_v47  ;;  %v2016_v61 = vrot.slane %v2014_v34, 4 }
 0x161   : > { %v7351_v18 = vadd.f32 %v3183_v40, %v2580_v21  ;;  %v3101_v21 = vpack.c.b16 %v3079_v37, %v3078_v10  ;;  %v6452_v40 = vld [vmem:[#allocation2 + $0x8c] sm:$0x1]  ;;  %v2917_v47 = vrot.slane %v2916_v22, 4  ;;  %v2644_v37 = vld [vmem:[#allocation2 + $0x90] sm:$0xf] }
 0x162   : > { %v2504_v12 = vpop.f32.mrf.mxu3  ;;  %v2192_v57 = vpop.f32.mrf.mxu2  ;;  %v2907_v27 = vrot.slane %v2906_v7, 4  ;;  %v2927_v32 = vshll.u32 %v2644_v37, 16 }
 0x163   : > { %v2581_v46 = vadd.f32 %v2504_v12, %v2267_v31  ;;  %v2268_v59 = vadd.f32 %v2192_v57, %v1812_v4  ;;  %v1816_v28 = vpop.f32.mrf.mxu1  ;;  %v2017_v31 = vrot.slane %v6452_v40, 5  ;;  %v6154_v12 = vld [vmem:[#allocation2 + $0x84] sm:$0xff]  ;;  %v2645_v57 = vld [vmem:[#allocation2 + $0x94] sm:$0xf] }
 0x164   : > { %v1817_v35 = vadd.f32 %v1816_v28, %v7298_v48  ;;  %v2015_v28 = vsel %vm7102_vm14, %v5599_v0, %v2014_v34  ;;  %v2912_v29 = vsel %vm6727_vm11, %v2907_v27, %v2911_v13  ;;  %v2933_v7 = vshll.u32 %v2645_v57, 16 }
 0x165   : > { %v2086_v24 = vunpack.c.l.b16 %v2015_v28  ;;  %v2929_v40 = vrot.slane %v2927_v32, 5 }
 0x166   : > { %v2935_v13 = vrot.slane %v2933_v7, 5 }
 0x167   : > { %2234 = vmatmul.bf16.gmra.mxu2 %v2106_v63  ;;  %v2921_v63 = vrot.slane %v2919_v41, 5 }
 0x168   : > { %v3186_v20 = vpop.f32.mrf.mxu0 }
 0x169   : > { %v7354_v62 = vadd.f32 %v3186_v20, %v2581_v46  ;;  %v2018_v46 = vsel %vm7102_vm14, %v2016_v61, %v2017_v31  ;;  %v3080_v20 = vunpack.c.l.b16 %v2912_v29 }
 0x16a   : > { %v2506_v42 = vpop.f32.mrf.mxu3  ;;  %v2195_v48 = vpop.f32.mrf.mxu2 }
 0x16b   : > { %3225 = vmatmul.bf16.gmra.mxu0 %v3101_v21  ;;  %v2582_v4 = vadd.f32 %v2506_v42, %v2268_v59  ;;  %v2269_v1 = vadd.f32 %v2195_v48, %v1815_v15  ;;  %v1819_v10 = vpop.f32.mrf.mxu1  ;;  %v2924_v59 = vshrl.u32 %v2644_v37, 16  ;;  %v2937_v15 = vshrl.u32 %v2645_v57, 16  ;;  %v6453_v57 = vld [vmem:[#allocation2 + $0x94] sm:$0xf] }
 0x16c   : > { %v1820_v17 = vadd.f32 %v1819_v10, %v7311_v56  ;;  %v2087_v21 = vunpack.c.l.b16 %v2018_v46  ;;  %v2922_v56 = vsel %vm6727_vm11, %v2917_v47, %v2921_v63  ;;  %v2021_v28 = vrot.slane %v6453_v57, 5  ;;  %v1896_v47 = vld [vmem:[#allocation2 + $0x90] sm:$0xe]  ;;  %v6209_v57 = vld [vmem:[%s8196_s3 + $0x1c8] sm:$0xff] }
 0x16d   : > { %1858 = vmatmul.bf16.gmra.mxu1 %v6115_v39  ;;  %v2926_v61 = vrot.slane %v2924_v59, 4  ;;  %v2939_v31 = vrot.slane %v2937_v15, 4  ;;  %v3081_v27 = vunpack.c.l.b16 %v2922_v56  ;;  %v5600_v32 = vrot.slane %v1896_v47, 9  ;;  %v6454_v15 = vld [vmem:[#allocation2 + $0x98] sm:$0x1]  ;;  %4601 = vmatpush.bf16.msra.mxu3 %v6209_v57 }
 0x16e   : > { %v2107_v48 = vpack.c.b16 %v2087_v21, %v2086_v24  ;;  %v2023_v7 = vrot.slane %v2021_v28, 4  ;;  %v6116_v24 = vld [vmem:[#allocation2 + $0x90] sm:$0xff]  ;;  %v6455_v57 = vld [vmem:[#allocation2 + $0xa0] sm:$0xf] }
 0x16f   : > { %2548 = vmatmul.bf16.gmra.mxu3 %v6154_v12  ;;  %v2646_v12 = vld [vmem:[#allocation2 + $0x98] sm:$0x1]  ;;  %v2930_v63 = vor.u32 %v2929_v40, %v2926_v61  ;;  %v3102_v29 = vpack.c.b16 %v3081_v27, %v3080_v20  ;;  %v2648_v20 = vld [vmem:[#allocation2 + $0xa0] sm:$0xf]  ;;  %v2022_v47 = vsel %vm7102_vm14, %v5600_v32, %v2021_v28  ;;  %v6217_v32 = vld [vmem:[%s8196_s3 + $0x208] sm:$0xff] }
 0x170   : > { %v3188_v22 = vpop.f32.mrf.mxu0  ;;  %v2943_v46 = vshll.u32 %v2646_v12, 16  ;;  %5027 = vmatpush.bf16.msra.mxu0 %v6217_v32 }
 0x171   : > { %v7365_v34 = vadd.f32 %v3188_v22, %v2582_v4  ;;  %v2940_v4 = vor.u32 %v2939_v31, %v2935_v13  ;;  %v2024_v22 = vrot.slane %v6454_v15, 5  ;;  %v2931_v56 = vrot.slane %v2930_v63, 4  ;;  %v6155_v31 = vld [vmem:[#allocation2 + $0x90] sm:$0xff]  ;;  %4602 = vmatpush.bf16.msra.mxu3 %v6208_v6 }
 0x172   : > { %v2509_v41 = vpop.f32.mrf.mxu3  ;;  %v2197_v0 = vpop.f32.mrf.mxu2 }
 0x173   : > { %v2583_v39 = vadd.f32 %v2509_v41, %v2269_v1  ;;  %v2270_v42 = vadd.f32 %v2197_v0, %v1817_v35  ;;  %v1821_v10 = vpop.f32.mrf.mxu1  ;;  %v6201_v35 = vld [vmem:[%s8196_s3 + $0x188] sm:$0xff]  ;;  %v2647_v1 = vld [vmem:[#allocation2 + $0x9c] sm:$0xf]  ;;  %v2941_v41 = vrot.slane %v2940_v4, 4  ;;  %v2945_v0 = vrot.slane %v2943_v46, 5 }
 0x174   : > { %v1822_v37 = vadd.f32 %v1821_v10, %v7324_v55  ;;  %3919 = vmatpush.bf16.msra.mxu2 %v6201_v35  ;;  %v2948_v12 = vshrl.u32 %v2647_v1, 16  ;;  %v2951_v10 = vshll.u32 %v2647_v1, 16  ;;  %v2025_v63 = vsel %vm7102_vm14, %v2023_v7, %v2024_v22 }
 0x175   : > { %v2936_v4 = vsel %vm6727_vm11, %v2931_v56, %v2935_v13  ;;  %v2946_v46 = vsel %vm6727_vm11, %v2941_v41, %v2945_v0  ;;  %v2649_v41 = vld [vmem:[#allocation2 + $0xa4] sm:$0x1] }
 0x176   : > { %v2950_v15 = vrot.slane %v2948_v12, 4  ;;  %v2953_v35 = vrot.slane %v2951_v10, 5  ;;  %v3082_v13 = vunpack.c.l.b16 %v2936_v4  ;;  %v1897_v10 = vld [vmem:[#allocation2 + $0x9c] sm:$0xe] }
 0x177   : > { %2239 = vmatmul.bf16.gmra.mxu2 %v2107_v48 }
 0x178   : > { %v3191_v59 = vpop.f32.mrf.mxu0 }
 0x179   : > { %v7371_v55 = vadd.f32 %v3191_v59, %v2583_v39  ;;  %v6177_v39 = vld [vmem:[%s8196_s3 + $0x148] sm:$0xff]  ;;  %v2089_v59 = vunpack.c.l.b16 %v2025_v63 }
 0x17a   : > { %v2511_v21 = vpop.f32.mrf.mxu3  ;;  %v2200_v61 = vpop.f32.mrf.mxu2  ;;  %3604 = vmatpush.bf16.msra.mxu1 %v6177_v39  ;;  %v2028_v39 = vrot.slane %v6455_v57, 5 }
 0x17b   : > { %8214 = vst [vmem:[#allocation6_spill] sm:$0xff] %v7371_v55  ;;  %3230 = vmatmul.bf16.gmra.mxu0 %v3102_v29  ;;  %v2584_v40 = vadd.f32 %v2511_v21, %v2270_v42  ;;  %v2271_v27 = vadd.f32 %v2200_v61, %v1820_v17  ;;  %v1824_v48 = vpop.f32.mrf.mxu1  ;;  %v2957_v42 = vshll.u32 %v2648_v20, 16  ;;  %v2961_v17 = vshrl.u32 %v2648_v20, 16 }
 0x17c   : > { %v2088_v29 = vunpack.c.l.b16 %v2022_v47  ;;  %v6382_v47 = vld [vmem:[%s6562_s27 + $0x78] sm:$0xff]  }
 0x17d   : > { %1863 = vmatmul.bf16.gmra.mxu1 %v6116_v24  ;;  %v7390_v7 = vrot.slane %v2957_v42, 5  ;;  %v2963_v22 = vrot.slane %v2961_v17, 4  ;;  %v3083_v24 = vunpack.c.l.b16 %v2946_v46  ;;  %v2967_v42 = vshll.u32 %v2649_v41, 16  ;;  %v6117_v41 = vld [vmem:[#allocation2 + $0x9c] sm:$0xff] }
 0x17e   : > { %v2108_v20 = vpack.c.b16 %v2089_v59, %v2088_v29  ;;  %v6287_v17 = vunpack.c.h.bf16 %v6382_v47  ;;  %v6457_v59 = vld [vmem:[%s8194_s1] ss:$0 sm:$0xff] }
 0x17f   : > { %2553 = vmatmul.bf16.gmra.mxu3 %v6155_v31  ;;  %v2954_v31 = vor.u32 %v2953_v35, %v2950_v15  ;;  %v2964_v63 = vor.u32 %v2963_v22, %v7390_v7  ;;  %v3103_v4 = vpack.c.b16 %v3083_v24, %v3082_v13  ;;  %v1825_v22 = vadd.f32 %v1824_v48, %v7177_v38 }
 0x180   : > { %v3193_v28 = vpop.f32.mrf.mxu0  ;;  %v337_v35 = vmul.f32 %v6457_v59, %v6287_v17  ;;  %v6156_v17 = vld [vmem:[#allocation2 + $0x9c] sm:$0xff] }
 0x181   : > { %v7392_v1 = vadd.f32 %v3193_v28, %v2584_v40  ;;  %v6286_v40 = vunpack.c.l.bf16 %v6382_v47  ;;  %v2955_v46 = vrot.slane %v2954_v31, 4  ;;  %v5601_v28 = vrot.slane %v1897_v10, 9  ;;  %v2651_v31 = vld [vmem:[#allocation2 + $0xac] sm:$0xf]  ;;  %v6458_v47 = vld [vmem:[%s8195_s2] ss:$0 sm:$0xff] }
 0x182   : > { %v2514_v21 = vpop.f32.mrf.mxu3  ;;  %v2202_v56 = vpop.f32.mrf.mxu2  ;;  %v372_v55 = vadd.f32 %v6458_v47, %v337_v35 }
 0x183   : > { %8215 = vst [vmem:[#allocation7_spill] sm:$0xff] %v7392_v1  ;;  %v2585_v0 = vadd.f32 %v2514_v21, %v2271_v27  ;;  %v2272_v61 = vadd.f32 %v2202_v56, %v1822_v37  ;;  %v1826_v12 = vpop.f32.mrf.mxu1  ;;  %v2650_v1 = vld [vmem:[#allocation2 + $0xa8] sm:$0xf]  ;;  %v2030_v27 = vrot.slane %v2028_v39, 4  ;;  %v6456_v37 = vld [vmem:[#allocation2 + $0xa4] sm:$0x1]  ;;  %v336_v15 = vmul.f32 %v6457_v59, %v6286_v40 }
 0x184   : > { %v2031_v29 = vrot.slane %v6456_v37, 5  ;;  %v2965_v21 = vrot.slane %v2964_v63, 4  ;;  %v2969_v56 = vrot.slane %v2967_v42, 5  ;;  %v2972_v10 = vshrl.u32 %v2650_v1, 16  ;;  %v493_v63 = vld [vmem:[#allocation2 + $0xc0] sm:$0x1] }
 0x185   : > { %v2975_v57 = vshll.u32 %v2650_v1, 16  ;;  %v371_v37 = vadd.f32 %v6458_v47, %v336_v15  ;;  %v494_v1 = vsel %vm6553_vm2, 0, %v493_v63  ;;  %v2960_v59 = vsel %vm6727_vm11, %v2955_v46, %v7390_v7 }
 0x186   : > { %v2032_v42 = vsel %vm7102_vm14, %v2030_v27, %v2031_v29  ;;  %v2985_v15 = vshrl.u32 %v2651_v31, 16  ;;  %495 = vst [vmem:[#allocation2 + $0xc0] sm:$0x1] %v494_v1  ;;  %v2974_v35 = vrot.slane %v2972_v10, 4 }
 0x187   : > { %2244 = vmatmul.bf16.gmra.mxu2 %v2108_v20  ;;  %v2091_v29 = vunpack.c.l.b16 %v2032_v42 }
 0x188   : > { %v3196_v32 = vpop.f32.mrf.mxu0  ;;  %v2987_v46 = vrot.slane %v2985_v15, 4 }
 0x189   : > { %v7400_v13 = vadd.f32 %v3196_v32, %v2585_v0  ;;  %v2029_v0 = vsel %vm7102_vm14, %v5601_v28, %v2028_v39  ;;  %v403_v32 = vmax.f32 %v371_v37, 0.0  ;;  %v2977_v39 = vrot.slane %v2975_v57, 5 }
 0x18a   : > { %v2516_v24 = vpop.f32.mrf.mxu3  ;;  %v2205_v20 = vpop.f32.mrf.mxu2  ;;  %v404_v28 = vmax.f32 %v372_v55, 0.0  ;;  %v2090_v27 = vunpack.c.l.b16 %v2029_v0  ;;  %v1827_v37 = vadd.f32 %v1826_v12, %v7192_v3  ;;  %v2652_v0 = vld [vmem:[#allocation2 + $0xb0] sm:$0x1] }
 0x18b   : > { %8216 = vst [vmem:[#allocation8_spill] sm:$0xff] %v7400_v13  ;;  %3235 = vmatmul.bf16.gmra.mxu0 %v3103_v4  ;;  %v2586_v40 = vadd.f32 %v2516_v24, %v2272_v61  ;;  %v2273_v38 = vadd.f32 %v2205_v20, %v1825_v22  ;;  %v1829_v48 = vpop.f32.mrf.mxu1  ;;  %v2970_v61 = vsel %vm6727_vm11, %v2965_v21, %v2969_v56  ;;  %v2981_v4 = vshll.u32 %v2651_v31, 16 }
 0x18c   : > { %v435_v22 = vpack.c.bf16 %v403_v32, %v403_v32  ;;  %v3084_v20 = vunpack.c.l.b16 %v2960_v59  ;;  %v3085_v47 = vunpack.c.l.b16 %v2970_v61  ;;  %v2978_v31 = vor.u32 %v2977_v39, %v2974_v35  ;;  %v6459_v32 = vld [vmem:[#allocation2 + $0xac] sm:$0xf]  ;;  %v1898_v59 = vld [vmem:[#allocation2 + $0xa8] sm:$0xe] }
 0x18d   : > { %1868 = vmatmul.bf16.gmra.mxu1 %v6117_v41  ;;  %v7417_v7 = vrot.slane %v2981_v4, 5  ;;  %v436_v10 = vpack.c.bf16 %v404_v28, %v404_v28  ;;  %v2109_v63 = vpack.c.b16 %v2091_v29, %v2090_v27  ;;  %v2035_v1 = vrot.slane %v6459_v32, 5  ;;  %v975_v27 = vld [vmem:[#allocation2 + $0xc0] sm:$0xf]  ;;  %v6157_v32 = vld [vmem:[#allocation2 + $0xa8] sm:$0xff] }
 0x18e   : > { %v804_v57 = vshrl.u32 %v435_v22, 16  ;;  %v3104_v3 = vpack.c.b16 %v3085_v47, %v3084_v20  ;;  %v2991_v61 = vshll.u32 %v2652_v0, 16  ;;  %v807_v4 = vshll.u32 %v435_v22, 16  ;;  %v6200_v20 = vld [vmem:[%s8196_s3 + $0x180] sm:$0xff]  ;;  %v6118_v0 = vld [vmem:[#allocation2 + $0xa8] sm:$0xff] }
 0x18f   : > { %2558 = vmatmul.bf16.gmra.mxu3 %v6156_v17  ;;  %v2988_v12 = vor.u32 %v2987_v46, %v7417_v7  ;;  %v812_v15 = vshrl.u32 %v436_v10, 16  ;;  %v2979_v35 = vrot.slane %v2978_v31, 4  ;;  %v5602_v39 = vrot.slane %v1898_v59, 9  ;;  %3920 = vmatpush.bf16.msra.mxu2 %v6200_v20 }
 0x190   : > { %v3198_v24 = vpop.f32.mrf.mxu0  ;;  %v815_v28 = vshll.u32 %v436_v10, 16  ;;  %v1830_v22 = vadd.f32 %v1829_v48, %v7200_v25  ;;  %v2993_v59 = vrot.slane %v2991_v61, 5 }
 0x191   : > { %v7419_v21 = vadd.f32 %v3198_v24, %v2586_v40  ;;  %v806_v40 = vrot.slane %v804_v57, 7  ;;  %v543_v24 = vld [vmem:[#allocation2 + $0xc8] sm:$0x1]  ;;  %v2989_v57 = vrot.slane %v2988_v12, 4  ;;  %v2036_v61 = vsel %vm7102_vm14, %v5602_v39, %v2035_v1 }
 0x192   : > { %v2519_v56 = vpop.f32.mrf.mxu3  ;;  %v2207_v41 = vpop.f32.mrf.mxu2  ;;  %v544_v31 = vsel %vm6573_vm4, 0, %v543_v24  ;;  %v2984_v24 = vsel %vm6727_vm11, %v2979_v35, %v7417_v7  ;;  %v2092_v39 = vunpack.c.l.b16 %v2036_v61 }
 0x193   : > { %8217 = vst [vmem:[#allocation9_spill] sm:$0xff] %v7419_v21  ;;  %v2587_v55 = vadd.f32 %v2519_v56, %v2273_v38  ;;  %v2274_v17 = vadd.f32 %v2207_v41, %v1827_v37  ;;  %v7421_v42 = vpop.f32.mrf.mxu1  ;;  %v2037_v38 = vrot.slane %v2035_v1, 4  ;;  %v6460_v37 = vld [vmem:[#allocation2 + $0xb0] sm:$0x1]  ;;  %v809_v47 = vor.u32 %v807_v4, %v806_v40  ;;  %v2653_v21 = vld [vmem:[#allocation2 + $0xb4] sm:$0xf] }
 0x194   : > { %v2038_v56 = vrot.slane %v6460_v37, 5  ;;  %v810_v46 = vrot.slane %v806_v40, 4  ;;  %v814_v41 = vrot.slane %v812_v15, 7  ;;  %545 = vst [vmem:[#allocation2 + $0xc8] sm:$0x1] %v544_v31  ;;  %v2999_v15 = vshll.u32 %v2653_v21, 16 }
 0x195   : > { %v976_v40 = vsel %vm6646_vm8, %v809_v47, %v975_v27  ;;  %v2654_v4 = vld [vmem:[#allocation2 + $0xb8] sm:$0xf]  ;;  %v2994_v1 = vsel %vm6727_vm11, %v2989_v57, %v2993_v59  ;;  %v3086_v47 = vunpack.c.l.b16 %v2984_v24 }
 0x196   : > { %v817_v13 = vor.u32 %v815_v28, %v814_v41  ;;  %977 = vst [vmem:[#allocation2 + $0xc0] sm:$0xf] %v976_v40  ;;  %v2039_v16 = vsel %vm7102_vm14, %v2037_v38, %v2038_v56  ;;  %v3005_v28 = vshll.u32 %v2654_v4, 16  ;;  %v819_v27 = vrot.slane %v814_v41, 4 }
 0x197   : > { %2249 = vmatmul.bf16.gmra.mxu2 %v2109_v63  ;;  %v2093_v38 = vunpack.c.l.b16 %v2039_v16  ;;  %v3009_v8 = vshrl.u32 %v2654_v4, 16  ;;  %v3001_v7 = vrot.slane %v2999_v15, 5  ;;  %v1899_v4 = vld [vmem:[#allocation2 + $0xb4] sm:$0xe]  ;;  %v2045_v15 = vrot.slane %v6462_v2, 5 }
 0x198   : > { %v3201_v29 = vpop.f32.mrf.mxu0  ;;  %v3007_v57 = vrot.slane %v3005_v28, 5  ;;  %v6119_v28 = vld [vmem:[#allocation2 + $0xb4] sm:$0xff]  ;;  %v3293_v2 = vld [vmem:[#allocation2 + $0xc] sm:$0xe] }
 0x199   : > { %v7430_v63 = vadd.f32 %v3201_v29, %v2587_v55  ;;  %v6176_v55 = vld [vmem:[%s8196_s3 + $0x140] sm:$0xff]  ;;  %v1832_v29 = vadd.f32 %v7421_v42, %v7212_v52  ;;  %v3011_v59 = vrot.slane %v3009_v8, 4  ;;  %v2655_v52 = vld [vmem:[#allocation2 + $0xbc] sm:$0x1]  ;;  %v6461_v42 = vld [vmem:[#allocation2 + $0xb8] sm:$0xf] }
 0x19a   : > { %v2521_v10 = vpop.f32.mrf.mxu3  ;;  %v2210_v37 = vpop.f32.mrf.mxu2  ;;  %3605 = vmatpush.bf16.msra.mxu1 %v6176_v55  ;;  %v2042_v40 = vrot.slane %v6461_v42, 5  ;;  %v3015_v61 = vshll.u32 %v2655_v52, 16  ;;  %v4034_v52 = vld [vmem:[#allocation2 + $0x18] sm:$0xf] }
 0x19b   : > { %3240 = vmatmul.bf16.gmra.mxu0 %v3104_v3  ;;  %v2588_v25 = vadd.f32 %v2521_v10, %v2274_v17  ;;  %v2275_v48 = vadd.f32 %v2210_v37, %v1830_v22  ;;  %v1834_v12 = vpop.f32.mrf.mxu1  ;;  %v818_v17 = vsel %vm6634_vm7, %v810_v46, %v817_v13  ;;  %v2996_v3 = vshrl.u32 %v2653_v21, 16  ;;  %v6216_v21 = vld [vmem:[%s8196_s3 + $0x200] sm:$0xff]  ;;  %v979_v35 = vld [vmem:[#allocation2 + $0xc8] sm:$0x1] }
 0x19c   : > { %978 = vst [vmem:[#allocation2 + $0xc4] sm:$0xf] %v818_v17  ;;  %v3087_v46 = vunpack.c.l.b16 %v2994_v1  ;;  %5028 = vmatpush.bf16.msra.mxu0 %v6216_v21  ;;  %v3012_v55 = vor.u32 %v3011_v59, %v3007_v57  ;;  %v5603_v17 = vrot.slane %v1899_v4, 9 }
 0x19d   : > { %1873 = vmatmul.bf16.gmra.mxu1 %v6118_v0  ;;  %v2998_v56 = vrot.slane %v2996_v3, 4  ;;  %v980_v0 = vsel %vm6553_vm2, %v819_v27, %v979_v35  ;;  %v2044_v3 = vrot.slane %v2042_v40, 4  ;;  %v2656_v27 = vld [vmem:[#allocation2 + $0xc0] sm:$0xf]  ;;  %v3017_v35 = vrot.slane %v3015_v61, 5 }
 0x19e   : > { %981 = vst [vmem:[#allocation2 + $0xc8] sm:$0x1] %v980_v0  ;;  %v3105_v6 = vpack.c.b16 %v3087_v46, %v3086_v47 }
 0x19f   : > { %2563 = vmatmul.bf16.gmra.mxu3 %v6157_v32  ;;  %v2110_v32 = vpack.c.b16 %v2093_v38, %v2092_v39  ;;  %v6463_v39 = vld [vmem:[#allocation2 + $0x10] sm:$0xf] }
 0x1a0   : > { %v3203_v13 = vpop.f32.mrf.mxu0  ;;  %v3359_v38 = vrot.slane %v6463_v39, 5 }
 0x1a1   : > { %v7456_v20 = vadd.f32 %v3203_v13, %v2588_v25  ;;  %v3002_v25 = vor.u32 %v3001_v7, %v2998_v56  ;;  %v6158_v56 = vld [vmem:[#allocation2 + $0xb4] sm:$0xff]  ;;  %v3013_v7 = vrot.slane %v3012_v55, 4 }
 0x1a2   : > { %v2524_v41 = vpop.f32.mrf.mxu3  ;;  %v2212_v22 = vpop.f32.mrf.mxu2  ;;  %v3361_v42 = vrot.slane %v3359_v38, 4 }
 0x1a3   : > { %v2589_v31 = vadd.f32 %v2524_v41, %v2275_v48  ;;  %v2276_v10 = vadd.f32 %v2212_v22, %v1832_v29  ;;  %v1836_v37 = vpop.f32.mrf.mxu1  ;;  %v1835_v48 = vadd.f32 %v1834_v12, %v7227_v54  ;;  %v3003_v24 = vrot.slane %v3002_v25, 4  ;;  %v2657_v21 = vld [vmem:[#allocation2 + $0xc4] sm:$0xf] }
 0x1a4   : > { %v2043_v54 = vsel %vm7102_vm14, %v5603_v17, %v2042_v40  ;;  %v2046_v12 = vsel %vm7102_vm14, %v2044_v3, %v2045_v15  ;;  %v3020_v41 = vshrl.u32 %v2656_v27, 16  ;;  %v3023_v22 = vshll.u32 %v2656_v27, 16 }
 0x1a5   : > { %v3008_v0 = vsel %vm6727_vm11, %v3003_v24, %v3007_v57  ;;  %v3033_v59 = vshrl.u32 %v2657_v21, 16  ;;  %v3018_v25 = vsel %vm6727_vm11, %v3013_v7, %v3017_v35  ;;  %v2094_v40 = vunpack.c.l.b16 %v2043_v54 }
 0x1a6   : > { %v2095_v4 = vunpack.c.l.b16 %v2046_v12  ;;  %v3088_v61 = vunpack.c.l.b16 %v3008_v0  ;;  %v3022_v57 = vrot.slane %v3020_v41, 4  ;;  %v3025_v17 = vrot.slane %v3023_v22, 5 }
 0x1a7   : > { %2254 = vmatmul.bf16.gmra.mxu2 %v2110_v32  ;;  %v6464_v32 = vld [vmem:[#allocation2 + $0x14] sm:$0x1]  ;;  %v4083_v15 = vshrl.u32 %v4034_v52, 16  ;;  %v3035_v39 = vrot.slane %v3033_v59, 4 }
 0x1a8   : > { %v3206_v16 = vpop.f32.mrf.mxu0  ;;  %v3026_v12 = vor.u32 %v3025_v17, %v3022_v57 }
 0x1a9   : > { %v7461_v1 = vadd.f32 %v3206_v16, %v2589_v31  ;;  %v3029_v31 = vshll.u32 %v2657_v21, 16  ;;  %v1837_v16 = vadd.f32 %v1836_v37, %v7252_v60  ;;  %v2111_v60 = vpack.c.b16 %v2095_v4, %v2094_v40  ;;  %v2658_v37 = vld [vmem:[#allocation2 + $0xc8] sm:$0x1]  ;;  %v7482_v4 = vld [vmem:[#allocation2 + $0x20] sm:$0x1] }
 0x1aa   : > { %v2526_v8 = vpop.f32.mrf.mxu3  ;;  %v2215_v13 = vpop.f32.mrf.mxu2 }
 0x1ab   : > { %3245 = vmatmul.bf16.gmra.mxu0 %v3105_v6  ;;  %v2590_v29 = vadd.f32 %v2526_v8, %v2276_v10  ;;  %v2277_v47 = vadd.f32 %v2215_v13, %v1835_v48  ;;  %v1839_v46 = vpop.f32.mrf.mxu1  ;;  %v3362_v10 = vrot.slane %v6464_v32, 5  ;;  %v7471_v6 = vld [vmem:[#allocation2 + $0x1c] sm:$0xf]  ;;  %v3031_v3 = vrot.slane %v3029_v31, 5 }
 0x1ac   : > { %v4086_v48 = vshll.u32 %v4034_v52, 16  ;;  %v5812_v8 = vrot.slane %v3293_v2, 9  ;;  %v4092_v13 = vshll.u32 %v7471_v6, 16  ;;  %v4096_v21 = vshrl.u32 %v7471_v6, 16 }
 0x1ad   : > { %1878 = vmatmul.bf16.gmra.mxu1 %v6119_v28  ;;  %v4085_v31 = vrot.slane %v4083_v15, 4  ;;  %v3036_v59 = vor.u32 %v3035_v39, %v3031_v3  ;;  %v3039_v52 = vshll.u32 %v2658_v37, 16  ;;  %v1840_v57 = vadd.f32 %v1839_v46, %v7262_v33  ;;  %v6159_v39 = vld [vmem:[#allocation2 + $0xc0] sm:$0xff] }
 0x1ae   : > { %v3360_v41 = vsel %vm7102_vm14, %v5812_v8, %v3359_v38  ;;  %v4088_v32 = vrot.slane %v4086_v48, 5  ;;  %v3027_v38 = vrot.slane %v3026_v12, 4  ;;  %v6465_v12 = vld [vmem:[#allocation2 + $0x1c] sm:$0xf] }
 0x1af   : > { %2568 = vmatmul.bf16.gmra.mxu3 %v6158_v56  ;;  %v3089_v56 = vunpack.c.l.b16 %v3018_v25  ;;  %v3486_v22 = vunpack.c.l.b16 %v3360_v41  ;;  %v4098_v25 = vrot.slane %v4096_v21, 4  ;;  %v3041_v15 = vrot.slane %v3039_v52, 5 }
 0x1b0   : > { %v3208_v55 = vpop.f32.mrf.mxu0  ;;  %v4089_v17 = vor.u32 %v4088_v32, %v4085_v31  ;;  %v3032_v21 = vsel %vm6727_vm11, %v3027_v38, %v3031_v3  ;;  %v3366_v41 = vrot.slane %v6465_v12, 5  ;;  %v3294_v3 = vld [vmem:[#allocation2 + $0x18] sm:$0xe]  ;;  %v7495_v31 = vld [vmem:[#allocation2 + $0x28] sm:$0xf] }
 0x1b1   : > { %v7474_v24 = vadd.f32 %v3208_v55, %v2590_v29  ;;  %v3363_v29 = vsel %vm7102_vm14, %v3361_v42, %v3362_v10  ;;  %v4094_v55 = vrot.slane %v4092_v13, 5  ;;  %v3037_v42 = vrot.slane %v3036_v59, 4 }
 0x1b2   : > { %v2529_v28 = vpop.f32.mrf.mxu3  ;;  %v2217_v27 = vpop.f32.mrf.mxu2  ;;  %v3487_v0 = vunpack.c.l.b16 %v3363_v29  ;;  %v4090_v33 = vrot.slane %v4089_v17, 4  ;;  %v3090_v37 = vunpack.c.l.b16 %v3032_v21  ;;  %v4037_v29 = vld [vmem:[#allocation2 + $0x24] sm:$0xf] }
 0x1b3   : > { %v2591_v7 = vadd.f32 %v2529_v28, %v2277_v47  ;;  %v2278_v35 = vadd.f32 %v2217_v27, %v1837_v16  ;;  %v1841_v54 = vpop.f32.mrf.mxu1  ;;  %v3106_v47 = vpack.c.b16 %v3089_v56, %v3088_v61  ;;  %v4099_v28 = vor.u32 %v4098_v25, %v4094_v55 }
 0x1b4   : > { %v3518_v40 = vpack.c.b16 %v3487_v0, %v3486_v22  ;;  %v4102_v27 = vshll.u32 %v7482_v4, 16  ;;  %v3042_v46 = vsel %vm6727_vm11, %v3037_v42, %v3041_v15  ;;  %v1842_v22 = vadd.f32 %v1841_v54, %v7276_v43  ;;  %v6184_v43 = vld [vmem:[#allocation2 + $0x18] sm:$0xff] }
 0x1b5   : > { %v4100_v56 = vrot.slane %v4099_v28, 4  ;;  %v4095_v0 = vsel %vm6727_vm11, %v4090_v33, %v4094_v55  ;;  %v4110_v55 = vshll.u32 %v4037_v29, 16  ;;  %v4120_v28 = vshrl.u32 %v7495_v31, 16 }
 0x1b6   : > { %v4483_v21 = vunpack.c.l.b16 %v4095_v0  ;;  %v4785_v0 = vrot.slane %v7482_v4, 5 }
 0x1b7   : > { %2259 = vmatmul.bf16.gmra.mxu2 %v2111_v60 }
 0x1b8   : > { %v3211_v16 = vpop.f32.mrf.mxu0 }
 0x1b9   : > { %v7485_v2 = vadd.f32 %v3211_v16, %v2591_v7  ;;  %v4104_v7 = vrot.slane %v4102_v27, 5  ;;  %v6466_v16 = vld [vmem:[#allocation2 + $0x20] sm:$0x1] }
 0x1ba   : > { %v2531_v10 = vpop.f32.mrf.mxu3  ;;  %v2220_v48 = vpop.f32.mrf.mxu2 }
 0x1bb   : > { %3250 = vmatmul.bf16.gmra.mxu0 %v3106_v47  ;;  %v2592_v61 = vadd.f32 %v2531_v10, %v2278_v35  ;;  %v2279_v8 = vadd.f32 %v2220_v48, %v1840_v57  ;;  %v1844_v13 = vpop.f32.mrf.mxu1  ;;  %v3091_v35 = vunpack.c.l.b16 %v3042_v46  ;;  %v4105_v25 = vsel %vm6727_vm11, %v4100_v56, %v4104_v7  ;;  %v4716_v46 = vld [vmem:[#allocation2 + $0x18] sm:$0xe] }
 0x1bc   : > { %v5813_v47 = vrot.slane %v3294_v3, 9  ;;  %v3369_v57 = vrot.slane %v6466_v16, 5  ;;  %v4107_v10 = vshrl.u32 %v4037_v29, 16  ;;  %v4116_v48 = vshll.u32 %v7495_v31, 16  ;;  %v7511_v3 = vld [vmem:[#allocation2 + $0x2c] sm:$0x1] }
 0x1bd   : > { %3606 = vmatmul.bf16.vlgmr.msra.gmra.mxu1 %v3518_v40  ;;  %v3368_v40 = vrot.slane %v3366_v41, 4  ;;  %v4484_v33 = vunpack.c.l.b16 %v4105_v25  ;;  %v4112_v7 = vrot.slane %v4110_v55, 5  ;;  %v1845_v29 = vadd.f32 %v1844_v13, %v7194_v53  ;;  %v4040_v13 = vld [vmem:[#allocation2 + $0x30] sm:$0xf] }
 0x1be   : > { %v3367_v42 = vsel %vm7102_vm14, %v5813_v47, %v3366_v41  ;;  %v4109_v56 = vrot.slane %v4107_v10, 4  ;;  %v7508_v12 = vrot.slane %v4116_v48, 5  ;;  %v4122_v41 = vrot.slane %v4120_v28, 4  ;;  %v6467_v28 = vld [vmem:[#allocation2 + $0x28] sm:$0xf] }
 0x1bf   : > { %2573 = vmatmul.bf16.gmra.mxu3 %v6159_v39  ;;  %v3370_v15 = vsel %vm7102_vm14, %v3368_v40, %v3369_v57  ;;  %v3488_v27 = vunpack.c.l.b16 %v3367_v42  ;;  %v3107_v39 = vpack.c.b16 %v3091_v35, %v3090_v37  ;;  %v6036_v35 = vrot.slane %v4716_v46, 9 }
 0x1c0   : > { %v3213_v60 = vpop.f32.mrf.mxu0  ;;  %v4515_v47 = vpack.c.b16 %v4484_v33, %v4483_v21  ;;  %v4113_v57 = vor.u32 %v4112_v7, %v4109_v56  ;;  %v4126_v53 = vshll.u32 %v7511_v3, 16  ;;  %v4134_v21 = vshll.u32 %v4040_v13, 16 }
 0x1c1   : > { %v7497_v32 = vadd.f32 %v3213_v60, %v2592_v61  ;;  %v3489_v61 = vunpack.c.l.b16 %v3370_v15 }
 0x1c2   : > { %v2534_v59 = vpop.f32.mrf.mxu3  ;;  %v2222_v52 = vpop.f32.mrf.mxu2  ;;  %v4128_v48 = vrot.slane %v4126_v53, 5 }
 0x1c3   : > { %v2593_v38 = vadd.f32 %v2534_v59, %v2279_v8  ;;  %v2280_v17 = vadd.f32 %v2222_v52, %v1842_v22  ;;  %v1846_v54 = vpop.f32.mrf.mxu1  ;;  %v4782_v8 = vrot.slane %v7471_v6, 5  ;;  %v3519_v22 = vpack.c.b16 %v3489_v61, %v3488_v27  ;;  %v3295_v61 = vld [vmem:[#allocation2 + $0x24] sm:$0xe] }
 0x1c4   : > { %v1847_v42 = vadd.f32 %v1846_v54, %v7204_v30  ;;  %v3373_v27 = vrot.slane %v6467_v28, 5  ;;  %v5814_v7 = vrot.slane %v3295_v61, 9 }
 0x1c5   : > { %v4784_v6 = vrot.slane %v4782_v8, 4  ;;  %v4783_v10 = vsel %vm7102_vm14, %v6036_v35, %v4782_v8 }
 0x1c6   : > { %v4909_v30 = vunpack.c.l.b16 %v4783_v10  ;;  %v4136_v10 = vrot.slane %v4134_v21, 5 }
 0x1c7   : > { %3921 = vmatmul.bf16.vlgmr.msra.gmra.mxu2 %v6184_v43  ;;  %v4123_v43 = vor.u32 %v4122_v41, %v7508_v12  ;;  %v4786_v4 = vsel %vm7102_vm14, %v4784_v6, %v4785_v0  ;;  %v6468_v41 = vld [vmem:[#allocation2 + $0x2c] sm:$0x1]  ;;  %v6185_v6 = vld [vmem:[#allocation2 + $0x24] sm:$0xff] }
 0x1c8   : > { %v3216_v60 = vpop.f32.mrf.mxu0  ;;  %v4910_v54 = vunpack.c.l.b16 %v4786_v4  ;;  %v4789_v4 = vrot.slane %v7495_v31, 5  ;;  %v4792_v31 = vrot.slane %v7511_v3, 5 }
 0x1c9   : > { %v7513_v59 = vadd.f32 %v3216_v60, %v2593_v38  ;;  %v7518_v38 = vld [vmem:[#allocation2 + $0x34] sm:$0xf]  ;;  %v4124_v15 = vrot.slane %v4123_v43, 4  ;;  %v3375_v60 = vrot.slane %v3373_v27, 4  ;;  %v4717_v43 = vld [vmem:[#allocation2 + $0x24] sm:$0xe] }
 0x1ca   : > { %v2536_v37 = vpop.f32.mrf.mxu3  ;;  %v2225_v52 = vpop.f32.mrf.mxu2  ;;  %v4140_v33 = vshll.u32 %v7518_v38, 16  ;;  %v4941_v28 = vpack.c.b16 %v4910_v54, %v4909_v30  ;;  %v4791_v21 = vrot.slane %v4789_v4, 4 }
 0x1cb   : > { %3255 = vmatmul.bf16.gmra.mxu0 %v3107_v39  ;;  %v2594_v25 = vadd.f32 %v2536_v37, %v2280_v17  ;;  %v2281_v40 = vadd.f32 %v2225_v52, %v1845_v29  ;;  %v1849_v16 = vpop.f32.mrf.mxu1  ;;  %v4114_v17 = vrot.slane %v4113_v57, 4  ;;  %v4131_v39 = vshrl.u32 %v4040_v13, 16 }
 0x1cc   : > { %v3376_v29 = vrot.slane %v6468_v41, 5  ;;  %v1850_v61 = vadd.f32 %v1849_v16, %v7223_v5 }
 0x1cd   : > { %3611 = vmatmul.bf16.gmra.mxu1 %v3519_v22  ;;  %v4144_v22 = vshrl.u32 %v7518_v38, 16  ;;  %v4119_v52 = vsel %vm6727_vm11, %v4114_v17, %v7508_v12 }
 0x1ce   : > { %v3377_v57 = vsel %vm7102_vm14, %v3375_v60, %v3376_v29  ;;  %v4485_v12 = vunpack.c.l.b16 %v4119_v52 }
 0x1cf   : > { %4603 = vmatmul.bf16.vlgmr.msra.gmra.mxu3 %v4515_v47  ;;  %v3374_v47 = vsel %vm7102_vm14, %v5814_v7, %v3373_v27  ;;  %v3491_v13 = vunpack.c.l.b16 %v3377_v57  ;;  %v6037_v27 = vrot.slane %v4717_v43, 9  ;;  %v4043_v43 = vld [vmem:[#allocation2 + $0x3c] sm:$0xf] }
 0x1d0   : > { %v3218_v55 = vpop.f32.mrf.mxu0  ;;  %v3490_v53 = vunpack.c.l.b16 %v3374_v47  ;;  %v6469_v47 = vld [vmem:[#allocation2 + $0x34] sm:$0xf] }
 0x1d1   : > { %v7526_v46 = vadd.f32 %v3218_v55, %v2594_v25  ;;  %v4129_v25 = vsel %vm6727_vm11, %v4124_v15, %v4128_v48  ;;  %v4142_v55 = vrot.slane %v4140_v33, 5  ;;  %v7539_v15 = vld [vmem:[#allocation2 + $0x38] sm:$0x1]  ;;  %v4790_v5 = vsel %vm7102_vm14, %v6037_v27, %v4789_v4 }
 0x1d2   : > { %v2539_v56 = vpop.f32.mrf.mxu3  ;;  %v2227_v8 = vpop.f32.mrf.mxu2  ;;  %v4486_v17 = vunpack.c.l.b16 %v4129_v25  ;;  %v4150_v41 = vshll.u32 %v7539_v15, 16  ;;  %v4911_v25 = vunpack.c.l.b16 %v4790_v5  ;;  %v3380_v57 = vrot.slane %v6469_v47, 5  ;;  %v6470_v27 = vld [vmem:[#allocation2 + $0x38] sm:$0x1] }
 0x1d3   : > { %v2595_v37 = vadd.f32 %v2539_v56, %v2281_v40  ;;  %v2282_v35 = vadd.f32 %v2227_v8, %v1847_v42  ;;  %v1851_v0 = vpop.f32.mrf.mxu1  ;;  %v4133_v40 = vrot.slane %v4131_v39, 4  ;;  %v4146_v42 = vrot.slane %v4144_v22, 4 }
 0x1d4   : > { %v3520_v56 = vpack.c.b16 %v3491_v13, %v3490_v53  ;;  %v4516_v22 = vpack.c.b16 %v4486_v17, %v4485_v12  ;;  %v4152_v52 = vrot.slane %v4150_v41, 5  ;;  %v1852_v53 = vadd.f32 %v1851_v0, %v7240_v50  ;;  %v6186_v50 = vld [vmem:[#allocation2 + $0x30] sm:$0xff] }
 0x1d5   : > { %v4137_v8 = vor.u32 %v4136_v10, %v4133_v40  ;;  %v4147_v60 = vor.u32 %v4146_v42, %v4142_v55  ;;  %v3296_v40 = vld [vmem:[#allocation2 + $0x30] sm:$0xe]  ;;  %v7553_v10 = vld [vmem:[#allocation2 + $0x40] sm:$0xf] }
 0x1d6   : > { %v5815_v17 = vrot.slane %v3296_v40, 9  ;;  %v7569_v40 = vld [vmem:[#allocation2 + $0x44] sm:$0x1] }
 0x1d7   : > { %3926 = vmatmul.bf16.gmra.mxu2 %v6185_v6  ;;  %v4138_v16 = vrot.slane %v4137_v8, 4  ;;  %v4148_v6 = vrot.slane %v4147_v60, 4  ;;  %v4168_v60 = vshrl.u32 %v7553_v10, 16 }
 0x1d8   : > { %v3221_v48 = vpop.f32.mrf.mxu0 }
 0x1d9   : > { %v7542_v7 = vadd.f32 %v3221_v48, %v2595_v37  ;;  %v4793_v37 = vsel %vm7102_vm14, %v4791_v21, %v4792_v31  ;;  %v4143_v13 = vsel %vm6727_vm11, %v4138_v16, %v4142_v55  ;;  %v4153_v12 = vsel %vm6727_vm11, %v4148_v6, %v4152_v52  ;;  %v4718_v16 = vld [vmem:[#allocation2 + $0x30] sm:$0xe] }
 0x1da   : > { %v2541_v39 = vpop.f32.mrf.mxu3  ;;  %v2230_v33 = vpop.f32.mrf.mxu2  ;;  %v3382_v48 = vrot.slane %v3380_v57, 4  ;;  %v4158_v55 = vshll.u32 %v4043_v43, 16  ;;  %v3381_v21 = vsel %vm7102_vm14, %v5815_v17, %v3380_v57  ;;  %v4488_v5 = vunpack.c.l.b16 %v4153_v12 }
 0x1db   : > { %5029 = vmatmul.bf16.vlgmr.msra.gmra.mxu0 %v4941_v28  ;;  %v2596_v29 = vadd.f32 %v2541_v39, %v2282_v35  ;;  %v2283_v30 = vadd.f32 %v2230_v33, %v1850_v61  ;;  %v1854_v54 = vpop.f32.mrf.mxu1  ;;  %v4912_v35 = vunpack.c.l.b16 %v4793_v37  ;;  %v3383_v61 = vrot.slane %v6470_v27, 5 }
 0x1dc   : > { %v4155_v39 = vshrl.u32 %v4043_v43, 16  ;;  %v4164_v33 = vshll.u32 %v7553_v10, 16  ;;  %v3492_v41 = vunpack.c.l.b16 %v3381_v21  ;;  %v4796_v37 = vrot.slane %v7518_v38, 5 }
 0x1dd   : > { %3616 = vmatmul.bf16.gmra.mxu1 %v3520_v56  ;;  %v3384_v31 = vsel %vm7102_vm14, %v3382_v48, %v3383_v61  ;;  %v4160_v52 = vrot.slane %v4158_v55, 5  ;;  %v4170_v57 = vrot.slane %v4168_v60, 4  ;;  %v1855_v43 = vadd.f32 %v1854_v54, %v7257_v9  ;;  %v4046_v54 = vld [vmem:[#allocation2 + $0x48] sm:$0xf]  ;;  %v6471_v60 = vld [vmem:[#allocation2 + $0x40] sm:$0xf] }
 0x1de   : > { %v4157_v6 = vrot.slane %v4155_v39, 4  ;;  %v7566_v47 = vrot.slane %v4164_v33, 5  ;;  %v4798_v17 = vrot.slane %v4796_v37, 4  ;;  %v4174_v9 = vshll.u32 %v7569_v40, 16 }
 0x1df   : > { %4608 = vmatmul.bf16.gmra.mxu3 %v4516_v22  ;;  %v4487_v22 = vunpack.c.l.b16 %v4143_v13 }
 0x1e0   : > { %v3223_v3 = vpop.f32.mrf.mxu0  ;;  %v4161_v61 = vor.u32 %v4160_v52, %v4157_v6  ;;  %v4176_v33 = vrot.slane %v4174_v9, 5 }
 0x1e1   : > { %v7555_v4 = vadd.f32 %v3223_v3, %v2596_v29  ;;  %v3493_v29 = vunpack.c.l.b16 %v3384_v31 }
 0x1e2   : > { %v2544_v42 = vpop.f32.mrf.mxu3  ;;  %v2232_v28 = vpop.f32.mrf.mxu2 }
 0x1e3   : > { %v2597_v56 = vadd.f32 %v2544_v42, %v2283_v30  ;;  %v2284_v8 = vadd.f32 %v2232_v28, %v1852_v53  ;;  %v1856_v0 = vpop.f32.mrf.mxu1  ;;  %v4942_v30 = vpack.c.b16 %v4912_v35, %v4911_v25  ;;  %v3521_v53 = vpack.c.b16 %v3493_v29, %v3492_v41  ;;  %v3297_v29 = vld [vmem:[#allocation2 + $0x3c] sm:$0xe] }
 0x1e4   : > { %v4517_v28 = vpack.c.b16 %v4488_v5, %v4487_v22  ;;  %v6038_v25 = vrot.slane %v4718_v16, 9  ;;  %v4799_v35 = vrot.slane %v7539_v15, 5  ;;  %v1857_v21 = vadd.f32 %v1856_v0, %v7274_v58 }
 0x1e5   : > { %v3387_v41 = vrot.slane %v6471_v60, 5  ;;  %v4179_v22 = vshrl.u32 %v4046_v54, 16  ;;  %v4182_v5 = vshll.u32 %v4046_v54, 16  ;;  %v5816_v52 = vrot.slane %v3297_v29, 9 }
 0x1e6   : > { %v4797_v39 = vsel %vm7102_vm14, %v6038_v25, %v4796_v37  ;;  %v4800_v15 = vsel %vm7102_vm14, %v4798_v17, %v4799_v35  ;;  %v6187_v25 = vld [vmem:[#allocation2 + $0x3c] sm:$0xff] }
 0x1e7   : > { %3931 = vmatmul.bf16.gmra.mxu2 %v6186_v50  ;;  %v4171_v50 = vor.u32 %v4170_v57, %v7566_v47  ;;  %v6472_v57 = vld [vmem:[#allocation2 + $0x44] sm:$0x1]  ;;  %v4913_v58 = vunpack.c.l.b16 %v4797_v39  ;;  %v4914_v0 = vunpack.c.l.b16 %v4800_v15  ;;  %v3388_v17 = vsel %vm7102_vm14, %v5816_v52, %v3387_v41 }
 0x1e8   : > { %v3226_v3 = vpop.f32.mrf.mxu0  ;;  %v3494_v9 = vunpack.c.l.b16 %v3388_v17  ;;  %v4184_v39 = vrot.slane %v4182_v5, 5  ;;  %v4803_v15 = vrot.slane %v7553_v10, 5  ;;  %v4806_v10 = vrot.slane %v7569_v40, 5  ;;  %v6473_v17 = vld [vmem:[#allocation2 + $0x4c] sm:$0xf] }
 0x1e9   : > { %v7571_v42 = vadd.f32 %v3226_v3, %v2597_v56  ;;  %v7576_v56 = vld [vmem:[#allocation2 + $0x4c] sm:$0xf]  ;;  %v4172_v31 = vrot.slane %v4171_v50, 4  ;;  %v3389_v3 = vrot.slane %v3387_v41, 4  ;;  %v4719_v50 = vld [vmem:[#allocation2 + $0x3c] sm:$0xe]  ;;  %v4943_v60 = vpack.c.b16 %v4914_v0, %v4913_v58 }
 0x1ea   : > { %v2546_v13 = vpop.f32.mrf.mxu3  ;;  %v2235_v12 = vpop.f32.mrf.mxu2  ;;  %v6039_v41 = vrot.slane %v4719_v50, 9  ;;  %v4805_v5 = vrot.slane %v4803_v15, 4  ;;  %v4049_v50 = vld [vmem:[#allocation2 + $0x54] sm:$0xf] }
 0x1eb   : > { %5034 = vmatmul.bf16.gmra.mxu0 %v4942_v30  ;;  %v2598_v38 = vadd.f32 %v2546_v13, %v2284_v8  ;;  %v2285_v48 = vadd.f32 %v2235_v12, %v1855_v43  ;;  %v1859_v27 = vpop.f32.mrf.mxu1  ;;  %v4162_v8 = vrot.slane %v4161_v61, 4  ;;  %v4188_v30 = vshll.u32 %v7576_v56, 16 }
 0x1ec   : > { %v3390_v43 = vrot.slane %v6472_v57, 5  ;;  %v1860_v29 = vadd.f32 %v1859_v27, %v7285_v45  ;;  %v4804_v45 = vsel %vm7102_vm14, %v6039_v41, %v4803_v15  ;;  %v6474_v41 = vld [vmem:[#allocation2 + $0x50] sm:$0x1] }
 0x1ed   : > { %3621 = vmatmul.bf16.gmra.mxu1 %v3521_v53  ;;  %v4192_v53 = vshrl.u32 %v7576_v56, 16  ;;  %v4167_v12 = vsel %vm6727_vm11, %v4162_v8, %v7566_v47 }
 0x1ee   : > { %v3391_v61 = vsel %vm7102_vm14, %v3389_v3, %v3390_v43  ;;  %v4489_v47 = vunpack.c.l.b16 %v4167_v12 }
 0x1ef   : > { %4613 = vmatmul.bf16.gmra.mxu3 %v4517_v28  ;;  %v3495_v54 = vunpack.c.l.b16 %v3391_v61  ;;  %v3394_v61 = vrot.slane %v6473_v17, 5 }
 0x1f0   : > { %v3228_v55 = vpop.f32.mrf.mxu0 }
 0x1f1   : > { %v7584_v16 = vadd.f32 %v3228_v55, %v2598_v38  ;;  %v4177_v38 = vsel %vm6727_vm11, %v4172_v31, %v4176_v33  ;;  %v4190_v55 = vrot.slane %v4188_v30, 5  ;;  %v7597_v31 = vld [vmem:[#allocation2 + $0x50] sm:$0x1] }
 0x1f2   : > { %v2549_v6 = vpop.f32.mrf.mxu3  ;;  %v2237_v37 = vpop.f32.mrf.mxu2  ;;  %v4490_v8 = vunpack.c.l.b16 %v4177_v38  ;;  %v4198_v57 = vshll.u32 %v7597_v31, 16  ;;  %v4915_v38 = vunpack.c.l.b16 %v4804_v45 }
 0x1f3   : > { %v2599_v13 = vadd.f32 %v2549_v6, %v2285_v48  ;;  %v2286_v28 = vadd.f32 %v2237_v37, %v1857_v21  ;;  %v1861_v35 = vpop.f32.mrf.mxu1  ;;  %v4181_v48 = vrot.slane %v4179_v22, 4  ;;  %v4194_v21 = vrot.slane %v4192_v53, 4 }
 0x1f4   : > { %v3522_v6 = vpack.c.b16 %v3495_v54, %v3494_v9  ;;  %v4518_v53 = vpack.c.b16 %v4490_v8, %v4489_v47  ;;  %v4200_v12 = vrot.slane %v4198_v57, 5  ;;  %v1862_v9 = vadd.f32 %v1861_v35, %v7309_v19  ;;  %v6188_v19 = vld [vmem:[#allocation2 + $0x48] sm:$0xff] }
 0x1f5   : > { %v4185_v37 = vor.u32 %v4184_v39, %v4181_v48  ;;  %v4195_v3 = vor.u32 %v4194_v21, %v4190_v55  ;;  %v3298_v48 = vld [vmem:[#allocation2 + $0x48] sm:$0xe]  ;;  %v7611_v39 = vld [vmem:[#allocation2 + $0x58] sm:$0xf] }
 0x1f6   : > { %v5817_v8 = vrot.slane %v3298_v48, 9  ;;  %v7627_v48 = vld [vmem:[#allocation2 + $0x5c] sm:$0x1] }
 0x1f7   : > { %3936 = vmatmul.bf16.gmra.mxu2 %v6187_v25  ;;  %v4186_v27 = vrot.slane %v4185_v37, 4  ;;  %v4196_v25 = vrot.slane %v4195_v3, 4  ;;  %v4216_v3 = vshrl.u32 %v7611_v39, 16 }
 0x1f8   : > { %v3231_v33 = vpop.f32.mrf.mxu0 }
 0x1f9   : > { %v7600_v52 = vadd.f32 %v3231_v33, %v2599_v13  ;;  %v4807_v13 = vsel %vm7102_vm14, %v4805_v5, %v4806_v10  ;;  %v4191_v54 = vsel %vm6727_vm11, %v4186_v27, %v4190_v55  ;;  %v4201_v47 = vsel %vm6727_vm11, %v4196_v25, %v4200_v12  ;;  %v4720_v27 = vld [vmem:[#allocation2 + $0x48] sm:$0xe] }
 0x1fa   : > { %v2551_v22 = vpop.f32.mrf.mxu3  ;;  %v2240_v30 = vpop.f32.mrf.mxu2  ;;  %v3396_v33 = vrot.slane %v3394_v61, 4  ;;  %v4206_v55 = vshll.u32 %v4049_v50, 16  ;;  %v3395_v5 = vsel %vm7102_vm14, %v5817_v8, %v3394_v61  ;;  %v4492_v45 = vunpack.c.l.b16 %v4201_v47 }
 0x1fb   : > { %5039 = vmatmul.bf16.gmra.mxu0 %v4943_v60  ;;  %v2600_v43 = vadd.f32 %v2551_v22, %v2286_v28  ;;  %v2287_v58 = vadd.f32 %v2240_v30, %v1860_v29  ;;  %v1864_v0 = vpop.f32.mrf.mxu1  ;;  %v4916_v28 = vunpack.c.l.b16 %v4807_v13  ;;  %v3397_v29 = vrot.slane %v6474_v41, 5 }
 0x1fc   : > { %v4203_v22 = vshrl.u32 %v4049_v50, 16  ;;  %v4212_v30 = vshll.u32 %v7611_v39, 16  ;;  %v3496_v57 = vunpack.c.l.b16 %v3395_v5  ;;  %v4810_v13 = vrot.slane %v7576_v56, 5 }
 0x1fd   : > { %3626 = vmatmul.bf16.gmra.mxu1 %v3522_v6  ;;  %v3398_v10 = vsel %vm7102_vm14, %v3396_v33, %v3397_v29  ;;  %v4208_v12 = vrot.slane %v4206_v55, 5  ;;  %v4218_v61 = vrot.slane %v4216_v3, 4  ;;  %v1865_v50 = vadd.f32 %v1864_v0, %v7202_v36  ;;  %v4052_v0 = vld [vmem:[#allocation2 + $0x60] sm:$0xf]  ;;  %v6475_v3 = vld [vmem:[#allocation2 + $0x58] sm:$0xf] }
 0x1fe   : > { %v4205_v25 = vrot.slane %v4203_v22, 4  ;;  %v7624_v17 = vrot.slane %v4212_v30, 5  ;;  %v4812_v8 = vrot.slane %v4810_v13, 4  ;;  %v4222_v36 = vshll.u32 %v7627_v48, 16 }
 0x1ff   : > { %4618 = vmatmul.bf16.gmra.mxu3 %v4518_v53  ;;  %v4491_v53 = vunpack.c.l.b16 %v4191_v54 }
 0x200   : > { %v3233_v40 = vpop.f32.mrf.mxu0  ;;  %v4209_v29 = vor.u32 %v4208_v12, %v4205_v25  ;;  %v4224_v30 = vrot.slane %v4222_v36, 5 }
 0x201   : > { %v7613_v15 = vadd.f32 %v3233_v40, %v2600_v43  ;;  %v3497_v43 = vunpack.c.l.b16 %v3398_v10 }
 0x202   : > { %v2554_v21 = vpop.f32.mrf.mxu3  ;;  %v2242_v60 = vpop.f32.mrf.mxu2 }
 0x203   : > { %v2601_v6 = vadd.f32 %v2554_v21, %v2287_v58  ;;  %v2288_v37 = vadd.f32 %v2242_v60, %v1862_v9  ;;  %v1866_v35 = vpop.f32.mrf.mxu1  ;;  %v4944_v58 = vpack.c.b16 %v4916_v28, %v4915_v38  ;;  %v3523_v9 = vpack.c.b16 %v3497_v43, %v3496_v57  ;;  %v3299_v43 = vld [vmem:[#allocation2 + $0x54] sm:$0xe] }
 0x204   : > { %v4519_v60 = vpack.c.b16 %v4492_v45, %v4491_v53  ;;  %v6040_v38 = vrot.slane %v4720_v27, 9  ;;  %v4813_v28 = vrot.slane %v7597_v31, 5  ;;  %v1867_v5 = vadd.f32 %v1866_v35, %v7221_v23 }
 0x205   : > { %v3401_v57 = vrot.slane %v6475_v3, 5  ;;  %v4227_v53 = vshrl.u32 %v4052_v0, 16  ;;  %v4230_v45 = vshll.u32 %v4052_v0, 16  ;;  %v5818_v12 = vrot.slane %v3299_v43, 9 }
 0x206   : > { %v4811_v22 = vsel %vm7102_vm14, %v6040_v38, %v4810_v13  ;;  %v4814_v31 = vsel %vm7102_vm14, %v4812_v8, %v4813_v28  ;;  %v6189_v38 = vld [vmem:[#allocation2 + $0x54] sm:$0xff] }
 0x207   : > { %3941 = vmatmul.bf16.gmra.mxu2 %v6188_v19  ;;  %v4219_v19 = vor.u32 %v4218_v61, %v7624_v17  ;;  %v6476_v61 = vld [vmem:[#allocation2 + $0x5c] sm:$0x1]  ;;  %v4917_v23 = vunpack.c.l.b16 %v4811_v22  ;;  %v4918_v35 = vunpack.c.l.b16 %v4814_v31  ;;  %v3402_v8 = vsel %vm7102_vm14, %v5818_v12, %v3401_v57 }
 0x208   : > { %v3236_v40 = vpop.f32.mrf.mxu0  ;;  %v3498_v36 = vunpack.c.l.b16 %v3402_v8  ;;  %v4232_v22 = vrot.slane %v4230_v45, 5  ;;  %v4817_v31 = vrot.slane %v7611_v39, 5  ;;  %v4820_v39 = vrot.slane %v7627_v48, 5  ;;  %v6477_v8 = vld [vmem:[#allocation2 + $0x64] sm:$0xf] }
 0x209   : > { %v7629_v21 = vadd.f32 %v3236_v40, %v2601_v6  ;;  %v7634_v6 = vld [vmem:[#allocation2 + $0x64] sm:$0xf]  ;;  %v4220_v10 = vrot.slane %v4219_v19, 4  ;;  %v3403_v40 = vrot.slane %v3401_v57, 4  ;;  %v4721_v19 = vld [vmem:[#allocation2 + $0x54] sm:$0xe]  ;;  %v4945_v3 = vpack.c.b16 %v4918_v35, %v4917_v23 }
 0x20a   : > { %v2556_v54 = vpop.f32.mrf.mxu3  ;;  %v2245_v47 = vpop.f32.mrf.mxu2  ;;  %v6041_v57 = vrot.slane %v4721_v19, 9  ;;  %v4819_v45 = vrot.slane %v4817_v31, 4  ;;  %v4055_v19 = vld [vmem:[#allocation2 + $0x6c] sm:$0xf] }
 0x20b   : > { %5044 = vmatmul.bf16.gmra.mxu0 %v4944_v58  ;;  %v2602_v56 = vadd.f32 %v2556_v54, %v2288_v37  ;;  %v2289_v33 = vadd.f32 %v2245_v47, %v1865_v50  ;;  %v1869_v41 = vpop.f32.mrf.mxu1  ;;  %v4210_v37 = vrot.slane %v4209_v29, 4  ;;  %v4236_v58 = vshll.u32 %v7634_v6, 16 }
 0x20c   : > { %v3404_v50 = vrot.slane %v6476_v61, 5  ;;  %v1870_v43 = vadd.f32 %v1869_v41, %v7229_v14  ;;  %v4818_v14 = vsel %vm7102_vm14, %v6041_v57, %v4817_v31  ;;  %v6478_v57 = vld [vmem:[#allocation2 + $0x68] sm:$0x1] }
 0x20d   : > { %3631 = vmatmul.bf16.gmra.mxu1 %v3523_v9  ;;  %v4240_v9 = vshrl.u32 %v7634_v6, 16  ;;  %v4215_v47 = vsel %vm6727_vm11, %v4210_v37, %v7624_v17 }
 0x20e   : > { %v3405_v29 = vsel %vm7102_vm14, %v3403_v40, %v3404_v50  ;;  %v4493_v17 = vunpack.c.l.b16 %v4215_v47 }
 0x20f   : > { %4623 = vmatmul.bf16.gmra.mxu3 %v4519_v60  ;;  %v3499_v0 = vunpack.c.l.b16 %v3405_v29  ;;  %v3408_v29 = vrot.slane %v6477_v8, 5 }
 0x210   : > { %v3238_v55 = vpop.f32.mrf.mxu0 }
 0x211   : > { %v7642_v27 = vadd.f32 %v3238_v55, %v2602_v56  ;;  %v4225_v56 = vsel %vm6727_vm11, %v4220_v10, %v4224_v30  ;;  %v4238_v55 = vrot.slane %v4236_v58, 5  ;;  %v7655_v10 = vld [vmem:[#allocation2 + $0x68] sm:$0x1] }
 0x212   : > { %v2559_v25 = vpop.f32.mrf.mxu3  ;;  %v2247_v13 = vpop.f32.mrf.mxu2  ;;  %v4494_v37 = vunpack.c.l.b16 %v4225_v56  ;;  %v4246_v61 = vshll.u32 %v7655_v10, 16  ;;  %v4919_v56 = vunpack.c.l.b16 %v4818_v14 }
 0x213   : > { %v2603_v54 = vadd.f32 %v2559_v25, %v2289_v33  ;;  %v2290_v60 = vadd.f32 %v2247_v13, %v1867_v5  ;;  %v1871_v28 = vpop.f32.mrf.mxu1  ;;  %v4229_v33 = vrot.slane %v4227_v53, 4  ;;  %v4242_v5 = vrot.slane %v4240_v9, 4 }
 0x214   : > { %v3524_v25 = vpack.c.b16 %v3499_v0, %v3498_v36  ;;  %v4520_v9 = vpack.c.b16 %v4494_v37, %v4493_v17  ;;  %v4248_v47 = vrot.slane %v4246_v61, 5  ;;  %v1872_v36 = vadd.f32 %v1871_v28, %v7254_v11  ;;  %v6190_v11 = vld [vmem:[#allocation2 + $0x60] sm:$0xff] }
 0x215   : > { %v4233_v13 = vor.u32 %v4232_v22, %v4229_v33  ;;  %v4243_v40 = vor.u32 %v4242_v5, %v4238_v55  ;;  %v3300_v33 = vld [vmem:[#allocation2 + $0x60] sm:$0xe]  ;;  %v7669_v22 = vld [vmem:[#allocation2 + $0x70] sm:$0xf] }
 0x216   : > { %v5819_v37 = vrot.slane %v3300_v33, 9  ;;  %v7685_v33 = vld [vmem:[#allocation2 + $0x74] sm:$0x1] }
 0x217   : > { %3946 = vmatmul.bf16.gmra.mxu2 %v6189_v38  ;;  %v4234_v41 = vrot.slane %v4233_v13, 4  ;;  %v4244_v38 = vrot.slane %v4243_v40, 4  ;;  %v4264_v40 = vshrl.u32 %v7669_v22, 16 }
 0x218   : > { %v3241_v30 = vpop.f32.mrf.mxu0 }
 0x219   : > { %v7658_v12 = vadd.f32 %v3241_v30, %v2603_v54  ;;  %v4821_v54 = vsel %vm7102_vm14, %v4819_v45, %v4820_v39  ;;  %v4239_v0 = vsel %vm6727_vm11, %v4234_v41, %v4238_v55  ;;  %v4249_v17 = vsel %vm6727_vm11, %v4244_v38, %v4248_v47  ;;  %v4722_v41 = vld [vmem:[#allocation2 + $0x60] sm:$0xe] }
 0x21a   : > { %v2561_v53 = vpop.f32.mrf.mxu3  ;;  %v2250_v58 = vpop.f32.mrf.mxu2  ;;  %v3410_v30 = vrot.slane %v3408_v29, 4  ;;  %v4254_v55 = vshll.u32 %v4055_v19, 16  ;;  %v3409_v45 = vsel %vm7102_vm14, %v5819_v37, %v3408_v29  ;;  %v4496_v14 = vunpack.c.l.b16 %v4249_v17 }
 0x21b   : > { %8218 = vst [vmem:[#allocation10_spill] sm:$0xff] %v7658_v12  ;;  %5049 = vmatmul.bf16.gmra.mxu0 %v4945_v3  ;;  %v2604_v50 = vadd.f32 %v2561_v53, %v2290_v60  ;;  %v2291_v23 = vadd.f32 %v2250_v58, %v1870_v43  ;;  %v1874_v35 = vpop.f32.mrf.mxu1  ;;  %v4920_v60 = vunpack.c.l.b16 %v4821_v54  ;;  %v3411_v43 = vrot.slane %v6478_v57, 5  ;;  %v7904_v12 = vld [vmem:[#allocation2 + $0xbc] sm:$0x1] }
 0x21c   : > { %v4251_v53 = vshrl.u32 %v4055_v19, 16  ;;  %v4260_v58 = vshll.u32 %v7669_v22, 16  ;;  %v3500_v61 = vunpack.c.l.b16 %v3409_v45  ;;  %v4824_v54 = vrot.slane %v7634_v6, 5  ;;  %v8221_v45 = vld [vmem:[#allocation3_spill] sm:$0xff] }
 0x21d   : > { %3636 = vmatmul.bf16.gmra.mxu1 %v3524_v25  ;;  %v3412_v39 = vsel %vm7102_vm14, %v3410_v30, %v3411_v43  ;;  %v4256_v47 = vrot.slane %v4254_v55, 5  ;;  %v4266_v29 = vrot.slane %v4264_v40, 4  ;;  %v1875_v19 = vadd.f32 %v1874_v35, %v7272_v51  ;;  %v4058_v35 = vld [vmem:[#allocation2 + $0x78] sm:$0xf] }
 0x21e   : > { %v4253_v38 = vrot.slane %v4251_v53, 4  ;;  %v7682_v8 = vrot.slane %v4260_v58, 5  ;;  %v4826_v37 = vrot.slane %v4824_v54, 4  ;;  %v4270_v51 = vshll.u32 %v7685_v33, 16 }
 0x21f   : > { %4628 = vmatmul.bf16.gmra.mxu3 %v4520_v9  ;;  %v4495_v9 = vunpack.c.l.b16 %v4239_v0 }
 0x220   : > { %v3243_v48 = vpop.f32.mrf.mxu0  ;;  %v4257_v43 = vor.u32 %v4256_v47, %v4253_v38  ;;  %v4272_v40 = vrot.slane %v4270_v51, 5 }
 0x221   : > { %v7671_v31 = vadd.f32 %v3243_v48, %v2604_v50  ;;  %v3501_v50 = vunpack.c.l.b16 %v3412_v39 }
 0x222   : > { %v2564_v5 = vpop.f32.mrf.mxu3  ;;  %v2252_v3 = vpop.f32.mrf.mxu2 }
 0x223   : > { %8219 = vst [vmem:[#allocation11_spill] sm:$0xff] %v7671_v31  ;;  %v2605_v25 = vadd.f32 %v2564_v5, %v2291_v23  ;;  %v2292_v13 = vadd.f32 %v2252_v3, %v1872_v36  ;;  %v1876_v28 = vpop.f32.mrf.mxu1  ;;  %v4946_v23 = vpack.c.b16 %v4920_v60, %v4919_v56  ;;  %v3525_v36 = vpack.c.b16 %v3501_v50, %v3500_v61  ;;  %v6479_v61 = vld [vmem:[#allocation2 + $0x70] sm:$0xf] }
 0x224   : > { %v4521_v3 = vpack.c.b16 %v4496_v14, %v4495_v9  ;;  %v6042_v56 = vrot.slane %v4722_v41, 9  ;;  %v4827_v60 = vrot.slane %v7655_v10, 5  ;;  %v1877_v39 = vadd.f32 %v1876_v28, %v8221_v45  ;;  %v3301_v9 = vld [vmem:[#allocation2 + $0x6c] sm:$0xe] }
 0x225   : > { %v3415_v50 = vrot.slane %v6479_v61, 5  ;;  %v4275_v14 = vshrl.u32 %v4058_v35, 16  ;;  %v4831_v45 = vrot.slane %v7669_v22, 5  ;;  %v4834_v22 = vrot.slane %v7685_v33, 5 }
 0x226   : > { %v4825_v53 = vsel %vm7102_vm14, %v6042_v56, %v4824_v54  ;;  %v4828_v10 = vsel %vm7102_vm14, %v4826_v37, %v4827_v60 }
 0x227   : > { %3951 = vmatmul.bf16.gmra.mxu2 %v6190_v11  ;;  %v4267_v11 = vor.u32 %v4266_v29, %v7682_v8  ;;  %v3417_v29 = vrot.slane %v3415_v50, 4  ;;  %v4921_v28 = vunpack.c.l.b16 %v4825_v53 }
 0x228   : > { %v3246_v48 = vpop.f32.mrf.mxu0 }
 0x229   : > { %v7687_v5 = vadd.f32 %v3246_v48, %v2605_v25  ;;  %v7692_v25 = vld [vmem:[#allocation2 + $0x7c] sm:$0xf]  ;;  %v4268_v58 = vrot.slane %v4267_v11, 4  ;;  %v5820_v48 = vrot.slane %v3301_v9, 9 }
 0x22a   : > { %v2566_v0 = vpop.f32.mrf.mxu3  ;;  %v2255_v17 = vpop.f32.mrf.mxu2  ;;  %v4284_v41 = vshll.u32 %v7692_v25, 16 }
 0x22b   : > { %8220 = vst [vmem:[#allocation12_spill] sm:$0xff] %v7687_v5  ;;  %5054 = vmatmul.bf16.gmra.mxu0 %v4946_v23  ;;  %v2606_v6 = vadd.f32 %v2566_v0, %v2292_v13  ;;  %v2293_v30 = vadd.f32 %v2255_v17, %v1875_v19  ;;  %v1879_v57 = vpop.f32.mrf.mxu1  ;;  %v4258_v13 = vrot.slane %v4257_v43, 4  ;;  %v4278_v23 = vshll.u32 %v4058_v35, 16  ;;  %v6480_v19 = vld [vmem:[#allocation2 + $0x74] sm:$0x1]  ;;  %v6191_v17 = vld [vmem:[#allocation2 + $0x6c] sm:$0xff] }
 0x22c   : > { %v4288_v0 = vshrl.u32 %v7692_v25, 16  ;;  %v3416_v11 = vsel %vm7102_vm14, %v5820_v48, %v3415_v50  ;;  %v4723_v35 = vld [vmem:[#allocation2 + $0x6c] sm:$0xe] }
 0x22d   : > { %3641 = vmatmul.bf16.gmra.mxu1 %v3525_v36  ;;  %v3418_v36 = vrot.slane %v6480_v19, 5  ;;  %v4263_v43 = vsel %vm6727_vm11, %v4258_v13, %v7682_v8  ;;  %v3502_v53 = vunpack.c.l.b16 %v3416_v11  ;;  %v6043_v9 = vrot.slane %v4723_v35, 9 }
 0x22e   : > { %v4290_v61 = vrot.slane %v4288_v0, 4  ;;  %v4497_v13 = vunpack.c.l.b16 %v4263_v43 }
 0x22f   : > { %4633 = vmatmul.bf16.gmra.mxu3 %v4521_v3  ;;  %v4922_v3 = vunpack.c.l.b16 %v4828_v10  ;;  %v3419_v51 = vsel %vm7102_vm14, %v3417_v29, %v3418_v36 }
 0x230   : > { %v3248_v55 = vpop.f32.mrf.mxu0  ;;  %v3503_v10 = vunpack.c.l.b16 %v3419_v51 }
 0x231   : > { %v7700_v38 = vadd.f32 %v3248_v55, %v2606_v6  ;;  %v4273_v6 = vsel %vm6727_vm11, %v4268_v58, %v4272_v40  ;;  %v4280_v55 = vrot.slane %v4278_v23, 5  ;;  %v4947_v8 = vpack.c.b16 %v4922_v3, %v4921_v28  ;;  %v7715_v40 = vld [vmem:[#allocation2 + $0x80] sm:$0x1] }
 0x232   : > { %v2569_v47 = vpop.f32.mrf.mxu3  ;;  %v2257_v54 = vpop.f32.mrf.mxu2  ;;  %v4498_v58 = vunpack.c.l.b16 %v4273_v6  ;;  %v3526_v48 = vpack.c.b16 %v3503_v10, %v3502_v53  ;;  %v4833_v23 = vrot.slane %v4831_v45, 4  ;;  %v4294_v0 = vshll.u32 %v7715_v40, 16  ;;  %v6481_v53 = vld [vmem:[#allocation2 + $0x7c] sm:$0xf] }
 0x233   : > { %8222 = vst [vmem:[#allocation3_spill] sm:$0xff] %v7700_v38  ;;  %v2607_v56 = vadd.f32 %v2569_v47, %v2293_v30  ;;  %v2294_v60 = vadd.f32 %v2257_v54, %v1877_v39  ;;  %v1881_v37 = vpop.f32.mrf.mxu1  ;;  %v4277_v30 = vrot.slane %v4275_v14, 4  ;;  %v7713_v39 = vrot.slane %v4284_v41, 5  ;;  %v8223_v47 = vld [vmem:[#allocation4_spill] sm:$0xff] }
 0x234   : > { %v1880_v54 = vadd.f32 %v1879_v57, %v8223_v47  ;;  %v4522_v3 = vpack.c.b16 %v4498_v58, %v4497_v13  ;;  %v4832_v57 = vsel %vm7102_vm14, %v6043_v9, %v4831_v45  ;;  %v4835_v6 = vsel %vm7102_vm14, %v4833_v23, %v4834_v22  ;;  %v7733_v13 = vld [vmem:[#allocation2 + $0x88] sm:$0xf]  ;;  %v6192_v22 = vld [vmem:[#allocation2 + $0x78] sm:$0xff] }
 0x235   : > { %v4281_v29 = vor.u32 %v4280_v55, %v4277_v30  ;;  %v4291_v36 = vor.u32 %v4290_v61, %v7713_v39  ;;  %v4296_v11 = vrot.slane %v4294_v0, 5  ;;  %v4923_v35 = vunpack.c.l.b16 %v4832_v57  ;;  %v8225_v55 = vld [vmem:[#allocation5_spill] sm:$0xff] }
 0x236   : > { %v3422_v10 = vrot.slane %v6481_v53, 5  ;;  %v4924_v30 = vunpack.c.l.b16 %v4835_v6  ;;  %v1882_v61 = vadd.f32 %v1881_v37, %v8225_v55  ;;  %v4312_v57 = vshrl.u32 %v7733_v13, 16  ;;  %v4724_v53 = vld [vmem:[#allocation2 + $0x78] sm:$0xe] }
 0x237   : > { %3956 = vmatmul.bf16.gmra.mxu2 %v6191_v17  ;;  %v4292_v33 = vrot.slane %v4291_v36, 4 }
 0x238   : > { %v3251_v50 = vpop.f32.mrf.mxu0 }
 0x239   : > { %v7718_v19 = vadd.f32 %v3251_v50, %v2607_v56  ;;  %v4282_v56 = vrot.slane %v4281_v29, 4  ;;  %v4297_v47 = vsel %vm6727_vm11, %v4292_v33, %v4296_v11  ;;  %v6482_v29 = vld [vmem:[#allocation2 + $0x80] sm:$0x1]  ;;  %v4948_v33 = vpack.c.b16 %v4924_v30, %v4923_v35 }
 0x23a   : > { %v2571_v14 = vpop.f32.mrf.mxu3  ;;  %v2260_v41 = vpop.f32.mrf.mxu2 }
 0x23b   : > { %8224 = vst [vmem:[#allocation4_spill] sm:$0xff] %v7718_v19  ;;  %5059 = vmatmul.bf16.gmra.mxu0 %v4947_v8  ;;  %v2608_v28 = vadd.f32 %v2571_v14, %v2294_v60  ;;  %v2295_v17 = vadd.f32 %v2260_v41, %v1880_v54  ;;  %v7723_v43 = vpop.f32.mrf.mxu1  ;;  %v4061_v60 = vld [vmem:[#allocation2 + $0x84] sm:$0xf]  ;;  %v4287_v45 = vsel %vm6727_vm11, %v4282_v56, %v7713_v39  ;;  %v3302_v8 = vld [vmem:[#allocation2 + $0x78] sm:$0xe]  ;;  %v3425_v14 = vrot.slane %v6482_v29, 5 }
 0x23c   : > { %v5821_v54 = vrot.slane %v3302_v8, 9  ;;  %v4299_v39 = vshrl.u32 %v4061_v60, 16  ;;  %v4302_v36 = vshll.u32 %v4061_v60, 16  ;;  %v4499_v11 = vunpack.c.l.b16 %v4287_v45  ;;  %v7828_v19 = vld [vmem:[#allocation2 + $0xa4] sm:$0x1] }
 0x23d   : > { %3646 = vmatmul.bf16.gmra.mxu1 %v3526_v48  ;;  %v3424_v48 = vrot.slane %v3422_v10, 4  ;;  %v4314_v8 = vrot.slane %v4312_v57, 4  ;;  %v6044_v29 = vrot.slane %v4724_v53, 9  ;;  %v3303_v53 = vld [vmem:[#allocation2 + $0x84] sm:$0xe] }
 0x23e   : > { %v3423_v0 = vsel %vm7102_vm14, %v5821_v54, %v3422_v10  ;;  %v4301_v55 = vrot.slane %v4299_v39, 4 }
 0x23f   : > { %4638 = vmatmul.bf16.gmra.mxu3 %v4522_v3  ;;  %v4308_v3 = vshll.u32 %v7733_v13, 16  ;;  %v3504_v56 = vunpack.c.l.b16 %v3423_v0 }
 0x240   : > { %v3253_v51 = vpop.f32.mrf.mxu0 }
 0x241   : > { %v7735_v58 = vadd.f32 %v3253_v51, %v2608_v28  ;;  %v3426_v28 = vsel %vm7102_vm14, %v3424_v48, %v3425_v14  ;;  %v4500_v51 = vunpack.c.l.b16 %v4297_v47  ;;  %v4310_v10 = vrot.slane %v4308_v3, 5 }
 0x242   : > { %v2574_v50 = vpop.f32.mrf.mxu3  ;;  %v2262_v9 = vpop.f32.mrf.mxu2  ;;  %v3505_v6 = vunpack.c.l.b16 %v3426_v28  ;;  %v4064_v28 = vld [vmem:[#allocation2 + $0x90] sm:$0xf] }
 0x243   : > { %8226 = vst [vmem:[#allocation5_spill] sm:$0xff] %v7735_v58  ;;  %v2609_v23 = vadd.f32 %v2574_v50, %v2295_v17  ;;  %v2296_v37 = vadd.f32 %v2262_v9, %v1882_v61  ;;  %v7739_v41 = vpop.f32.mrf.mxu1  ;;  %v4838_v17 = vrot.slane %v7692_v25, 5  ;;  %v4304_v61 = vrot.slane %v4302_v36, 5  ;;  %v7748_v9 = vld [vmem:[#allocation2 + $0x8c] sm:$0x1] }
 0x244   : > { %v3527_v50 = vpack.c.b16 %v3505_v6, %v3504_v56  ;;  %v4841_v25 = vrot.slane %v7715_v40, 5  ;;  %v4523_v45 = vpack.c.b16 %v4500_v51, %v4499_v11  ;;  %v4315_v39 = vor.u32 %v4314_v8, %v4310_v10  ;;  %v6483_v56 = vld [vmem:[#allocation2 + $0x88] sm:$0xf] }
 0x245   : > { %v4840_v14 = vrot.slane %v4838_v17, 4  ;;  %v4318_v36 = vshll.u32 %v7748_v9, 16  ;;  %v3429_v6 = vrot.slane %v6483_v56, 5  ;;  %v5822_v8 = vrot.slane %v3303_v53, 9 }
 0x246   : > { %v4316_v57 = vrot.slane %v4315_v39, 4 }
 0x247   : > { %3961 = vmatmul.bf16.gmra.mxu2 %v6192_v22  ;;  %v4305_v22 = vor.u32 %v4304_v61, %v4301_v55  ;;  %v4842_v0 = vsel %vm7102_vm14, %v4840_v14, %v4841_v25  ;;  %v4326_v14 = vshll.u32 %v4064_v28, 16  ;;  %v6193_v25 = vld [vmem:[#allocation2 + $0x84] sm:$0xff] }
 0x248   : > { %v3256_v60 = vpop.f32.mrf.mxu0  ;;  %v4926_v51 = vunpack.c.l.b16 %v4842_v0 }
 0x249   : > { %v7750_v54 = vadd.f32 %v3256_v60, %v2609_v23  ;;  %v4839_v23 = vsel %vm7102_vm14, %v6044_v29, %v4838_v17  ;;  %v4306_v3 = vrot.slane %v4305_v22, 4  ;;  %v4323_v60 = vshrl.u32 %v4064_v28, 16 }
 0x24a   : > { %v2576_v48 = vpop.f32.mrf.mxu3  ;;  %v3922_v35 = vpop.f32.mrf.mxu2  ;;  %v4925_v11 = vunpack.c.l.b16 %v4839_v23  ;;  %v3430_v23 = vsel %vm7102_vm14, %v5822_v8, %v3429_v6  ;;  %v3687_v28 = vadd.f32 %v7723_v43, %v7330_v44 }
 0x24b   : > { %8227 = vst [vmem:[#allocation13_spill] sm:$0xff] %v7750_v54  ;;  %5064 = vmatmul.bf16.gmra.mxu0 %v4948_v33  ;;  %v2610_v30 = vadd.f32 %v2576_v48, %v2296_v37  ;;  %v7753_v47 = vpop.f32.mrf.mxu1  ;;  %v4320_v37 = vrot.slane %v4318_v36, 5  ;;  %v7760_v33 = vld [vmem:[#allocation2 + $0x94] sm:$0xf]  ;;  %v6484_v48 = vld [vmem:[#allocation2 + $0x8c] sm:$0x1]  ;;  %v4311_v36 = vsel %vm6727_vm11, %v4306_v3, %v4310_v10  ;;  %v3506_v56 = vunpack.c.l.b16 %v3430_v23 }
 0x24c   : > { %v3432_v29 = vrot.slane %v6484_v48, 5  ;;  %v4332_v22 = vshll.u32 %v7760_v33, 16  ;;  %v4336_v39 = vshrl.u32 %v7760_v33, 16  ;;  %v3688_v48 = vadd.f32 %v7739_v41, %v7351_v18  ;;  %v7783_v54 = vld [vmem:[#allocation2 + $0x98] sm:$0x1] }
 0x24d   : > { %3651 = vmatmul.bf16.gmra.mxu1 %v3527_v50  ;;  %v3431_v50 = vrot.slane %v3429_v6, 4  ;;  %v4845_v10 = vrot.slane %v7733_v13, 5  ;;  %v4325_v3 = vrot.slane %v4323_v60, 4  ;;  %v4725_v6 = vld [vmem:[#allocation2 + $0x84] sm:$0xe]  ;;  %v4002_v44 = vadd.f32 %v3922_v35, %v3687_v28 }
 0x24e   : > { %v7781_v8 = vrot.slane %v4332_v22, 5  ;;  %v6045_v23 = vrot.slane %v4725_v6, 9  ;;  %v4848_v13 = vrot.slane %v7748_v9, 5 }
 0x24f   : > { %4643 = vmatmul.bf16.gmra.mxu3 %v4523_v45  ;;  %v3433_v0 = vsel %vm7102_vm14, %v3431_v50, %v3432_v29  ;;  %v4338_v50 = vrot.slane %v4336_v39, 4  ;;  %v4847_v18 = vrot.slane %v4845_v10, 4  ;;  %v4342_v39 = vshll.u32 %v7783_v54, 16 }
 0x250   : > { %v3258_v40 = vpop.f32.mrf.mxu0  ;;  %v3507_v53 = vunpack.c.l.b16 %v3433_v0  ;;  %v4846_v35 = vsel %vm7102_vm14, %v6045_v23, %v4845_v10  ;;  %v7798_v10 = vld [vmem:[#allocation2 + $0xa0] sm:$0xf] }
 0x251   : > { %v7762_v55 = vadd.f32 %v3258_v40, %v2610_v30  ;;  %v4321_v30 = vsel %vm6727_vm11, %v4316_v57, %v4320_v37  ;;  %v4949_v40 = vpack.c.b16 %v4926_v51, %v4925_v11  ;;  %v4501_v57 = vunpack.c.l.b16 %v4311_v36 }
 0x252   : > { %v4604_v17 = vpop.f32.mrf.mxu3  ;;  %v3924_v61 = vpop.f32.mrf.mxu2  ;;  %v4502_v37 = vunpack.c.l.b16 %v4321_v30  ;;  %v3528_v11 = vpack.c.b16 %v3507_v53, %v3506_v56  ;;  %v4339_v22 = vor.u32 %v4338_v50, %v7781_v8  ;;  %v4849_v9 = vsel %vm7102_vm14, %v4847_v18, %v4848_v13  ;;  %v4067_v53 = vld [vmem:[#allocation2 + $0x9c] sm:$0xf]  ;;  %v6194_v18 = vld [vmem:[#allocation2 + $0x90] sm:$0xff] }
 0x253   : > { %8228 = vst [vmem:[#allocation14_spill] sm:$0xff] %v7762_v55  ;;  %v7764_v45 = vpop.f32.mrf.mxu1  ;;  %v4328_v55 = vrot.slane %v4326_v14, 5  ;;  %v4003_v43 = vadd.f32 %v3924_v61, %v3688_v48  ;;  %v4684_v36 = vadd.f32 %v4604_v17, %v4002_v44  ;;  %v4344_v0 = vrot.slane %v4342_v39, 5  ;;  %v4726_v39 = vld [vmem:[#allocation2 + $0x90] sm:$0xe] }
 0x254   : > { %v4524_v14 = vpack.c.b16 %v4502_v37, %v4501_v57  ;;  %v4928_v57 = vunpack.c.l.b16 %v4849_v9  ;;  %v3304_v37 = vld [vmem:[#allocation2 + $0x90] sm:$0xe] }
 0x255   : > { %v4329_v60 = vor.u32 %v4328_v55, %v4325_v3  ;;  %v4340_v55 = vrot.slane %v4339_v22, 4  ;;  %v4927_v3 = vunpack.c.l.b16 %v4846_v35  ;;  %v5823_v44 = vrot.slane %v3304_v37, 9 }
 0x256   : > { %v4350_v22 = vshll.u32 %v4067_v53, 16  ;;  %v4360_v35 = vshrl.u32 %v7798_v10, 16  ;;  %v6046_v37 = vrot.slane %v4726_v39, 9 }
 0x257   : > { %3966 = vmatmul.bf16.gmra.mxu2 %v6193_v25  ;;  %v4330_v61 = vrot.slane %v4329_v60, 4  ;;  %v4345_v13 = vsel %vm6727_vm11, %v4340_v55, %v4344_v0  ;;  %v3689_v55 = vadd.f32 %v7753_v47, %v7354_v62  ;;  %v4950_v0 = vpack.c.b16 %v4928_v57, %v4927_v3 }
 0x258   : > { %v5030_v29 = vpop.f32.mrf.mxu0 }
 0x259   : > { %v7794_v48 = vadd.f32 %v5030_v29, %v4684_v36  ;;  %v4335_v29 = vsel %vm6727_vm11, %v4330_v61, %v7781_v8 }
 0x25a   : > { %v4606_v51 = vpop.f32.mrf.mxu3  ;;  %v3927_v41 = vpop.f32.mrf.mxu2 }
 0x25b   : > { %5069 = vmatmul.bf16.gmra.mxu0 %v4949_v40  ;;  %v7786_v25 = vpop.f32.mrf.mxu1  ;;  %v4685_v30 = vadd.f32 %v4606_v51, %v4003_v43  ;;  %v6485_v40 = vld [vmem:[#allocation2 + $0x94] sm:$0xf] }
 0x25c   : > { %v3436_v56 = vrot.slane %v6485_v40, 5  ;;  %v3690_v40 = vadd.f32 %v7764_v45, %v7365_v34 }
 0x25d   : > { %3656 = vmatmul.bf16.gmra.mxu1 %v3528_v11  ;;  %v6486_v11 = vld [vmem:[#allocation2 + $0x98] sm:$0x1] }
 0x25e   : > { %v3438_v43 = vrot.slane %v3436_v56, 4  ;;  %v3439_v51 = vrot.slane %v6486_v11, 5  ;;  %v3437_v8 = vsel %vm7102_vm14, %v5823_v44, %v3436_v56  ;;  %v4503_v56 = vunpack.c.l.b16 %v4335_v29 }
 0x25f   : > { %4648 = vmatmul.bf16.gmra.mxu3 %v4524_v14  ;;  %v4347_v14 = vshrl.u32 %v4067_v53, 16  ;;  %v3508_v9 = vunpack.c.l.b16 %v3437_v8  ;;  %v4504_v53 = vunpack.c.l.b16 %v4345_v13  ;;  %v4352_v11 = vrot.slane %v4350_v22, 5  ;;  %v4070_v22 = vld [vmem:[#allocation2 + $0xa8] sm:$0xf] }
 0x260   : > { %v5032_v28 = vpop.f32.mrf.mxu0  ;;  %v3440_v36 = vsel %vm7102_vm14, %v3438_v43, %v3439_v51  ;;  %v4004_v8 = vadd.f32 %v3927_v41, %v3689_v55  ;;  %v4366_v41 = vshll.u32 %v7828_v19, 16 }
 0x261   : > { %v7796_v17 = vadd.f32 %v5032_v28, %v4685_v30  ;;  %v4356_v30 = vshll.u32 %v7798_v10, 16  ;;  %v3509_v61 = vunpack.c.l.b16 %v3440_v36  ;;  %v4852_v28 = vrot.slane %v7760_v33, 5 }
 0x262   : > { %v4609_v6 = vpop.f32.mrf.mxu3  ;;  %v3929_v50 = vpop.f32.mrf.mxu2  ;;  %v4349_v43 = vrot.slane %v4347_v14, 4  ;;  %v4855_v33 = vrot.slane %v7783_v54, 5  ;;  %v4525_v34 = vpack.c.b16 %v4504_v53, %v4503_v56  ;;  %v4371_v56 = vshrl.u32 %v4070_v22, 16 }
 0x263   : > { %v6291_v23 = vpack.c.bf16 %v7796_v17, %v7794_v48  ;;  %v7814_v60 = vpop.f32.mrf.mxu1  ;;  %v4358_v51 = vrot.slane %v4356_v30, 5  ;;  %v4005_v36 = vadd.f32 %v3929_v50, %v3690_v40  ;;  %v3529_v58 = vpack.c.b16 %v3509_v61, %v3508_v9  ;;  %v6487_v61 = vld [vmem:[#allocation2 + $0xa0] sm:$0xf] }
 0x264   : > { %v4854_v47 = vrot.slane %v4852_v28, 4  ;;  %v4853_v57 = vsel %vm7102_vm14, %v6046_v37, %v4852_v28  ;;  %v4353_v29 = vor.u32 %v4352_v11, %v4349_v43  ;;  %v4686_v50 = vadd.f32 %v4609_v6, %v4004_v8 }
 0x265   : > { %6292 = vst [vmem:[%s7805_s9] sm:$0xff] %v6291_v23   ;;  %v4362_v23 = vrot.slane %v4360_v35, 4  ;;  %v4929_v54 = vunpack.c.l.b16 %v4853_v57  ;;  %v4368_v9 = vrot.slane %v4366_v41, 5  ;;  %v3443_v55 = vrot.slane %v6487_v61, 5  ;;  %v8230_v61 = vld [vmem:[#allocation7_spill] sm:$0xff] }
 0x266   : > { %v4856_v14 = vsel %vm7102_vm14, %v4854_v47, %v4855_v33  ;;  %v4354_v30 = vrot.slane %v4353_v29, 4  ;;  %v6195_v47 = vld [vmem:[#allocation2 + $0x9c] sm:$0xff] }
 0x267   : > { %3971 = vmatmul.bf16.gmra.mxu2 %v6194_v18  ;;  %v4363_v18 = vor.u32 %v4362_v23, %v4358_v51  ;;  %v4930_v6 = vunpack.c.l.b16 %v4856_v14  ;;  %v3445_v11 = vrot.slane %v3443_v55, 4  ;;  %v6488_v23 = vld [vmem:[#allocation2 + $0xa4] sm:$0x1] }
 0x268   : > { %v5035_v44 = vpop.f32.mrf.mxu0  ;;  %v3446_v8 = vrot.slane %v6488_v23, 5  ;;  %v4359_v57 = vsel %vm6727_vm11, %v4354_v30, %v4358_v51  ;;  %v4859_v51 = vrot.slane %v7798_v10, 5  ;;  %v4373_v30 = vrot.slane %v4371_v56, 4 }
 0x269   : > { %v4364_v35 = vrot.slane %v4363_v18, 4  ;;  %v7840_v28 = vadd.f32 %v5035_v44, %v4686_v50  ;;  %v8229_v50 = vld [vmem:[#allocation6_spill] sm:$0xff]  ;;  %v4951_v14 = vpack.c.b16 %v4930_v6, %v4929_v54  ;;  %v4862_v10 = vrot.slane %v7828_v19, 5 }
 0x26a   : > { %v4611_v62 = vpop.f32.mrf.mxu3  ;;  %v3932_v3 = vpop.f32.mrf.mxu2  ;;  %v3447_v41 = vsel %vm7102_vm14, %v3445_v11, %v3446_v8 }
 0x26b   : > { %5074 = vmatmul.bf16.gmra.mxu0 %v4950_v0  ;;  %v7831_v45 = vpop.f32.mrf.mxu1  ;;  %v4687_v13 = vadd.f32 %v4611_v62, %v4005_v36  ;;  %v7838_v0 = vld [vmem:[#allocation2 + $0xac] sm:$0xf]  ;;  %v4374_v36 = vshll.u32 %v4070_v22, 16  ;;  %v4369_v29 = vsel %vm6727_vm11, %v4364_v35, %v4368_v9  ;;  %v4505_v9 = vunpack.c.l.b16 %v4359_v57 }
 0x26c   : > { %v4380_v44 = vshll.u32 %v7838_v0, 16 }
 0x26d   : > { %3661 = vmatmul.bf16.gmra.mxu1 %v3529_v58  ;;  %v3305_v58 = vld [vmem:[#allocation2 + $0x9c] sm:$0xe]  ;;  %v4376_v35 = vrot.slane %v4374_v36, 5 }
 0x26e   : > { %v5824_v43 = vrot.slane %v3305_v58, 9  ;;  %v3692_v58 = vadd.f32 %v7814_v60, %v8230_v61  ;;  %v7864_v23 = vrot.slane %v4380_v44, 5  ;;  %v4861_v60 = vrot.slane %v4859_v51, 4 }
 0x26f   : > { %4653 = vmatmul.bf16.gmra.mxu3 %v4525_v34  ;;  %v4384_v34 = vshrl.u32 %v7838_v0, 16  ;;  %v4377_v36 = vor.u32 %v4376_v35, %v4373_v30 }
 0x270   : > { %v5037_v39 = vpop.f32.mrf.mxu0  ;;  %v3444_v18 = vsel %vm7102_vm14, %v5824_v43, %v3443_v55  ;;  %v4506_v55 = vunpack.c.l.b16 %v4369_v29  ;;  %v4727_v43 = vld [vmem:[#allocation2 + $0x9c] sm:$0xe] }
 0x271   : > { %v7842_v40 = vadd.f32 %v5037_v39, %v4687_v13  ;;  %v3691_v13 = vadd.f32 %v7786_v25, %v8229_v50  ;;  %v3510_v22 = vunpack.c.l.b16 %v3444_v18  ;;  %v3511_v39 = vunpack.c.l.b16 %v3447_v41 }
 0x272   : > { %v4614_v53 = vpop.f32.mrf.mxu3  ;;  %v3934_v37 = vpop.f32.mrf.mxu2  ;;  %v4386_v11 = vrot.slane %v4384_v34, 4  ;;  %v6047_v41 = vrot.slane %v4727_v43, 9  ;;  %v4378_v19 = vrot.slane %v4377_v36, 4  ;;  %v7881_v43 = vld [vmem:[#allocation2 + $0xb8] sm:$0xf] }
 0x273   : > { %v6296_v62 = vpack.c.bf16 %v7842_v40, %v7840_v28  ;;  %v7846_v33 = vpop.f32.mrf.mxu1  ;;  %v4006_v25 = vadd.f32 %v3932_v3, %v3691_v13  ;;  %v4007_v54 = vadd.f32 %v3934_v37, %v3692_v58  ;;  %v3530_v6 = vpack.c.b16 %v3511_v39, %v3510_v22  ;;  %v6489_v39 = vld [vmem:[#allocation2 + $0xac] sm:$0xf]  ;;  %v4073_v58 = vld [vmem:[#allocation2 + $0xb4] sm:$0xf] }
 0x274   : > { %v4387_v44 = vor.u32 %v4386_v11, %v7864_v23  ;;  %v4860_v3 = vsel %vm7102_vm14, %v6047_v41, %v4859_v51  ;;  %v4863_v37 = vsel %vm7102_vm14, %v4861_v60, %v4862_v10  ;;  %v3450_v61 = vrot.slane %v6489_v39, 5  ;;  %v6196_v60 = vld [vmem:[#allocation2 + $0xa8] sm:$0xff] }
 0x275   : > { %6383 = vst [vmem:[%s7805_s9 + $0x8] sm:$0xff] %v6296_v62   ;;  %v7866_v62 = vld [vmem:[#allocation2 + $0xb0] sm:$0x1]  ;;  %v4688_v29 = vadd.f32 %v4614_v53, %v4006_v25  ;;  %v4931_v53 = vunpack.c.l.b16 %v4860_v3  ;;  %v4383_v25 = vsel %vm6727_vm11, %v4378_v19, %v7864_v23  ;;  %v4408_v3 = vshrl.u32 %v7881_v43, 16 }
 0x276   : > { %v4390_v34 = vshll.u32 %v7866_v62, 16  ;;  %v4388_v13 = vrot.slane %v4387_v44, 4  ;;  %v4398_v44 = vshll.u32 %v4073_v58, 16  ;;  %v4866_v39 = vrot.slane %v7838_v0, 5 }
 0x277   : > { %3976 = vmatmul.bf16.gmra.mxu2 %v6195_v47  ;;  %v4526_v47 = vpack.c.b16 %v4506_v55, %v4505_v9  ;;  %v4932_v9 = vunpack.c.l.b16 %v4863_v37  ;;  %v3306_v55 = vld [vmem:[#allocation2 + $0xa8] sm:$0xe]  ;;  %v4869_v0 = vrot.slane %v7866_v62, 5 }
 0x278   : > { %v5040_v8 = vpop.f32.mrf.mxu0  ;;  %v4400_v38 = vrot.slane %v4398_v44, 5 }
 0x279   : > { %v7877_v30 = vadd.f32 %v5040_v8, %v4688_v29 }
 0x27a   : > { %v4616_v18 = vpop.f32.mrf.mxu3  ;;  %v3937_v56 = vpop.f32.mrf.mxu2 }
 0x27b   : > { %5079 = vmatmul.bf16.gmra.mxu0 %v4951_v14  ;;  %v7869_v57 = vpop.f32.mrf.mxu1  ;;  %v4689_v50 = vadd.f32 %v4616_v18, %v4007_v54  ;;  %v4392_v14 = vrot.slane %v4390_v34, 5  ;;  %v5825_v54 = vrot.slane %v3306_v55, 9  ;;  %v6490_v18 = vld [vmem:[#allocation2 + $0xb0] sm:$0x1]  ;;  %v4728_v34 = vld [vmem:[#allocation2 + $0xa8] sm:$0xe] }
 0x27c   : > { %v3453_v41 = vrot.slane %v6490_v18, 5 }
 0x27d   : > { %3666 = vmatmul.bf16.gmra.mxu1 %v3530_v6  ;;  %v3452_v6 = vrot.slane %v3450_v61, 4  ;;  %v4393_v10 = vsel %vm6727_vm11, %v4388_v13, %v4392_v14  ;;  %v3451_v23 = vsel %vm7102_vm14, %v5825_v54, %v3450_v61  ;;  %v4952_v14 = vpack.c.b16 %v4932_v9, %v4931_v53 }
 0x27e   : > { %v3512_v37 = vunpack.c.l.b16 %v3451_v23  ;;  %v4507_v61 = vunpack.c.l.b16 %v4383_v25  ;;  %v4508_v54 = vunpack.c.l.b16 %v4393_v10  ;;  %v4868_v53 = vrot.slane %v4866_v39, 4 }
 0x27f   : > { %4658 = vmatmul.bf16.gmra.mxu3 %v4526_v47  ;;  %v4395_v47 = vshrl.u32 %v4073_v58, 16  ;;  %v3454_v29 = vsel %vm7102_vm14, %v3452_v6, %v3453_v41  ;;  %v8232_v58 = vld [vmem:[#allocation9_spill] sm:$0xff]  ;;  %v6048_v6 = vrot.slane %v4728_v34, 9 }
 0x280   : > { %v5042_v22 = vpop.f32.mrf.mxu0  ;;  %v3513_v19 = vunpack.c.l.b16 %v3454_v29  ;;  %v3694_v55 = vadd.f32 %v7846_v33, %v8232_v58  ;;  %v4527_v33 = vpack.c.b16 %v4508_v54, %v4507_v61  ;;  %v4870_v34 = vsel %vm7102_vm14, %v4868_v53, %v4869_v0  ;;  %v6197_v53 = vld [vmem:[#allocation2 + $0xb4] sm:$0xff] }
 0x281   : > { %v7879_v35 = vadd.f32 %v5042_v22, %v4689_v50  ;;  %v4404_v50 = vshll.u32 %v7881_v43, 16  ;;  %v8231_v22 = vld [vmem:[#allocation8_spill] sm:$0xff]  ;;  %v4397_v41 = vrot.slane %v4395_v47, 4 }
 0x282   : > { %v4619_v51 = vpop.f32.mrf.mxu3  ;;  %v3939_v11 = vpop.f32.mrf.mxu2  ;;  %v3693_v13 = vadd.f32 %v7831_v45, %v8231_v22  ;;  %v3531_v31 = vpack.c.b16 %v3513_v19, %v3512_v37 }
 0x283   : > { %v6301_v8 = vpack.c.bf16 %v7879_v35, %v7877_v30  ;;  %v7890_v36 = vpop.f32.mrf.mxu1  ;;  %v4406_v5 = vrot.slane %v4404_v50, 5  ;;  %v4009_v29 = vadd.f32 %v3939_v11, %v3694_v55  ;;  %v4401_v10 = vor.u32 %v4400_v38, %v4397_v41  ;;  %v4076_v50 = vld [vmem:[#allocation2 + $0xc0] sm:$0xf] }
 0x284   : > { %v4008_v23 = vadd.f32 %v3937_v56, %v3693_v13  ;;  %v4414_v56 = vshll.u32 %v7904_v12, 16  ;;  %v6491_v13 = vld [vmem:[#allocation2 + $0xb8] sm:$0xf]  ;;  %v4419_v55 = vshrl.u32 %v4076_v50, 16 }
 0x285   : > { %6384 = vst [vmem:[%s7805_s9 + $0x10] sm:$0xff] %v6301_v8   ;;  %v4410_v8 = vrot.slane %v4408_v3, 4  ;;  %v4402_v37 = vrot.slane %v4401_v10, 4 }
 0x286   : > { %v4690_v11 = vadd.f32 %v4619_v51, %v4008_v23  ;;  %v4416_v22 = vrot.slane %v4414_v56, 5  ;;  %v4934_v51 = vunpack.c.l.b16 %v4870_v34 }
 0x287   : > { %3981 = vmatmul.bf16.gmra.mxu2 %v6196_v60  ;;  %v4867_v60 = vsel %vm7102_vm14, %v6048_v6, %v4866_v39  ;;  %v4411_v47 = vor.u32 %v4410_v8, %v4406_v5  ;;  %v7914_v39 = vld [vmem:[#allocation2 + $0xc4] sm:$0xf]  ;;  %v6492_v8 = vld [vmem:[#allocation2 + $0xbc] sm:$0x1] }
 0x288   : > { %v5045_v18 = vpop.f32.mrf.mxu0  ;;  %v4933_v62 = vunpack.c.l.b16 %v4867_v60  ;;  %v3460_v23 = vrot.slane %v6492_v8, 5  ;;  %v4407_v60 = vsel %vm6727_vm11, %v4402_v37, %v4406_v5  ;;  %v4873_v5 = vrot.slane %v7881_v43, 5  ;;  %v7940_v8 = vld [vmem:[#allocation2 + $0xc8] sm:$0x1] }
 0x289   : > { %v4412_v19 = vrot.slane %v4411_v47, 4  ;;  %v7916_v38 = vadd.f32 %v5045_v18, %v4690_v11  ;;  %v4428_v18 = vshll.u32 %v7914_v39, 16  ;;  %v3695_v11 = vadd.f32 %v7869_v57, %v7430_v63 }
 0x28a   : > { %v4621_v45 = vpop.f32.mrf.mxu3  ;;  %v3942_v9 = vpop.f32.mrf.mxu2  ;;  %v4421_v37 = vrot.slane %v4419_v55, 4 }
 0x28b   : > { %5084 = vmatmul.bf16.gmra.mxu0 %v4952_v14  ;;  %v7907_v25 = vpop.f32.mrf.mxu1  ;;  %v4691_v44 = vadd.f32 %v4621_v45, %v4009_v29  ;;  %v3457_v14 = vrot.slane %v6491_v13, 5  ;;  %v4422_v29 = vshll.u32 %v4076_v50, 16  ;;  %v4417_v10 = vsel %vm6727_vm11, %v4412_v19, %v4416_v22 }
 0x28c   : > { %v4509_v22 = vunpack.c.l.b16 %v4407_v60  ;;  %v4510_v13 = vunpack.c.l.b16 %v4417_v10  ;;  %v4010_v63 = vadd.f32 %v3942_v9, %v3695_v11  ;;  %v6493_v11 = vld [vmem:[#allocation2 + $0xc4] sm:$0xf] }
 0x28d   : > { %3671 = vmatmul.bf16.gmra.mxu1 %v3531_v31  ;;  %v3307_v31 = vld [vmem:[#allocation2 + $0xb4] sm:$0xe]  ;;  %v3459_v41 = vrot.slane %v3457_v14, 4  ;;  %v4424_v19 = vrot.slane %v4422_v29, 5 }
 0x28e   : > { %v5826_v6 = vrot.slane %v3307_v31, 9  ;;  %v4430_v31 = vrot.slane %v4428_v18, 5  ;;  %v4528_v55 = vpack.c.b16 %v4510_v13, %v4509_v22  ;;  %v4438_v18 = vshll.u32 %v7940_v8, 16  ;;  %v7954_v22 = vld [vmem:[#allocation2 + $0xd0] sm:$0xf] }
 0x28f   : > { %4663 = vmatmul.bf16.gmra.mxu3 %v4527_v33  ;;  %v4432_v33 = vshrl.u32 %v7914_v39, 16  ;;  %v3461_v56 = vsel %vm7102_vm14, %v3459_v41, %v3460_v23 }
 0x290   : > { %v5047_v3 = vpop.f32.mrf.mxu0  ;;  %v3458_v47 = vsel %vm7102_vm14, %v5826_v6, %v3457_v14  ;;  %v3515_v50 = vunpack.c.l.b16 %v3461_v56  ;;  %v4729_v14 = vld [vmem:[#allocation2 + $0xb4] sm:$0xe] }
 0x291   : > { %v7918_v58 = vadd.f32 %v5047_v3, %v4691_v44  ;;  %v4953_v44 = vpack.c.b16 %v4934_v51, %v4933_v62  ;;  %v3514_v34 = vunpack.c.l.b16 %v3458_v47  ;;  %v3696_v3 = vadd.f32 %v7890_v36, %v7456_v20 }
 0x292   : > { %v4624_v61 = vpop.f32.mrf.mxu3  ;;  %v3944_v54 = vpop.f32.mrf.mxu2  ;;  %v4434_v6 = vrot.slane %v4432_v33, 4  ;;  %v6049_v23 = vrot.slane %v4729_v14, 9  ;;  %v4876_v20 = vrot.slane %v7904_v12, 5  ;;  %v4425_v36 = vor.u32 %v4424_v19, %v4421_v37  ;;  %v3308_v19 = vld [vmem:[#allocation2 + $0xc0] sm:$0xe] }
 0x293   : > { %v6306_v45 = vpack.c.bf16 %v7918_v58, %v7916_v38  ;;  %v7922_v0 = vpop.f32.mrf.mxu1  ;;  %v4011_v57 = vadd.f32 %v3944_v54, %v3696_v3  ;;  %v3532_v62 = vpack.c.b16 %v3515_v50, %v3514_v34  ;;  %v4692_v33 = vadd.f32 %v4624_v61, %v4010_v63  ;;  %v4079_v34 = vld [vmem:[#allocation2 + $0xcc] sm:$0xf] }
 0x294   : > { %v4874_v9 = vsel %vm7102_vm14, %v6049_v23, %v4873_v5  ;;  %v4426_v10 = vrot.slane %v4425_v36, 4  ;;  %v4440_v47 = vrot.slane %v4438_v18, 5  ;;  %v4446_v36 = vshll.u32 %v4079_v34, 16 }
 0x295   : > { %6385 = vst [vmem:[%s7805_s9 + $0x18] sm:$0xff] %v6306_v45   ;;  %v4875_v45 = vrot.slane %v4873_v5, 4  ;;  %v4935_v61 = vunpack.c.l.b16 %v4874_v9  ;;  %v4456_v18 = vshrl.u32 %v7954_v22, 16  ;;  %v3697_v9 = vadd.f32 %v7907_v25, %v7461_v1 }
 0x296   : > { %v4431_v14 = vsel %vm6727_vm11, %v4426_v10, %v4430_v31  ;;  %v3698_v10 = vadd.f32 %v7922_v0, %v7474_v24  ;;  %v4883_v0 = vrot.slane %v7940_v8, 5 }
 0x297   : > { %3986 = vmatmul.bf16.gmra.mxu2 %v6197_v53  ;;  %v4435_v53 = vor.u32 %v4434_v6, %v4430_v31  ;;  %v4877_v54 = vsel %vm7102_vm14, %v4875_v45, %v4876_v20  ;;  %v5827_v6 = vrot.slane %v3308_v19, 9  ;;  %v4443_v20 = vshrl.u32 %v4079_v34, 16 }
 0x298   : > { %v5050_v41 = vpop.f32.mrf.mxu0  ;;  %v4936_v37 = vunpack.c.l.b16 %v4877_v54  ;;  %v4448_v19 = vrot.slane %v4446_v36, 5 }
 0x299   : > { %v4436_v12 = vrot.slane %v4435_v53, 4  ;;  %v7950_v50 = vadd.f32 %v5050_v41, %v4692_v33  ;;  %v4452_v53 = vshll.u32 %v7954_v22, 16  ;;  %v4445_v34 = vrot.slane %v4443_v20, 4 }
 0x29a   : > { %v4626_v51 = vpop.f32.mrf.mxu3  ;;  %v3947_v43 = vpop.f32.mrf.mxu2  ;;  %v4954_v54 = vpack.c.b16 %v4936_v37, %v4935_v61 }
 0x29b   : > { %5089 = vmatmul.bf16.gmra.mxu0 %v4953_v44  ;;  %v7943_v29 = vpop.f32.mrf.mxu1  ;;  %v4693_v60 = vadd.f32 %v4626_v51, %v4011_v57  ;;  %v3464_v44 = vrot.slane %v6493_v11, 5  ;;  %v6494_v57 = vld [vmem:[#allocation2 + $0xc8] sm:$0x1]  ;;  %v6198_v51 = vld [vmem:[#allocation2 + $0xc0] sm:$0xff]  ;;  %v4441_v23 = vsel %vm6727_vm11, %v4436_v12, %v4440_v47  ;;  %v4511_v12 = vunpack.c.l.b16 %v4431_v14 }
 0x29c   : > { %v4512_v47 = vunpack.c.l.b16 %v4441_v23 }
 0x29d   : > { %3676 = vmatmul.bf16.gmra.mxu1 %v3532_v62  ;;  %v3466_v63 = vrot.slane %v3464_v44, 4  ;;  %v3467_v62 = vrot.slane %v6494_v57, 5  ;;  %v4012_v57 = vadd.f32 %v3947_v43, %v3697_v9 }
 0x29e   : > { %v4529_v61 = vpack.c.b16 %v4512_v47, %v4511_v12  ;;  %v6199_v47 = vld [vmem:[#allocation2 + $0xcc] sm:$0xff] }
 0x29f   : > { %4668 = vmatmul.bf16.gmra.mxu3 %v4528_v55  ;;  %v3465_v55 = vsel %vm7102_vm14, %v5827_v6, %v3464_v44  ;;  %v3468_v31 = vsel %vm7102_vm14, %v3466_v63, %v3467_v62  ;;  %v4730_v44 = vld [vmem:[#allocation2 + $0xc0] sm:$0xe]  ;;  %v4454_v6 = vrot.slane %v4452_v53, 5  ;;  %v4458_v63 = vrot.slane %v4456_v18, 4 }
 0x2a0   : > { %v5052_v56 = vpop.f32.mrf.mxu0  ;;  %v3516_v33 = vunpack.c.l.b16 %v3465_v55  ;;  %v4081_v55 = vld [vmem:[#allocation2 + $0xd4] sm:$0x1]  ;;  %v6050_v24 = vrot.slane %v4730_v44, 9 }
 0x2a1   : > { %v7952_v3 = vadd.f32 %v5052_v56, %v4693_v60  ;;  %v3517_v60 = vunpack.c.l.b16 %v3468_v31  ;;  %v4880_v56 = vrot.slane %v7914_v39, 5  ;;  %v4449_v39 = vor.u32 %v4448_v19, %v4445_v34 }
 0x2a2   : > { %v4629_v5 = vpop.f32.mrf.mxu3  ;;  %v3949_v13 = vpop.f32.mrf.mxu2  ;;  %v4462_v23 = vshll.u32 %v4081_v55, 16 }
 0x2a3   : > { %v6311_v41 = vpack.c.bf16 %v7952_v3, %v7950_v50  ;;  %v3639_v45 = vpop.f32.mrf.mxu1  ;;  %v4013_v62 = vadd.f32 %v3949_v13, %v3698_v10  ;;  %v4882_v14 = vrot.slane %v4880_v56, 4  ;;  %v4694_v20 = vadd.f32 %v4629_v5, %v4012_v57 }
 0x2a4   : > { %v4881_v43 = vsel %vm7102_vm14, %v6050_v24, %v4880_v56  ;;  %v4450_v53 = vrot.slane %v4449_v39, 4  ;;  %v4464_v8 = vrot.slane %v4462_v23, 5 }
 0x2a5   : > { %6386 = vst [vmem:[%s7805_s9 + $0x20] sm:$0xff] %v6311_v41   ;;  %v3533_v41 = vpack.c.b16 %v3517_v60, %v3516_v33  ;;  %v4884_v31 = vsel %vm7102_vm14, %v4882_v14, %v4883_v0  ;;  %v4937_v10 = vunpack.c.l.b16 %v4881_v43  ;;  %v4731_v0 = vld [vmem:[#allocation2 + $0xcc] sm:$0xe] }
 0x2a6   : > { %v4938_v12 = vunpack.c.l.b16 %v4884_v31  ;;  %v4455_v44 = vsel %vm6727_vm11, %v4450_v53, %v4454_v6 }
 0x2a7   : > { %3991 = vmatmul.bf16.gmra.mxu2 %v6198_v51  ;;  %v4459_v51 = vor.u32 %v4458_v63, %v4454_v6  ;;  %v3700_v63 = vadd.f32 %v3639_v45, %v7497_v32  ;;  %v4513_v57 = vunpack.c.l.b16 %v4455_v44 }
 0x2a8   : > { %v5055_v11 = vpop.f32.mrf.mxu0  ;;  %v4955_v19 = vpack.c.b16 %v4938_v12, %v4937_v10 }
 0x2a9   : > { %v4460_v18 = vrot.slane %v4459_v51, 4  ;;  %v7979_v33 = vadd.f32 %v5055_v11, %v4694_v20  ;;  %v3699_v11 = vadd.f32 %v7943_v29, %v7485_v2  ;;  %v6051_v51 = vrot.slane %v4731_v0, 9 }
 0x2aa   : > { %v4631_v1 = vpop.f32.mrf.mxu3  ;;  %v3952_v25 = vpop.f32.mrf.mxu2  ;;  %v4890_v2 = vrot.slane %v4081_v55, 5 }
 0x2ab   : > { %5094 = vmatmul.bf16.gmra.mxu0 %v4954_v54  ;;  %v3642_v37 = vpop.f32.mrf.mxu1  ;;  %v4695_v36 = vadd.f32 %v4631_v1, %v4013_v62  ;;  %v4465_v34 = vsel %vm6727_vm11, %v4460_v18, %v4464_v8  ;;  %v4887_v1 = vrot.slane %v7954_v22, 5 }
 0x2ac   : > { %v4514_v62 = vunpack.c.l.b16 %v4465_v34  ;;  %v3701_v8 = vadd.f32 %v3642_v37, %v7513_v59 }
 0x2ad   : > { %3681 = vmatmul.bf16.gmra.mxu1 %v3533_v41  ;;  %v4889_v23 = vrot.slane %v4887_v1, 4  ;;  %v4888_v20 = vsel %vm7102_vm14, %v6051_v51, %v4887_v1 }
 0x2ae   : > { %v4530_v26 = vpack.c.b16 %v4514_v62, %v4513_v57  ;;  %v4939_v55 = vunpack.c.l.b16 %v4888_v20 }
 0x2af   : > { %4673 = vmatmul.bf16.gmra.mxu3 %v4529_v61  ;;  %v4014_v61 = vadd.f32 %v3952_v25, %v3699_v11  ;;  %v4891_v22 = vsel %vm7102_vm14, %v4889_v23, %v4890_v2 }
 0x2b0   : > { %v5057_v13 = vpop.f32.mrf.mxu0  ;;  %v4940_v53 = vunpack.c.l.b16 %v4891_v22 }
 0x2b1   : > { %v7981_v60 = vadd.f32 %v5057_v13, %v4695_v36 }
 0x2b2   : > { %v4634_v9 = vpop.f32.mrf.mxu3  ;;  %v3954_v5 = vpop.f32.mrf.mxu2 }
 0x2b3   : > { %v6316_v54 = vpack.c.bf16 %v7981_v60, %v7979_v33  ;;  %v3644_v56 = vpop.f32.mrf.mxu1  ;;  %v4015_v24 = vadd.f32 %v3954_v5, %v3700_v63  ;;  %v4696_v29 = vadd.f32 %v4634_v9, %v4014_v61  ;;  %v4956_v9 = vpack.c.b16 %v4940_v53, %v4939_v55 }
 0x2b4   : > { %v3702_v5 = vadd.f32 %v3644_v56, %v7526_v46 }
 0x2b5   : > { %6387 = vst [vmem:[%s7805_s9 + $0x28] sm:$0xff] %v6316_v54  }
 0x2b7   : > { %3996 = vmatmul.bf16.gmra.mxu2 %v6199_v47 }
 0x2b8   : > { %v5060_v41 = vpop.f32.mrf.mxu0 }
 0x2b9   : > { %v7998_v25 = vadd.f32 %v5060_v41, %v4696_v29 }
 0x2ba   : > { %v4636_v6 = vpop.f32.mrf.mxu3  ;;  %v3957_v14 = vpop.f32.mrf.mxu2 }
 0x2bb   : > { %5099 = vmatmul.bf16.gmra.mxu0 %v4955_v19  ;;  %v3647_v39 = vpop.f32.mrf.mxu1  ;;  %v4697_v32 = vadd.f32 %v4636_v6, %v4015_v24  ;;  %v4016_v54 = vadd.f32 %v3957_v14, %v3701_v8 }
 0x2bc   : > { %v3703_v56 = vadd.f32 %v3647_v39, %v7542_v7 }
 0x2bf   : > { %4678 = vmatmul.bf16.gmra.mxu3 %v4530_v26 }
 0x2c0   : > { %v5062_v45 = vpop.f32.mrf.mxu0 }
 0x2c1   : > { %v8000_v36 = vadd.f32 %v5062_v45, %v4697_v32 }
 0x2c2   : > { %v4639_v43 = vpop.f32.mrf.mxu3  ;;  %v3959_v13 = vpop.f32.mrf.mxu2 }
 0x2c3   : > { %v6321_v31 = vpack.c.bf16 %v8000_v36, %v7998_v25  ;;  %v3649_v18 = vpop.f32.mrf.mxu1  ;;  %v4017_v10 = vadd.f32 %v3959_v13, %v3702_v5  ;;  %v4698_v34 = vadd.f32 %v4639_v43, %v4016_v54 }
 0x2c4   : > { %v3704_v41 = vadd.f32 %v3649_v18, %v7555_v4 }
 0x2c5   : > { %6388 = vst [vmem:[%s7805_s9 + $0x30] sm:$0xff] %v6321_v31  }
 0x2c8   : > { %v5065_v49 = vpop.f32.mrf.mxu0 }
 0x2c9   : > { %v8007_v63 = vadd.f32 %v5065_v49, %v4698_v34 }
 0x2ca   : > { %v4641_v12 = vpop.f32.mrf.mxu3  ;;  %v3962_v47 = vpop.f32.mrf.mxu2 }
 0x2cb   : > { %5104 = vmatmul.bf16.gmra.mxu0 %v4956_v9  ;;  %v3652_v44 = vpop.f32.mrf.mxu1  ;;  %v4699_v11 = vadd.f32 %v4641_v12, %v4017_v10  ;;  %v4018_v61 = vadd.f32 %v3962_v47, %v3703_v56  ;;  %v5206_v56 = vadd.f32 %v7796_v17, %v7794_v48 }
 0x2cc   : > { %v3705_v39 = vadd.f32 %v3652_v44, %v7571_v42 }
 0x2d0   : > { %v5067_v19 = vpop.f32.mrf.mxu0 }
 0x2d1   : > { %v8009_v57 = vadd.f32 %v5067_v19, %v4699_v11 }
 0x2d2   : > { %v4644_v62 = vpop.f32.mrf.mxu3  ;;  %v3964_v59 = vpop.f32.mrf.mxu2 }
 0x2d3   : > { %v6326_v46 = vpack.c.bf16 %v8009_v57, %v8007_v63  ;;  %v3654_v37 = vpop.f32.mrf.mxu1  ;;  %v4019_v24 = vadd.f32 %v3964_v59, %v3704_v41  ;;  %v4700_v26 = vadd.f32 %v4644_v62, %v4018_v61 }
 0x2d4   : > { %v3706_v20 = vadd.f32 %v3654_v37, %v7584_v16 }
 0x2d5   : > { %6389 = vst [vmem:[%s7805_s9 + $0x38] sm:$0xff] %v6326_v46  }
 0x2d8   : > { %v5070_v1 = vpop.f32.mrf.mxu0 }
 0x2d9   : > { %v8016_v2 = vadd.f32 %v5070_v1, %v4700_v26  ;;  %v5207_v1 = vadd.f32 %v5206_v56, %v7840_v28 }
 0x2da   : > { %v4646_v0 = vpop.f32.mrf.mxu3  ;;  %v3967_v6 = vpop.f32.mrf.mxu2 }
 0x2db   : > { %v3657_v14 = vpop.f32.mrf.mxu1  ;;  %v4701_v51 = vadd.f32 %v4646_v0, %v4019_v24  ;;  %v4020_v43 = vadd.f32 %v3967_v6, %v3705_v39  ;;  %v5208_v0 = vadd.f32 %v5207_v1, %v7842_v40 }
 0x2dc   : > { %v3707_v12 = vadd.f32 %v3657_v14, %v7600_v52 }
 0x2dd   : > { %v5209_v14 = vadd.f32 %v5208_v0, %v7877_v30 }
 0x2df   : > { %v5210_v26 = vadd.f32 %v5209_v14, %v7879_v35 }
 0x2e0   : > { %v5072_v23 = vpop.f32.mrf.mxu0 }
 0x2e1   : > { %v8018_v29 = vadd.f32 %v5072_v23, %v4701_v51 }
 0x2e2   : > { %v4649_v32 = vpop.f32.mrf.mxu3  ;;  %v3969_v45 = vpop.f32.mrf.mxu2 }
 0x2e3   : > { %v6331_v7 = vpack.c.bf16 %v8018_v29, %v8016_v2  ;;  %v3659_v4 = vpop.f32.mrf.mxu1  ;;  %v4021_v13 = vadd.f32 %v3969_v45, %v3706_v20  ;;  %v4702_v18 = vadd.f32 %v4649_v32, %v4020_v43 }
 0x2e4   : > { %v3708_v47 = vadd.f32 %v3659_v4, %v7613_v15 }
 0x2e5   : > { %6390 = vst [vmem:[%s7805_s9 + $0x40] sm:$0xff] %v6331_v7   ;;  %v5211_v7 = vadd.f32 %v5210_v26, %v7916_v38 }
 0x2e7   : > { %v5212_v43 = vadd.f32 %v5211_v7, %v7918_v58 }
 0x2e8   : > { %v5075_v22 = vpop.f32.mrf.mxu0 }
 0x2e9   : > { %v8025_v5 = vadd.f32 %v5075_v22, %v4702_v18 }
 0x2ea   : > { %v4651_v31 = vpop.f32.mrf.mxu3  ;;  %v3972_v55 = vpop.f32.mrf.mxu2 }
 0x2eb   : > { %v3662_v53 = vpop.f32.mrf.mxu1  ;;  %v4703_v8 = vadd.f32 %v4651_v31, %v4021_v13  ;;  %v4022_v34 = vadd.f32 %v3972_v55, %v3707_v12  ;;  %v5213_v13 = vadd.f32 %v5212_v43, %v7950_v50 }
 0x2ec   : > { %v3709_v51 = vadd.f32 %v3662_v53, %v7629_v21 }
 0x2ed   : > { %v5214_v18 = vadd.f32 %v5213_v13, %v7952_v3 }
 0x2f0   : > { %v5077_v9 = vpop.f32.mrf.mxu0 }
 0x2f1   : > { %v8027_v49 = vadd.f32 %v5077_v9, %v4703_v8 }
 0x2f2   : > { %v4654_v54 = vpop.f32.mrf.mxu3  ;;  %v3974_v10 = vpop.f32.mrf.mxu2 }
 0x2f3   : > { %v6336_v42 = vpack.c.bf16 %v8027_v49, %v8025_v5  ;;  %v3664_v16 = vpop.f32.mrf.mxu1  ;;  %v4023_v11 = vadd.f32 %v3974_v10, %v3708_v47  ;;  %v4704_v59 = vadd.f32 %v4654_v54, %v4022_v34 }
 0x2f4   : > { %v3710_v23 = vadd.f32 %v3664_v16, %v7642_v27  ;;  %v5215_v27 = vadd.f32 %v5214_v18, %v7979_v33  ;;  %v8236_v18 = vld [vmem:[#allocation3_spill] sm:$0xff] }
 0x2f5   : > { %6391 = vst [vmem:[%s7805_s9 + $0x48] sm:$0xff] %v6336_v42  }
 0x2f6   : > { %v5216_v42 = vadd.f32 %v5215_v27, %v7981_v60 }
 0x2f8   : > { %v5080_v44 = vpop.f32.mrf.mxu0  ;;  %v5217_v12 = vadd.f32 %v5216_v42, %v7998_v25 }
 0x2f9   : > { %v8037_v61 = vadd.f32 %v5080_v44, %v4704_v59  ;;  %v8233_v44 = vld [vmem:[#allocation10_spill] sm:$0xff] }
 0x2fa   : > { %v4656_v19 = vpop.f32.mrf.mxu3  ;;  %v3977_v62 = vpop.f32.mrf.mxu2  ;;  %v5218_v47 = vadd.f32 %v5217_v12, %v8000_v36 }
 0x2fb   : > { %v4705_v46 = vadd.f32 %v4656_v19, %v4023_v11  ;;  %v3667_v37 = vpop.f32.mrf.mxu1  ;;  %v4024_v4 = vadd.f32 %v3977_v62, %v3709_v51  ;;  %v8234_v11 = vld [vmem:[#allocation11_spill] sm:$0xff] }
 0x2fc   : > { %v3711_v34 = vadd.f32 %v3667_v37, %v8233_v44  ;;  %v5219_v59 = vadd.f32 %v5218_v47, %v8007_v63 }
 0x300   : > { %v5082_v41 = vpop.f32.mrf.mxu0 }
 0x301   : > { %v8039_v52 = vadd.f32 %v5082_v41, %v4705_v46 }
 0x302   : > { %v4659_v15 = vpop.f32.mrf.mxu3  ;;  %v3979_v24 = vpop.f32.mrf.mxu2 }
 0x303   : > { %v6341_v6 = vpack.c.bf16 %v8039_v52, %v8037_v61  ;;  %v3669_v32 = vpop.f32.mrf.mxu1  ;;  %v4025_v39 = vadd.f32 %v3979_v24, %v3710_v23  ;;  %v4706_v31 = vadd.f32 %v4659_v15, %v4024_v4  ;;  %v5220_v15 = vadd.f32 %v5219_v59, %v8009_v57 }
 0x304   : > { %v3712_v19 = vadd.f32 %v3669_v32, %v8234_v11 }
 0x305   : > { %6392 = vst [vmem:[%s7805_s9 + $0x50] sm:$0xff] %v6341_v6   ;;  %v5221_v0 = vadd.f32 %v5220_v15, %v8016_v2 }
 0x307   : > { %v5222_v26 = vadd.f32 %v5221_v0, %v8018_v29 }
 0x308   : > { %v5085_v45 = vpop.f32.mrf.mxu0 }
 0x309   : > { %v8054_v53 = vadd.f32 %v5085_v45, %v4706_v31  ;;  %v5223_v51 = vadd.f32 %v5222_v26, %v8025_v5  ;;  %v8238_v26 = vld [vmem:[#allocation5_spill] sm:$0xff] }
 0x30a   : > { %v4661_v20 = vpop.f32.mrf.mxu3  ;;  %v3982_v22 = vpop.f32.mrf.mxu2 }
 0x30b   : > { %v4707_v55 = vadd.f32 %v4661_v20, %v4025_v39  ;;  %v3672_v9 = vpop.f32.mrf.mxu1  ;;  %v4026_v46 = vadd.f32 %v3982_v22, %v3711_v34  ;;  %v5224_v4 = vadd.f32 %v5223_v51, %v8027_v49  ;;  %v8235_v20 = vld [vmem:[#allocation12_spill] sm:$0xff] }
 0x30c   : > { %v3713_v22 = vadd.f32 %v3672_v9, %v8235_v20 }
 0x30d   : > { %v5225_v43 = vadd.f32 %v5224_v4, %v8037_v61 }
 0x310   : > { %v5087_v21 = vpop.f32.mrf.mxu0 }
 0x311   : > { %v8056_v8 = vadd.f32 %v5087_v21, %v4707_v55  ;;  %v5226_v55 = vadd.f32 %v5225_v43, %v8039_v52 }
 0x312   : > { %v4664_v54 = vpop.f32.mrf.mxu3  ;;  %v3984_v10 = vpop.f32.mrf.mxu2 }
 0x313   : > { %v6346_v16 = vpack.c.bf16 %v8056_v8, %v8054_v53  ;;  %v4027_v56 = vadd.f32 %v3984_v10, %v3712_v19  ;;  %v3674_v24 = vpop.f32.mrf.mxu1  ;;  %v4708_v6 = vadd.f32 %v4664_v54, %v4026_v46  ;;  %v5227_v54 = vadd.f32 %v5226_v55, %v8054_v53  ;;  %v8237_v19 = vld [vmem:[#allocation4_spill] sm:$0xff] }
 0x314   : > { %v3714_v21 = vadd.f32 %v3674_v24, %v8236_v18 }
 0x315   : > { %6393 = vst [vmem:[%s7805_s9 + $0x58] sm:$0xff] %v6346_v16   ;;  %v5228_v47 = vadd.f32 %v5227_v54, %v8056_v8 }
 0x318   : > { %v5090_v62 = vpop.f32.mrf.mxu0 }
 0x319   : > { %v8071_v23 = vadd.f32 %v5090_v62, %v4708_v6 }
 0x31a   : > { %v4666_v41 = vpop.f32.mrf.mxu3  ;;  %v3987_v1 = vpop.f32.mrf.mxu2 }
 0x31b   : > { %v4709_v14 = vadd.f32 %v4666_v41, %v4027_v56  ;;  %v4028_v13 = vadd.f32 %v3987_v1, %v3713_v22  ;;  %v3677_v31 = vpop.f32.mrf.mxu1  ;;  %v5229_v9 = vadd.f32 %v5228_v47, %v8071_v23  ;;  %v8240_v47 = vld [vmem:[#allocation14_spill] sm:$0xff] }
 0x31c   : > { %v3715_v62 = vadd.f32 %v3677_v31, %v8237_v19 }
 0x320   : > { %v5092_v37 = vpop.f32.mrf.mxu0 }
 0x321   : > { %v8073_v32 = vadd.f32 %v5092_v37, %v4709_v14 }
 0x322   : > { %v4669_v45 = vpop.f32.mrf.mxu3  ;;  %v3989_v7 = vpop.f32.mrf.mxu2 }
 0x323   : > { %v6351_v39 = vpack.c.bf16 %v8073_v32, %v8071_v23  ;;  %v4710_v10 = vadd.f32 %v4669_v45, %v4028_v13  ;;  %v4029_v42 = vadd.f32 %v3989_v7, %v3714_v21  ;;  %v5230_v11 = vadd.f32 %v5229_v9, %v8073_v32  ;;  %v3679_v46 = vpop.f32.mrf.mxu1  ;;  %v8239_v13 = vld [vmem:[#allocation13_spill] sm:$0xff] }
 0x324   : > { %v3716_v37 = vadd.f32 %v3679_v46, %v8238_v26 }
 0x325   : > { %6394 = vst [vmem:[%s7805_s9 + $0x60] sm:$0xff] %v6351_v39  }
 0x328   : > { %v5095_v27 = vpop.f32.mrf.mxu0 }
 0x329   : > { %v8086_v44 = vadd.f32 %v5095_v27, %v4710_v10 }
 0x32a   : > { %v4671_v16 = vpop.f32.mrf.mxu3  ;;  %v3992_v12 = vpop.f32.mrf.mxu2 }
 0x32b   : > { %v4711_v34 = vadd.f32 %v4671_v16, %v4029_v42  ;;  %v5231_v56 = vadd.f32 %v5230_v11, %v8086_v44  ;;  %v4030_v1 = vadd.f32 %v3992_v12, %v3715_v62  ;;  %v3682_v39 = vpop.f32.mrf.mxu1 }
 0x32c   : > { %v3717_v31 = vadd.f32 %v3682_v39, %v8239_v13 }
 0x330   : > { %v5097_v59 = vpop.f32.mrf.mxu0 }
 0x331   : > { %v8091_v41 = vadd.f32 %v5097_v59, %v4711_v34 }
 0x332   : > { %v4674_v15 = vpop.f32.mrf.mxu3  ;;  %v3994_v24 = vpop.f32.mrf.mxu2 }
 0x333   : > { %v6356_v0 = vpack.c.bf16 %v8091_v41, %v8086_v44  ;;  %v5232_v6 = vadd.f32 %v5231_v56, %v8091_v41  ;;  %v4712_v14 = vadd.f32 %v4674_v15, %v4030_v1  ;;  %v4031_v7 = vadd.f32 %v3994_v24, %v3716_v37  ;;  %v3684_v42 = vpop.f32.mrf.mxu1 }
 0x334   : > { %v3718_v9 = vadd.f32 %v3684_v42, %v8240_v47 }
 0x335   : > { %6395 = vst [vmem:[%s7805_s9 + $0x68] sm:$0xff] %v6356_v0  }
 0x338   : > { %v5100_v51 = vpop.f32.mrf.mxu0 }
 0x339   : > { %v8098_v45 = vadd.f32 %v5100_v51, %v4712_v14 }
 0x33a   : > { %v4676_v4 = vpop.f32.mrf.mxu3  ;;  %v3997_v22 = vpop.f32.mrf.mxu2 }
 0x33b   : > { %v5233_v20 = vadd.f32 %v5232_v6, %v8098_v45  ;;  %v4713_v43 = vadd.f32 %v4676_v4, %v4031_v7  ;;  %v4032_v21 = vadd.f32 %v3997_v22, %v3717_v31 }
 0x340   : > { %v5102_v55 = vpop.f32.mrf.mxu0 }
 0x341   : > { %v8102_v18 = vadd.f32 %v5102_v55, %v4713_v43 }
 0x342   : > { %v4679_v27 = vpop.f32.mrf.mxu3  ;;  %v3999_v12 = vpop.f32.mrf.mxu2 }
 0x343   : > { %v6361_v54 = vpack.c.bf16 %v8102_v18, %v8098_v45  ;;  %v5234_v10 = vadd.f32 %v5233_v20, %v8102_v18  ;;  %v4714_v16 = vadd.f32 %v4679_v27, %v4032_v21  ;;  %v4033_v19 = vadd.f32 %v3999_v12, %v3718_v9 }
 0x345   : > { %6396 = vst [vmem:[%s7805_s9 + $0x70] sm:$0xff] %v6361_v54  }
 0x348   : > { %v5105_v34 = vpop.f32.mrf.mxu0 }
 0x349   : > { %v8109_v11 = vadd.f32 %v5105_v34, %v4714_v16 }
 0x34a   : > { %v4681_v59 = vpop.f32.mrf.mxu3 }
 0x34b   : > { %v5235_v62 = vadd.f32 %v5234_v10, %v8109_v11  ;;  %v4715_v46 = vadd.f32 %v4681_v59, %v4033_v19 }
 0x350   : > { %v5107_v56 = vpop.f32.mrf.mxu0 }
 0x351   : > { %v8112_v1 = vadd.f32 %v5107_v56, %v4715_v46 }
 0x353   : > { %v6366_v15 = vpack.c.bf16 %v8112_v1, %v8109_v11  ;;  %v5236_v24 = vadd.f32 %v5235_v62, %v8112_v1 }
 0x355   : > { %6397 = vst [vmem:[%s7805_s9 + $0x78] sm:$0xff] %v6366_v15   ;;  %v5237_v0 = vrot.slane %v5236_v24, 4 }
 0x357   : > { %v5238_v6 = vadd.f32 %v5237_v0, %v5236_v24 }
 0x359   : > { %v5239_v14 = vrot.slane %v5238_v6, 2 }
 0x35b   : > { %v5240_v26 = vadd.f32 %v5239_v14, %v5238_v6 }
 0x35d   : > { %v5241_v37 = vrot.slane %v5240_v26, 1 }
 0x35f   : > { %v5242_v51 = vadd.f32 %v5241_v37, %v5240_v26 }
 0x361   : > { %v8118_v7 = vmul.f32 0.00390625, %v5242_v51 }
 0x363   : > { %v5244_v4 = vsub.f32 %v7794_v48, %v8118_v7  ;;  %v5245_v39 = vsub.f32 %v7796_v17, %v8118_v7  ;;  %v5246_v20 = vsub.f32 %v7840_v28, %v8118_v7  ;;  %v5247_v13 = vsub.f32 %v7842_v40, %v8118_v7 }
 0x364   : > { %v5248_v31 = vsub.f32 %v7877_v30, %v8118_v7  ;;  %v5249_v27 = vsub.f32 %v7879_v35, %v8118_v7  ;;  %v5250_v17 = vsub.f32 %v7916_v38, %v8118_v7  ;;  %v5251_v42 = vsub.f32 %v7918_v58, %v8118_v7 }
 0x365   : > { %v5276_v22 = vmul.f32 %v5244_v4, %v5244_v4  ;;  %v5277_v43 = vmul.f32 %v5245_v39, %v5245_v39  ;;  %v5278_v55 = vmul.f32 %v5246_v20, %v5246_v20  ;;  %v5279_v48 = vmul.f32 %v5247_v13, %v5247_v13 }
 0x366   : > { %v5280_v10 = vmul.f32 %v5248_v31, %v5248_v31  ;;  %v5281_v16 = vmul.f32 %v5249_v27, %v5249_v27  ;;  %v5252_v30 = vsub.f32 %v7950_v50, %v8118_v7  ;;  %v5282_v12 = vmul.f32 %v5250_v17, %v5250_v17 }
 0x367   : > { %v5308_v21 = vadd.f32 %v5277_v43, %v5276_v22  ;;  %v5253_v35 = vsub.f32 %v7952_v3, %v8118_v7  ;;  %v5283_v9 = vmul.f32 %v5251_v42, %v5251_v42  ;;  %v5254_v38 = vsub.f32 %v7979_v33, %v8118_v7 }
 0x368   : > { %v5284_v19 = vmul.f32 %v5252_v30, %v5252_v30  ;;  %v5255_v58 = vsub.f32 %v7981_v60, %v8118_v7  ;;  %v5256_v50 = vsub.f32 %v7998_v25, %v8118_v7  ;;  %v5257_v3 = vsub.f32 %v8000_v36, %v8118_v7 }
 0x369   : > { %v5309_v54 = vadd.f32 %v5308_v21, %v5278_v55  ;;  %v5285_v59 = vmul.f32 %v5253_v35, %v5253_v35  ;;  %v5286_v56 = vmul.f32 %v5254_v38, %v5254_v38  ;;  %v5258_v33 = vsub.f32 %v8007_v63, %v8118_v7 }
 0x36a   : > { %v5287_v24 = vmul.f32 %v5255_v58, %v5255_v58  ;;  %v5288_v6 = vmul.f32 %v5256_v50, %v5256_v50  ;;  %v5259_v60 = vsub.f32 %v8009_v57, %v8118_v7  ;;  %v5289_v26 = vmul.f32 %v5257_v3, %v5257_v3 }
 0x36b   : > { %v5310_v28 = vadd.f32 %v5309_v54, %v5279_v48  ;;  %v5260_v25 = vsub.f32 %v8016_v2, %v8118_v7  ;;  %v5290_v51 = vmul.f32 %v5258_v33, %v5258_v33  ;;  %v5261_v36 = vsub.f32 %v8018_v29, %v8118_v7 }
 0x36c   : > { %v5291_v39 = vmul.f32 %v5259_v60, %v5259_v60  ;;  %v5262_v63 = vsub.f32 %v8025_v5, %v8118_v7  ;;  %v5263_v57 = vsub.f32 %v8027_v49, %v8118_v7  ;;  %v5264_v2 = vsub.f32 %v8037_v61, %v8118_v7 }
 0x36d   : > { %v5311_v40 = vadd.f32 %v5310_v28, %v5280_v10  ;;  %v5292_v22 = vmul.f32 %v5260_v25, %v5260_v25  ;;  %v5293_v13 = vmul.f32 %v5261_v36, %v5261_v36  ;;  %v5265_v29 = vsub.f32 %v8039_v52, %v8118_v7 }
 0x36e   : > { %v5294_v55 = vmul.f32 %v5262_v63, %v5262_v63  ;;  %v5295_v27 = vmul.f32 %v5263_v57, %v5263_v57  ;;  %v5266_v5 = vsub.f32 %v8054_v53, %v8118_v7  ;;  %v5296_v54 = vmul.f32 %v5264_v2, %v5264_v2 }
 0x36f   : > { %v5312_v47 = vadd.f32 %v5311_v40, %v5281_v16  ;;  %v5267_v49 = vsub.f32 %v8056_v8, %v8118_v7  ;;  %v5297_v10 = vmul.f32 %v5265_v29, %v5265_v29  ;;  %v5268_v61 = vsub.f32 %v8071_v23, %v8118_v7 }
 0x370   : > { %v5298_v42 = vmul.f32 %v5266_v5, %v5266_v5  ;;  %v5269_v52 = vsub.f32 %v8073_v32, %v8118_v7  ;;  %v5270_v53 = vsub.f32 %v8086_v44, %v8118_v7  ;;  %v5271_v8 = vsub.f32 %v8091_v41, %v8118_v7 }
 0x371   : > { %v5313_v34 = vadd.f32 %v5312_v47, %v5282_v12  ;;  %v5299_v40 = vmul.f32 %v5267_v49, %v5267_v49  ;;  %v5300_v12 = vmul.f32 %v5268_v61, %v5268_v61  ;;  %v5272_v23 = vsub.f32 %v8098_v45, %v8118_v7 }
 0x372   : > { %v5301_v35 = vmul.f32 %v5269_v52, %v5269_v52  ;;  %v5273_v32 = vsub.f32 %v8102_v18, %v8118_v7  ;;  %v5274_v44 = vsub.f32 %v8109_v11, %v8118_v7  ;;  %v5275_v41 = vsub.f32 %v8112_v1, %v8118_v7 }
 0x373   : > { %v5314_v62 = vadd.f32 %v5313_v34, %v5283_v9  ;;  %v5302_v34 = vmul.f32 %v5270_v53, %v5270_v53  ;;  %v5304_v58 = vmul.f32 %v5272_v23, %v5272_v23 }
 0x375   : > { %v5315_v46 = vadd.f32 %v5314_v62, %v5284_v19  ;;  %v5303_v19 = vmul.f32 %v5271_v8, %v5271_v8 }
 0x377   : > { %v5316_v15 = vadd.f32 %v5315_v46, %v5285_v59  ;;  %v5305_v46 = vmul.f32 %v5273_v32, %v5273_v32 }
 0x379   : > { %v5317_v0 = vadd.f32 %v5316_v15, %v5286_v56  ;;  %v5306_v56 = vmul.f32 %v5274_v44, %v5274_v44  ;;  %v5307_v15 = vmul.f32 %v5275_v41, %v5275_v41 }
 0x37b   : > { %v5318_v14 = vadd.f32 %v5317_v0, %v5287_v24 }
 0x37d   : > { %v5319_v37 = vadd.f32 %v5318_v14, %v5288_v6 }
 0x37f   : > { %v5320_v4 = vadd.f32 %v5319_v37, %v5289_v26 }
 0x381   : > { %v5321_v20 = vadd.f32 %v5320_v4, %v5290_v51 }
 0x383   : > { %v5322_v43 = vadd.f32 %v5321_v20, %v5291_v39 }
 0x385   : > { %v5323_v31 = vadd.f32 %v5322_v43, %v5292_v22 }
 0x387   : > { %v5324_v21 = vadd.f32 %v5323_v31, %v5293_v13 }
 0x389   : > { %v5325_v48 = vadd.f32 %v5324_v21, %v5294_v55 }
 0x38b   : > { %v5326_v17 = vadd.f32 %v5325_v48, %v5295_v27 }
 0x38d   : > { %v5327_v28 = vadd.f32 %v5326_v17, %v5296_v54 }
 0x38f   : > { %v5328_v16 = vadd.f32 %v5327_v28, %v5297_v10 }
 0x391   : > { %v5329_v30 = vadd.f32 %v5328_v16, %v5298_v42 }
 0x393   : > { %v5330_v47 = vadd.f32 %v5329_v30, %v5299_v40 }
 0x395   : > { %v5331_v9 = vadd.f32 %v5330_v47, %v5300_v12 }
 0x397   : > { %v5332_v38 = vadd.f32 %v5331_v9, %v5301_v35 }
 0x399   : > { %v5333_v62 = vadd.f32 %v5332_v38, %v5302_v34 }
 0x39b   : > { %v5334_v59 = vadd.f32 %v5333_v62, %v5303_v19 }
 0x39d   : > { %v5335_v50 = vadd.f32 %v5334_v59, %v5304_v58 }
 0x39f   : > { %v5336_v45 = vadd.f32 %v5335_v50, %v5305_v46 }
 0x3a1   : > { %v5337_v3 = vadd.f32 %v5336_v45, %v5306_v56 }
 0x3a3   : > { %v5338_v24 = vadd.f32 %v5337_v3, %v5307_v15 }
 0x3a5   : > { %v5339_v0 = vrot.slane %v5338_v24, 4 }
 0x3a7   : > { %v5340_v18 = vadd.f32 %v5339_v0, %v5338_v24 }
 0x3a9   : > { %v5341_v33 = vrot.slane %v5340_v18, 2 }
 0x3ab   : > { %v5342_v6 = vadd.f32 %v5341_v33, %v5340_v18 }
 0x3ad   : > { %v5343_v14 = vrot.slane %v5342_v6, 1 }
 0x3af   : > { %v5344_v11 = vadd.f32 %v5343_v14, %v5342_v6 }
 0x3b1   : > { %v5346_v1 = vsel %vm445_vm0, %v8118_v7, %v5344_v11 }
 0x3b2   : > { %5347 = vst [vmem:[%s235_s12] sm:$0x3] %v5346_v1 }
 0x3b3 PF: > { %s16_s18 = sadd.s32 1, %s6501_s18  }
 0x3b4   : > { %p13_p4 = scmp.ge.s32.totalorder %s16_s18, 4  }
 0x3b6   :  { %15 = sbr.rel (!%p13_p4) target bundleno = 1 (0x1), region = 89 }

// kernel: resnet_cell_forward.2
= control target key start
LH: loop header
LB: loop body
LE: loop exit
PB: predicated region body
PF: predicated region fallthrough
CT: control target
= control target key end

     0   :  { %s6433_s18 = smov 0   ;;  %s8378_s0 = inlined_call_operand.vmem [shape: bf16[2,18,18,128], index: 0, kind: input, shape index: {}]   ;;  %s8379_s1 = inlined_call_operand.vmem [shape: bf16[8,128,128], index: 1, kind: input, shape index: {}]   ;;  %s8380_s2 = inlined_call_operand.vmem [shape: bf16[128,256], index: 2, kind: input, shape index: {}]   ;;  %s8381_s3 = inlined_call_operand.vmem [shape: bf16[2,16,16,128], index: 3, kind: output, shape index: {0}]   ;;  %s8382_s4 = inlined_call_operand.vmem [shape: bf16[2,16,16,128], index: 4, kind: output, shape index: {1}]   ;;  %s8383_s5 = inlined_call_operand.vmem [shape: f32[2,4,128], index: 5, kind: output, shape index: {2}]  }
   0x1 LB: > { %s5141_s19 = sadd.s32 4294967295, %s6401_s18   ;;  %p5145_p0 = scmp.ge.s32.totalorder %s6401_s18, 1  ;;  %s6401_s18 = sphi %s6433_s18, %s16_s18  }
   0x2   : > { %p192_p1 = scmp.lt.s32.totalorder %s6401_s18, 3 }
   0x4   : > { %p193_p2 = pnand %p5145_p0, %p192_p1 }
   0x6   : > { %196 = sbr.rel (%p193_p2) target bundleno = 916 (0x394), region = 32 }
   0xb   : > { %v5258_v0 = vld [vmem:[%s8380_s2 + $0x70] sm:$0xf]  ;;  %v6035_v1 = vld [vmem:[%s8380_s2 + $0x74] sm:$0xf0]  ;;  %v6034_v2 = vld [vmem:[%s8380_s2 + $0x74] sm:$0xf] }
   0xc   : > { %v5259_v3 = vor.u32 %v6035_v1, %v5258_v0  ;;  %v5260_v4 = vld [vmem:[%s8380_s2 + $0x78] sm:$0xf0]  ;;  %v5250_v5 = vld [vmem:[%s8380_s2 + $0x60] sm:$0xf]  ;;  %v6033_v6 = vld [vmem:[%s8380_s2 + $0x64] sm:$0xf0] }
   0xd   : > { %v5263_v7 = vor.u32 %v6034_v2, %v5260_v4  ;;  %v6032_v8 = vld [vmem:[%s8380_s2 + $0x64] sm:$0xf]  ;;  %v5252_v9 = vld [vmem:[%s8380_s2 + $0x68] sm:$0xf0]  ;;  %v5251_v10 = vor.u32 %v6033_v6, %v5250_v5  ;;  %v5242_v12 = vld [vmem:[%s8380_s2 + $0x50] sm:$0xf] }
   0xe   : > { %6338 = vmatpush.bf16.msra.mxu2 %v5259_v3  ;;  %844 = vmatpush.bf16.msra.mxu0 %v5259_v3  ;;  %v5255_v11 = vor.u32 %v6032_v8, %v5252_v9  ;;  %v6031_v13 = vld [vmem:[%s8380_s2 + $0x54] sm:$0xf0]  ;;  %v6030_v14 = vld [vmem:[%s8380_s2 + $0x54] sm:$0xf]  ;;  %v5244_v15 = vld [vmem:[%s8380_s2 + $0x58] sm:$0xf0] }
   0xf   : > { %933 = vmatpush.bf16.msra.mxu1 %v5263_v7  ;;  %6346 = vmatpush.bf16.msra.mxu3 %v5263_v7  ;;  %v5243_v16 = vor.u32 %v6031_v13, %v5242_v12  ;;  %v5247_v17 = vor.u32 %v6030_v14, %v5244_v15  ;;  %v5234_v18 = vld [vmem:[%s8380_s2 + $0x40] sm:$0xf]  ;;  %v6029_v19 = vld [vmem:[%s8380_s2 + $0x44] sm:$0xf0]  ;;  %v6028_v20 = vld [vmem:[%s8380_s2 + $0x44] sm:$0xf] }
  0x10   : > { %v5236_v21 = vld [vmem:[%s8380_s2 + $0x48] sm:$0xf0]  ;;  %p229_p3 = scmp.lt.s32.totalorder %s5141_s19, 1  ;;  %v5235_v22 = vor.u32 %v6029_v19, %v5234_v18  ;;  %v5226_v24 = vld [vmem:[%s8380_s2 + $0x30] sm:$0xf]  ;;  %vm2081_vm3 = vcmask 1042432  }
  0x11   : > { %v5239_v23 = vor.u32 %v6028_v20, %v5236_v21  ;;  %v6027_v25 = vld [vmem:[%s8380_s2 + $0x34] sm:$0xf0]  ;;  %v6026_v26 = vld [vmem:[%s8380_s2 + $0x34] sm:$0xf]  ;;  %v5228_v27 = vld [vmem:[%s8380_s2 + $0x38] sm:$0xf0] }
  0x12   : > { %6339 = vmatpush.bf16.msra.mxu2 %v5251_v10  ;;  %845 = vmatpush.bf16.msra.mxu0 %v5251_v10  ;;  %s8493_s19 = smov (!%p229_p3, %s5141_s19), 1  ;;  %v5218_v28 = vld [vmem:[%s8380_s2 + $0x20] sm:$0xf]  ;;  %v6025_v29 = vld [vmem:[%s8380_s2 + $0x24] sm:$0xf0]  ;;  %v5227_v30 = vor.u32 %v6027_v25, %v5226_v24  ;;  %v5231_v34 = vor.u32 %v6026_v26, %v5228_v27  ;;  %vm2082_vm4 = vcmask 1046532  }
  0x13   : > { %934 = vmatpush.bf16.msra.mxu1 %v5255_v11  ;;  %6347 = vmatpush.bf16.msra.mxu3 %v5255_v11  ;;  %s6354_s16 = smul.u32 216, %s8493_s19  ;;  %v6024_v31 = vld [vmem:[%s8380_s2 + $0x24] sm:$0xf]  ;;  %v5220_v32 = vld [vmem:[%s8380_s2 + $0x28] sm:$0xf0]  ;;  %v5219_v36 = vor.u32 %v6025_v29, %v5218_v28  ;;  %vm6784_vm5 = vmor %vm2081_vm3, %vm2082_vm4  ;;  %s6018_s30 = sshll.u32 %s8493_s19, 7 }
  0x14   : > { %v5210_v33 = vld [vmem:[%s8380_s2 + $0x10] sm:$0xf]  ;;  %v6023_v35 = vld [vmem:[%s8380_s2 + $0x14] sm:$0xf0]  ;;  %vm297_vm0 = vsmask.f32 3328  ;;  %v5223_v49 = vor.u32 %v6024_v31, %v5220_v32  ;;  %s6828_s8 = scalar_lea.vmem %s8382_s4, %s6018_s30  ;;  %s7979_s23 = scalar_lea.vmem %s8381_s3, %s6018_s30 }
  0x15   : > { %s6529_s29 = scalar_lea.vmem %s8378_s0, %s6354_s16  ;;  %vm298_vm1 = vsmask.f32 7440  ;;  %v6022_v40 = vld [vmem:[%s8380_s2 + $0x14] sm:$0xf]  ;;  %v5212_v41 = vld [vmem:[%s8380_s2 + $0x18] sm:$0xf0]  ;;  %v5211_v50 = vor.u32 %v6023_v35, %v5210_v33 }
  0x16   : > { %6340 = vmatpush.bf16.msra.mxu2 %v5243_v16  ;;  %846 = vmatpush.bf16.msra.mxu0 %v5243_v16  ;;  %v5176_v37 = vld [vmem:[%s6529_s29 + $0x6c] sm:$0xf]  ;;  %v5177_v38 = vld [vmem:[%s6529_s29 + $0x70] sm:$0xf]  ;;  %v5178_v39 = vld [vmem:[%s6529_s29 + $0x74] sm:$0x1]  ;;  %v5215_v6 = vor.u32 %v6022_v40, %v5212_v41 }
  0x17   : > { %935 = vmatpush.bf16.msra.mxu1 %v5247_v17  ;;  %6348 = vmatpush.bf16.msra.mxu3 %v5247_v17  ;;  %v5202_v42 = vld [vmem:[%s8380_s2] sm:$0xf]  ;;  %v6021_v43 = vld [vmem:[%s8380_s2 + $0x4] sm:$0xf0]  ;;  %v493_v44 = vshrl.u32 %v5176_v37, 16  ;;  %v496_v45 = vshll.u32 %v5176_v37, 16  ;;  %vm6558_vm2 = vmor %vm297_vm0, %vm298_vm1 }
  0x18   : > { %v502_v46 = vshll.u32 %v5177_v38, 16  ;;  %v506_v47 = vshrl.u32 %v5177_v38, 16  ;;  %v5152_v48 = vld [vmem:[%s6529_s29 + $0xc] sm:$0xf]  ;;  %v512_v51 = vshll.u32 %v5178_v39, 16  ;;  %v5203_v7 = vor.u32 %v6021_v43, %v5202_v42  ;;  %v6067_v37 = vld [vmem:[%s8379_s1 + $0x78] sm:$0xff] }
  0x19   : > { %v5153_v52 = vld [vmem:[%s6529_s29 + $0x10] sm:$0xf]  ;;  %v5154_v53 = vld [vmem:[%s6529_s29 + $0x14] sm:$0x1]  ;;  %v301_v54 = vshrl.u32 %v5152_v48, 16  ;;  %v495_v56 = vrot.slane %v493_v44, 4 }
  0x1a   : > { %6341 = vmatpush.bf16.msra.mxu2 %v5235_v22  ;;  %847 = vmatpush.bf16.msra.mxu0 %v5235_v22  ;;  %v6020_v55 = vld [vmem:[%s8380_s2 + $0x4] sm:$0xf]  ;;  %v498_v57 = vrot.slane %v496_v45, 5  ;;  %v504_v58 = vrot.slane %v502_v46, 5  ;;  %v508_v59 = vrot.slane %v506_v47, 4  ;;  %v514_v61 = vrot.slane %v512_v51, 5 }
  0x1b   : > { %936 = vmatpush.bf16.msra.mxu1 %v5239_v23  ;;  %6349 = vmatpush.bf16.msra.mxu3 %v5239_v23  ;;  %v5204_v60 = vld [vmem:[%s8380_s2 + $0x8] sm:$0xf0]  ;;  %v303_v62 = vrot.slane %v301_v54, 4  ;;  %v304_v63 = vshll.u32 %v5152_v48, 16  ;;  %v310_v0 = vshll.u32 %v5153_v52, 16  ;;  %v314_v3 = vshrl.u32 %v5153_v52, 16 }
  0x1c   : > { %v499_v1 = vor.u32 %v498_v57, %v495_v56  ;;  %v509_v2 = vor.u32 %v508_v59, %v504_v58  ;;  %v320_v4 = vshll.u32 %v5154_v53, 16  ;;  %v5179_v5 = vld [vmem:[%s6529_s29 + $0x78] sm:$0xf]  ;;  %v5180_v11 = vld [vmem:[%s6529_s29 + $0x7c] sm:$0xf]  ;;  %v5207_v12 = vor.u32 %v6020_v55, %v5204_v60  ;;  %v6066_v59 = vld [vmem:[%s8379_s1 + $0x70] sm:$0xff] }
  0x1d   : > { %v306_v9 = vrot.slane %v304_v63, 5  ;;  %v312_v10 = vrot.slane %v310_v0, 5  ;;  %v316_v15 = vrot.slane %v314_v3, 4  ;;  %v517_v18 = vshrl.u32 %v5179_v5, 16  ;;  %v5155_v24 = vld [vmem:[%s6529_s29 + $0x18] sm:$0xf] }
  0x1e   : > { %6342 = vmatpush.bf16.msra.mxu2 %v5227_v30  ;;  %848 = vmatpush.bf16.msra.mxu0 %v5227_v30  ;;  %v500_v13 = vrot.slane %v499_v1, 4  ;;  %v510_v14 = vrot.slane %v509_v2, 4  ;;  %v322_v17 = vrot.slane %v320_v4, 5  ;;  %v520_v19 = vshll.u32 %v5179_v5, 16  ;;  %v5181_v28 = vld [vmem:[%s6529_s29 + $0x80] sm:$0x1] }
  0x1f   : > { %937 = vmatpush.bf16.msra.mxu1 %v5231_v34  ;;  %6350 = vmatpush.bf16.msra.mxu3 %v5231_v34  ;;  %v307_v16 = vor.u32 %v306_v9, %v303_v62  ;;  %v317_v22 = vor.u32 %v316_v15, %v312_v10  ;;  %v526_v23 = vshll.u32 %v5180_v11, 16  ;;  %v519_v29 = vrot.slane %v517_v18, 4  ;;  %v5156_v38 = vld [vmem:[%s6529_s29 + $0x1c] sm:$0xf]  ;;  %v5157_v45 = vld [vmem:[%s6529_s29 + $0x20] sm:$0x1] }
  0x20   : > { %v505_v20 = vsel %vm6558_vm2, %v500_v13, %v504_v58  ;;  %v515_v21 = vsel %vm6558_vm2, %v510_v14, %v514_v61  ;;  %v522_v31 = vrot.slane %v520_v19, 5  ;;  %v530_v33 = vshrl.u32 %v5180_v11, 16  ;;  %v6075_v42 = vld [vmem:[%s8379_s1 + $0xb8] sm:$0xff]  ;;  %v5182_v54 = vld [vmem:[%s6529_s29 + $0x84] sm:$0xf]  ;;  %v6058_v58 = vld [vmem:[%s8379_s1 + $0x30] sm:$0xff] }
  0x21   : > { %v716_v25 = vunpack.c.l.b16 %v505_v20  ;;  %v717_v26 = vunpack.c.l.b16 %v515_v21  ;;  %v308_v27 = vrot.slane %v307_v16, 4  ;;  %v318_v30 = vrot.slane %v317_v22, 4  ;;  %v6074_v63 = vld [vmem:[%s8379_s1 + $0xb0] sm:$0xff]  ;;  %v5183_v0 = vld [vmem:[%s6529_s29 + $0x88] sm:$0xf] }
  0x22   : > { %6343 = vmatpush.bf16.msra.mxu2 %v5219_v36  ;;  %849 = vmatpush.bf16.msra.mxu0 %v5219_v36  ;;  %v6569_v32 = vrot.slane %v526_v23, 5  ;;  %v6059_v36 = vld [vmem:[%s8379_s1 + $0x38] sm:$0xff]  ;;  %v325_v39 = vshrl.u32 %v5155_v24, 16  ;;  %v532_v43 = vrot.slane %v530_v33, 4  ;;  %v536_v44 = vshll.u32 %v5181_v28, 16  ;;  %v6057_v14 = vld [vmem:[%s8379_s1 + $0x28] sm:$0xff] }
  0x23   : > { %938 = vmatpush.bf16.msra.mxu1 %v5223_v49  ;;  %6351 = vmatpush.bf16.msra.mxu3 %v5223_v49  ;;  %v740_v34 = vpack.c.b16 %v717_v26, %v716_v25  ;;  %v313_v35 = vsel %vm6558_vm2, %v308_v27, %v312_v10  ;;  %v323_v40 = vsel %vm6558_vm2, %v318_v30, %v322_v17  ;;  %v328_v49 = vshll.u32 %v5155_v24, 16  ;;  %v5158_v10 = vld [vmem:[%s6529_s29 + $0x24] sm:$0xf]  ;;  %v6065_v15 = vld [vmem:[%s8379_s1 + $0x68] sm:$0xff] }
  0x24   : > { %v700_v41 = vunpack.c.l.b16 %v313_v35  ;;  %v701_v46 = vunpack.c.l.b16 %v323_v40  ;;  %v523_v47 = vor.u32 %v522_v31, %v519_v29  ;;  %v327_v48 = vrot.slane %v325_v39, 4  ;;  %v5159_v17 = vld [vmem:[%s6529_s29 + $0x28] sm:$0xf]  ;;  %v5184_v33 = vld [vmem:[%s6529_s29 + $0x8c] sm:$0x1] }
  0x25   : > { %v533_v51 = vor.u32 %v532_v43, %v6569_v32  ;;  %v334_v52 = vshll.u32 %v5156_v38, 16  ;;  %v338_v53 = vshrl.u32 %v5156_v38, 16  ;;  %v330_v56 = vrot.slane %v328_v49, 5  ;;  %v6073_v18 = vld [vmem:[%s8379_s1 + $0xa8] sm:$0xff] }
  0x26   : > { %6344 = vmatpush.bf16.msra.mxu2 %v5211_v50  ;;  %850 = vmatpush.bf16.msra.mxu0 %v5211_v50  ;;  %v6099_v50 = vld [vmem:[%s8379_s1 + $0xf8] sm:$0xff]  ;;  %v732_v55 = vpack.c.b16 %v701_v46, %v700_v41  ;;  %v344_v57 = vshll.u32 %v5157_v45, 16  ;;  %v538_v60 = vrot.slane %v536_v44, 5  ;;  %v524_v1 = vrot.slane %v523_v47, 4  ;;  %v6097_v26 = vld [vmem:[%s8379_s1 + $0xe8] sm:$0xff] }
  0x27   : > { %939 = vmatpush.bf16.msra.mxu1 %v5215_v6  ;;  %6352 = vmatpush.bf16.msra.mxu3 %v5215_v6  ;;  %v336_v61 = vrot.slane %v334_v52, 5  ;;  %v340_v62 = vrot.slane %v338_v53, 4  ;;  %v534_v2 = vrot.slane %v533_v51, 4  ;;  %v331_v3 = vor.u32 %v330_v56, %v327_v48  ;;  %v5160_v44 = vld [vmem:[%s6529_s29 + $0x2c] sm:$0x1] }
  0x28   : > { %v541_v4 = vshrl.u32 %v5182_v54, 16  ;;  %v346_v6 = vrot.slane %v344_v57, 5  ;;  %v544_v9 = vshll.u32 %v5182_v54, 16  ;;  %v554_v13 = vshrl.u32 %v5183_v0, 16  ;;  %v5185_v51 = vld [vmem:[%s6529_s29 + $0x90] sm:$0xf] }
  0x29   : > { %v341_v5 = vor.u32 %v340_v62, %v336_v61  ;;  %v332_v11 = vrot.slane %v331_v3, 4  ;;  %v529_v19 = vsel %vm6558_vm2, %v524_v1, %v6569_v32  ;;  %v539_v20 = vsel %vm6558_vm2, %v534_v2, %v538_v60  ;;  %v5186_v54 = vld [vmem:[%s6529_s29 + $0x94] sm:$0xf]  ;;  %v5161_v56 = vld [vmem:[%s6529_s29 + $0x30] sm:$0xf]  ;;  %v6096_v1 = vld [vmem:[%s8379_s1 + $0xe0] sm:$0xff] }
  0x2a   : > { %6345 = vmatpush.bf16.msra.mxu2 %v5203_v7  ;;  %851 = vmatpush.bf16.msra.mxu0 %v5203_v7  ;;  %v6098_v7 = vld [vmem:[%s8379_s1 + $0xf0] sm:$0xff]  ;;  %v543_v21 = vrot.slane %v541_v4, 4  ;;  %v546_v22 = vrot.slane %v544_v9, 5  ;;  %v349_v25 = vshrl.u32 %v5158_v10, 16  ;;  %v556_v28 = vrot.slane %v554_v13, 4 }
  0x2b   : > { %940 = vmatpush.bf16.msra.mxu1 %v5207_v12  ;;  %6353 = vmatpush.bf16.msra.mxu3 %v5207_v12  ;;  %v550_v12 = vshll.u32 %v5183_v0, 16  ;;  %v342_v16 = vrot.slane %v341_v5, 4  ;;  %v337_v23 = vsel %vm6558_vm2, %v332_v11, %v336_v61  ;;  %v352_v29 = vshll.u32 %v5158_v10, 16  ;;  %v5162_v57 = vld [vmem:[%s6529_s29 + $0x34] sm:$0xf]  ;;  %v6072_v0 = vld [vmem:[%s8379_s1 + $0xa0] sm:$0xff] }
  0x2c   : > { %v358_v30 = vshll.u32 %v5159_v17, 16  ;;  %v718_v31 = vunpack.c.l.b16 %v529_v19  ;;  %v719_v32 = vunpack.c.l.b16 %v539_v20  ;;  %v702_v35 = vunpack.c.l.b16 %v337_v23  ;;  %v5187_v19 = vld [vmem:[%s6529_s29 + $0x98] sm:$0x1] }
  0x2d   : > { %892 = vmatmul.bf16.vlgmr.msra.gmra.mxu2 %v740_v34  ;;  %852 = vmatmul.bf16.vlgmr.msra.gmra.mxu0 %v732_v55  ;;  %v347_v24 = vsel %vm6558_vm2, %v342_v16, %v346_v6  ;;  %v552_v27 = vrot.slane %v550_v12, 5  ;;  %v351_v38 = vrot.slane %v349_v25, 4  ;;  %v354_v39 = vrot.slane %v352_v29, 5 }
  0x2e   : > { %1214 = vmatpush.bf16.msrb.mxu2 %v6059_v36  ;;  %2325 = vmatpush.bf16.msrb.mxu0 %v6075_v42  ;;  %v703_v36 = vunpack.c.l.b16 %v347_v24  ;;  %v360_v40 = vrot.slane %v358_v30, 5  ;;  %v560_v43 = vshll.u32 %v5184_v33, 16  ;;  %v741_v45 = vpack.c.b16 %v719_v32, %v718_v31 }
  0x2f   : > { %1896 = vmatpush.bf16.msrb.mxu3 %v6067_v37  ;;  %941 = vmatmul.bf16.vlgmr.msra.gmra.mxu1 %v732_v55  ;;  %v547_v37 = vor.u32 %v546_v22, %v543_v21  ;;  %v557_v42 = vor.u32 %v556_v28, %v552_v27  ;;  %v355_v48 = vor.u32 %v354_v39, %v351_v38  ;;  %v565_v55 = vshrl.u32 %v5185_v51, 16  ;;  %v5188_v38 = vld [vmem:[%s6529_s29 + $0x9c] sm:$0xf] }
  0x30   : > { %981 = vmatmul.bf16.vlgmr.msra.gmra.mxu3 %v740_v34  ;;  %2639 = vmatpush.bf16.msrb.mxu1 %v6099_v50  ;;  %v362_v34 = vshrl.u32 %v5159_v17, 16  ;;  %v733_v46 = vpack.c.b16 %v703_v36, %v702_v35  ;;  %v368_v50 = vshll.u32 %v5160_v44, 16  ;;  %v562_v53 = vrot.slane %v560_v43, 5  ;;  %v5164_v43 = vld [vmem:[%s6529_s29 + $0x3c] sm:$0xf] }
  0x31   : > { %v548_v47 = vrot.slane %v547_v37, 4  ;;  %v558_v52 = vrot.slane %v557_v42, 4  ;;  %v356_v60 = vrot.slane %v355_v48, 4  ;;  %v568_v3 = vshll.u32 %v5185_v51, 16  ;;  %v5189_v42 = vld [vmem:[%s6529_s29 + $0xa0] sm:$0xf] }
  0x32   : > { %1215 = vmatpush.bf16.msrb.mxu2 %v6058_v58  ;;  %2326 = vmatpush.bf16.msrb.mxu0 %v6074_v63  ;;  %v364_v41 = vrot.slane %v362_v34, 4  ;;  %v6056_v58 = vld [vmem:[%s8379_s1 + $0x20] sm:$0xff]  ;;  %v370_v62 = vrot.slane %v368_v50, 5  ;;  %v574_v4 = vshll.u32 %v5186_v54, 16  ;;  %v578_v5 = vshrl.u32 %v5186_v54, 16  ;;  %v6095_v48 = vld [vmem:[%s8379_s1 + $0xd8] sm:$0xff] }
  0x33   : > { %1897 = vmatpush.bf16.msrb.mxu3 %v6066_v59  ;;  %v553_v59 = vsel %vm6558_vm2, %v548_v47, %v552_v27  ;;  %v6064_v63 = vld [vmem:[%s8379_s1 + $0x60] sm:$0xff]  ;;  %v563_v2 = vsel %vm6558_vm2, %v558_v52, %v562_v53  ;;  %v373_v6 = vshrl.u32 %v5161_v56, 16  ;;  %v382_v9 = vshll.u32 %v5162_v57, 16  ;;  %v6071_v47 = vld [vmem:[%s8379_s1 + $0x98] sm:$0xff] }
  0x34   : > { %2640 = vmatpush.bf16.msrb.mxu1 %v6098_v7  ;;  %v365_v49 = vor.u32 %v364_v41, %v360_v40  ;;  %v376_v7 = vshll.u32 %v5161_v56, 16  ;;  %v386_v10 = vshrl.u32 %v5162_v57, 16  ;;  %v720_v11 = vunpack.c.l.b16 %v553_v59  ;;  %v5165_v44 = vld [vmem:[%s6529_s29 + $0x40] sm:$0xf] }
  0x35   : > { %v361_v12 = vsel %vm6558_vm2, %v356_v60, %v360_v40  ;;  %v570_v16 = vrot.slane %v568_v3, 5  ;;  %v576_v17 = vrot.slane %v574_v4, 5  ;;  %v375_v20 = vrot.slane %v373_v6, 4  ;;  %v5190_v3 = vld [vmem:[%s6529_s29 + $0xa4] sm:$0x1] }
  0x36   : > { %1216 = vmatpush.bf16.msrb.mxu2 %v6057_v14  ;;  %2327 = vmatpush.bf16.msrb.mxu0 %v6073_v18  ;;  %v366_v61 = vrot.slane %v365_v49, 4  ;;  %v567_v14 = vrot.slane %v565_v55, 4  ;;  %v580_v18 = vrot.slane %v578_v5, 4  ;;  %v378_v21 = vrot.slane %v376_v7, 5 }
  0x37   : > { %1898 = vmatpush.bf16.msrb.mxu3 %v6065_v15  ;;  %v721_v15 = vunpack.c.l.b16 %v563_v2  ;;  %v384_v22 = vrot.slane %v382_v9, 5  ;;  %v388_v23 = vrot.slane %v386_v10, 4  ;;  %v704_v24 = vunpack.c.l.b16 %v361_v12 }
  0x38   : > { %2641 = vmatpush.bf16.msrb.mxu1 %v6097_v26  ;;  %v371_v13 = vsel %vm6558_vm2, %v366_v61, %v370_v62  ;;  %v5163_v26 = vld [vmem:[%s6529_s29 + $0x38] sm:$0x1]  ;;  %v571_v27 = vor.u32 %v570_v16, %v567_v14  ;;  %v581_v28 = vor.u32 %v580_v18, %v576_v17  ;;  %v584_v29 = vshll.u32 %v5187_v19, 16 }
  0x39   : > { %v705_v25 = vunpack.c.l.b16 %v371_v13  ;;  %v742_v30 = vpack.c.b16 %v721_v15, %v720_v11  ;;  %v379_v31 = vor.u32 %v378_v21, %v375_v20  ;;  %v389_v32 = vor.u32 %v388_v23, %v384_v22  ;;  %v5166_v11 = vld [vmem:[%s6529_s29 + $0x44] sm:$0x1]  ;;  %v5191_v20 = vld [vmem:[%s6529_s29 + $0xa8] sm:$0xf] }
  0x3a   : > { %1217 = vmatpush.bf16.msrb.mxu2 %v6056_v58  ;;  %2328 = vmatpush.bf16.msrb.mxu0 %v6072_v0  ;;  %v392_v33 = vshll.u32 %v5163_v26, 16  ;;  %v572_v35 = vrot.slane %v571_v27, 4  ;;  %v582_v36 = vrot.slane %v581_v28, 4  ;;  %v586_v37 = vrot.slane %v584_v29, 5  ;;  %v5168_v26 = vld [vmem:[%s6529_s29 + $0x4c] sm:$0xf] }
  0x3b   : > { %1899 = vmatpush.bf16.msrb.mxu3 %v6064_v63  ;;  %v734_v34 = vpack.c.b16 %v705_v25, %v704_v24  ;;  %v380_v39 = vrot.slane %v379_v31, 4  ;;  %v390_v40 = vrot.slane %v389_v32, 4  ;;  %v589_v51 = vshrl.u32 %v5188_v38, 16  ;;  %v5167_v25 = vld [vmem:[%s6529_s29 + $0x48] sm:$0xf]  ;;  %v6054_v31 = vld [vmem:[%s8379_s1 + $0x10] sm:$0xff] }
  0x3c   : > { %2642 = vmatpush.bf16.msrb.mxu1 %v6096_v1  ;;  %v394_v41 = vrot.slane %v392_v33, 5  ;;  %v577_v49 = vsel %vm6558_vm2, %v572_v35, %v576_v17  ;;  %v587_v50 = vsel %vm6558_vm2, %v582_v36, %v586_v37  ;;  %v592_v52 = vshll.u32 %v5188_v38, 16  ;;  %v6062_v35 = vld [vmem:[%s8379_s1 + $0x50] sm:$0xff] }
  0x3d   : > { %897 = vmatmul.bf16.gmra.mxu2 %v741_v45  ;;  %857 = vmatmul.bf16.gmra.mxu0 %v733_v46  ;;  %v385_v53 = vsel %vm6558_vm2, %v380_v39, %v384_v22  ;;  %v598_v55 = vshll.u32 %v5189_v42, 16  ;;  %v602_v56 = vshrl.u32 %v5189_v42, 16  ;;  %v397_v57 = vshrl.u32 %v5164_v43, 16  ;;  %v5192_v22 = vld [vmem:[%s6529_s29 + $0xac] sm:$0xf]  ;;  %v6070_v36 = vld [vmem:[%s8379_s1 + $0x90] sm:$0xff] }
  0x3e   : > { %v395_v54 = vsel %vm6558_vm2, %v390_v40, %v394_v41  ;;  %2329 = vmatpush.bf16.msrb.mxu0 %v6071_v47  ;;  %v400_v58 = vshll.u32 %v5164_v43, 16  ;;  %v406_v59 = vshll.u32 %v5165_v44, 16  ;;  %v410_v60 = vshrl.u32 %v5165_v44, 16  ;;  %v6094_v37 = vld [vmem:[%s8379_s1 + $0xd0] sm:$0xff] }
  0x3f   : > { %946 = vmatmul.bf16.gmra.mxu1 %v733_v46  ;;  %v6063_v46 = vld [vmem:[%s8379_s1 + $0x58] sm:$0xff]  ;;  %v722_v61 = vunpack.c.l.b16 %v577_v49  ;;  %v723_v62 = vunpack.c.l.b16 %v587_v50  ;;  %v591_v63 = vrot.slane %v589_v51, 4  ;;  %v594_v0 = vrot.slane %v592_v52, 5  ;;  %v5193_v50 = vld [vmem:[%s6529_s29 + $0xb0] sm:$0x1] }
  0x40   : > { %986 = vmatmul.bf16.gmra.mxu3 %v741_v45  ;;  %v6055_v45 = vld [vmem:[%s8379_s1 + $0x18] sm:$0xff]  ;;  %2643 = vmatpush.bf16.msrb.mxu1 %v6095_v48  ;;  %v706_v1 = vunpack.c.l.b16 %v385_v53  ;;  %v707_v2 = vunpack.c.l.b16 %v395_v54  ;;  %v600_v4 = vrot.slane %v598_v55, 5  ;;  %v604_v5 = vrot.slane %v602_v56, 4 }
  0x41   : > { %1218 = vmatpush.bf16.msrb.mxu2 %v6055_v45  ;;  %1900 = vmatpush.bf16.msrb.mxu3 %v6063_v46  ;;  %v399_v6 = vrot.slane %v397_v57, 4  ;;  %v402_v7 = vrot.slane %v400_v58, 5  ;;  %v408_v9 = vrot.slane %v406_v59, 5  ;;  %v412_v10 = vrot.slane %v410_v60, 4  ;;  %v5169_v57 = vld [vmem:[%s6529_s29 + $0x50] sm:$0x1] }
  0x42   : > { %v608_v12 = vshll.u32 %v5190_v3, 16  ;;  %v743_v13 = vpack.c.b16 %v723_v62, %v722_v61  ;;  %v595_v14 = vor.u32 %v594_v0, %v591_v63  ;;  %v605_v15 = vor.u32 %v604_v5, %v600_v4  ;;  %2330 = vmatpush.bf16.msrb.mxu0 %v6070_v36 }
  0x43   : > { %v735_v16 = vpack.c.b16 %v707_v2, %v706_v1  ;;  %v403_v17 = vor.u32 %v402_v7, %v399_v6  ;;  %v413_v18 = vor.u32 %v412_v10, %v408_v9  ;;  %v416_v19 = vshll.u32 %v5166_v11, 16  ;;  %v5194_v11 = vld [vmem:[%s6529_s29 + $0xb4] sm:$0xf] }
  0x44   : > { %v610_v21 = vrot.slane %v608_v12, 5  ;;  %v596_v23 = vrot.slane %v595_v14, 4  ;;  %v606_v24 = vrot.slane %v605_v15, 4  ;;  %v616_v32 = vshll.u32 %v5191_v20, 16  ;;  %2644 = vmatpush.bf16.msrb.mxu1 %v6094_v37  ;;  %v5195_v12 = vld [vmem:[%s6529_s29 + $0xb8] sm:$0xf] }
  0x45   : > { %v404_v27 = vrot.slane %v403_v17, 4  ;;  %v414_v28 = vrot.slane %v413_v18, 4  ;;  %v418_v29 = vrot.slane %v416_v19, 5  ;;  %v622_v33 = vshll.u32 %v5192_v22, 16  ;;  %1219 = vmatpush.bf16.msrb.mxu2 %v6054_v31  ;;  %1901 = vmatpush.bf16.msrb.mxu3 %v6062_v35  ;;  %v5171_v14 = vld [vmem:[%s6529_s29 + $0x58] sm:$0xf] }
  0x46   : > { %v421_v38 = vshrl.u32 %v5167_v25, 16  ;;  %v424_v39 = vshll.u32 %v5167_v25, 16  ;;  %v430_v40 = vshll.u32 %v5168_v26, 16  ;;  %v434_v41 = vshrl.u32 %v5168_v26, 16  ;;  %v6053_v15 = vld [vmem:[%s8379_s1 + $0x8] sm:$0xff] }
  0x47   : > { %v601_v42 = vsel %vm6558_vm2, %v596_v23, %v600_v4  ;;  %v611_v43 = vsel %vm6558_vm2, %v606_v24, %v610_v21  ;;  %v409_v44 = vsel %vm6558_vm2, %v404_v27, %v408_v9  ;;  %v419_v45 = vsel %vm6558_vm2, %v414_v28, %v418_v29  ;;  %v6069_v17 = vld [vmem:[%s8379_s1 + $0x88] sm:$0xff] }
  0x48   : > { %v618_v47 = vrot.slane %v616_v32, 5  ;;  %v624_v48 = vrot.slane %v622_v33, 5  ;;  %v423_v51 = vrot.slane %v421_v38, 4  ;;  %v426_v52 = vrot.slane %v424_v39, 5  ;;  %v6093_v18 = vld [vmem:[%s8379_s1 + $0xc8] sm:$0xff]  ;;  %2331 = vmatpush.bf16.msrb.mxu0 %v6069_v17 }
  0x49   : > { %v432_v53 = vrot.slane %v430_v40, 5  ;;  %v436_v54 = vrot.slane %v434_v41, 4  ;;  %v724_v55 = vunpack.c.l.b16 %v601_v42  ;;  %v725_v56 = vunpack.c.l.b16 %v611_v43  ;;  %1220 = vmatpush.bf16.msrb.mxu2 %v6053_v15  ;;  %2645 = vmatpush.bf16.msrb.mxu1 %v6093_v18  ;;  %v5196_v39 = vld [vmem:[%s6529_s29 + $0xbc] sm:$0x1] }
  0x4a   : > { %v708_v58 = vunpack.c.l.b16 %v409_v44  ;;  %v709_v59 = vunpack.c.l.b16 %v419_v45  ;;  %v632_v61 = vshll.u32 %v5193_v50, 16  ;;  %v427_v63 = vor.u32 %v426_v52, %v423_v51  ;;  %v5172_v44 = vld [vmem:[%s6529_s29 + $0x5c] sm:$0x1] }
  0x4b   : > { %v437_v0 = vor.u32 %v436_v54, %v432_v53  ;;  %v440_v1 = vshll.u32 %v5169_v57, 16  ;;  %v744_v2 = vpack.c.b16 %v725_v56, %v724_v55  ;;  %v637_v23 = vshrl.u32 %v5194_v11, 16  ;;  %v5198_v56 = vld [vmem:[%s6529_s29 + $0xc4] sm:$0xf] }
  0x4c   : > { %v736_v3 = vpack.c.b16 %v709_v59, %v708_v58  ;;  %v634_v5 = vrot.slane %v632_v61, 5  ;;  %v428_v7 = vrot.slane %v427_v63, 4  ;;  %v640_v24 = vshll.u32 %v5194_v11, 16  ;;  %v6052_v61 = vld [vmem:[%s8379_s1] sm:$0xff] }
  0x4d   : > { %902 = vmatmul.bf16.gmra.mxu2 %v742_v30  ;;  %862 = vmatmul.bf16.gmra.mxu0 %v734_v34  ;;  %v438_v9 = vrot.slane %v437_v0, 4  ;;  %v442_v10 = vrot.slane %v440_v1, 5  ;;  %v646_v25 = vshll.u32 %v5195_v12, 16  ;;  %v650_v26 = vshrl.u32 %v5195_v12, 16  ;;  %v6060_v0 = vld [vmem:[%s8379_s1 + $0x40] sm:$0xff] }
  0x4e   : > { %v433_v21 = vsel %vm6558_vm2, %v428_v7, %v432_v53  ;;  %v454_v29 = vshll.u32 %v5171_v14, 16  ;;  %v639_v35 = vrot.slane %v637_v23, 4  ;;  %v642_v36 = vrot.slane %v640_v24, 5  ;;  %v5197_v53 = vld [vmem:[%s6529_s29 + $0xc0] sm:$0xf]  ;;  %1221 = vmatpush.bf16.msrb.mxu2 %v6052_v61 }
  0x4f   : > { %951 = vmatmul.bf16.gmra.mxu1 %v734_v34  ;;  %v626_v34 = vshrl.u32 %v5192_v22, 16  ;;  %v443_v22 = vsel %vm6558_vm2, %v438_v9, %v442_v10  ;;  %v710_v33 = vunpack.c.l.b16 %v433_v21  ;;  %v648_v37 = vrot.slane %v646_v25, 5  ;;  %v6068_v1 = vld [vmem:[%s8379_s1 + $0x80] sm:$0xff] }
  0x50   : > { %991 = vmatmul.bf16.gmra.mxu3 %v742_v30  ;;  %v613_v30 = vshrl.u32 %v5191_v20, 16  ;;  %v652_v38 = vrot.slane %v650_v26, 4  ;;  %v456_v42 = vrot.slane %v454_v29, 5  ;;  %v464_v52 = vshll.u32 %v5172_v44, 16  ;;  %2332 = vmatpush.bf16.msrb.mxu0 %v6068_v1  ;;  %v1337_v1 = vld [vmem:[%s6529_s29 + $0x8] sm:$0x1] }
  0x51   : > { %v628_v49 = vrot.slane %v626_v34, 4  ;;  %v711_v34 = vunpack.c.l.b16 %v443_v22  ;;  %v664_v63 = vshll.u32 %v5197_v53, 16  ;;  %v5199_v22 = vld [vmem:[%s6529_s29 + $0xc8] sm:$0x1]  ;;  %vm5015_vm6 = vcmask 1040384  }
  0x52   : > { %v615_v46 = vrot.slane %v613_v30, 4  ;;  %v458_v30 = vshrl.u32 %v5171_v14, 16  ;;  %vm5017_vm7 = vcmask 1041408  }
  0x53   : > { %v629_v62 = vor.u32 %v628_v49, %v624_v48  ;;  %v653_v49 = vor.u32 %v652_v38, %v648_v37  ;;  %v666_v17 = vrot.slane %v664_v63, 5 }
  0x54   : > { %v619_v60 = vor.u32 %v618_v47, %v615_v46  ;;  %v460_v43 = vrot.slane %v458_v30, 4  ;;  %v737_v46 = vpack.c.b16 %v711_v34, %v710_v33  ;;  %v643_v47 = vor.u32 %v642_v36, %v639_v35 }
  0x55   : > { %v630_v6 = vrot.slane %v629_v62, 4  ;;  %v654_v57 = vrot.slane %v653_v49, 4  ;;  %v661_v62 = vshrl.u32 %v5197_v53, 16 }
  0x56   : > { %v620_v4 = vrot.slane %v619_v60, 4  ;;  %v461_v51 = vor.u32 %v460_v43, %v456_v42  ;;  %v644_v54 = vrot.slane %v643_v47, 4  ;;  %v466_v60 = vrot.slane %v464_v52, 5  ;;  %v6107_v43 = vld [vmem:[%s8379_s1 + $0x138] sm:$0xff] }
  0x57   : > { %v635_v20 = vsel %vm6558_vm2, %v630_v6, %v634_v5  ;;  %v5173_v5 = vld [vmem:[%s6529_s29 + $0x60] sm:$0xf]  ;;  %v5174_v6 = vld [vmem:[%s6529_s29 + $0x64] sm:$0xf]  ;;  %v6131_v47 = vld [vmem:[%s8379_s1 + $0x178] sm:$0xff]  ;;  %3065 = vmatpush.bf16.msra.mxu2 %v6107_v43 }
  0x58   : > { %v625_v19 = vsel %vm6558_vm2, %v620_v4, %v624_v48  ;;  %v727_v32 = vunpack.c.l.b16 %v635_v20  ;;  %v656_v48 = vshll.u32 %v5196_v39, 16  ;;  %v462_v59 = vrot.slane %v461_v51, 4 }
  0x59   : > { %v726_v31 = vunpack.c.l.b16 %v625_v19  ;;  %v674_v4 = vshrl.u32 %v5198_v56, 16  ;;  %v649_v7 = vsel %vm6558_vm2, %v644_v54, %v648_v37  ;;  %v469_v12 = vshrl.u32 %v5173_v5, 16 }
  0x5a   : > { %v658_v55 = vrot.slane %v656_v48, 5  ;;  %v467_v11 = vsel %vm6558_vm2, %v462_v59, %v466_v60  ;;  %v478_v14 = vshll.u32 %v5174_v6, 16  ;;  %v482_v15 = vshrl.u32 %v5174_v6, 16 }
  0x5b   : > { %v745_v45 = vpack.c.b16 %v727_v32, %v726_v31  ;;  %v676_v19 = vrot.slane %v674_v4, 4  ;;  %v728_v20 = vunpack.c.l.b16 %v649_v7  ;;  %v713_v24 = vunpack.c.l.b16 %v467_v11  ;;  %v5175_v32 = vld [vmem:[%s6529_s29 + $0x68] sm:$0x1] }
  0x5c   : > { %v659_v9 = vsel %vm6558_vm2, %v654_v57, %v658_v55  ;;  %v471_v25 = vrot.slane %v469_v12, 4  ;;  %v680_v31 = vshll.u32 %v5199_v22, 16  ;;  %v488_v37 = vshll.u32 %v5175_v32, 16 }
  0x5d   : > { %907 = vmatmul.bf16.gmra.mxu2 %v743_v13  ;;  %867 = vmatmul.bf16.gmra.mxu0 %v735_v16  ;;  %v729_v21 = vunpack.c.l.b16 %v659_v9  ;;  %v1403_v6 = vshll.u32 %v1337_v1, 16  ;;  %v2017_v9 = vld [vmem:[%s6529_s29] sm:$0xe] }
  0x5f   : > { %956 = vmatmul.bf16.gmra.mxu1 %v735_v16  ;;  %v6061_v16 = vld [vmem:[%s8379_s1 + $0x48] sm:$0xff]  ;;  %v746_v33 = vpack.c.b16 %v729_v21, %v728_v20 }
  0x60   : > { %996 = vmatmul.bf16.gmra.mxu3 %v743_v13  ;;  %v5170_v13 = vld [vmem:[%s6529_s29 + $0x54] sm:$0xf] }
  0x61   : > { %1902 = vmatpush.bf16.msrb.mxu3 %v6061_v16  ;;  %v445_v27 = vshrl.u32 %v5170_v13, 16  ;;  %v448_v28 = vshll.u32 %v5170_v13, 16  ;;  %v472_v13 = vshll.u32 %v5173_v5, 16  ;;  %v663_v16 = vrot.slane %v661_v62, 4 }
  0x63   : > { %v447_v40 = vrot.slane %v445_v27, 4  ;;  %v450_v41 = vrot.slane %v448_v28, 5  ;;  %v474_v26 = vrot.slane %v472_v13, 5  ;;  %v480_v27 = vrot.slane %v478_v14, 5 }
  0x64   : > { %v484_v28 = vrot.slane %v482_v15, 4  ;;  %v667_v29 = vor.u32 %v666_v17, %v663_v16  ;;  %v1405_v13 = vrot.slane %v1403_v6, 5  ;;  %v5408_v14 = vrot.slane %v2017_v9, 9 }
  0x65   : > { %v451_v50 = vor.u32 %v450_v41, %v447_v40  ;;  %1903 = vmatpush.bf16.msrb.mxu3 %v6060_v0  ;;  %v475_v35 = vor.u32 %v474_v26, %v471_v25  ;;  %v682_v40 = vrot.slane %v680_v31, 5  ;;  %v1335_v41 = vld [vmem:[%s6529_s29] sm:$0xf]  ;;  %v6139_v0 = vld [vmem:[%s8379_s1 + $0x1b8] sm:$0xff]  ;;  %v2089_v16 = vrot.slane %v1337_v1, 5 }
  0x66   : > { %v485_v36 = vor.u32 %v484_v28, %v480_v27  ;;  %v668_v38 = vrot.slane %v667_v29, 4  ;;  %v1387_v51 = vshll.u32 %v1335_v41, 16  ;;  %4062 = vmatpush.bf16.msra.mxu0 %v6139_v0 }
  0x67   : > { %v452_v58 = vrot.slane %v451_v50, 4  ;;  %v476_v44 = vrot.slane %v475_v35, 4  ;;  %v1384_v50 = vshrl.u32 %v1335_v41, 16 }
  0x68   : > { %v1389_v59 = vrot.slane %v1387_v51, 5 }
  0x69   : > { %v457_v10 = vsel %vm6558_vm2, %v452_v58, %v456_v42  ;;  %v1336_v42 = vld [vmem:[%s6529_s29 + $0x4] sm:$0xf]  ;;  %3380 = vmatpush.bf16.msra.mxu3 %v6131_v47  ;;  %v481_v54 = vsel %vm6558_vm2, %v476_v44, %v480_v27  ;;  %v1386_v58 = vrot.slane %v1384_v50, 4  ;;  %v2018_v47 = vld [vmem:[%s6529_s29 + $0xc] sm:$0xe]  ;;  %v6106_v50 = vld [vmem:[%s8379_s1 + $0x130] sm:$0xff] }
  0x6a   : > { %v712_v23 = vunpack.c.l.b16 %v457_v10  ;;  %v1393_v52 = vshll.u32 %v1336_v42, 16  ;;  %v1397_v53 = vshrl.u32 %v1336_v42, 16  ;;  %v714_v62 = vunpack.c.l.b16 %v481_v54  ;;  %v6147_v10 = vld [vmem:[%s8379_s1 + $0x1f8] sm:$0xff]  ;;  %v6130_v54 = vld [vmem:[%s8379_s1 + $0x170] sm:$0xff]  ;;  %3066 = vmatpush.bf16.msra.mxu2 %v6106_v50 }
  0x6b   : > { %v2086_v7 = vrot.slane %v1336_v42, 5 }
  0x6c   : > { %v738_v34 = vpack.c.b16 %v713_v24, %v712_v23  ;;  %v1395_v60 = vrot.slane %v1393_v52, 5  ;;  %v1399_v61 = vrot.slane %v1397_v53, 4 }
  0x6d   : > { %912 = vmatmul.bf16.gmra.mxu2 %v744_v2  ;;  %872 = vmatmul.bf16.gmra.mxu0 %v736_v3  ;;  %v2088_v15 = vrot.slane %v2086_v7, 4  ;;  %v2087_v22 = vsel %vm6784_vm5, %v5408_v14, %v2086_v7  ;;  %v6138_v14 = vld [vmem:[%s8379_s1 + $0x1b0] sm:$0xff] }
  0x6e   : > { %v1400_v4 = vor.u32 %v1399_v61, %v1395_v60  ;;  %3381 = vmatpush.bf16.msra.mxu3 %v6130_v54  ;;  %4063 = vmatpush.bf16.msra.mxu0 %v6138_v14 }
  0x6f   : > { %961 = vmatmul.bf16.gmra.mxu1 %v736_v3  ;;  %v670_v3 = vshll.u32 %v5198_v56, 16  ;;  %v2090_v23 = vsel %vm6784_vm5, %v2088_v15, %v2089_v16 }
  0x70   : > { %1001 = vmatmul.bf16.gmra.mxu3 %v744_v2  ;;  %v6092_v2 = vld [vmem:[%s8379_s1 + $0xc0] sm:$0xff]  ;;  %v1401_v12 = vrot.slane %v1400_v4, 4  ;;  %v2214_v31 = vunpack.c.l.b16 %v2090_v23 }
  0x71   : > { %2646 = vmatpush.bf16.msrb.mxu1 %v6092_v2  ;;  %v672_v18 = vrot.slane %v670_v3, 5  ;;  %v1390_v3 = vor.u32 %v1389_v59, %v1386_v58 }
  0x72   : > { %v1406_v21 = vsel %vm6558_vm2, %v1401_v12, %v1405_v13 }
  0x73   : > { %v677_v30 = vor.u32 %v676_v19, %v672_v18  ;;  %v673_v48 = vsel %vm6558_vm2, %v668_v38, %v672_v18  ;;  %v1391_v11 = vrot.slane %v1390_v3, 4  ;;  %v1338_v18 = vld [vmem:[%s6529_s29 + $0xc] sm:$0xf]  ;;  %v1339_v19 = vld [vmem:[%s6529_s29 + $0x10] sm:$0xf]  ;;  %v1785_v29 = vunpack.c.l.b16 %v1406_v21 }
  0x74   : > { %v730_v56 = vunpack.c.l.b16 %v673_v48  ;;  %v1408_v24 = vshrl.u32 %v1338_v18, 16  ;;  %v1411_v25 = vshll.u32 %v1338_v18, 16  ;;  %v1417_v26 = vshll.u32 %v1339_v19, 16  ;;  %v1341_v48 = vld [vmem:[%s6529_s29 + $0x18] sm:$0xf]  ;;  %v6037_v21 = vld [vmem:[%s6529_s29 + $0xc] sm:$0xff] }
  0x75   : > { %v678_v39 = vrot.slane %v677_v30, 4  ;;  %4488 = vmatpush.bf16.msra.mxu1 %v6147_v10  ;;  %v1396_v20 = vsel %vm6558_vm2, %v1391_v11, %v1395_v60  ;;  %v1421_v27 = vshrl.u32 %v1339_v19, 16  ;;  %v2213_v30 = vunpack.c.l.b16 %v2087_v22  ;;  %v1343_v18 = vld [vmem:[%s6529_s29 + $0x20] sm:$0x1] }
  0x76   : > { %v1784_v28 = vunpack.c.l.b16 %v1396_v20  ;;  %v1410_v32 = vrot.slane %v1408_v24, 4  ;;  %v1432_v60 = vshrl.u32 %v1341_v48, 16  ;;  %v1435_v61 = vshll.u32 %v1341_v48, 16 }
  0x77   : > { %v683_v49 = vsel %vm6558_vm2, %v678_v39, %v682_v40  ;;  %v1423_v35 = vrot.slane %v1421_v27, 4  ;;  %v6076_v39 = vld [vmem:[%s6529_s29 + $0xc] sm:$0xff]  ;;  %v2245_v41 = vpack.c.b16 %v2214_v31, %v2213_v30  ;;  %v1451_v27 = vshll.u32 %v1343_v18, 16  ;;  %v2019_v31 = vld [vmem:[%s6529_s29 + $0x18] sm:$0xe] }
  0x78   : > { %v731_v57 = vunpack.c.l.b16 %v683_v49  ;;  %v1816_v38 = vpack.c.b16 %v1785_v29, %v1784_v28  ;;  %v6808_v49 = vld [vmem:[%s6529_s29 + $0x1c] sm:$0xf]  ;;  %v1434_v7 = vrot.slane %v1432_v60, 4  ;;  %v1437_v9 = vrot.slane %v1435_v61, 5 }
  0x79   : > { %v2100_v28 = vrot.slane %v6808_v49, 5 }
  0x7a   : > { %v747_v2 = vpack.c.b16 %v731_v57, %v730_v56  ;;  %v5409_v56 = vrot.slane %v2018_v47, 9  ;;  %v1438_v22 = vor.u32 %v1437_v9, %v1434_v7  ;;  %v6038_v9 = vld [vmem:[%s6529_s29 + $0x18] sm:$0xff] }
  0x7d   : > { %917 = vmatmul.bf16.gmra.mxu2 %v745_v45  ;;  %877 = vmatmul.bf16.gmra.mxu0 %v737_v46 }
  0x7f   : > { %966 = vmatmul.bf16.gmra.mxu1 %v737_v46  ;;  %v490_v46 = vrot.slane %v488_v37, 5  ;;  %v6036_v37 = vld [vmem:[%s6529_s29] sm:$0xff] }
  0x80   : > { %1006 = vmatmul.bf16.gmra.mxu3 %v745_v45  ;;  %v486_v45 = vrot.slane %v485_v36, 4  ;;  %v1340_v36 = vld [vmem:[%s6529_s29 + $0x14] sm:$0x1] }
  0x81   : > { %v1427_v44 = vshll.u32 %v1340_v36, 16  ;;  %v2096_v58 = vrot.slane %v1340_v36, 5  ;;  %v1453_v36 = vrot.slane %v1451_v27, 5 }
  0x82   : > { %v491_v55 = vsel %vm6558_vm2, %v486_v45, %v490_v46  ;;  %v2093_v46 = vrot.slane %v1339_v19, 5 }
  0x83   : > { %v715_v63 = vunpack.c.l.b16 %v491_v55  ;;  %v1429_v53 = vrot.slane %v1427_v44, 5 }
  0x84   : > { %v2095_v57 = vrot.slane %v2093_v46, 4 }
  0x85   : > { %v739_v5 = vpack.c.b16 %v715_v63, %v714_v62  ;;  %v1441_v62 = vshll.u32 %v6808_v49, 16  ;;  %v1445_v63 = vshrl.u32 %v6808_v49, 16 }
  0x86   : > { %v2097_v6 = vsel %vm6784_vm5, %v2095_v57, %v2096_v58 }
  0x87   : > { %v1443_v10 = vrot.slane %v1441_v62, 5  ;;  %v1447_v11 = vrot.slane %v1445_v63, 4  ;;  %v2216_v16 = vunpack.c.l.b16 %v2097_v6  ;;  %v1346_v6 = vld [vmem:[%s6529_s29 + $0x2c] sm:$0x1] }
  0x89   : > { %v1448_v23 = vor.u32 %v1447_v11, %v1443_v10 }
  0x8d   : > { %922 = vmatmul.bf16.gmra.mxu2 %v746_v33  ;;  %882 = vmatmul.bf16.gmra.mxu0 %v738_v34 }
  0x8f   : > { %971 = vmatmul.bf16.gmra.mxu1 %v738_v34  ;;  %v1419_v34 = vrot.slane %v1417_v26, 5  ;;  %v6077_v26 = vld [vmem:[%s6529_s29 + $0x18] sm:$0xff] }
  0x90   : > { %1011 = vmatmul.bf16.gmra.mxu3 %v746_v33  ;;  %v1413_v33 = vrot.slane %v1411_v25, 5 }
  0x91   : > { %v1424_v43 = vor.u32 %v1423_v35, %v1419_v34  ;;  %v1449_v35 = vrot.slane %v1448_v23, 4  ;;  %v2020_v23 = vld [vmem:[%s6529_s29 + $0x24] sm:$0xe] }
  0x92   : > { %v1414_v42 = vor.u32 %v1413_v33, %v1410_v32  ;;  %v6146_v33 = vld [vmem:[%s8379_s1 + $0x1f0] sm:$0xff] }
  0x93   : > { %v1425_v52 = vrot.slane %v1424_v43, 4  ;;  %4489 = vmatpush.bf16.msra.mxu1 %v6146_v33  ;;  %v6871_v43 = vld [vmem:[%s6529_s29 + $0x28] sm:$0xf]  ;;  %v1454_v47 = vsel %vm6558_vm2, %v1449_v35, %v1453_v36  ;;  %v2110_v36 = vrot.slane %v1346_v6, 5 }
  0x94   : > { %v1415_v51 = vrot.slane %v1414_v42, 4  ;;  %v1344_v42 = vld [vmem:[%s6529_s29 + $0x24] sm:$0xf]  ;;  %v1469_v54 = vshrl.u32 %v6871_v43, 16  ;;  %v1789_v60 = vunpack.c.l.b16 %v1454_v47 }
  0x96   : > { %v1420_v1 = vsel %vm6558_vm2, %v1415_v51, %v1419_v34  ;;  %v1439_v34 = vrot.slane %v1438_v22, 4  ;;  %v1456_v51 = vshrl.u32 %v1344_v42, 16  ;;  %v2107_v22 = vrot.slane %v6871_v43, 5 }
  0x97   : > { %v1786_v12 = vunpack.c.l.b16 %v1420_v1 }
  0x98   : > { %v1458_v63 = vrot.slane %v1456_v51, 4  ;;  %v2109_v35 = vrot.slane %v2107_v22, 4 }
  0x9d   : > { %927 = vmatmul.bf16.gmra.mxu2 %v747_v2  ;;  %887 = vmatmul.bf16.gmra.mxu0 %v739_v5 }
  0x9f   : > { %976 = vmatmul.bf16.gmra.mxu1 %v739_v5  ;;  %v2094_v5 = vsel %vm6784_vm5, %v5409_v56, %v2093_v46  ;;  %v1444_v46 = vsel %vm6558_vm2, %v1439_v34, %v1443_v10  ;;  %v5411_v34 = vrot.slane %v2020_v23, 9 }
  0xa0   : > { %1016 = vmatmul.bf16.gmra.mxu3 %v747_v2  ;;  %v1430_v2 = vsel %vm6558_vm2, %v1425_v52, %v1429_v53  ;;  %v2215_v15 = vunpack.c.l.b16 %v2094_v5  ;;  %v1459_v52 = vshll.u32 %v1344_v42, 16  ;;  %v1465_v53 = vshll.u32 %v6871_v43, 16 }
  0xa1   : > { %v1787_v13 = vunpack.c.l.b16 %v1430_v2  ;;  %v1788_v58 = vunpack.c.l.b16 %v1444_v46 }
  0xa2   : > { %v2246_v30 = vpack.c.b16 %v2216_v16, %v2215_v15  ;;  %v1461_v1 = vrot.slane %v1459_v52, 5  ;;  %v1467_v2 = vrot.slane %v1465_v53, 5  ;;  %v2108_v52 = vsel %vm6784_vm5, %v5411_v34, %v2107_v22 }
  0xa3   : > { %v1817_v25 = vpack.c.b16 %v1787_v13, %v1786_v12  ;;  %v1818_v11 = vpack.c.b16 %v1789_v60, %v1788_v58  ;;  %v6078_v12 = vld [vmem:[%s6529_s29 + $0x24] sm:$0xff]  ;;  %v2111_v53 = vsel %vm6784_vm5, %v2109_v35, %v2110_v36 }
  0xa4   : > { %v1462_v15 = vor.u32 %v1461_v1, %v1458_v63  ;;  %v6137_v63 = vld [vmem:[%s8379_s1 + $0x1a8] sm:$0xff]  ;;  %v2219_v1 = vunpack.c.l.b16 %v2108_v52 }
  0xa5   : > { %4064 = vmatpush.bf16.msra.mxu0 %v6137_v63 }
  0xa6   : > { %v1463_v27 = vrot.slane %v1462_v15, 4 }
  0xa8   : > { %v1468_v47 = vsel %vm6558_vm2, %v1463_v27, %v1467_v2 }
  0xaa   : > { %v6803_v45 = vpop.f32.mrf.mxu0 }
  0xac   : > { %v6801_v40 = vpop.f32.mrf.mxu1 }
  0xad   : > { %1222 = vmatmul.bf16.vlgmr.msrb.gmra.mxu2 %v6036_v37  ;;  %2333 = vmatmul.bf16.vlgmr.msrb.gmra.mxu0 %v2245_v41  ;;  %v5410_v37 = vrot.slane %v2019_v31, 9  ;;  %v6129_v31 = vld [vmem:[%s8379_s1 + $0x168] sm:$0xff] }
  0xae   : > { %3382 = vmatpush.bf16.msra.mxu3 %v6129_v31 }
  0xaf   : > { %2647 = vmatmul.bf16.vlgmr.msrb.gmra.mxu1 %v6076_v39  ;;  %v2103_v39 = vrot.slane %v1343_v18, 5  ;;  %v2101_v48 = vsel %vm6784_vm5, %v5410_v37, %v2100_v28  ;;  %v1475_v18 = vshll.u32 %v1346_v6, 16 }
  0xb0   : > { %1904 = vmatmul.bf16.vlgmr.msrb.gmra.mxu3 %v1816_v38  ;;  %v6816_v55 = vpop.f32.mrf.mxu2  ;;  %v2102_v38 = vrot.slane %v2100_v28, 4  ;;  %v2217_v61 = vunpack.c.l.b16 %v2101_v48 }
  0xb1   : > { %8400 = vst [vmem:[#allocation2_spill] sm:$0xff] %v6816_v55 }
  0xb2   : > { %v6838_v4 = vpop.f32.mrf.mxu0  ;;  %v2104_v49 = vsel %vm6784_vm5, %v2102_v38, %v2103_v39 }
  0xb3   : > { %v6819_v59 = vpop.f32.mrf.mxu3  ;;  %v2218_v62 = vunpack.c.l.b16 %v2104_v49 }
  0xb4   : > { %8401 = vst [vmem:[#allocation3_spill] sm:$0xff] %v6819_v59  ;;  %v6830_v0 = vpop.f32.mrf.mxu1 }
  0xb5   : > { %v6231_v3 = vpack.c.bf16 %v6830_v0, %v6801_v40  ;;  %v2247_v14 = vpack.c.b16 %v2218_v62, %v2217_v61  ;;  %v1790_v61 = vunpack.c.l.b16 %v1468_v47 }
  0xb7   : > { %6232 = vst [vmem:[%s6828_s8] sm:$0xff] %v6231_v3   ;;  %v1471_v3 = vrot.slane %v1469_v54, 4 }
  0xb8   : > { %v6849_v19 = vpop.f32.mrf.mxu2 }
  0xb9   : > { %8402 = vst [vmem:[#allocation4_spill] sm:$0xff] %v6849_v19  ;;  %v1472_v16 = vor.u32 %v1471_v3, %v1467_v2  ;;  %v2220_v2 = vunpack.c.l.b16 %v2111_v53  ;;  %v1349_v3 = vld [vmem:[%s6529_s29 + $0x38] sm:$0x1]  ;;  %v7104_v19 = vld [vmem:[%s6529_s29 + $0x64] sm:$0xf] }
  0xba   : > { %v6862_v32 = vpop.f32.mrf.mxu0  ;;  %v2117_v36 = vrot.slane %v1349_v3, 5 }
  0xbb   : > { %v6851_v20 = vpop.f32.mrf.mxu3  ;;  %v1473_v28 = vrot.slane %v1472_v16, 4  ;;  %v6079_v16 = vld [vmem:[%s6529_s29 + $0x30] sm:$0xff] }
  0xbc   : > { %8403 = vst [vmem:[#allocation5_spill] sm:$0xff] %v6851_v20  ;;  %v6271_v24 = vpack.c.bf16 %v6851_v20, %v6819_v59  ;;  %v6858_v29 = vpop.f32.mrf.mxu1 }
  0xbd   : > { %1227 = vmatmul.bf16.gmra.mxu2 %v6037_v21  ;;  %2338 = vmatmul.bf16.gmra.mxu0 %v2246_v30  ;;  %v1477_v30 = vrot.slane %v1475_v18, 5  ;;  %v1499_v18 = vshll.u32 %v1349_v3, 16 }
  0xbe   : > { %6330 = vst [vmem:[%s6828_s8 + $0x40] sm:$0xff] %v6271_v24   ;;  %v1347_v24 = vld [vmem:[%s6529_s29 + $0x30] sm:$0xf] }
  0xbf   : > { %2652 = vmatmul.bf16.gmra.mxu1 %v6077_v26  ;;  %v6105_v26 = vld [vmem:[%s8379_s1 + $0x128] sm:$0xff]  ;;  %v1480_v38 = vshrl.u32 %v1347_v24, 16  ;;  %v1483_v39 = vshll.u32 %v1347_v24, 16  ;;  %v1478_v48 = vsel %vm6558_vm2, %v1473_v28, %v1477_v30  ;;  %v2248_v24 = vpack.c.b16 %v2220_v2, %v2219_v1 }
  0xc0   : > { %1909 = vmatmul.bf16.gmra.mxu3 %v1817_v25  ;;  %v6867_v41 = vpop.f32.mrf.mxu2  ;;  %v6910_v25 = vld [vmem:[%s6529_s29 + $0x34] sm:$0xf]  ;;  %3067 = vmatpush.bf16.msra.mxu2 %v6105_v26  ;;  %v1791_v62 = vunpack.c.l.b16 %v1478_v48  ;;  %v2021_v26 = vld [vmem:[%s6529_s29 + $0x30] sm:$0xe]  ;;  %v6145_v28 = vld [vmem:[%s8379_s1 + $0x1e8] sm:$0xff]  ;;  %v1501_v34 = vrot.slane %v1499_v18, 5 }
  0xc1   : > { %8404 = vst [vmem:[#allocation6_spill] sm:$0xff] %v6867_v41  ;;  %v1489_v42 = vshll.u32 %v6910_v25, 16  ;;  %v1493_v43 = vshrl.u32 %v6910_v25, 16  ;;  %v1482_v54 = vrot.slane %v1480_v38, 4  ;;  %v2114_v22 = vrot.slane %v6910_v25, 5  ;;  %4490 = vmatpush.bf16.msra.mxu1 %v6145_v28  ;;  %v6080_v28 = vld [vmem:[%s6529_s29 + $0x3c] sm:$0xff] }
  0xc2   : > { %v6889_v57 = vpop.f32.mrf.mxu0  ;;  %v1819_v15 = vpack.c.b16 %v1791_v62, %v1790_v61  ;;  %v5412_v25 = vrot.slane %v2021_v26, 9  ;;  %v2024_v41 = vld [vmem:[%s6529_s29 + $0x54] sm:$0xe] }
  0xc3   : > { %v6873_v44 = vpop.f32.mrf.mxu3  ;;  %v1491_v58 = vrot.slane %v1489_v42, 5  ;;  %v1495_v60 = vrot.slane %v1493_v43, 4  ;;  %v2116_v35 = vrot.slane %v2114_v22, 4  ;;  %v6965_v42 = vld [vmem:[%s6529_s29 + $0x40] sm:$0xf] }
  0xc4   : > { %8405 = vst [vmem:[#allocation7_spill] sm:$0xff] %v6873_v44  ;;  %v6883_v50 = vpop.f32.mrf.mxu1  ;;  %v1517_v61 = vshrl.u32 %v6965_v42, 16 }
  0xc5   : > { %v6236_v56 = vpack.c.bf16 %v6883_v50, %v6858_v29  ;;  %v2118_v52 = vsel %vm6784_vm5, %v2116_v35, %v2117_v36 }
  0xc6   : > { %v2222_v3 = vunpack.c.l.b16 %v2118_v52  ;;  %v6104_v52 = vld [vmem:[%s8379_s1 + $0x120] sm:$0xff] }
  0xc7   : > { %6323 = vst [vmem:[%s6828_s8 + $0x8] sm:$0xff] %v6236_v56   ;;  %v1485_v56 = vrot.slane %v1483_v39, 5  ;;  %v1350_v39 = vld [vmem:[%s6529_s29 + $0x3c] sm:$0xf]  ;;  %3068 = vmatpush.bf16.msra.mxu2 %v6104_v52 }
  0xc8   : > { %v6892_v5 = vpop.f32.mrf.mxu2 }
  0xc9   : > { %8406 = vst [vmem:[#allocation8_spill] sm:$0xff] %v6892_v5  ;;  %v6042_v5 = vld [vmem:[%s6529_s29 + $0x48] sm:$0xff] }
  0xca   : > { %v6904_v21 = vpop.f32.mrf.mxu0 }
  0xcb   : > { %v6895_v7 = vpop.f32.mrf.mxu3 }
  0xcc   : > { %8407 = vst [vmem:[#allocation9_spill] sm:$0xff] %v6895_v7  ;;  %v6276_v10 = vpack.c.bf16 %v6895_v7, %v6873_v44  ;;  %v6901_v13 = vpop.f32.mrf.mxu1 }
  0xcd   : > { %1232 = vmatmul.bf16.gmra.mxu2 %v6038_v9  ;;  %2343 = vmatmul.bf16.gmra.mxu0 %v2247_v14 }
  0xce   : > { %6331 = vst [vmem:[%s6828_s8 + $0x48] sm:$0xff] %v6276_v10   ;;  %v6039_v10 = vld [vmem:[%s6529_s29 + $0x24] sm:$0xff] }
  0xcf   : > { %2657 = vmatmul.bf16.gmra.mxu1 %v6078_v12  ;;  %v1496_v12 = vor.u32 %v1495_v60, %v1491_v58  ;;  %v1513_v60 = vshll.u32 %v6965_v42, 16 }
  0xd0   : > { %1914 = vmatmul.bf16.gmra.mxu3 %v1818_v11  ;;  %v6918_v33 = vpop.f32.mrf.mxu2  ;;  %v1486_v11 = vor.u32 %v1485_v56, %v1482_v54  ;;  %v1504_v54 = vshrl.u32 %v1350_v39, 16  ;;  %v1507_v56 = vshll.u32 %v1350_v39, 16  ;;  %v2121_v39 = vrot.slane %v6965_v42, 5 }
  0xd1   : > { %8408 = vst [vmem:[#allocation10_spill] sm:$0xff] %v6918_v33  ;;  %v1497_v31 = vrot.slane %v1496_v12, 4  ;;  %v1515_v12 = vrot.slane %v1513_v60, 5 }
  0xd2   : > { %v6932_v51 = vpop.f32.mrf.mxu0  ;;  %v1487_v30 = vrot.slane %v1486_v11, 4  ;;  %v1509_v11 = vrot.slane %v1507_v56, 5 }
  0xd3   : > { %v6920_v37 = vpop.f32.mrf.mxu3  ;;  %v1502_v48 = vsel %vm6558_vm2, %v1497_v31, %v1501_v34 }
  0xd4   : > { %v6924_v46 = vpop.f32.mrf.mxu1  ;;  %v1492_v47 = vsel %vm6558_vm2, %v1487_v30, %v1491_v58  ;;  %v1793_v1 = vunpack.c.l.b16 %v1502_v48  ;;  %v1353_v48 = vld [vmem:[%s6529_s29 + $0x48] sm:$0xf] }
  0xd5   : > { %v6241_v49 = vpack.c.bf16 %v6924_v46, %v6901_v13  ;;  %v1792_v63 = vunpack.c.l.b16 %v1492_v47  ;;  %v2022_v47 = vld [vmem:[%s6529_s29 + $0x3c] sm:$0xe] }
  0xd7   : > { %6324 = vst [vmem:[%s6828_s8 + $0x10] sm:$0xff] %v6241_v49   ;;  %v2115_v49 = vsel %vm6784_vm5, %v5412_v25, %v2114_v22  ;;  %v6040_v22 = vld [vmem:[%s6529_s29 + $0x30] sm:$0xff]  ;;  %v1820_v26 = vpack.c.b16 %v1793_v1, %v1792_v63  ;;  %v2123_v63 = vrot.slane %v2121_v39, 4 }
  0xd8   : > { %v6943_v6 = vpop.f32.mrf.mxu2  ;;  %v2221_v2 = vunpack.c.l.b16 %v2115_v49  ;;  %v7004_v49 = vld [vmem:[%s6529_s29 + $0x4c] sm:$0xf] }
  0xd9   : > { %8409 = vst [vmem:[#allocation11_spill] sm:$0xff] %v6943_v6  ;;  %v1358_v6 = vld [vmem:[%s6529_s29 + $0x5c] sm:$0x1] }
  0xda   : > { %v6956_v27 = vpop.f32.mrf.mxu0  ;;  %v2249_v31 = vpack.c.b16 %v2222_v3, %v2221_v2  ;;  %v1528_v3 = vshrl.u32 %v1353_v48, 16 }
  0xdb   : > { %v6945_v9 = vpop.f32.mrf.mxu3 }
  0xdc   : > { %v6281_v14 = vpack.c.bf16 %v6945_v9, %v6920_v37  ;;  %v6952_v23 = vpop.f32.mrf.mxu1 }
  0xdd   : > { %1237 = vmatmul.bf16.gmra.mxu2 %v6039_v10  ;;  %2348 = vmatmul.bf16.gmra.mxu0 %v2248_v24  ;;  %v1506_v10 = vrot.slane %v1504_v54, 4 }
  0xde   : > { %6332 = vst [vmem:[%s6828_s8 + $0x50] sm:$0xff] %v6281_v14   ;;  %v1519_v14 = vrot.slane %v1517_v61, 4  ;;  %v6128_v61 = vld [vmem:[%s8379_s1 + $0x160] sm:$0xff] }
  0xdf   : > { %2662 = vmatmul.bf16.gmra.mxu1 %v6079_v16  ;;  %v1352_v16 = vld [vmem:[%s6529_s29 + $0x44] sm:$0x1]  ;;  %v1510_v34 = vor.u32 %v1509_v11, %v1506_v10  ;;  %v1531_v10 = vshll.u32 %v1353_v48, 16  ;;  %v1537_v11 = vshll.u32 %v7004_v49, 16  ;;  %3383 = vmatpush.bf16.msra.mxu3 %v6128_v61 }
  0xe0   : > { %1919 = vmatmul.bf16.gmra.mxu3 %v1819_v15  ;;  %v6961_v38 = vpop.f32.mrf.mxu2  ;;  %v1520_v25 = vor.u32 %v1519_v14, %v1515_v12  ;;  %v1523_v35 = vshll.u32 %v1352_v16, 16  ;;  %v2124_v1 = vrot.slane %v1352_v16, 5  ;;  %v1541_v14 = vshrl.u32 %v7004_v49, 16 }
  0xe1   : > { %8410 = vst [vmem:[#allocation12_spill] sm:$0xff] %v6961_v38  ;;  %v1511_v54 = vrot.slane %v1510_v34, 4 }
  0xe2   : > { %v6983_v62 = vpop.f32.mrf.mxu0  ;;  %v1521_v56 = vrot.slane %v1520_v25, 4  ;;  %v1525_v60 = vrot.slane %v1523_v35, 5  ;;  %v2125_v34 = vsel %vm6784_vm5, %v2123_v63, %v2124_v1  ;;  %v1530_v25 = vrot.slane %v1528_v3, 4  ;;  %v6041_v63 = vld [vmem:[%s6529_s29 + $0x3c] sm:$0xff] }
  0xe3   : > { %v6967_v43 = vpop.f32.mrf.mxu3  ;;  %v1533_v35 = vrot.slane %v1531_v10, 5 }
  0xe4   : > { %8411 = vst [vmem:[#allocation13_spill] sm:$0xff] %v6967_v43  ;;  %v6977_v53 = vpop.f32.mrf.mxu1  ;;  %v1526_v16 = vsel %vm6558_vm2, %v1521_v56, %v1525_v60  ;;  %v2224_v60 = vunpack.c.l.b16 %v2125_v34  ;;  %v2023_v34 = vld [vmem:[%s6529_s29 + $0x48] sm:$0xe] }
  0xe5   : > { %v6246_v58 = vpack.c.bf16 %v6977_v53, %v6952_v23  ;;  %v1795_v52 = vunpack.c.l.b16 %v1526_v16  ;;  %v1534_v1 = vor.u32 %v1533_v35, %v1530_v25  ;;  %v2128_v16 = vrot.slane %v7004_v49, 5  ;;  %v6144_v25 = vld [vmem:[%s8379_s1 + $0x1e0] sm:$0xff] }
  0xe6   : > { %v5414_v49 = vrot.slane %v2023_v34, 9  ;;  %4491 = vmatpush.bf16.msra.mxu1 %v6144_v25 }
  0xe7   : > { %6325 = vst [vmem:[%s6828_s8 + $0x18] sm:$0xff] %v6246_v58   ;;  %v5413_v58 = vrot.slane %v2022_v47, 9  ;;  %v1539_v47 = vrot.slane %v1537_v11, 5  ;;  %v1535_v35 = vrot.slane %v1534_v1, 4 }
  0xe8   : > { %v6986_v15 = vpop.f32.mrf.mxu2 }
  0xe9   : > { %8412 = vst [vmem:[#allocation14_spill] sm:$0xff] %v6986_v15 }
  0xea   : > { %v6998_v36 = vpop.f32.mrf.mxu0 }
  0xeb   : > { %v6989_v18 = vpop.f32.mrf.mxu3  ;;  %8414 = vst [vmem:[#allocation16_spill] sm:$0xff] %v6998_v36 }
  0xec   : > { %8413 = vst [vmem:[#allocation15_spill] sm:$0xff] %v6989_v18  ;;  %v6286_v24 = vpack.c.bf16 %v6989_v18, %v6967_v43  ;;  %v6995_v30 = vpop.f32.mrf.mxu1 }
  0xed   : > { %1242 = vmatmul.bf16.gmra.mxu2 %v6040_v22  ;;  %2353 = vmatmul.bf16.gmra.mxu0 %v2249_v31  ;;  %v2122_v31 = vsel %vm6784_vm5, %v5413_v58, %v2121_v39  ;;  %v1355_v39 = vld [vmem:[%s6529_s29 + $0x50] sm:$0x1] }
  0xee   : > { %6333 = vst [vmem:[%s6828_s8 + $0x58] sm:$0xff] %v6286_v24   ;;  %v1516_v24 = vsel %vm6558_vm2, %v1511_v54, %v1515_v12  ;;  %v1543_v12 = vrot.slane %v1541_v14, 4  ;;  %v6136_v54 = vld [vmem:[%s8379_s1 + $0x1a0] sm:$0xff]  ;;  %v2223_v56 = vunpack.c.l.b16 %v2122_v31  ;;  %v6081_v14 = vld [vmem:[%s6529_s29 + $0x48] sm:$0xff] }
  0xef   : > { %2667 = vmatmul.bf16.gmra.mxu1 %v6080_v28  ;;  %v1794_v48 = vunpack.c.l.b16 %v1516_v24  ;;  %4065 = vmatpush.bf16.msra.mxu0 %v6136_v54  ;;  %v1547_v24 = vshll.u32 %v1355_v39, 16 }
  0xf0   : > { %1924 = vmatmul.bf16.gmra.mxu3 %v1820_v26  ;;  %v7012_v42 = vpop.f32.mrf.mxu2  ;;  %v1544_v3 = vor.u32 %v1543_v12, %v1539_v47  ;;  %v2250_v31 = vpack.c.b16 %v2224_v60, %v2223_v56  ;;  %v1356_v60 = vld [vmem:[%s6529_s29 + $0x54] sm:$0xf] }
  0xf1   : > { %8415 = vst [vmem:[#allocation17_spill] sm:$0xff] %v7012_v42  ;;  %v1821_v11 = vpack.c.b16 %v1795_v52, %v1794_v48  ;;  %v1549_v48 = vrot.slane %v1547_v24, 5  ;;  %v2130_v52 = vrot.slane %v2128_v16, 4  ;;  %v1555_v24 = vshll.u32 %v1356_v60, 16 }
  0xf2   : > { %v7026_v28 = vpop.f32.mrf.mxu0  ;;  %v1545_v12 = vrot.slane %v1544_v3, 4  ;;  %v2129_v3 = vsel %vm6784_vm5, %v5414_v49, %v2128_v16  ;;  %v4876_v16 = vadd.f32 %v6830_v0, %v6801_v40 }
  0xf3   : > { %v7014_v2 = vpop.f32.mrf.mxu3  ;;  %8416 = vst [vmem:[#allocation18_spill] sm:$0xff] %v7026_v28  ;;  %v7155_v28 = vld [vmem:[%s6529_s29 + $0x70] sm:$0xf] }
  0xf4   : > { %v7018_v22 = vpop.f32.mrf.mxu1  ;;  %v1550_v1 = vsel %vm6558_vm2, %v1545_v12, %v1549_v48  ;;  %v2225_v12 = vunpack.c.l.b16 %v2129_v3  ;;  %v4877_v15 = vadd.f32 %v4876_v16, %v6858_v29 }
  0xf5   : > { %v6251_v26 = vpack.c.bf16 %v7018_v22, %v6995_v30 }
  0xf7   : > { %6326 = vst [vmem:[%s6828_s8 + $0x20] sm:$0xff] %v6251_v26  }
  0xf8   : > { %v7037_v61 = vpop.f32.mrf.mxu2 }
  0xf9   : > { %8417 = vst [vmem:[#allocation19_spill] sm:$0xff] %v7037_v61  ;;  %v2131_v61 = vrot.slane %v1355_v39, 5 }
  0xfa   : > { %v7050_v54 = vpop.f32.mrf.mxu0 }
  0xfb   : > { %v7039_v58 = vpop.f32.mrf.mxu3  ;;  %8418 = vst [vmem:[#allocation20_spill] sm:$0xff] %v7050_v54  ;;  %v2132_v39 = vsel %vm6784_vm5, %v2130_v52, %v2131_v61  ;;  %v1557_v52 = vrot.slane %v1555_v24, 5 }
  0xfc   : > { %v6291_v10 = vpack.c.bf16 %v7039_v58, %v7014_v2  ;;  %v7046_v26 = vpop.f32.mrf.mxu1  ;;  %v2226_v48 = vunpack.c.l.b16 %v2132_v39  ;;  %v6082_v39 = vld [vmem:[%s6529_s29 + $0x54] sm:$0xff] }
  0xfd   : > { %1247 = vmatmul.bf16.gmra.mxu2 %v6041_v63  ;;  %2358 = vmatmul.bf16.gmra.mxu0 %v2250_v31  ;;  %v1540_v63 = vsel %vm6558_vm2, %v1535_v35, %v1539_v47  ;;  %v1797_v35 = vunpack.c.l.b16 %v1550_v1 }
  0xfe   : > { %6334 = vst [vmem:[%s6828_s8 + $0x60] sm:$0xff] %v6291_v10   ;;  %v7059_v10 = vld [vmem:[%s6529_s29 + $0x58] sm:$0xf]  ;;  %v1796_v61 = vunpack.c.l.b16 %v1540_v63  ;;  %v4878_v63 = vadd.f32 %v4877_v15, %v6883_v50  ;;  %v2251_v24 = vpack.c.b16 %v2226_v48, %v2225_v12 }
  0xff   : > { %2672 = vmatmul.bf16.gmra.mxu1 %v6081_v14  ;;  %v1552_v14 = vshrl.u32 %v1356_v60, 16  ;;  %v1561_v31 = vshll.u32 %v7059_v10, 16  ;;  %v1565_v34 = vshrl.u32 %v7059_v10, 16  ;;  %v2135_v15 = vrot.slane %v7059_v10, 5 }
 0x100   : > { %1929 = vmatmul.bf16.gmra.mxu3 %v1821_v11  ;;  %v7055_v56 = vpop.f32.mrf.mxu2  ;;  %v1822_v3 = vpack.c.b16 %v1797_v35, %v1796_v61  ;;  %v4879_v16 = vadd.f32 %v4878_v63, %v6901_v13  ;;  %v1359_v35 = vld [vmem:[%s6529_s29 + $0x60] sm:$0xf]  ;;  %v5415_v63 = vrot.slane %v2024_v41, 9  ;;  %v2138_v10 = vrot.slane %v1358_v6, 5 }
 0x101   : > { %8419 = vst [vmem:[#allocation21_spill] sm:$0xff] %v7055_v56  ;;  %v1554_v49 = vrot.slane %v1552_v14, 4  ;;  %v1563_v60 = vrot.slane %v1561_v31, 5  ;;  %v1567_v56 = vrot.slane %v1565_v34, 4  ;;  %v1576_v55 = vshrl.u32 %v1359_v35, 16 }
 0x102   : > { %v7077_v25 = vpop.f32.mrf.mxu0  ;;  %v4880_v61 = vadd.f32 %v4879_v16, %v6924_v46  ;;  %v1579_v16 = vshll.u32 %v1359_v35, 16  ;;  %v2136_v35 = vsel %vm6784_vm5, %v5415_v63, %v2135_v15 }
 0x103   : > { %v7061_v42 = vpop.f32.mrf.mxu3  ;;  %8420 = vst [vmem:[#allocation22_spill] sm:$0xff] %v7077_v25  ;;  %v1558_v31 = vor.u32 %v1557_v52, %v1554_v49  ;;  %v1568_v34 = vor.u32 %v1567_v56, %v1563_v60  ;;  %v2227_v25 = vunpack.c.l.b16 %v2136_v35 }
 0x104   : > { %v7071_v11 = vpop.f32.mrf.mxu1  ;;  %v4881_v49 = vadd.f32 %v4880_v61, %v6952_v23 }
 0x105   : > { %v6256_v47 = vpack.c.bf16 %v7071_v11, %v7046_v26  ;;  %v1559_v12 = vrot.slane %v1558_v31, 4  ;;  %v1569_v56 = vrot.slane %v1568_v34, 4 }
 0x107   : > { %6327 = vst [vmem:[%s6828_s8 + $0x28] sm:$0xff] %v6256_v47   ;;  %v1571_v47 = vshll.u32 %v1358_v6, 16  ;;  %v1564_v34 = vsel %vm6558_vm2, %v1559_v12, %v1563_v60  ;;  %v1581_v60 = vrot.slane %v1579_v16, 5 }
 0x108   : > { %v7083_v38 = vpop.f32.mrf.mxu2 }
 0x109   : > { %8421 = vst [vmem:[#allocation23_spill] sm:$0xff] %v7083_v38  ;;  %v1573_v48 = vrot.slane %v1571_v47, 5 }
 0x10a   : > { %v7097_v38 = vpop.f32.mrf.mxu0 }
 0x10b   : > { %v7086_v33 = vpop.f32.mrf.mxu3  ;;  %8422 = vst [vmem:[#allocation24_spill] sm:$0xff] %v7097_v38  ;;  %v1574_v41 = vsel %vm6558_vm2, %v1569_v56, %v1573_v48  ;;  %v1798_v56 = vunpack.c.l.b16 %v1564_v34  ;;  %v6083_v34 = vld [vmem:[%s6529_s29 + $0x60] sm:$0xff] }
 0x10c   : > { %v6296_v1 = vpack.c.bf16 %v7086_v33, %v7061_v42  ;;  %v7093_v14 = vpop.f32.mrf.mxu1  ;;  %v1799_v48 = vunpack.c.l.b16 %v1574_v41 }
 0x10d   : > { %1252 = vmatmul.bf16.gmra.mxu2 %v6042_v5  ;;  %2363 = vmatmul.bf16.gmra.mxu0 %v2251_v24  ;;  %v4882_v24 = vadd.f32 %v4881_v49, %v6977_v53 }
 0x10e   : > { %6335 = vst [vmem:[%s6828_s8 + $0x68] sm:$0xff] %v6296_v1   ;;  %v2137_v1 = vrot.slane %v2135_v15, 4 }
 0x10f   : > { %2677 = vmatmul.bf16.gmra.mxu1 %v6082_v39  ;;  %v1589_v39 = vshrl.u32 %v7104_v19, 16  ;;  %v4883_v6 = vadd.f32 %v4882_v24, %v6995_v30 }
 0x110   : > { %1934 = vmatmul.bf16.gmra.mxu3 %v1822_v3  ;;  %v7107_v52 = vpop.f32.mrf.mxu2  ;;  %v1585_v3 = vshll.u32 %v7104_v19, 16  ;;  %v2139_v49 = vsel %vm6784_vm5, %v2137_v1, %v2138_v10 }
 0x111   : > { %8423 = vst [vmem:[#allocation25_spill] sm:$0xff] %v7107_v52  ;;  %v1578_v52 = vrot.slane %v1576_v55, 4  ;;  %v1591_v38 = vrot.slane %v1589_v39, 4  ;;  %v4884_v24 = vadd.f32 %v4883_v6, %v7018_v22  ;;  %v2228_v54 = vunpack.c.l.b16 %v2139_v49  ;;  %v6043_v55 = vld [vmem:[%s6529_s29 + $0x54] sm:$0xff] }
 0x112   : > { %v7123_v61 = vpop.f32.mrf.mxu0  ;;  %v1587_v12 = vrot.slane %v1585_v3, 5  ;;  %v1823_v39 = vpack.c.b16 %v1799_v48, %v1798_v56  ;;  %v2142_v6 = vrot.slane %v7104_v19, 5 }
 0x113   : > { %v7109_v5 = vpop.f32.mrf.mxu3  ;;  %8424 = vst [vmem:[#allocation26_spill] sm:$0xff] %v7123_v61  ;;  %v1361_v61 = vld [vmem:[%s6529_s29 + $0x68] sm:$0x1]  ;;  %v4885_v63 = vadd.f32 %v4884_v24, %v7046_v26  ;;  %v1582_v10 = vor.u32 %v1581_v60, %v1578_v52  ;;  %v2252_v49 = vpack.c.b16 %v2228_v54, %v2227_v25 }
 0x114   : > { %v7114_v31 = vpop.f32.mrf.mxu1  ;;  %v1592_v16 = vor.u32 %v1591_v38, %v1587_v12  ;;  %v1595_v41 = vshll.u32 %v1361_v61, 16  ;;  %v2144_v48 = vrot.slane %v2142_v6, 4 }
 0x115   : > { %v6261_v47 = vpack.c.bf16 %v7114_v31, %v7093_v14  ;;  %v1583_v52 = vrot.slane %v1582_v10, 4 }
 0x116   : > { %v1593_v60 = vrot.slane %v1592_v16, 4  ;;  %v1597_v56 = vrot.slane %v1595_v41, 5 }
 0x117   : > { %6328 = vst [vmem:[%s6828_s8 + $0x30] sm:$0xff] %v6261_v47   ;;  %v4886_v47 = vadd.f32 %v4885_v63, %v7071_v11  ;;  %v2145_v63 = vrot.slane %v1361_v61, 5 }
 0x118   : > { %v7132_v15 = vpop.f32.mrf.mxu2 }
 0x119   : > { %8425 = vst [vmem:[#allocation27_spill] sm:$0xff] %v7132_v15  ;;  %v2025_v15 = vld [vmem:[%s6529_s29 + $0x60] sm:$0xe]  ;;  %v4887_v38 = vadd.f32 %v4886_v47, %v7093_v14  ;;  %v2146_v16 = vsel %vm6784_vm5, %v2144_v48, %v2145_v63  ;;  %v1609_v47 = vshll.u32 %v7155_v28, 16 }
 0x11a   : > { %v7147_v24 = vpop.f32.mrf.mxu0  ;;  %v5416_v19 = vrot.slane %v2025_v15, 9  ;;  %v1598_v15 = vsel %vm6558_vm2, %v1593_v60, %v1597_v56  ;;  %v2230_v48 = vunpack.c.l.b16 %v2146_v16  ;;  %v6084_v16 = vld [vmem:[%s6529_s29 + $0x6c] sm:$0xff] }
 0x11b   : > { %v7135_v1 = vpop.f32.mrf.mxu3  ;;  %8427 = vst [vmem:[#allocation29_spill] sm:$0xff] %v7147_v24  ;;  %v4888_v54 = vadd.f32 %v4887_v38, %v7114_v31  ;;  %v1801_v56 = vunpack.c.l.b16 %v1598_v15 }
 0x11c   : > { %v6301_v3 = vpack.c.bf16 %v7135_v1, %v7109_v5  ;;  %v7143_v35 = vpop.f32.mrf.mxu1  ;;  %v2143_v61 = vsel %vm6784_vm5, %v5416_v19, %v2142_v6 }
 0x11d   : > { %8426 = vst [vmem:[#allocation28_spill] sm:$0xff] %v7143_v35  ;;  %1257 = vmatmul.bf16.gmra.mxu2 %v6043_v55  ;;  %2368 = vmatmul.bf16.gmra.mxu0 %v2252_v49  ;;  %v1588_v55 = vsel %vm6558_vm2, %v1583_v52, %v1587_v12  ;;  %v4889_v10 = vadd.f32 %v4888_v54, %v7143_v35  ;;  %v1613_v49 = vshrl.u32 %v7155_v28, 16  ;;  %v2229_v19 = vunpack.c.l.b16 %v2143_v61 }
 0x11e   : > { %6336 = vst [vmem:[%s6828_s8 + $0x70] sm:$0xff] %v6301_v3   ;;  %v1362_v3 = vld [vmem:[%s6529_s29 + $0x6c] sm:$0xf]  ;;  %v1800_v6 = vunpack.c.l.b16 %v1588_v55  ;;  %v6044_v55 = vld [vmem:[%s6529_s29 + $0x60] sm:$0xff] }
 0x11f   : > { %2682 = vmatmul.bf16.gmra.mxu1 %v6083_v34  ;;  %v1600_v34 = vshrl.u32 %v1362_v3, 16  ;;  %v1603_v41 = vshll.u32 %v1362_v3, 16  ;;  %v1611_v3 = vrot.slane %v1609_v47, 5 }
 0x120   : > { %1939 = vmatmul.bf16.gmra.mxu3 %v1823_v39  ;;  %v7151_v25 = vpop.f32.mrf.mxu2  ;;  %v1824_v61 = vpack.c.b16 %v1801_v56, %v1800_v6  ;;  %v7197_v6 = vld [vmem:[%s6529_s29 + $0x7c] sm:$0xf] }
 0x121   : > { %8428 = vst [vmem:[#allocation30_spill] sm:$0xff] %v7151_v25  ;;  %v1602_v63 = vrot.slane %v1600_v34, 4  ;;  %v1605_v54 = vrot.slane %v1603_v41, 5  ;;  %v1615_v25 = vrot.slane %v1613_v49, 4  ;;  %v2253_v41 = vpack.c.b16 %v2230_v48, %v2229_v19 }
 0x122   : > { %v7175_v52 = vpop.f32.mrf.mxu0 }
 0x123   : > { %v7157_v24 = vpop.f32.mrf.mxu3  ;;  %8430 = vst [vmem:[#allocation32_spill] sm:$0xff] %v7175_v52  ;;  %v1606_v47 = vor.u32 %v1605_v54, %v1602_v63  ;;  %v1616_v49 = vor.u32 %v1615_v25, %v1611_v3 }
 0x124   : > { %v7168_v39 = vpop.f32.mrf.mxu1 }
 0x125   : > { %8429 = vst [vmem:[#allocation31_spill] sm:$0xff] %v7168_v39  ;;  %v6266_v12 = vpack.c.bf16 %v7168_v39, %v7143_v35  ;;  %v4890_v38 = vadd.f32 %v4889_v10, %v7168_v39  ;;  %v1364_v10 = vld [vmem:[%s6529_s29 + $0x74] sm:$0x1]  ;;  %v1607_v56 = vrot.slane %v1606_v47, 4  ;;  %v1617_v19 = vrot.slane %v1616_v49, 4 }
 0x127   : > { %6329 = vst [vmem:[%s6828_s8 + $0x38] sm:$0xff] %v6266_v12   ;;  %v4891_v60 = vadd.f32 %v4890_v38, %v6819_v59  ;;  %v1619_v38 = vshll.u32 %v1364_v10, 16  ;;  %v2149_v59 = vrot.slane %v7155_v28, 5 }
 0x128   : > { %v7180_v36 = vpop.f32.mrf.mxu2 }
 0x129   : > { %v4892_v35 = vadd.f32 %v4891_v60, %v6851_v20  ;;  %8431 = vst [vmem:[#allocation33_spill] sm:$0xff] %v7180_v36  ;;  %v2026_v20 = vld [vmem:[%s6529_s29 + $0x6c] sm:$0xe]  ;;  %v1621_v25 = vrot.slane %v1619_v38, 5 }
 0x12a   : > { %v2334_v36 = vpop.f32.mrf.mxu0  ;;  %v5417_v48 = vrot.slane %v2026_v20, 9  ;;  %v1612_v20 = vsel %vm6558_vm2, %v1607_v56, %v1611_v3 }
 0x12b   : > { %v7183_v52 = vpop.f32.mrf.mxu3  ;;  %v4893_v12 = vadd.f32 %v4892_v35, %v6873_v44  ;;  %v1365_v35 = vld [vmem:[%s6529_s29 + $0x78] sm:$0xf]  ;;  %v1802_v56 = vunpack.c.l.b16 %v1612_v20 }
 0x12c   : > { %8432 = vst [vmem:[#allocation34_spill] sm:$0xff] %v7183_v52  ;;  %v6306_v15 = vpack.c.bf16 %v7183_v52, %v7157_v24  ;;  %v2648_v34 = vpop.f32.mrf.mxu1  ;;  %v1627_v39 = vshll.u32 %v1365_v35, 16  ;;  %v2150_v38 = vsel %vm6784_vm5, %v5417_v48, %v2149_v59  ;;  %v6085_v20 = vld [vmem:[%s6529_s29 + $0x78] sm:$0xff] }
 0x12d   : > { %v4894_v60 = vadd.f32 %v4893_v12, %v6895_v7  ;;  %1262 = vmatmul.bf16.gmra.mxu2 %v6044_v55  ;;  %2373 = vmatmul.bf16.gmra.mxu0 %v2253_v41  ;;  %v2151_v12 = vrot.slane %v2149_v59, 4  ;;  %v1624_v7 = vshrl.u32 %v1365_v35, 16 }
 0x12e   : > { %6337 = vst [vmem:[%s6828_s8 + $0x78] sm:$0xff] %v6306_v15   ;;  %v2152_v15 = vrot.slane %v1364_v10, 5 }
 0x12f   : > { %v4895_v44 = vadd.f32 %v4894_v60, %v6920_v37  ;;  %2687 = vmatmul.bf16.gmra.mxu1 %v6084_v16  ;;  %v1637_v16 = vshrl.u32 %v7197_v6, 16  ;;  %v1626_v35 = vrot.slane %v1624_v7, 4 }
 0x130   : > { %1944 = vmatmul.bf16.gmra.mxu3 %v1824_v61  ;;  %v1223_v54 = vpop.f32.mrf.mxu2  ;;  %v1633_v61 = vshll.u32 %v7197_v6, 16  ;;  %v2153_v60 = vsel %vm6784_vm5, %v2151_v12, %v2152_v15 }
 0x131   : > { %v4896_v63 = vadd.f32 %v4895_v44, %v6945_v9  ;;  %v1303_v28 = vadd.f32 %v1223_v54, %v6803_v45  ;;  %v1622_v44 = vsel %vm6558_vm2, %v1617_v19, %v1621_v25  ;;  %v1629_v54 = vrot.slane %v1627_v39, 5  ;;  %v1367_v25 = vld [vmem:[%s6529_s29 + $0x80] sm:$0x1]  ;;  %v6045_v39 = vld [vmem:[%s6529_s29 + $0x6c] sm:$0xff] }
 0x132   : > { %v2336_v45 = vpop.f32.mrf.mxu0  ;;  %v1803_v19 = vunpack.c.l.b16 %v1622_v44  ;;  %v2156_v44 = vrot.slane %v7197_v6, 5 }
 0x133   : > { %v1905_v55 = vpop.f32.mrf.mxu3  ;;  %v4897_v41 = vadd.f32 %v4896_v63, %v6967_v43  ;;  %v1630_v12 = vor.u32 %v1629_v54, %v1626_v35 }
 0x134   : > { %v1985_v47 = vadd.f32 %v1905_v55, %v1303_v28  ;;  %v2650_v49 = vpop.f32.mrf.mxu1  ;;  %v1635_v28 = vrot.slane %v1633_v61, 5  ;;  %v1639_v55 = vrot.slane %v1637_v16, 4  ;;  %v1643_v61 = vshll.u32 %v1367_v25, 16 }
 0x135   : > { %v4898_v10 = vadd.f32 %v4897_v41, %v6989_v18  ;;  %v2231_v41 = vunpack.c.l.b16 %v2150_v38  ;;  %v2232_v18 = vunpack.c.l.b16 %v2153_v60  ;;  %v2027_v60 = vld [vmem:[%s6529_s29 + $0x78] sm:$0xe]  ;;  %v1631_v35 = vrot.slane %v1630_v12, 4 }
 0x136   : > { %v2414_v63 = vadd.f32 %v2334_v36, %v1985_v47  ;;  %v1640_v15 = vor.u32 %v1639_v55, %v1635_v28  ;;  %v1825_v47 = vpack.c.b16 %v1803_v19, %v1802_v56  ;;  %v1645_v55 = vrot.slane %v1643_v61, 5 }
 0x137   : > { %v4899_v3 = vadd.f32 %v4898_v10, %v7014_v2  ;;  %v2254_v38 = vpack.c.b16 %v2232_v18, %v2231_v41  ;;  %v5418_v56 = vrot.slane %v2027_v60, 9  ;;  %v2158_v6 = vrot.slane %v2156_v44, 4  ;;  %v1368_v18 = vld [vmem:[%s6529_s29 + $0x84] sm:$0xf] }
 0x138   : > { %v7215_v43 = vadd.f32 %v2648_v34, %v2414_v63  ;;  %v1225_v48 = vpop.f32.mrf.mxu2  ;;  %v1641_v54 = vrot.slane %v1640_v15, 4  ;;  %v2159_v19 = vrot.slane %v1367_v25, 5  ;;  %v1636_v12 = vsel %vm6558_vm2, %v1631_v35, %v1635_v28 }
 0x139   : > { %v4900_v59 = vadd.f32 %v4899_v3, %v7039_v58  ;;  %v1304_v7 = vadd.f32 %v1225_v48, %v6838_v4  ;;  %v2157_v61 = vsel %vm6784_vm5, %v5418_v56, %v2156_v44 }
 0x13a   : > { %8433 = vst [vmem:[#allocation35_spill] sm:$0xff] %v7215_v43  ;;  %v2339_v3 = vpop.f32.mrf.mxu0  ;;  %v1646_v15 = vsel %vm6558_vm2, %v1641_v54, %v1645_v55  ;;  %v2233_v54 = vunpack.c.l.b16 %v2157_v61  ;;  %v6086_v61 = vld [vmem:[%s6529_s29 + $0x84] sm:$0xff] }
 0x13b   : > { %v1907_v36 = vpop.f32.mrf.mxu3  ;;  %v4901_v16 = vadd.f32 %v4900_v59, %v7061_v42  ;;  %v1805_v44 = vunpack.c.l.b16 %v1646_v15 }
 0x13c   : > { %v1986_v10 = vadd.f32 %v1907_v36, %v1304_v7  ;;  %v2653_v34 = vpop.f32.mrf.mxu1  ;;  %v7229_v7 = vld [vmem:[%s6529_s29 + $0x88] sm:$0xf] }
 0x13d   : > { %v4902_v63 = vadd.f32 %v4901_v16, %v7086_v33  ;;  %1267 = vmatmul.bf16.gmra.mxu2 %v6045_v39  ;;  %2378 = vmatmul.bf16.gmra.mxu0 %v2254_v38  ;;  %v2160_v16 = vsel %vm6784_vm5, %v2158_v6, %v2159_v19  ;;  %v1661_v28 = vshrl.u32 %v7229_v7, 16 }
 0x13e   : > { %v2415_v4 = vadd.f32 %v2336_v45, %v1986_v10  ;;  %v1651_v10 = vshll.u32 %v1368_v18, 16  ;;  %v2234_v55 = vunpack.c.l.b16 %v2160_v16 }
 0x13f   : > { %v4903_v59 = vadd.f32 %v4902_v63, %v7109_v5  ;;  %2692 = vmatmul.bf16.gmra.mxu1 %v6085_v20  ;;  %v1663_v19 = vrot.slane %v1661_v28, 4 }
 0x140   : > { %1949 = vmatmul.bf16.gmra.mxu3 %v1825_v47  ;;  %v1228_v48 = vpop.f32.mrf.mxu2  ;;  %v7231_v36 = vadd.f32 %v2650_v49, %v2415_v4  ;;  %v1648_v47 = vshrl.u32 %v1368_v18, 16  ;;  %v1804_v4 = vunpack.c.l.b16 %v1636_v12  ;;  %v1653_v56 = vrot.slane %v1651_v10, 5 }
 0x141   : > { %v4904_v41 = vadd.f32 %v4903_v59, %v7135_v1  ;;  %v1305_v45 = vadd.f32 %v1228_v48, %v6862_v32  ;;  %v1657_v32 = vshll.u32 %v7229_v7, 16  ;;  %v1370_v48 = vld [vmem:[%s6529_s29 + $0x8c] sm:$0x1]  ;;  %v2255_v15 = vpack.c.b16 %v2234_v55, %v2233_v54 }
 0x142   : > { %8434 = vst [vmem:[#allocation36_spill] sm:$0xff] %v7231_v36  ;;  %v2341_v60 = vpop.f32.mrf.mxu0  ;;  %v1650_v59 = vrot.slane %v1648_v47, 4 }
 0x143   : > { %v1910_v39 = vpop.f32.mrf.mxu3  ;;  %v4905_v25 = vadd.f32 %v4904_v41, %v7157_v24  ;;  %v1659_v6 = vrot.slane %v1657_v32, 5  ;;  %v1667_v32 = vshll.u32 %v1370_v48, 16 }
 0x144   : > { %v1987_v49 = vadd.f32 %v1910_v39, %v1305_v45  ;;  %v2655_v20 = vpop.f32.mrf.mxu1  ;;  %v1654_v47 = vor.u32 %v1653_v56, %v1650_v59 }
 0x145   : > { %v4906_v38 = vadd.f32 %v4905_v25, %v7183_v52  ;;  %v6046_v25 = vld [vmem:[%s6529_s29 + $0x78] sm:$0xff]  ;;  %v1664_v10 = vor.u32 %v1663_v19, %v1659_v6  ;;  %v2166_v19 = vrot.slane %v1370_v48, 5  ;;  %v1371_v48 = vld [vmem:[%s6529_s29 + $0x90] sm:$0xf] }
 0x146   : > { %v2416_v63 = vadd.f32 %v2339_v3, %v1987_v49  ;;  %v1826_v49 = vpack.c.b16 %v1805_v44, %v1804_v4  ;;  %v1669_v44 = vrot.slane %v1667_v32, 5 }
 0x147   : > { %v4907_v35 = vrot.slane %v4906_v38, 4  ;;  %v1665_v4 = vrot.slane %v1664_v10, 4 }
 0x148   : > { %v1230_v41 = vpop.f32.mrf.mxu2  ;;  %v7247_v45 = vadd.f32 %v2653_v34, %v2416_v63  ;;  %v2163_v34 = vrot.slane %v7229_v7, 5 }
 0x149   : > { %v4908_v18 = vadd.f32 %v4907_v35, %v4906_v38  ;;  %v1306_v39 = vadd.f32 %v1230_v41, %v6889_v57  ;;  %v2028_v35 = vld [vmem:[%s6529_s29 + $0x84] sm:$0xe]  ;;  %v1655_v57 = vrot.slane %v1654_v47, 4 }
 0x14a   : > { %8435 = vst [vmem:[#allocation37_spill] sm:$0xff] %v7247_v45  ;;  %v7254_v38 = vpop.f32.mrf.mxu0  ;;  %v5419_v54 = vrot.slane %v2028_v35, 9  ;;  %v2165_v56 = vrot.slane %v2163_v34, 4  ;;  %v1675_v35 = vshll.u32 %v1371_v48, 16 }
 0x14b   : > { %v1912_v3 = vpop.f32.mrf.mxu3  ;;  %v4909_v12 = vrot.slane %v4908_v18, 2 }
 0x14c   : > { %v1988_v36 = vadd.f32 %v1912_v3, %v1306_v39  ;;  %v7252_v16 = vpop.f32.mrf.mxu1  ;;  %v1660_v39 = vsel %vm6558_vm2, %v1655_v57, %v1659_v6  ;;  %v1670_v3 = vsel %vm6558_vm2, %v1665_v4, %v1669_v44  ;;  %v7277_v6 = vld [vmem:[%s6529_s29 + $0x94] sm:$0xf]  ;;  %v6047_v4 = vld [vmem:[%s6529_s29 + $0x84] sm:$0xff] }
 0x14d   : > { %v4910_v28 = vadd.f32 %v4909_v12, %v4908_v18  ;;  %1272 = vmatmul.bf16.gmra.mxu2 %v6046_v25  ;;  %2383 = vmatmul.bf16.gmra.mxu0 %v2255_v15  ;;  %v1807_v15 = vunpack.c.l.b16 %v1670_v3 }
 0x14e   : > { %v2417_v63 = vadd.f32 %v2341_v60, %v1988_v36 }
 0x14f   : > { %2697 = vmatmul.bf16.gmra.mxu1 %v6086_v61  ;;  %v4911_v55 = vrot.slane %v4910_v28, 1 }
 0x150   : > { %1954 = vmatmul.bf16.gmra.mxu3 %v1826_v49  ;;  %v1233_v59 = vpop.f32.mrf.mxu2  ;;  %v7258_v18 = vadd.f32 %v2655_v20, %v2417_v63  ;;  %v2164_v20 = vsel %vm6784_vm5, %v5419_v54, %v2163_v34  ;;  %v1806_v49 = vunpack.c.l.b16 %v1660_v39  ;;  %v7282_v63 = vld [vmem:[%s6529_s29 + $0x10] sm:$0xf]  ;;  %v1681_v54 = vshll.u32 %v7277_v6, 16 }
 0x151   : > { %v1307_v41 = vadd.f32 %v1233_v59, %v6904_v21  ;;  %v4912_v25 = vadd.f32 %v4911_v55, %v4910_v28  ;;  %v2167_v21 = vsel %vm6784_vm5, %v2165_v56, %v2166_v19  ;;  %v2235_v61 = vunpack.c.l.b16 %v2164_v20  ;;  %v6087_v39 = vld [vmem:[%s6529_s29 + $0x90] sm:$0xff] }
 0x152   : > { %8436 = vst [vmem:[#allocation38_spill] sm:$0xff] %v7258_v18  ;;  %v7269_v12 = vpop.f32.mrf.mxu0  ;;  %v2236_v47 = vunpack.c.l.b16 %v2167_v21  ;;  %v1672_v28 = vshrl.u32 %v1371_v48, 16  ;;  %v8392_v34 = vrot.slane %v7282_v63, 5  ;;  %v1827_v44 = vpack.c.b16 %v1807_v15, %v1806_v49  ;;  %v7300_v21 = vld [vmem:[%s6529_s29 + $0x14] sm:$0x1] }
 0x153   : > { %v1915_v7 = vpop.f32.mrf.mxu3  ;;  %v7279_v10 = vmul.f32 0.00390625, %v4912_v25  ;;  %v1685_v55 = vshrl.u32 %v7277_v6, 16  ;;  %v1677_v25 = vrot.slane %v1675_v35, 5  ;;  %v7304_v49 = vld [vmem:[%s6529_s29 + $0x98] sm:$0x1]  ;;  %v1683_v15 = vrot.slane %v1681_v54, 5 }
 0x154   : > { %v7261_v36 = vadd.f32 %v1915_v7, %v1307_v41  ;;  %v7263_v60 = vpop.f32.mrf.mxu1  ;;  %v2256_v56 = vpack.c.b16 %v2236_v47, %v2235_v61  ;;  %v1674_v3 = vrot.slane %v1672_v28, 4  ;;  %v7297_v20 = vrot.slane %v8392_v34, 4 }
 0x155   : > { %8437 = vst [vmem:[#allocation39_spill] sm:$0xff] %v7279_v10  ;;  %v4914_v19 = vsub.f32 %v6801_v40, %v7279_v10  ;;  %v4915_v41 = vsub.f32 %v6830_v0, %v7279_v10  ;;  %v4916_v40 = vsub.f32 %v6858_v29, %v7279_v10  ;;  %v4917_v0 = vsub.f32 %v6883_v50, %v7279_v10 }
 0x156   : > { %v1687_v61 = vrot.slane %v1685_v55, 4  ;;  %v4918_v47 = vsub.f32 %v6901_v13, %v7279_v10  ;;  %v4919_v28 = vsub.f32 %v6924_v46, %v7279_v10  ;;  %v4920_v35 = vsub.f32 %v6952_v23, %v7279_v10 }
 0x157   : > { %v4946_v29 = vmul.f32 %v4914_v19, %v4914_v19  ;;  %v4947_v34 = vmul.f32 %v4915_v41, %v4915_v41  ;;  %v1691_v54 = vshll.u32 %v7304_v49, 16  ;;  %v7321_v13 = vsub.f32 %v6995_v30, %v7279_v10  ;;  %v2029_v41 = vld [vmem:[%s6529_s29 + $0x90] sm:$0xe] }
 0x158   : > { %v1235_v32 = vpop.f32.mrf.mxu2  ;;  %v7325_v46 = vsub.f32 %v7018_v22, %v7279_v10  ;;  %v7329_v23 = vsub.f32 %v7046_v26, %v7279_v10  ;;  %v7341_v30 = vsub.f32 %v7114_v31, %v7279_v10  ;;  %v4948_v22 = vmul.f32 %v4916_v40, %v4916_v40  ;;  %v1374_v40 = vld [vmem:[%s6529_s29 + $0x9c] sm:$0xf] }
 0x159   : > { %v4949_v19 = vmul.f32 %v4917_v0, %v4917_v0  ;;  %v4951_v26 = vmul.f32 %v4919_v28, %v4919_v28  ;;  %v4978_v48 = vadd.f32 %v4947_v34, %v4946_v29  ;;  %v7350_v18 = vadd.f32 %v7254_v38, %v7261_v36 }
 0x15a   : > { %v2349_v7 = vpop.f32.mrf.mxu0  ;;  %v1688_v43 = vor.u32 %v1687_v61, %v1683_v15  ;;  %v5420_v28 = vrot.slane %v2029_v41, 9  ;;  %v2170_v34 = vrot.slane %v7277_v6, 5 }
 0x15b   : > { %v1917_v57 = vpop.f32.mrf.mxu3 }
 0x15c   : > { %v7288_v59 = vpop.f32.mrf.mxu1  ;;  %v1689_v36 = vrot.slane %v1688_v43, 4 }
 0x15d   : > { %1277 = vmatmul.bf16.gmra.mxu2 %v6047_v4  ;;  %v4921_v4 = vsub.f32 %v6977_v53, %v7279_v10  ;;  %2388 = vmatmul.bf16.gmra.mxu0 %v2256_v56  ;;  %v7333_v53 = vsub.f32 %v7071_v11, %v7279_v10  ;;  %v7337_v56 = vsub.f32 %v7093_v14, %v7279_v10 }
 0x15e   : > { %v1308_v14 = vadd.f32 %v1235_v32, %v6932_v51  ;;  %v2173_v51 = vrot.slane %v7304_v49, 5  ;;  %v2171_v49 = vsel %vm6784_vm5, %v5420_v28, %v2170_v34 }
 0x15f   : > { %2702 = vmatmul.bf16.gmra.mxu1 %v6087_v39  ;;  %v4950_v39 = vmul.f32 %v4918_v47, %v4918_v47  ;;  %v1693_v47 = vrot.slane %v1691_v54, 5  ;;  %v6048_v54 = vld [vmem:[%s6529_s29 + $0x90] sm:$0xff] }
 0x160   : > { %1959 = vmatmul.bf16.gmra.mxu3 %v1827_v44  ;;  %v1238_v50 = vpop.f32.mrf.mxu2  ;;  %v1678_v44 = vor.u32 %v1677_v25, %v1674_v3  ;;  %v4952_v3 = vmul.f32 %v4920_v35, %v4920_v35  ;;  %v7344_v25 = vmul.f32 %v4921_v4, %v4921_v4  ;;  %v4979_v35 = vadd.f32 %v4978_v48, %v4948_v22 }
 0x161   : > { %v1309_v31 = vadd.f32 %v1238_v50, %v6956_v27  ;;  %v1990_v4 = vadd.f32 %v1917_v57, %v1308_v14  ;;  %v1696_v27 = vshrl.u32 %v1374_v40, 16  ;;  %v7365_v57 = vld [vmem:[%s6529_s29 + $0xa0] sm:$0xf]  ;;  %v1694_v43 = vsel %vm6558_vm2, %v1689_v36, %v1693_v47 }
 0x162   : > { %v2351_v45 = vpop.f32.mrf.mxu0  ;;  %v1679_v0 = vrot.slane %v1678_v44, 4  ;;  %v4980_v32 = vadd.f32 %v4979_v35, %v4949_v19  ;;  %v1699_v14 = vshll.u32 %v1374_v40, 16  ;;  %v4954_v40 = vmul.f32 %v7321_v13, %v7321_v13  ;;  %v8438_v13 = vld [vmem:[#allocation16_spill] sm:$0xff] }
 0x163   : > { %v1920_v55 = vpop.f32.mrf.mxu3  ;;  %v7360_v61 = vadd.f32 %v7269_v12, %v1990_v4  ;;  %v1698_v22 = vrot.slane %v1696_v27, 4  ;;  %v1709_v4 = vshrl.u32 %v7365_v57, 16 }
 0x164   : > { %v7346_v11 = vpop.f32.mrf.mxu1  ;;  %v1991_v52 = vadd.f32 %v1920_v55, %v1309_v31  ;;  %v1684_v38 = vsel %vm6558_vm2, %v1679_v0, %v1683_v15  ;;  %v2172_v15 = vrot.slane %v2170_v34, 4  ;;  %v4981_v12 = vadd.f32 %v4980_v32, %v4950_v39  ;;  %v1376_v55 = vld [vmem:[%s6529_s29 + $0xa4] sm:$0x1]  ;;  %v6088_v39 = vld [vmem:[%s6529_s29 + $0x9c] sm:$0xff] }
 0x165   : > { %v1808_v50 = vunpack.c.l.b16 %v1684_v38  ;;  %v1705_v31 = vshll.u32 %v7365_v57, 16  ;;  %v2030_v34 = vld [vmem:[%s6529_s29 + $0x9c] sm:$0xe]  ;;  %v1701_v36 = vrot.slane %v1699_v14, 5  ;;  %v1715_v32 = vshll.u32 %v1376_v55, 16 }
 0x166   : > { %v7362_v29 = vadd.f32 %v2349_v7, %v1991_v52  ;;  %v1809_v52 = vunpack.c.l.b16 %v1694_v43  ;;  %v2237_v7 = vunpack.c.l.b16 %v2171_v49  ;;  %v4982_v0 = vadd.f32 %v4981_v12, %v4951_v26 }
 0x167   : > { %v1707_v27 = vrot.slane %v1705_v31, 5  ;;  %v5421_v43 = vrot.slane %v2030_v34, 9  ;;  %v2177_v49 = vrot.slane %v7365_v57, 5  ;;  %v2180_v12 = vrot.slane %v1376_v55, 5 }
 0x168   : > { %v1240_v48 = vpop.f32.mrf.mxu2  ;;  %v1828_v28 = vpack.c.b16 %v1809_v52, %v1808_v50  ;;  %v1702_v50 = vor.u32 %v1701_v36, %v1698_v22  ;;  %v8439_v22 = vld [vmem:[#allocation28_spill] sm:$0xff]  ;;  %v4955_v57 = vmul.f32 %v7325_v46, %v7325_v46  ;;  %v4956_v55 = vmul.f32 %v7329_v23, %v7329_v23 }
 0x169   : > { %v1310_v6 = vadd.f32 %v1240_v48, %v6983_v62  ;;  %v2174_v62 = vsel %vm6784_vm5, %v2172_v15, %v2173_v51  ;;  %v4983_v51 = vadd.f32 %v4982_v0, %v4952_v3  ;;  %v1711_v48 = vrot.slane %v1709_v4, 4 }
 0x16a   : > { %v2354_v47 = vpop.f32.mrf.mxu0  ;;  %v2238_v35 = vunpack.c.l.b16 %v2174_v62  ;;  %v2179_v62 = vrot.slane %v2177_v49, 4  ;;  %v4928_v31 = vsub.f32 %v8439_v22, %v7279_v10 }
 0x16b   : > { %v1922_v44 = vpop.f32.mrf.mxu3  ;;  %v1712_v15 = vor.u32 %v1711_v48, %v1707_v27 }
 0x16c   : > { %v1992_v19 = vadd.f32 %v1922_v44, %v1310_v6  ;;  %v7374_v41 = vpop.f32.mrf.mxu1  ;;  %v2257_v26 = vpack.c.b16 %v2238_v35, %v2237_v7  ;;  %v1377_v6 = vld [vmem:[%s6529_s29 + $0xa8] sm:$0xf]  ;;  %v1717_v44 = vrot.slane %v1715_v32, 5  ;;  %v1703_v7 = vrot.slane %v1702_v50, 4 }
 0x16d   : > { %1282 = vmatmul.bf16.gmra.mxu2 %v6048_v54  ;;  %v1720_v52 = vshrl.u32 %v1377_v6, 16  ;;  %v1723_v14 = vshll.u32 %v1377_v6, 16  ;;  %v1713_v0 = vrot.slane %v1712_v15, 4  ;;  %v4957_v35 = vmul.f32 %v7333_v53, %v7333_v53  ;;  %v8441_v15 = vld [vmem:[#allocation3_spill] sm:$0xff] }
 0x16e   : > { %v7382_v38 = vadd.f32 %v2351_v45, %v1992_v19  ;;  %v4984_v45 = vadd.f32 %v4983_v51, %v7344_v25  ;;  %2393 = vmatmul.bf16.gmra.mxu0 %v2257_v26  ;;  %v1708_v34 = vsel %vm6558_vm2, %v1703_v7, %v1707_v27  ;;  %v2181_v53 = vsel %vm6784_vm5, %v2179_v62, %v2180_v12 }
 0x16f   : > { %2707 = vmatmul.bf16.gmra.mxu1 %v6088_v39  ;;  %v1718_v46 = vsel %vm6558_vm2, %v1713_v0, %v1717_v44  ;;  %v1722_v51 = vrot.slane %v1720_v52, 4  ;;  %v1725_v26 = vrot.slane %v1723_v14, 5  ;;  %v1810_v50 = vunpack.c.l.b16 %v1708_v34  ;;  %v8442_v14 = vld [vmem:[#allocation18_spill] sm:$0xff] }
 0x170   : > { %1964 = vmatmul.bf16.gmra.mxu3 %v1828_v28  ;;  %v1243_v54 = vpop.f32.mrf.mxu2  ;;  %v4985_v25 = vadd.f32 %v4984_v45, %v4954_v40  ;;  %v7395_v28 = vld [vmem:[%s6529_s29 + $0xac] sm:$0xf]  ;;  %v2178_v40 = vsel %vm6784_vm5, %v5421_v43, %v2177_v49  ;;  %v1811_v27 = vunpack.c.l.b16 %v1718_v46  ;;  %v4930_v43 = vsub.f32 %v8441_v15, %v7279_v10  ;;  %v7420_v49 = vld [vmem:[%s6529_s29 + $0xb0] sm:$0x1] }
 0x171   : > { %v1311_v3 = vadd.f32 %v1243_v54, %v8438_v13  ;;  %v1729_v48 = vshll.u32 %v7395_v28, 16  ;;  %v1733_v45 = vshrl.u32 %v7395_v28, 16  ;;  %v8440_v54 = vld [vmem:[#allocation31_spill] sm:$0xff]  ;;  %v4959_v62 = vmul.f32 %v7341_v30, %v7341_v30 }
 0x172   : > { %v4986_v36 = vadd.f32 %v4985_v25, %v4955_v57  ;;  %v2356_v32 = vpop.f32.mrf.mxu0  ;;  %v4929_v44 = vsub.f32 %v8440_v54, %v7279_v10  ;;  %v6049_v25 = vld [vmem:[%s6529_s29 + $0x9c] sm:$0xff]  ;;  %v1726_v0 = vor.u32 %v1725_v26, %v1722_v51  ;;  %v1739_v34 = vshll.u32 %v7420_v49, 16 }
 0x173   : > { %v1925_v19 = vpop.f32.mrf.mxu3  ;;  %v7422_v12 = vrot.slane %v1729_v48, 5  ;;  %v1735_v7 = vrot.slane %v1733_v45, 4  ;;  %v4960_v46 = vmul.f32 %v4928_v31, %v4928_v31  ;;  %v7440_v51 = vadd.f32 %v7263_v60, %v7360_v61  ;;  %v6089_v48 = vld [vmem:[%s6529_s29 + $0xa8] sm:$0xff] }
 0x174   : > { %v1993_v39 = vadd.f32 %v1925_v19, %v1311_v3  ;;  %v7401_v4 = vpop.f32.mrf.mxu1  ;;  %v4987_v6 = vadd.f32 %v4986_v36, %v4956_v55  ;;  %v2239_v3 = vunpack.c.l.b16 %v2178_v40  ;;  %v2240_v19 = vunpack.c.l.b16 %v2181_v53  ;;  %v8443_v36 = vld [vmem:[#allocation5_spill] sm:$0xff]  ;;  %v2031_v45 = vld [vmem:[%s6529_s29 + $0xa8] sm:$0xe] }
 0x175   : > { %v4931_v30 = vsub.f32 %v8443_v36, %v7279_v10  ;;  %v2184_v60 = vrot.slane %v7395_v28, 5  ;;  %v4961_v54 = vmul.f32 %v4929_v44, %v4929_v44  ;;  %v4935_v28 = vsub.f32 %v6945_v9, %v7279_v10 }
 0x176   : > { %v2422_v23 = vadd.f32 %v2354_v47, %v1993_v39  ;;  %v4958_v47 = vmul.f32 %v7337_v56, %v7337_v56  ;;  %v4988_v52 = vadd.f32 %v4987_v6, %v4957_v35  ;;  %v7430_v56 = vadd.f32 %v7252_v16, %v7350_v18 }
 0x177   : > { %v1829_v39 = vpack.c.b16 %v1811_v27, %v1810_v50  ;;  %v1736_v35 = vor.u32 %v1735_v7, %v7422_v12  ;;  %v2258_v26 = vpack.c.b16 %v2240_v19, %v2239_v3  ;;  %v7445_v6 = vadd.f32 %v7288_v59, %v7362_v29  ;;  %v7466_v7 = vld [vmem:[%s6529_s29 + $0xb8] sm:$0xf] }
 0x178   : > { %v1245_v13 = vpop.f32.mrf.mxu2  ;;  %v4989_v55 = vadd.f32 %v4988_v52, %v4958_v47  ;;  %v7449_v50 = vadd.f32 %v7346_v11, %v7382_v38  ;;  %v1727_v27 = vrot.slane %v1726_v0, 4  ;;  %v7454_v61 = vadd.f32 %v7374_v41, %v2422_v23  ;;  %v8444_v47 = vld [vmem:[#allocation7_spill] sm:$0xff]  ;;  %v8445_v38 = vld [vmem:[#allocation9_spill] sm:$0xff]  ;;  %v1380_v41 = vld [vmem:[%s6529_s29 + $0xb4] sm:$0xf] }
 0x179   : > { %v1312_v22 = vadd.f32 %v1245_v13, %v8442_v14  ;;  %v1737_v59 = vrot.slane %v1736_v35, 4  ;;  %v1741_v29 = vrot.slane %v1739_v34, 5  ;;  %v4932_v11 = vsub.f32 %v8444_v47, %v7279_v10 }
 0x17a   : > { %v4990_v16 = vadd.f32 %v4989_v55, %v4959_v62  ;;  %v2359_v18 = vpop.f32.mrf.mxu0  ;;  %v4934_v52 = vsub.f32 %v6920_v37, %v7279_v10  ;;  %v4962_v23 = vmul.f32 %v4930_v43, %v4930_v43  ;;  %v4963_v44 = vmul.f32 %v4931_v30, %v4931_v30  ;;  %v8446_v62 = vld [vmem:[#allocation20_spill] sm:$0xff] }
 0x17b   : > { %v1927_v57 = vpop.f32.mrf.mxu3  ;;  %v5422_v19 = vrot.slane %v2031_v45, 9  ;;  %v1732_v37 = vsel %vm6558_vm2, %v1727_v27, %v7422_v12  ;;  %v2187_v9 = vrot.slane %v7420_v49, 5  ;;  %v1742_v43 = vsel %vm6558_vm2, %v1737_v59, %v1741_v29  ;;  %v8447_v12 = vld [vmem:[#allocation13_spill] sm:$0xff]  ;;  %v8448_v49 = vld [vmem:[#allocation15_spill] sm:$0xff] }
 0x17c   : > { %v1994_v40 = vadd.f32 %v1927_v57, %v1312_v22  ;;  %v7436_v53 = vpop.f32.mrf.mxu1  ;;  %v4991_v15 = vadd.f32 %v4990_v16, %v4960_v46  ;;  %v2186_v57 = vrot.slane %v2184_v60, 4  ;;  %v1744_v0 = vshrl.u32 %v1380_v41, 16 }
 0x17d   : > { %1287 = vmatmul.bf16.gmra.mxu2 %v6049_v25  ;;  %v1747_v34 = vshll.u32 %v1380_v41, 16  ;;  %v1753_v36 = vshll.u32 %v7466_v7, 16  ;;  %v1757_v30 = vshrl.u32 %v7466_v7, 16  ;;  %v4936_v46 = vsub.f32 %v8447_v12, %v7279_v10  ;;  %v6143_v12 = vld [vmem:[%s8379_s1 + $0x1d8] sm:$0xff] }
 0x17e   : > { %v2423_v31 = vadd.f32 %v2356_v32, %v1994_v40  ;;  %v4933_v32 = vsub.f32 %v8445_v38, %v7279_v10  ;;  %v4992_v13 = vadd.f32 %v4991_v15, %v4961_v54  ;;  %2398 = vmatmul.bf16.gmra.mxu0 %v2258_v26  ;;  %v4937_v40 = vsub.f32 %v8448_v49, %v7279_v10  ;;  %v6102_v49 = vld [vmem:[%s8379_s1 + $0x110] sm:$0xff] }
 0x17f   : > { %2712 = vmatmul.bf16.gmra.mxu1 %v6089_v48  ;;  %v4964_v16 = vmul.f32 %v4932_v11, %v4932_v11  ;;  %v1812_v45 = vunpack.c.l.b16 %v1732_v37  ;;  %v1813_v15 = vunpack.c.l.b16 %v1742_v43  ;;  %v2185_v59 = vsel %vm6784_vm5, %v5422_v19, %v2184_v60 }
 0x180   : > { %1969 = vmatmul.bf16.gmra.mxu3 %v1829_v39  ;;  %v1248_v3 = vpop.f32.mrf.mxu2  ;;  %v4993_v25 = vadd.f32 %v4992_v13, %v4962_v23  ;;  %v7476_v55 = vadd.f32 %v7401_v4, %v2423_v31  ;;  %v7488_v4 = vsub.f32 %v7014_v2, %v7279_v10  ;;  %v4965_v31 = vmul.f32 %v4933_v32, %v4933_v32  ;;  %v7501_v13 = vld [vmem:[%s6529_s29 + $0xbc] sm:$0x1] }
 0x181   : > { %v1313_v14 = vadd.f32 %v1248_v3, %v8446_v62  ;;  %v2188_v29 = vsel %vm6784_vm5, %v2186_v57, %v2187_v9  ;;  %v1746_v47 = vrot.slane %v1744_v0, 4  ;;  %v1749_v11 = vrot.slane %v1747_v34, 5  ;;  %v8449_v3 = vld [vmem:[#allocation22_spill] sm:$0xff]  ;;  %4492 = vmatpush.bf16.msra.mxu1 %v6143_v12 }
 0x182   : > { %v4994_v26 = vadd.f32 %v4993_v25, %v4963_v44  ;;  %v2361_v48 = vpop.f32.mrf.mxu0  ;;  %v7494_v38 = vrot.slane %v1753_v36, 5  ;;  %v1759_v41 = vrot.slane %v1757_v30, 4  ;;  %v4939_v2 = vsub.f32 %v7039_v58, %v7279_v10 }
 0x183   : > { %v1930_v22 = vpop.f32.mrf.mxu3  ;;  %v4966_v32 = vmul.f32 %v4934_v52, %v4934_v52  ;;  %v7505_v60 = vsub.f32 %v7086_v33, %v7279_v10  ;;  %v2242_v37 = vunpack.c.l.b16 %v2188_v29  ;;  %v4967_v57 = vmul.f32 %v4935_v28, %v4935_v28  ;;  %v6127_v52 = vld [vmem:[%s8379_s1 + $0x158] sm:$0xff] }
 0x184   : > { %v1995_v39 = vadd.f32 %v1930_v22, %v1313_v14  ;;  %v7478_v35 = vpop.f32.mrf.mxu1  ;;  %v4995_v54 = vadd.f32 %v4994_v26, %v4964_v16  ;;  %v6050_v14 = vld [vmem:[%s6529_s29 + $0xa8] sm:$0xff]  ;;  %v2241_v22 = vunpack.c.l.b16 %v2185_v59  ;;  %v1830_v9 = vpack.c.b16 %v1813_v15, %v1812_v45  ;;  %3384 = vmatpush.bf16.msra.mxu3 %v6127_v52 }
 0x185   : > { %v1750_v0 = vor.u32 %v1749_v11, %v1746_v47  ;;  %v1760_v28 = vor.u32 %v1759_v41, %v7494_v38  ;;  %v7524_v34 = vsub.f32 %v7109_v5, %v7279_v10  ;;  %v4968_v36 = vmul.f32 %v4936_v46, %v4936_v46  ;;  %v6126_v5 = vld [vmem:[%s8379_s1 + $0x150] sm:$0xff] }
 0x186   : > { %v2424_v27 = vadd.f32 %v2359_v18, %v1995_v39  ;;  %v4940_v18 = vsub.f32 %v7061_v42, %v7279_v10  ;;  %v4996_v23 = vadd.f32 %v4995_v54, %v4965_v31  ;;  %v6103_v42 = vld [vmem:[%s8379_s1 + $0x118] sm:$0xff]  ;;  %v1763_v39 = vshll.u32 %v7501_v13, 16 }
 0x187   : > { %3069 = vmatpush.bf16.msra.mxu2 %v6103_v42  ;;  %v2259_v26 = vpack.c.b16 %v2242_v37, %v2241_v22  ;;  %v6090_v31 = vld [vmem:[%s6529_s29 + $0xb4] sm:$0xff]  ;;  %v2191_v45 = vrot.slane %v7466_v7, 5  ;;  %v8450_v54 = vrot.slane %v7300_v21, 5  ;;  %v7550_v59 = vsub.f32 %v7135_v1, %v7279_v10  ;;  %v5616_v22 = vld [vmem:[%s6529_s29 + $0xc] sm:$0xe] }
 0x188   : > { %v1250_v44 = vpop.f32.mrf.mxu2  ;;  %v4997_v58 = vadd.f32 %v4996_v23, %v4966_v32  ;;  %v7516_v33 = vadd.f32 %v7436_v53, %v2424_v27  ;;  %v6135_v53 = vld [vmem:[%s8379_s1 + $0x198] sm:$0xff]  ;;  %v2032_v27 = vld [vmem:[%s6529_s29 + $0xb4] sm:$0xe]  ;;  %v4969_v29 = vmul.f32 %v4937_v40, %v4937_v40  ;;  %v1751_v7 = vrot.slane %v1750_v0, 4  ;;  %3385 = vmatpush.bf16.msra.mxu3 %v6126_v5  ;;  %v6101_v23 = vld [vmem:[%s8379_s1 + $0x108] sm:$0xff] }
 0x189   : > { %v1314_v19 = vadd.f32 %v1250_v44, %v8449_v3  ;;  %v7546_v15 = vsel %vm6784_vm5, %v7297_v20, %v8450_v54  ;;  %4066 = vmatpush.bf16.msra.mxu0 %v6135_v53  ;;  %v6142_v21 = vld [vmem:[%s8379_s1 + $0x1d0] sm:$0xff]  ;;  %v7560_v20 = vsub.f32 %v7157_v24, %v7279_v10  ;;  %v1761_v1 = vrot.slane %v1760_v28, 4  ;;  %v6125_v24 = vld [vmem:[%s8379_s1 + $0x148] sm:$0xff]  ;;  %v6124_v53 = vld [vmem:[%s8379_s1 + $0x140] sm:$0xff] }
 0x18a   : > { %v4998_v30 = vadd.f32 %v4997_v58, %v4967_v57  ;;  %v2364_v16 = vpop.f32.mrf.mxu0  ;;  %v1765_v11 = vrot.slane %v1763_v39, 5  ;;  %v4970_v40 = vmul.f32 %v7488_v4, %v7488_v4  ;;  %v4971_v41 = vmul.f32 %v4939_v2, %v4939_v2  ;;  %4493 = vmatpush.bf16.msra.mxu1 %v6142_v21  ;;  %v6141_v42 = vld [vmem:[%s8379_s1 + $0x1c8] sm:$0xff] }
 0x18b   : > { %v1932_v62 = vpop.f32.mrf.mxu3  ;;  %3070 = vmatpush.bf16.msra.mxu2 %v6102_v49  ;;  %v5423_v3 = vrot.slane %v2032_v27, 9  ;;  %v2193_v2 = vrot.slane %v2191_v45, 4  ;;  %v4973_v57 = vmul.f32 %v7505_v60, %v7505_v60  ;;  %v2194_v52 = vrot.slane %v7501_v13, 5  ;;  %v6100_v13 = vld [vmem:[%s8379_s1 + $0x100] sm:$0xff] }
 0x18c   : > { %v1996_v25 = vadd.f32 %v1932_v62, %v1314_v19  ;;  %v7518_v43 = vpop.f32.mrf.mxu1  ;;  %v4999_v47 = vadd.f32 %v4998_v30, %v4968_v36  ;;  %v4972_v19 = vmul.f32 %v4940_v18, %v4940_v18  ;;  %v8451_v62 = vld [vmem:[#allocation24_spill] sm:$0xff]  ;;  %v6133_v18 = vld [vmem:[%s8379_s1 + $0x188] sm:$0xff]  ;;  %v1756_v60 = vsel %vm6558_vm2, %v1751_v7, %v7494_v38  ;;  %v7594_v36 = vld [vmem:[%s6529_s29 + $0x1c] sm:$0xf]  ;;  %3386 = vmatpush.bf16.msra.mxu3 %v6125_v24 }
 0x18d   : > { %1292 = vmatmul.bf16.gmra.mxu2 %v6050_v14  ;;  %v1766_v28 = vsel %vm6558_vm2, %v1761_v1, %v1765_v11  ;;  %v2954_v39 = vunpack.c.l.b16 %v7546_v15  ;;  %v2192_v38 = vsel %vm6784_vm5, %v5423_v3, %v2191_v45  ;;  %v8452_v49 = vrot.slane %v7282_v63, 5  ;;  %v6132_v15 = vld [vmem:[%s8379_s1 + $0x180] sm:$0xff] }
 0x18e   : > { %v2425_v46 = vadd.f32 %v2361_v48, %v1996_v25  ;;  %v6134_v48 = vld [vmem:[%s8379_s1 + $0x190] sm:$0xff]  ;;  %v5000_v32 = vadd.f32 %v4999_v47, %v4969_v29  ;;  %2403 = vmatmul.bf16.gmra.mxu0 %v2259_v26  ;;  %v5840_v25 = vld [vmem:[%s6529_s29 + $0x18] sm:$0xf]  ;;  %4494 = vmatpush.bf16.msra.mxu1 %v6141_v42  ;;  %v6140_v45 = vld [vmem:[%s8379_s1 + $0x1c0] sm:$0xff]  ;;  %v2195_v63 = vsel %vm6784_vm5, %v2193_v2, %v2194_v52  ;;  %v3563_v29 = vshrl.u32 %v7594_v36, 16 }
 0x18f   : > { %2717 = vmatmul.bf16.gmra.mxu1 %v6090_v31  ;;  %4067 = vmatpush.bf16.msra.mxu0 %v6134_v48  ;;  %v3550_v31 = vshrl.u32 %v5840_v25, 16  ;;  %v3553_v27 = vshll.u32 %v5840_v25, 16  ;;  %v8453_v47 = vld [vmem:[#allocation34_spill] sm:$0xff]  ;;  %v1814_v21 = vunpack.c.l.b16 %v1756_v60  ;;  %v1815_v7 = vunpack.c.l.b16 %v1766_v28 }
 0x190   : > { %1974 = vmatmul.bf16.gmra.mxu3 %v1830_v9  ;;  %v1253_v44 = vpop.f32.mrf.mxu2  ;;  %v7573_v37 = vadd.f32 %v7478_v35, %v2425_v46  ;;  %v5001_v58 = vadd.f32 %v5000_v32, %v4970_v40  ;;  %v5632_v9 = vrot.slane %v5616_v22, 9  ;;  %3071 = vmatpush.bf16.msra.mxu2 %v6101_v23  ;;  %v4945_v48 = vsub.f32 %v8453_v47, %v7279_v10  ;;  %v8454_v24 = vld [vmem:[#allocation26_spill] sm:$0xff]  ;;  %v7644_v47 = vld [vmem:[%s6529_s29 + $0x28] sm:$0xf] }
 0x191   : > { %v1315_v14 = vadd.f32 %v1253_v44, %v8451_v62  ;;  %v4974_v11 = vmul.f32 %v7524_v34, %v7524_v34  ;;  %v4975_v40 = vmul.f32 %v7550_v59, %v7550_v59  ;;  %3387 = vmatpush.bf16.msra.mxu3 %v6124_v53  ;;  %v2243_v23 = vunpack.c.l.b16 %v2192_v38  ;;  %v5842_v42 = vld [vmem:[%s6529_s29 + $0x20] sm:$0x1]  ;;  %v5936_v38 = vld [vmem:[%s6529_s29 + $0x18] sm:$0xe] }
 0x192   : > { %v5002_v30 = vadd.f32 %v5001_v58, %v4971_v41  ;;  %v2366_v12 = vpop.f32.mrf.mxu0  ;;  %v2827_v5 = vsel %vm6784_vm5, %v5632_v9, %v8452_v49  ;;  %v2244_v62 = vunpack.c.l.b16 %v2195_v63  ;;  %4495 = vmatpush.bf16.msra.mxu1 %v6140_v45  ;;  %v3565_v22 = vrot.slane %v3563_v29, 4 }
 0x193   : > { %v1935_v4 = vpop.f32.mrf.mxu3  ;;  %v2953_v26 = vunpack.c.l.b16 %v2827_v5  ;;  %4068 = vmatpush.bf16.msra.mxu0 %v6133_v18  ;;  %v1831_v58 = vpack.c.b16 %v1815_v7, %v1814_v21  ;;  %v4976_v52 = vmul.f32 %v7560_v20, %v7560_v20  ;;  %v3569_v53 = vshll.u32 %v5842_v42, 16 }
 0x194   : > { %v1997_v35 = vadd.f32 %v1935_v4, %v1315_v14  ;;  %v7585_v0 = vpop.f32.mrf.mxu1  ;;  %v5003_v54 = vadd.f32 %v5002_v30, %v4972_v19  ;;  %3072 = vmatpush.bf16.msra.mxu2 %v6100_v13  ;;  %v6051_v19 = vld [vmem:[%s6529_s29 + $0xb4] sm:$0xff]  ;;  %v3552_v14 = vrot.slane %v3550_v31, 4  ;;  %v3555_v4 = vrot.slane %v3553_v27, 5 }
 0x195   : > { %v7620_v1 = vpack.c.b16 %v2954_v39, %v2953_v26  ;;  %v2260_v28 = vpack.c.b16 %v2244_v62, %v2243_v23  ;;  %v6091_v39 = vld [vmem:[%s6529_s29 + $0xc0] sm:$0xff]  ;;  %v4249_v49 = vrot.slane %v7594_v36, 5  ;;  %v8456_v26 = vld [vmem:[#allocation29_spill] sm:$0xff]  ;;  %v3571_v45 = vrot.slane %v3569_v53, 5 }
 0x196   : > { %v2426_v46 = vadd.f32 %v2364_v16, %v1997_v35  ;;  %v3559_v16 = vshll.u32 %v7594_v36, 16  ;;  %v5004_v41 = vadd.f32 %v5003_v54, %v4973_v57  ;;  %v4977_v35 = vmul.f32 %v4945_v48, %v4945_v48 }
 0x197   : > { %4069 = vmatpush.bf16.msra.mxu0 %v6132_v15  ;;  %v3556_v30 = vor.u32 %v3555_v4, %v3552_v14  ;;  %v5952_v54 = vrot.slane %v5936_v38, 9  ;;  %v4251_v63 = vrot.slane %v4249_v49, 4 }
 0x198   : > { %v1255_v32 = vpop.f32.mrf.mxu2  ;;  %v5005_v2 = vadd.f32 %v5004_v41, %v4974_v11  ;;  %v3561_v34 = vrot.slane %v3559_v16, 5  ;;  %v7629_v59 = vadd.f32 %v7518_v43, %v2426_v46  ;;  %v5843_v46 = vld [vmem:[%s6529_s29 + $0x24] sm:$0xf]  ;;  %v4252_v16 = vrot.slane %v5842_v42, 5 }
 0x199   : > { %v1316_v44 = vadd.f32 %v1255_v32, %v8454_v24  ;;  %v3557_v27 = vrot.slane %v3556_v30, 4  ;;  %v3574_v48 = vshrl.u32 %v5843_v46, 16  ;;  %v3577_v21 = vshll.u32 %v5843_v46, 16 }
 0x19a   : > { %v5006_v9 = vadd.f32 %v5005_v2, %v4975_v40  ;;  %v2369_v25 = vpop.f32.mrf.mxu0  ;;  %v3566_v43 = vor.u32 %v3565_v22, %v3561_v34  ;;  %v4250_v32 = vsel %vm6784_vm5, %v5952_v54, %v4249_v49  ;;  %v4253_v24 = vsel %vm6784_vm5, %v4251_v63, %v4252_v16  ;;  %v6365_v2 = vld [vmem:[%s6529_s29 + $0x1c] sm:$0xf]  ;;  %v8457_v22 = vld [vmem:[#allocation32_spill] sm:$0xff]  ;;  %v5937_v63 = vld [vmem:[%s6529_s29 + $0x24] sm:$0xe] }
 0x19b   : > { %v1937_v3 = vpop.f32.mrf.mxu3  ;;  %v3562_v41 = vsel %vm6558_vm2, %v3557_v27, %v3561_v34  ;;  %v3579_v62 = vrot.slane %v3577_v21, 5  ;;  %v4376_v4 = vunpack.c.l.b16 %v4250_v32  ;;  %v2833_v34 = vrot.slane %v6365_v2, 5  ;;  %v7677_v32 = vld [vmem:[%s6529_s29 + $0x34] sm:$0xf] }
 0x19c   : > { %v1998_v57 = vadd.f32 %v1937_v3, %v1316_v44  ;;  %v2683_v18 = vpop.f32.mrf.mxu1  ;;  %v5007_v13 = vadd.f32 %v5006_v9, %v4976_v52  ;;  %v3567_v15 = vrot.slane %v3566_v43, 4  ;;  %v3583_v44 = vshll.u32 %v7644_v47, 16 }
 0x19d   : > { %1297 = vmatmul.bf16.gmra.mxu2 %v6051_v19  ;;  %v3587_v3 = vshrl.u32 %v7644_v47, 16  ;;  %v3576_v19 = vrot.slane %v3574_v48, 4  ;;  %v3950_v42 = vunpack.c.l.b16 %v3562_v41  ;;  %v4377_v9 = vunpack.c.l.b16 %v4253_v24  ;;  %v5846_v41 = vld [vmem:[%s6529_s29 + $0x30] sm:$0xf] }
 0x19e   : > { %v2427_v60 = vadd.f32 %v2366_v12, %v1998_v57  ;;  %v7637_v5 = vadd.f32 %v5007_v13, %v4977_v35  ;;  %2408 = vmatmul.bf16.gmra.mxu0 %v2260_v28  ;;  %v3572_v23 = vsel %vm6558_vm2, %v3567_v15, %v3571_v45  ;;  %v5845_v35 = vld [vmem:[%s6529_s29 + $0x2c] sm:$0x1]  ;;  %v6108_v13 = vld [vmem:[%s6529_s29 + $0x18] sm:$0xff]  ;;  %v2835_v49 = vrot.slane %v2833_v34, 4 }
 0x19f   : > { %2722 = vmatmul.bf16.gmra.mxu1 %v6091_v39  ;;  %v3951_v52 = vunpack.c.l.b16 %v3572_v23  ;;  %v3589_v28 = vrot.slane %v3587_v3, 4  ;;  %v3580_v53 = vor.u32 %v3579_v62, %v3576_v19  ;;  %v3593_v27 = vshll.u32 %v5845_v35, 16 }
 0x1a0   : > { %1979 = vmatmul.bf16.gmra.mxu3 %v1831_v58  ;;  %8455 = vst [vmem:[#allocation16_spill] sm:$0xff] %v7637_v5  ;;  %v1258_v20 = vpop.f32.mrf.mxu2  ;;  %v7647_v11 = vadd.f32 %v7585_v0, %v2427_v60  ;;  %v5617_v0 = vld [vmem:[%s6529_s29 + $0x18] sm:$0xe]  ;;  %v3585_v60 = vrot.slane %v3583_v44, 5  ;;  %v4256_v15 = vrot.slane %v7644_v47, 5  ;;  %v5953_v24 = vrot.slane %v5937_v63, 9 }
 0x1a1   : > { %v1317_v31 = vadd.f32 %v1258_v20, %v8456_v26  ;;  %v6366_v20 = vld [vmem:[%s6529_s29 + $0x20] sm:$0x1]  ;;  %v3581_v45 = vrot.slane %v3580_v53, 4  ;;  %v4259_v44 = vrot.slane %v5845_v35, 5  ;;  %v3598_v2 = vshrl.u32 %v5846_v41, 16 }
 0x1a2   : > { %v2371_v7 = vpop.f32.mrf.mxu0  ;;  %v2836_v46 = vrot.slane %v6366_v20, 5  ;;  %v3590_v54 = vor.u32 %v3589_v28, %v3585_v60  ;;  %v4258_v47 = vrot.slane %v4256_v15, 4  ;;  %v6367_v35 = vld [vmem:[%s6529_s29 + $0x28] sm:$0xf]  ;;  %v8459_v20 = vld [vmem:[#allocation4_spill] sm:$0xff] }
 0x1a3   : > { %v1940_v12 = vpop.f32.mrf.mxu3  ;;  %v3586_v62 = vsel %vm6558_vm2, %v3581_v45, %v3585_v60  ;;  %v2840_v60 = vrot.slane %v6367_v35, 5  ;;  %v6109_v45 = vld [vmem:[%s6529_s29 + $0x24] sm:$0xff] }
 0x1a4   : > { %v1999_v29 = vadd.f32 %v1940_v12, %v1317_v31  ;;  %v7641_v36 = vpop.f32.mrf.mxu1  ;;  %v3982_v31 = vpack.c.b16 %v3951_v52, %v3950_v42  ;;  %v4408_v12 = vpack.c.b16 %v4377_v9, %v4376_v4  ;;  %v3591_v23 = vrot.slane %v3590_v54, 4 }
 0x1a5   : > { %v4257_v52 = vsel %vm6784_vm5, %v5953_v24, %v4256_v15  ;;  %v4260_v9 = vsel %vm6784_vm5, %v4258_v47, %v4259_v44  ;;  %v5938_v44 = vld [vmem:[%s6529_s29 + $0x30] sm:$0xe] }
 0x1a6   : > { %v2428_v40 = vadd.f32 %v2369_v25, %v1999_v29  ;;  %v5633_v25 = vrot.slane %v5617_v0, 9  ;;  %v2837_v29 = vsel %vm6784_vm5, %v2835_v49, %v2836_v46 }
 0x1a7   : > { %v2956_v19 = vunpack.c.l.b16 %v2837_v29  ;;  %v2842_v29 = vrot.slane %v2840_v60, 4 }
 0x1a8   : > { %v1260_v14 = vpop.f32.mrf.mxu2  ;;  %v7663_v39 = vadd.f32 %v2683_v18, %v2428_v40  ;;  %v2834_v18 = vsel %vm6784_vm5, %v5633_v25, %v2833_v34  ;;  %v3595_v40 = vrot.slane %v3593_v27, 5  ;;  %v3601_v34 = vshll.u32 %v5846_v41, 16 }
 0x1a9   : > { %v1318_v57 = vadd.f32 %v1260_v14, %v8457_v22  ;;  %v3607_v22 = vshll.u32 %v7677_v32, 16  ;;  %v3952_v25 = vunpack.c.l.b16 %v3586_v62  ;;  %v4379_v27 = vunpack.c.l.b16 %v4260_v9  ;;  %v5849_v9 = vld [vmem:[%s6529_s29 + $0x3c] sm:$0xf] }
 0x1aa   : > { %v2374_v38 = vpop.f32.mrf.mxu0  ;;  %v3596_v42 = vsel %vm6558_vm2, %v3591_v23, %v3595_v40  ;;  %v3603_v53 = vrot.slane %v3601_v34, 5 }
 0x1ab   : > { %v1942_v58 = vpop.f32.mrf.mxu3 }
 0x1ac   : > { %v2000_v30 = vadd.f32 %v1942_v58, %v1318_v57  ;;  %v2688_v43 = vpop.f32.mrf.mxu1  ;;  %v3611_v57 = vshrl.u32 %v7677_v32, 16 }
 0x1ad   : > { %3073 = vmatmul.bf16.vlgmr.msra.gmra.mxu2 %v7620_v1  ;;  %v8458_v1 = vld [vmem:[#allocation2_spill] sm:$0xff] }
 0x1ae   : > { %v2429_v26 = vadd.f32 %v2371_v7, %v2000_v30  ;;  %4070 = vmatmul.bf16.vlgmr.msra.gmra.mxu0 %v3982_v31  ;;  %v2955_v7 = vunpack.c.l.b16 %v2834_v18  ;;  %v5618_v30 = vld [vmem:[%s6529_s29 + $0x24] sm:$0xe]  ;;  %v3613_v49 = vrot.slane %v3611_v57, 4  ;;  %v3953_v31 = vunpack.c.l.b16 %v3596_v42  ;;  %v5848_v18 = vld [vmem:[%s6529_s29 + $0x38] sm:$0x1] }
 0x1af   : > { %4496 = vmatmul.bf16.vlgmr.msra.gmra.mxu1 %v4408_v12  ;;  %v4378_v12 = vunpack.c.l.b16 %v4257_v52  ;;  %v3617_v41 = vshll.u32 %v5848_v18, 16  ;;  %v8460_v57 = vld [vmem:[#allocation6_spill] sm:$0xff] }
 0x1b0   : > { %3388 = vmatmul.bf16.vlgmr.msra.gmra.mxu3 %v6108_v13  ;;  %v1263_v16 = vpop.f32.mrf.mxu2  ;;  %v7684_v14 = vadd.f32 %v7641_v36, %v2429_v26  ;;  %v2986_v36 = vpack.c.b16 %v2956_v19, %v2955_v7  ;;  %v3600_v13 = vrot.slane %v3598_v2, 4  ;;  %v3983_v24 = vpack.c.b16 %v3953_v31, %v3952_v25 }
 0x1b1   : > { %v1319_v48 = vadd.f32 %v1263_v16, %v8458_v1  ;;  %v5634_v16 = vrot.slane %v5618_v30, 9  ;;  %v6368_v1 = vld [vmem:[%s6529_s29 + $0x2c] sm:$0x1]  ;;  %v4409_v47 = vpack.c.b16 %v4379_v27, %v4378_v12  ;;  %v3622_v31 = vshrl.u32 %v5849_v9, 16 }
 0x1b2   : > { %v2376_v4 = vpop.f32.mrf.mxu0  ;;  %v3604_v7 = vor.u32 %v3603_v53, %v3600_v13  ;;  %v3625_v12 = vshll.u32 %v5849_v9, 16 }
 0x1b3   : > { %v1945_v21 = vpop.f32.mrf.mxu3 }
 0x1b4   : > { %v2001_v3 = vadd.f32 %v1945_v21, %v1319_v48  ;;  %v7679_v0 = vpop.f32.mrf.mxu1  ;;  %v2843_v48 = vrot.slane %v6368_v1, 5  ;;  %v3605_v2 = vrot.slane %v3604_v7, 4  ;;  %v8461_v1 = vld [vmem:[#allocation8_spill] sm:$0xff] }
 0x1b5   : > { %v5619_v7 = vld [vmem:[%s6529_s29 + $0x30] sm:$0xe] }
 0x1b6   : > { %v2430_v58 = vadd.f32 %v2374_v38, %v2001_v3  ;;  %v3609_v38 = vrot.slane %v3607_v22, 5  ;;  %v2841_v3 = vsel %vm6784_vm5, %v5634_v16, %v2840_v60  ;;  %v2844_v19 = vsel %vm6784_vm5, %v2842_v29, %v2843_v48 }
 0x1b7   : > { %v3619_v22 = vrot.slane %v3617_v41, 5  ;;  %v2957_v35 = vunpack.c.l.b16 %v2841_v3  ;;  %v2958_v60 = vunpack.c.l.b16 %v2844_v19  ;;  %v6110_v19 = vld [vmem:[%s6529_s29 + $0x30] sm:$0xff] }
 0x1b8   : > { %v1265_v28 = vpop.f32.mrf.mxu2  ;;  %v7698_v54 = vadd.f32 %v2688_v43, %v2430_v58  ;;  %v3614_v40 = vor.u32 %v3613_v49, %v3609_v38  ;;  %v4263_v43 = vrot.slane %v7677_v32, 5  ;;  %v4266_v32 = vrot.slane %v5848_v18, 5 }
 0x1b9   : > { %v1320_v46 = vadd.f32 %v1265_v28, %v8459_v20  ;;  %v7713_v28 = vld [vmem:[%s6529_s29 + $0x40] sm:$0xf]  ;;  %v3610_v53 = vsel %vm6558_vm2, %v3605_v2, %v3609_v38  ;;  %v2987_v18 = vpack.c.b16 %v2958_v60, %v2957_v35  ;;  %v5851_v2 = vld [vmem:[%s6529_s29 + $0x44] sm:$0x1]  ;;  %v5939_v35 = vld [vmem:[%s6529_s29 + $0x3c] sm:$0xe] }
 0x1ba   : > { %v2379_v21 = vpop.f32.mrf.mxu0  ;;  %v3615_v34 = vrot.slane %v3614_v40, 4  ;;  %v4265_v52 = vrot.slane %v4263_v43, 4  ;;  %v3635_v27 = vshrl.u32 %v7713_v28, 16  ;;  %v6369_v40 = vld [vmem:[%s6529_s29 + $0x34] sm:$0xf]  ;;  %v4270_v60 = vrot.slane %v7713_v28, 5 }
 0x1bb   : > { %v1947_v26 = vpop.f32.mrf.mxu3  ;;  %v2847_v41 = vrot.slane %v6369_v40, 5 }
 0x1bc   : > { %v2002_v15 = vadd.f32 %v1947_v26, %v1320_v46  ;;  %v2693_v63 = vpop.f32.mrf.mxu1  ;;  %v3620_v49 = vsel %vm6558_vm2, %v3615_v34, %v3619_v22  ;;  %v4267_v26 = vsel %vm6784_vm5, %v4265_v52, %v4266_v32  ;;  %v6370_v52 = vld [vmem:[%s6529_s29 + $0x38] sm:$0x1] }
 0x1bd   : > { %3078 = vmatmul.bf16.gmra.mxu2 %v2986_v36  ;;  %v4381_v29 = vunpack.c.l.b16 %v4267_v26  ;;  %v2850_v32 = vrot.slane %v6370_v52, 5  ;;  %v8463_v52 = vld [vmem:[#allocation11_spill] sm:$0xff] }
 0x1be   : > { %v2431_v23 = vadd.f32 %v2376_v4, %v2002_v15  ;;  %v5954_v4 = vrot.slane %v5938_v44, 9  ;;  %4075 = vmatmul.bf16.gmra.mxu0 %v3983_v24  ;;  %v3954_v15 = vunpack.c.l.b16 %v3610_v53  ;;  %v3627_v24 = vrot.slane %v3625_v12, 5 }
 0x1bf   : > { %4501 = vmatmul.bf16.gmra.mxu1 %v4409_v47  ;;  %v3637_v44 = vrot.slane %v3635_v27, 4 }
 0x1c0   : > { %3393 = vmatmul.bf16.gmra.mxu3 %v6109_v45  ;;  %v1268_v62 = vpop.f32.mrf.mxu2  ;;  %v7716_v30 = vadd.f32 %v7679_v0, %v2431_v23  ;;  %v4264_v20 = vsel %vm6784_vm5, %v5954_v4, %v4263_v43  ;;  %v3631_v0 = vshll.u32 %v7713_v28, 16  ;;  %v3955_v45 = vunpack.c.l.b16 %v3620_v49 }
 0x1c1   : > { %v1321_v58 = vadd.f32 %v1268_v62, %v8460_v57  ;;  %v4380_v16 = vunpack.c.l.b16 %v4264_v20  ;;  %v3624_v23 = vrot.slane %v3622_v31, 4  ;;  %v5635_v57 = vrot.slane %v5619_v7, 9  ;;  %v5852_v20 = vld [vmem:[%s6529_s29 + $0x48] sm:$0xf] }
 0x1c2   : > { %v2381_v13 = vpop.f32.mrf.mxu0  ;;  %v3633_v47 = vrot.slane %v3631_v0, 5  ;;  %v3984_v22 = vpack.c.b16 %v3955_v45, %v3954_v15  ;;  %v5955_v0 = vrot.slane %v5939_v35, 9  ;;  %v4272_v28 = vrot.slane %v4270_v60, 4 }
 0x1c3   : > { %v1950_v42 = vpop.f32.mrf.mxu3  ;;  %v4410_v4 = vpack.c.b16 %v4381_v29, %v4380_v16  ;;  %v3628_v9 = vor.u32 %v3627_v24, %v3624_v23  ;;  %v2848_v49 = vsel %vm6784_vm5, %v5635_v57, %v2847_v41  ;;  %v7749_v16 = vld [vmem:[%s6529_s29 + $0x4c] sm:$0xf]  ;;  %v3646_v29 = vshrl.u32 %v5852_v20, 16 }
 0x1c4   : > { %v2003_v36 = vadd.f32 %v1950_v42, %v1321_v58  ;;  %v7710_v25 = vpop.f32.mrf.mxu1  ;;  %v2849_v42 = vrot.slane %v2847_v41, 4  ;;  %v2959_v7 = vunpack.c.l.b16 %v2848_v49  ;;  %v4271_v24 = vsel %vm6784_vm5, %v5955_v0, %v4270_v60 }
 0x1c5   : > { %v3629_v12 = vrot.slane %v3628_v9, 4 }
 0x1c6   : > { %v2432_v46 = vadd.f32 %v2379_v21, %v2003_v36  ;;  %v3638_v36 = vor.u32 %v3637_v44, %v3633_v47  ;;  %v2851_v31 = vsel %vm6784_vm5, %v2849_v42, %v2850_v32 }
 0x1c7   : > { %v2960_v40 = vunpack.c.l.b16 %v2851_v31  ;;  %v3634_v23 = vsel %vm6558_vm2, %v3629_v12, %v3633_v47 }
 0x1c8   : > { %v1270_v38 = vpop.f32.mrf.mxu2  ;;  %v7731_v43 = vadd.f32 %v2693_v63, %v2432_v46  ;;  %v3641_v63 = vshll.u32 %v5851_v2, 16  ;;  %v8462_v46 = vld [vmem:[#allocation10_spill] sm:$0xff]  ;;  %v3639_v27 = vrot.slane %v3638_v36, 4  ;;  %v3956_v57 = vunpack.c.l.b16 %v3634_v23  ;;  %v5940_v23 = vld [vmem:[%s6529_s29 + $0x48] sm:$0xe] }
 0x1c9   : > { %v1322_v48 = vadd.f32 %v1270_v38, %v8461_v1  ;;  %v4273_v38 = vrot.slane %v5851_v2, 5  ;;  %v3649_v1 = vshll.u32 %v5852_v20, 16  ;;  %v5620_v2 = vld [vmem:[%s6529_s29 + $0x3c] sm:$0xe]  ;;  %v2988_v47 = vpack.c.b16 %v2960_v40, %v2959_v7 }
 0x1ca   : > { %v2384_v34 = vpop.f32.mrf.mxu0  ;;  %v5636_v60 = vrot.slane %v5620_v2, 9  ;;  %v4277_v40 = vrot.slane %v7749_v16, 5 }
 0x1cb   : > { %v1952_v21 = vpop.f32.mrf.mxu3 }
 0x1cc   : > { %v2004_v3 = vadd.f32 %v1952_v21, %v1322_v48  ;;  %v7734_v62 = vpop.f32.mrf.mxu1 }
 0x1cd   : > { %3083 = vmatmul.bf16.gmra.mxu2 %v2987_v18  ;;  %v3643_v18 = vrot.slane %v3641_v63, 5  ;;  %v4382_v63 = vunpack.c.l.b16 %v4271_v24 }
 0x1ce   : > { %v2433_v58 = vadd.f32 %v2381_v13, %v2004_v3  ;;  %4080 = vmatmul.bf16.gmra.mxu0 %v3984_v22  ;;  %v4274_v3 = vsel %vm6784_vm5, %v4272_v28, %v4273_v38  ;;  %v3648_v22 = vrot.slane %v3646_v29, 4 }
 0x1cf   : > { %4506 = vmatmul.bf16.gmra.mxu1 %v4410_v4  ;;  %v3644_v44 = vsel %vm6558_vm2, %v3639_v27, %v3643_v18  ;;  %v4383_v35 = vunpack.c.l.b16 %v4274_v3  ;;  %v6372_v27 = vld [vmem:[%s6529_s29 + $0x44] sm:$0x1] }
 0x1d0   : > { %3398 = vmatmul.bf16.gmra.mxu3 %v6110_v19  ;;  %v1273_v53 = vpop.f32.mrf.mxu2  ;;  %v7752_v48 = vadd.f32 %v7710_v25, %v2433_v58  ;;  %v3655_v25 = vshll.u32 %v7749_v16, 16  ;;  %v3659_v19 = vshrl.u32 %v7749_v16, 16  ;;  %v6371_v58 = vld [vmem:[%s6529_s29 + $0x40] sm:$0xf]  ;;  %v3957_v36 = vunpack.c.l.b16 %v3644_v44  ;;  %v8464_v44 = vld [vmem:[#allocation12_spill] sm:$0xff] }
 0x1d1   : > { %v1323_v13 = vadd.f32 %v1273_v53, %v8462_v46  ;;  %v2854_v42 = vrot.slane %v6371_v58, 5  ;;  %v5854_v53 = vld [vmem:[%s6529_s29 + $0x50] sm:$0x1]  ;;  %v2857_v18 = vrot.slane %v6372_v27, 5  ;;  %v4411_v29 = vpack.c.b16 %v4383_v35, %v4382_v63 }
 0x1d2   : > { %v2386_v21 = vpop.f32.mrf.mxu0  ;;  %v3657_v49 = vrot.slane %v3655_v25, 5  ;;  %v3661_v20 = vrot.slane %v3659_v19, 4  ;;  %v4279_v16 = vrot.slane %v4277_v40, 4 }
 0x1d3   : > { %v1955_v26 = vpop.f32.mrf.mxu3  ;;  %v2856_v0 = vrot.slane %v2854_v42, 4 }
 0x1d4   : > { %v2005_v15 = vadd.f32 %v1955_v26, %v1323_v13  ;;  %v7746_v45 = vpop.f32.mrf.mxu1  ;;  %v6111_v26 = vld [vmem:[%s6529_s29 + $0x3c] sm:$0xff]  ;;  %v3662_v7 = vor.u32 %v3661_v20, %v3657_v49 }
 0x1d6   : > { %v2434_v41 = vadd.f32 %v2384_v34, %v2005_v15  ;;  %v3651_v34 = vrot.slane %v3649_v1, 5  ;;  %v3985_v15 = vpack.c.b16 %v3957_v36, %v3956_v57  ;;  %v3665_v1 = vshll.u32 %v5854_v53, 16 }
 0x1d7   : > { %v4280_v57 = vrot.slane %v5854_v53, 5 }
 0x1d8   : > { %v1275_v4 = vpop.f32.mrf.mxu2  ;;  %v7769_v46 = vadd.f32 %v7734_v62, %v2434_v41  ;;  %v3652_v31 = vor.u32 %v3651_v34, %v3648_v22  ;;  %v2855_v62 = vsel %vm6784_vm5, %v5636_v60, %v2854_v42  ;;  %v3667_v2 = vrot.slane %v3665_v1, 5  ;;  %v5855_v22 = vld [vmem:[%s6529_s29 + $0x54] sm:$0xf]  ;;  %v7782_v34 = vld [vmem:[%s6529_s29 + $0x58] sm:$0xf] }
 0x1d9   : > { %v1324_v32 = vadd.f32 %v1275_v4, %v8463_v52  ;;  %v2961_v19 = vunpack.c.l.b16 %v2855_v62  ;;  %v3663_v4 = vrot.slane %v3662_v7, 4  ;;  %v3670_v36 = vshrl.u32 %v5855_v22, 16  ;;  %v8465_v62 = vld [vmem:[#allocation14_spill] sm:$0xff] }
 0x1da   : > { %v2389_v12 = vpop.f32.mrf.mxu0  ;;  %v3653_v41 = vrot.slane %v3652_v31, 4  ;;  %v3673_v63 = vshll.u32 %v5855_v22, 16  ;;  %v3679_v35 = vshll.u32 %v7782_v34, 16  ;;  %v3683_v60 = vshrl.u32 %v7782_v34, 16  ;;  %v6374_v22 = vld [vmem:[%s6529_s29 + $0x50] sm:$0x1] }
 0x1db   : > { %v1957_v9 = vpop.f32.mrf.mxu3  ;;  %v3668_v53 = vsel %vm6558_vm2, %v3663_v4, %v3667_v2  ;;  %v2864_v4 = vrot.slane %v6374_v22, 5 }
 0x1dc   : > { %v2006_v13 = vadd.f32 %v1957_v9, %v1324_v32  ;;  %v2703_v38 = vpop.f32.mrf.mxu1  ;;  %v3658_v52 = vsel %vm6558_vm2, %v3653_v41, %v3657_v49  ;;  %v3685_v1 = vrot.slane %v3683_v60, 4 }
 0x1dd   : > { %3088 = vmatmul.bf16.gmra.mxu2 %v2988_v47  ;;  %v5956_v47 = vrot.slane %v5940_v23, 9  ;;  %v3958_v31 = vunpack.c.l.b16 %v3658_v52 }
 0x1de   : > { %v2435_v28 = vadd.f32 %v2386_v21, %v2006_v13  ;;  %v2858_v21 = vsel %vm6784_vm5, %v2856_v0, %v2857_v18  ;;  %4085 = vmatmul.bf16.gmra.mxu0 %v3985_v15  ;;  %v6373_v0 = vld [vmem:[%s6529_s29 + $0x4c] sm:$0xf]  ;;  %v3675_v15 = vrot.slane %v3673_v63, 5 }
 0x1df   : > { %4511 = vmatmul.bf16.gmra.mxu1 %v4411_v29  ;;  %v2962_v42 = vunpack.c.l.b16 %v2858_v21  ;;  %v2861_v27 = vrot.slane %v6373_v0, 5  ;;  %v3681_v29 = vrot.slane %v3679_v35, 5  ;;  %v5857_v21 = vld [vmem:[%s6529_s29 + $0x5c] sm:$0x1]  ;;  %v5941_v35 = vld [vmem:[%s6529_s29 + $0x54] sm:$0xe] }
 0x1e0   : > { %3403 = vmatmul.bf16.gmra.mxu3 %v6111_v26  ;;  %v1278_v24 = vpop.f32.mrf.mxu2  ;;  %v7787_v32 = vadd.f32 %v7746_v45, %v2435_v28  ;;  %v4278_v26 = vsel %vm6784_vm5, %v5956_v47, %v4277_v40  ;;  %v4281_v45 = vsel %vm6784_vm5, %v4279_v16, %v4280_v57  ;;  %v5621_v28 = vld [vmem:[%s6529_s29 + $0x48] sm:$0xe]  ;;  %v3959_v40 = vunpack.c.l.b16 %v3668_v53 }
 0x1e1   : > { %v1325_v3 = vadd.f32 %v1278_v24, %v8464_v44  ;;  %v2989_v49 = vpack.c.b16 %v2962_v42, %v2961_v19  ;;  %v4384_v23 = vunpack.c.l.b16 %v4278_v26  ;;  %v4385_v24 = vunpack.c.l.b16 %v4281_v45 }
 0x1e2   : > { %v2391_v9 = vpop.f32.mrf.mxu0  ;;  %v5637_v19 = vrot.slane %v5621_v28, 9  ;;  %v2863_v2 = vrot.slane %v2861_v27, 4  ;;  %v3686_v16 = vor.u32 %v3685_v1, %v3681_v29  ;;  %v3689_v57 = vshll.u32 %v5857_v21, 16 }
 0x1e3   : > { %v1960_v25 = vpop.f32.mrf.mxu3  ;;  %v4412_v63 = vpack.c.b16 %v4385_v24, %v4384_v23 }
 0x1e4   : > { %v2007_v58 = vadd.f32 %v1960_v25, %v1325_v3  ;;  %v2705_v13 = vpop.f32.mrf.mxu1  ;;  %v6112_v25 = vld [vmem:[%s6529_s29 + $0x48] sm:$0xff]  ;;  %v2862_v60 = vsel %vm6784_vm5, %v5637_v19, %v2861_v27  ;;  %v3691_v45 = vrot.slane %v3689_v57, 5 }
 0x1e5   : > { %v2963_v1 = vunpack.c.l.b16 %v2862_v60 }
 0x1e6   : > { %v2436_v20 = vadd.f32 %v2389_v12, %v2007_v58  ;;  %v3672_v12 = vrot.slane %v3670_v36, 4  ;;  %v3986_v36 = vpack.c.b16 %v3959_v40, %v3958_v31  ;;  %v8466_v31 = vld [vmem:[#allocation17_spill] sm:$0xff] }
 0x1e8   : > { %v1280_v18 = vpop.f32.mrf.mxu2  ;;  %v7801_v44 = vadd.f32 %v2703_v38, %v2436_v20  ;;  %v3676_v47 = vor.u32 %v3675_v15, %v3672_v12  ;;  %v4284_v38 = vrot.slane %v7782_v34, 5  ;;  %v2865_v20 = vsel %vm6784_vm5, %v2863_v2, %v2864_v4  ;;  %v5858_v12 = vld [vmem:[%s6529_s29 + $0x60] sm:$0xf] }
 0x1e9   : > { %v1326_v7 = vadd.f32 %v1280_v18, %v8465_v62  ;;  %v4287_v34 = vrot.slane %v5857_v21, 5  ;;  %v2964_v27 = vunpack.c.l.b16 %v2865_v20  ;;  %v7814_v62 = vld [vmem:[%s6529_s29 + $0x64] sm:$0xf]  ;;  %v3694_v19 = vshrl.u32 %v5858_v12, 16 }
 0x1ea   : > { %v3677_v26 = vrot.slane %v3676_v47, 4  ;;  %v4286_v28 = vrot.slane %v4284_v38, 4  ;;  %v3697_v2 = vshll.u32 %v5858_v12, 16  ;;  %v3707_v22 = vshrl.u32 %v7814_v62, 16 }
 0x1eb   : > { %v1962_v41 = vpop.f32.mrf.mxu3  ;;  %v2394_v42 = vpop.f32.mrf.mxu0  ;;  %v2990_v4 = vpack.c.b16 %v2964_v27, %v2963_v1  ;;  %v3696_v20 = vrot.slane %v3694_v19, 4 }
 0x1ec   : > { %v2008_v3 = vadd.f32 %v1962_v41, %v1326_v7  ;;  %v2708_v52 = vpop.f32.mrf.mxu1  ;;  %v3682_v7 = vsel %vm6558_vm2, %v3677_v26, %v3681_v29  ;;  %v3703_v29 = vshll.u32 %v7814_v62, 16 }
 0x1ed   : > { %3093 = vmatmul.bf16.gmra.mxu2 %v2989_v49  ;;  %v5957_v49 = vrot.slane %v5941_v35, 9  ;;  %v5622_v35 = vld [vmem:[%s6529_s29 + $0x54] sm:$0xe] }
 0x1ee   : > { %v2437_v58 = vadd.f32 %v2391_v9, %v2008_v3  ;;  %v3687_v9 = vrot.slane %v3686_v16, 4  ;;  %4090 = vmatmul.bf16.gmra.mxu0 %v3986_v36  ;;  %v3960_v16 = vunpack.c.l.b16 %v3682_v7  ;;  %v3705_v26 = vrot.slane %v3703_v29, 5  ;;  %v6376_v7 = vld [vmem:[%s6529_s29 + $0x5c] sm:$0x1] }
 0x1ef   : > { %4516 = vmatmul.bf16.gmra.mxu1 %v4412_v63  ;;  %v4285_v40 = vsel %vm6784_vm5, %v5957_v49, %v4284_v38  ;;  %v6375_v38 = vld [vmem:[%s6529_s29 + $0x58] sm:$0xf] }
 0x1f0   : > { %3408 = vmatmul.bf16.gmra.mxu3 %v6112_v25  ;;  %v1283_v53 = vpop.f32.mrf.mxu2  ;;  %v3692_v41 = vsel %vm6558_vm2, %v3687_v9, %v3691_v45  ;;  %v7822_v23 = vadd.f32 %v2705_v13, %v2437_v58  ;;  %v4288_v25 = vsel %vm6784_vm5, %v4286_v28, %v4287_v34  ;;  %v4386_v57 = vunpack.c.l.b16 %v4285_v40 }
 0x1f1   : > { %v1327_v0 = vadd.f32 %v1283_v53, %v8466_v31  ;;  %v3961_v13 = vunpack.c.l.b16 %v3692_v41  ;;  %v4387_v58 = vunpack.c.l.b16 %v4288_v25  ;;  %v2868_v60 = vrot.slane %v6375_v38, 5  ;;  %v6113_v31 = vld [vmem:[%s6529_s29 + $0x54] sm:$0xff] }
 0x1f2   : > { %v3699_v53 = vrot.slane %v3697_v2, 5  ;;  %v3709_v9 = vrot.slane %v3707_v22, 4  ;;  %v5638_v34 = vrot.slane %v5622_v35, 9  ;;  %v2871_v41 = vrot.slane %v6376_v7, 5  ;;  %v5861_v22 = vld [vmem:[%s6529_s29 + $0x6c] sm:$0xf] }
 0x1f3   : > { %v1965_v18 = vpop.f32.mrf.mxu3  ;;  %v2396_v21 = vpop.f32.mrf.mxu0  ;;  %v4413_v28 = vpack.c.b16 %v4387_v58, %v4386_v57  ;;  %v2870_v27 = vrot.slane %v2868_v60, 4  ;;  %v7845_v35 = vld [vmem:[%s6529_s29 + $0x70] sm:$0xf]  ;;  %v3718_v38 = vshrl.u32 %v5861_v22, 16 }
 0x1f4   : > { %v2009_v15 = vadd.f32 %v1965_v18, %v1327_v0  ;;  %v2710_v3 = vpop.f32.mrf.mxu1  ;;  %v5860_v0 = vld [vmem:[%s6529_s29 + $0x68] sm:$0x1]  ;;  %v3987_v18 = vpack.c.b16 %v3961_v13, %v3960_v16  ;;  %v3700_v40 = vor.u32 %v3699_v53, %v3696_v20  ;;  %v3710_v25 = vor.u32 %v3709_v9, %v3705_v26 }
 0x1f5   : > { %v3713_v19 = vshll.u32 %v5860_v0, 16  ;;  %v2869_v29 = vsel %vm6784_vm5, %v5638_v34, %v2868_v60  ;;  %v2872_v16 = vsel %vm6784_vm5, %v2870_v27, %v2871_v41  ;;  %v3721_v60 = vshll.u32 %v5861_v22, 16 }
 0x1f6   : > { %v2438_v24 = vadd.f32 %v2394_v42, %v2009_v15  ;;  %v8467_v42 = vld [vmem:[#allocation19_spill] sm:$0xff]  ;;  %v3701_v13 = vrot.slane %v3700_v40, 4  ;;  %v3711_v58 = vrot.slane %v3710_v25, 4  ;;  %v2965_v20 = vunpack.c.l.b16 %v2869_v29 }
 0x1f7   : > { %v2966_v53 = vunpack.c.l.b16 %v2872_v16  ;;  %v3720_v7 = vrot.slane %v3718_v38, 4  ;;  %v3723_v41 = vrot.slane %v3721_v60, 5  ;;  %v5863_v16 = vld [vmem:[%s6529_s29 + $0x74] sm:$0x1]  ;;  %v6378_v38 = vld [vmem:[%s6529_s29 + $0x68] sm:$0x1] }
 0x1f8   : > { %v1285_v47 = vpop.f32.mrf.mxu2  ;;  %v7831_v45 = vadd.f32 %v2708_v52, %v2438_v24  ;;  %v5942_v52 = vld [vmem:[%s6529_s29 + $0x60] sm:$0xe]  ;;  %v4291_v24 = vrot.slane %v7814_v62, 5  ;;  %v2878_v60 = vrot.slane %v6378_v38, 5 }
 0x1f9   : > { %v1328_v36 = vadd.f32 %v1285_v47, %v8467_v42  ;;  %v5958_v57 = vrot.slane %v5942_v52, 9  ;;  %v3715_v42 = vrot.slane %v3713_v19, 5  ;;  %v6377_v19 = vld [vmem:[%s6529_s29 + $0x64] sm:$0xf] }
 0x1fa   : > { %v4293_v62 = vrot.slane %v4291_v24, 4  ;;  %v2875_v52 = vrot.slane %v6377_v19, 5 }
 0x1fb   : > { %v1967_v63 = vpop.f32.mrf.mxu3  ;;  %v2399_v15 = vpop.f32.mrf.mxu0  ;;  %v3716_v34 = vsel %vm6558_vm2, %v3711_v58, %v3715_v42 }
 0x1fc   : > { %v2010_v49 = vadd.f32 %v1967_v63, %v1328_v36  ;;  %v2713_v1 = vpop.f32.mrf.mxu1  ;;  %v4294_v36 = vrot.slane %v5860_v0, 5  ;;  %v4292_v0 = vsel %vm6784_vm5, %v5958_v57, %v4291_v24  ;;  %v8469_v24 = vld [vmem:[#allocation23_spill] sm:$0xff]  ;;  %v3963_v22 = vunpack.c.l.b16 %v3716_v34 }
 0x1fd   : > { %3098 = vmatmul.bf16.gmra.mxu2 %v2990_v4 }
 0x1fe   : > { %v2439_v12 = vadd.f32 %v2396_v21, %v2010_v49  ;;  %4095 = vmatmul.bf16.gmra.mxu0 %v3987_v18  ;;  %v8468_v21 = vld [vmem:[#allocation21_spill] sm:$0xff]  ;;  %v4295_v27 = vsel %vm6784_vm5, %v4293_v62, %v4294_v36  ;;  %v6114_v62 = vld [vmem:[%s6529_s29 + $0x60] sm:$0xff]  ;;  %v3724_v36 = vor.u32 %v3723_v41, %v3720_v7 }
 0x1ff   : > { %4521 = vmatmul.bf16.gmra.mxu1 %v4413_v28  ;;  %v3706_v28 = vsel %vm6558_vm2, %v3701_v13, %v3705_v26  ;;  %v2991_v26 = vpack.c.b16 %v2966_v53, %v2965_v20  ;;  %v5864_v41 = vld [vmem:[%s6529_s29 + $0x78] sm:$0xf] }
 0x200   : > { %3413 = vmatmul.bf16.gmra.mxu3 %v6113_v31  ;;  %v1288_v2 = vpop.f32.mrf.mxu2  ;;  %v7847_v9 = vadd.f32 %v2710_v3, %v2439_v12  ;;  %v3727_v3 = vshll.u32 %v7845_v35, 16  ;;  %v3731_v12 = vshrl.u32 %v7845_v35, 16  ;;  %v3962_v25 = vunpack.c.l.b16 %v3706_v28 }
 0x201   : > { %v1329_v4 = vadd.f32 %v1288_v2, %v8468_v21  ;;  %v4388_v21 = vunpack.c.l.b16 %v4292_v0  ;;  %v3737_v0 = vshll.u32 %v5863_v16, 16 }
 0x202   : > { %v3729_v13 = vrot.slane %v3727_v3, 5  ;;  %v3733_v57 = vrot.slane %v3731_v12, 4  ;;  %v3988_v53 = vpack.c.b16 %v3963_v22, %v3962_v25  ;;  %v4298_v3 = vrot.slane %v7845_v35, 5 }
 0x203   : > { %v1970_v47 = vpop.f32.mrf.mxu3  ;;  %v2401_v31 = vpop.f32.mrf.mxu0  ;;  %v3725_v12 = vrot.slane %v3724_v36, 4  ;;  %v3739_v19 = vrot.slane %v3737_v0, 5  ;;  %v4301_v22 = vrot.slane %v5863_v16, 5 }
 0x204   : > { %v2011_v63 = vadd.f32 %v1970_v47, %v1329_v4  ;;  %v7849_v18 = vpop.f32.mrf.mxu1  ;;  %v4389_v4 = vunpack.c.l.b16 %v4295_v27  ;;  %v4300_v35 = vrot.slane %v4298_v3, 4 }
 0x206   : > { %v2440_v49 = vadd.f32 %v2399_v15, %v2011_v63  ;;  %v5623_v15 = vld [vmem:[%s6529_s29 + $0x60] sm:$0xe]  ;;  %v2877_v63 = vrot.slane %v2875_v52, 4  ;;  %v4414_v28 = vpack.c.b16 %v4389_v4, %v4388_v21 }
 0x207   : > { %v5639_v47 = vrot.slane %v5623_v15, 9  ;;  %v5943_v15 = vld [vmem:[%s6529_s29 + $0x6c] sm:$0xe] }
 0x208   : > { %v1290_v40 = vpop.f32.mrf.mxu2  ;;  %v7865_v58 = vadd.f32 %v2713_v1, %v2440_v49  ;;  %v3734_v49 = vor.u32 %v3733_v57, %v3729_v13  ;;  %v3742_v57 = vshrl.u32 %v5864_v41, 16 }
 0x209   : > { %v1330_v2 = vadd.f32 %v1290_v40, %v8469_v24  ;;  %v2876_v1 = vsel %vm6784_vm5, %v5639_v47, %v2875_v52  ;;  %v8471_v40 = vld [vmem:[#allocation25_spill] sm:$0xff]  ;;  %v3730_v47 = vsel %vm6558_vm2, %v3725_v12, %v3729_v13  ;;  %v4302_v13 = vsel %vm6784_vm5, %v4300_v35, %v4301_v22  ;;  %v6115_v35 = vld [vmem:[%s6529_s29 + $0x6c] sm:$0xff] }
 0x20a   : > { %8470 = vst [vmem:[#allocation28_spill] sm:$0xff] %v7865_v58  ;;  %v2967_v25 = vunpack.c.l.b16 %v2876_v1  ;;  %v7878_v24 = vld [vmem:[%s6529_s29 + $0x7c] sm:$0xf]  ;;  %v3964_v1 = vunpack.c.l.b16 %v3730_v47 }
 0x20b   : > { %v1972_v29 = vpop.f32.mrf.mxu3  ;;  %v2404_v34 = vpop.f32.mrf.mxu0  ;;  %v3755_v36 = vshrl.u32 %v7878_v24, 16 }
 0x20c   : > { %v2012_v42 = vadd.f32 %v1972_v29, %v1330_v2  ;;  %v2718_v27 = vpop.f32.mrf.mxu1  ;;  %v3735_v2 = vrot.slane %v3734_v49, 4  ;;  %v5959_v29 = vrot.slane %v5943_v15, 9  ;;  %v6379_v49 = vld [vmem:[%s6529_s29 + $0x70] sm:$0xf] }
 0x20d   : > { %3103 = vmatmul.bf16.gmra.mxu2 %v2991_v26  ;;  %v2882_v12 = vrot.slane %v6379_v49, 5 }
 0x20e   : > { %v2441_v20 = vadd.f32 %v2401_v31, %v2012_v42  ;;  %v2879_v31 = vsel %vm6784_vm5, %v2877_v63, %v2878_v60  ;;  %4100 = vmatmul.bf16.gmra.mxu0 %v3988_v53  ;;  %v3745_v42 = vshll.u32 %v5864_v41, 16  ;;  %v3740_v16 = vsel %vm6558_vm2, %v3735_v2, %v3739_v19  ;;  %v8473_v41 = vld [vmem:[#allocation27_spill] sm:$0xff] }
 0x20f   : > { %4526 = vmatmul.bf16.gmra.mxu1 %v4414_v28  ;;  %v2968_v4 = vunpack.c.l.b16 %v2879_v31  ;;  %v4299_v28 = vsel %vm6784_vm5, %v5959_v29, %v4298_v3  ;;  %v3757_v31 = vrot.slane %v3755_v36, 4  ;;  %v4391_v19 = vunpack.c.l.b16 %v4302_v13 }
 0x210   : > { %3418 = vmatmul.bf16.gmra.mxu3 %v6114_v62  ;;  %v1293_v7 = vpop.f32.mrf.mxu2  ;;  %v3751_v62 = vshll.u32 %v7878_v24, 16  ;;  %v7885_v63 = vadd.f32 %v7849_v18, %v2441_v20  ;;  %v5624_v20 = vld [vmem:[%s6529_s29 + $0x6c] sm:$0xe]  ;;  %v3747_v15 = vrot.slane %v3745_v42, 5  ;;  %v4390_v3 = vunpack.c.l.b16 %v4299_v28 }
 0x211   : > { %v1331_v26 = vadd.f32 %v1293_v7, %v8471_v40  ;;  %v2992_v0 = vpack.c.b16 %v2968_v4, %v2967_v25  ;;  %v5640_v22 = vrot.slane %v5624_v20, 9  ;;  %v2884_v47 = vrot.slane %v2882_v12, 4 }
 0x212   : > { %8472 = vst [vmem:[#allocation31_spill] sm:$0xff] %v7885_v63  ;;  %v3753_v7 = vrot.slane %v3751_v62, 5  ;;  %v4415_v28 = vpack.c.b16 %v4391_v19, %v4390_v3 }
 0x213   : > { %v1975_v52 = vpop.f32.mrf.mxu3  ;;  %v2406_v60 = vpop.f32.mrf.mxu0 }
 0x214   : > { %v2013_v21 = vadd.f32 %v1975_v52, %v1331_v26  ;;  %v2720_v53 = vpop.f32.mrf.mxu1  ;;  %v3965_v26 = vunpack.c.l.b16 %v3740_v16  ;;  %v5866_v52 = vld [vmem:[%s6529_s29 + $0x80] sm:$0x1]  ;;  %v3758_v42 = vor.u32 %v3757_v31, %v3753_v7 }
 0x215   : > { %v3761_v62 = vshll.u32 %v5866_v52, 16  ;;  %v4308_v19 = vrot.slane %v5866_v52, 5 }
 0x216   : > { %v2442_v38 = vadd.f32 %v2404_v34, %v2013_v21  ;;  %v3744_v34 = vrot.slane %v3742_v57, 4  ;;  %v6380_v21 = vld [vmem:[%s6529_s29 + $0x74] sm:$0x1]  ;;  %v3989_v16 = vpack.c.b16 %v3965_v26, %v3964_v1  ;;  %v3759_v31 = vrot.slane %v3758_v42, 4  ;;  %v8475_v1 = vld [vmem:[#allocation30_spill] sm:$0xff] }
 0x217   : > { %v2885_v4 = vrot.slane %v6380_v21, 5 }
 0x218   : > { %v1295_v18 = vpop.f32.mrf.mxu2  ;;  %v7897_v29 = vadd.f32 %v2718_v27, %v2442_v38  ;;  %v3748_v57 = vor.u32 %v3747_v15, %v3744_v34  ;;  %v4305_v27 = vrot.slane %v7878_v24, 5  ;;  %v2883_v38 = vsel %vm6784_vm5, %v5640_v22, %v2882_v12 }
 0x219   : > { %v1332_v40 = vadd.f32 %v1295_v18, %v8473_v41  ;;  %v5944_v18 = vld [vmem:[%s6529_s29 + $0x78] sm:$0xe]  ;;  %v2886_v34 = vsel %vm6784_vm5, %v2884_v47, %v2885_v4  ;;  %v2969_v24 = vunpack.c.l.b16 %v2883_v38 }
 0x21a   : > { %8474 = vst [vmem:[#allocation3_spill] sm:$0xff] %v7897_v29  ;;  %v3749_v15 = vrot.slane %v3748_v57, 4  ;;  %v4307_v3 = vrot.slane %v4305_v27, 4 }
 0x21b   : > { %v1977_v2 = vpop.f32.mrf.mxu3  ;;  %v2409_v13 = vpop.f32.mrf.mxu0 }
 0x21c   : > { %v2014_v25 = vadd.f32 %v1977_v2, %v1332_v40  ;;  %v2723_v49 = vpop.f32.mrf.mxu1  ;;  %v5960_v40 = vrot.slane %v5944_v18, 9  ;;  %v7910_v2 = vld [vmem:[%s6529_s29 + $0x88] sm:$0xf]  ;;  %v3754_v4 = vsel %vm6558_vm2, %v3749_v15, %v3753_v7 }
 0x21d   : > { %3108 = vmatmul.bf16.gmra.mxu2 %v2992_v0  ;;  %v5867_v0 = vld [vmem:[%s6529_s29 + $0x84] sm:$0xf]  ;;  %v3775_v52 = vshll.u32 %v7910_v2, 16 }
 0x21e   : > { %v2443_v36 = vadd.f32 %v2406_v60, %v2014_v25  ;;  %v3763_v60 = vrot.slane %v3761_v62, 5  ;;  %4105 = vmatmul.bf16.gmra.mxu0 %v3989_v16  ;;  %v3766_v22 = vshrl.u32 %v5867_v0, 16  ;;  %v3769_v21 = vshll.u32 %v5867_v0, 16 }
 0x21f   : > { %4531 = vmatmul.bf16.gmra.mxu1 %v4415_v28  ;;  %v4306_v42 = vsel %vm6784_vm5, %v5960_v40, %v4305_v27  ;;  %v4309_v16 = vsel %vm6784_vm5, %v4307_v3, %v4308_v19  ;;  %v6381_v27 = vld [vmem:[%s6529_s29 + $0x7c] sm:$0xf]  ;;  %v5869_v3 = vld [vmem:[%s6529_s29 + $0x8c] sm:$0x1] }
 0x220   : > { %3423 = vmatmul.bf16.gmra.mxu3 %v6115_v35  ;;  %v1298_v20 = vpop.f32.mrf.mxu2  ;;  %v7912_v12 = vadd.f32 %v2720_v53, %v2443_v36  ;;  %v2970_v35 = vunpack.c.l.b16 %v2886_v34  ;;  %v3764_v47 = vsel %vm6558_vm2, %v3759_v31, %v3763_v60  ;;  %v3779_v53 = vshrl.u32 %v7910_v2, 16  ;;  %v8477_v31 = vld [vmem:[#allocation33_spill] sm:$0xff] }
 0x221   : > { %v1333_v41 = vadd.f32 %v1298_v20, %v8475_v1  ;;  %v3768_v28 = vrot.slane %v3766_v22, 4  ;;  %v3771_v18 = vrot.slane %v3769_v21, 5  ;;  %v3967_v20 = vunpack.c.l.b16 %v3764_v47  ;;  %v5625_v1 = vld [vmem:[%s6529_s29 + $0x78] sm:$0xe]  ;;  %v6382_v47 = vld [vmem:[%s6529_s29 + $0x80] sm:$0x1] }
 0x222   : > { %8476 = vst [vmem:[#allocation18_spill] sm:$0xff] %v7912_v12  ;;  %v2993_v7 = vpack.c.b16 %v2970_v35, %v2969_v24  ;;  %v4392_v34 = vunpack.c.l.b16 %v4306_v42  ;;  %v2889_v15 = vrot.slane %v6381_v27, 5  ;;  %v4393_v0 = vunpack.c.l.b16 %v4309_v16  ;;  %v6386_v12 = vld [vmem:[%s6529_s29 + $0x98] sm:$0x1] }
 0x223   : > { %v1980_v26 = vpop.f32.mrf.mxu3  ;;  %v2411_v62 = vpop.f32.mrf.mxu0  ;;  %v3781_v40 = vrot.slane %v3779_v53, 4  ;;  %v3772_v35 = vor.u32 %v3771_v18, %v3768_v28  ;;  %v5641_v21 = vrot.slane %v5625_v1, 9  ;;  %v2892_v42 = vrot.slane %v6382_v47, 5  ;;  %v5945_v28 = vld [vmem:[%s6529_s29 + $0x84] sm:$0xe] }
 0x224   : > { %v2015_v25 = vadd.f32 %v1980_v26, %v1333_v41  ;;  %v2725_v36 = vpop.f32.mrf.mxu1  ;;  %v3777_v41 = vrot.slane %v3775_v52, 5  ;;  %v3785_v52 = vshll.u32 %v5869_v3, 16  ;;  %v5961_v1 = vrot.slane %v5945_v28, 9  ;;  %v6383_v28 = vld [vmem:[%s6529_s29 + $0x88] sm:$0xf] }
 0x225   : > { %v2906_v29 = vrot.slane %v6386_v12, 5 }
 0x226   : > { %v2444_v57 = vadd.f32 %v2409_v13, %v2015_v25  ;;  %v3966_v13 = vunpack.c.l.b16 %v3754_v4  ;;  %v6116_v25 = vld [vmem:[%s6529_s29 + $0x78] sm:$0xff]  ;;  %v2891_v4 = vrot.slane %v2889_v15, 4  ;;  %v3782_v16 = vor.u32 %v3781_v40, %v3777_v41 }
 0x227   : > { %v4315_v40 = vrot.slane %v5869_v3, 5 }
 0x228   : > { %v1300_v38 = vpop.f32.mrf.mxu2  ;;  %v7928_v19 = vadd.f32 %v2723_v49, %v2444_v57  ;;  %v3990_v22 = vpack.c.b16 %v3967_v20, %v3966_v13  ;;  %v4312_v49 = vrot.slane %v7910_v2, 5  ;;  %v3773_v57 = vrot.slane %v3772_v35, 4 }
 0x229   : > { %v1334_v60 = vadd.f32 %v1300_v38, %v8477_v31  ;;  %v4416_v38 = vpack.c.b16 %v4393_v0, %v4392_v34  ;;  %v2890_v13 = vsel %vm6784_vm5, %v5641_v21, %v2889_v15  ;;  %v3787_v20 = vrot.slane %v3785_v52, 5  ;;  %v5870_v34 = vld [vmem:[%s6529_s29 + $0x90] sm:$0xf] }
 0x22a   : > { %8478 = vst [vmem:[#allocation5_spill] sm:$0xff] %v7928_v19  ;;  %v4314_v2 = vrot.slane %v4312_v49, 4  ;;  %v2971_v15 = vunpack.c.l.b16 %v2890_v13  ;;  %v3790_v21 = vshrl.u32 %v5870_v34, 16  ;;  %v4313_v3 = vsel %vm6784_vm5, %v5961_v1, %v4312_v49 }
 0x22b   : > { %v1982_v26 = vpop.f32.mrf.mxu3  ;;  %v4071_v53 = vpop.f32.mrf.mxu0  ;;  %v4394_v1 = vunpack.c.l.b16 %v4313_v3 }
 0x22c   : > { %v2016_v24 = vadd.f32 %v1982_v26, %v1334_v60  ;;  %v7932_v31 = vpop.f32.mrf.mxu1  ;;  %v7942_v60 = vld [vmem:[%s6529_s29 + $0x94] sm:$0xf] }
 0x22d   : > { %3113 = vmatmul.bf16.gmra.mxu2 %v2993_v7  ;;  %v3783_v7 = vrot.slane %v3782_v16, 4  ;;  %v3799_v47 = vshll.u32 %v7942_v60, 16  ;;  %v4319_v3 = vrot.slane %v7942_v60, 5 }
 0x22e   : > { %v2445_v27 = vadd.f32 %v2411_v62, %v2016_v24  ;;  %v2893_v62 = vsel %vm6784_vm5, %v2891_v4, %v2892_v42  ;;  %4110 = vmatmul.bf16.gmra.mxu0 %v3990_v22  ;;  %v8480_v24 = vld [vmem:[#allocation35_spill] sm:$0xff]  ;;  %v3778_v22 = vsel %vm6558_vm2, %v3773_v57, %v3777_v41  ;;  %v3793_v4 = vshll.u32 %v5870_v34, 16 }
 0x22f   : > { %4536 = vmatmul.bf16.gmra.mxu1 %v4416_v38  ;;  %v2972_v35 = vunpack.c.l.b16 %v2893_v62  ;;  %v3803_v42 = vshrl.u32 %v7942_v60, 16  ;;  %v3968_v57 = vunpack.c.l.b16 %v3778_v22  ;;  %v5626_v62 = vld [vmem:[%s6529_s29 + $0x84] sm:$0xe]  ;;  %v3792_v34 = vrot.slane %v3790_v21, 4  ;;  %v6384_v22 = vld [vmem:[%s6529_s29 + $0x8c] sm:$0x1] }
 0x230   : > { %3428 = vmatmul.bf16.gmra.mxu3 %v6116_v25  ;;  %v3074_v18 = vpop.f32.mrf.mxu2  ;;  %v7944_v26 = vadd.f32 %v2725_v36, %v2445_v27  ;;  %v3788_v36 = vsel %vm6558_vm2, %v3783_v7, %v3787_v20  ;;  %v4316_v27 = vsel %vm6784_vm5, %v4314_v2, %v4315_v40  ;;  %v3801_v10 = vrot.slane %v3799_v47, 5  ;;  %v8481_v20 = vld [vmem:[#allocation36_spill] sm:$0xff]  ;;  %v5872_v2 = vld [vmem:[%s6529_s29 + $0x98] sm:$0x1] }
 0x231   : > { %v3154_v25 = vadd.f32 %v3074_v18, %v8480_v24  ;;  %v2994_v52 = vpack.c.b16 %v2972_v35, %v2971_v15  ;;  %v2896_v18 = vrot.slane %v6383_v28, 5  ;;  %v3795_v24 = vrot.slane %v3793_v4, 5  ;;  %v6117_v15 = vld [vmem:[%s6529_s29 + $0x84] sm:$0xff] }
 0x232   : > { %8479 = vst [vmem:[#allocation7_spill] sm:$0xff] %v7944_v26  ;;  %v3805_v7 = vrot.slane %v3803_v42, 4  ;;  %v3969_v49 = vunpack.c.l.b16 %v3788_v36  ;;  %v4395_v26 = vunpack.c.l.b16 %v4316_v27  ;;  %v5642_v35 = vrot.slane %v5626_v62, 9 }
 0x233   : > { %v3389_v0 = vpop.f32.mrf.mxu3  ;;  %v4073_v38 = vpop.f32.mrf.mxu0  ;;  %v2899_v28 = vrot.slane %v6384_v22, 5  ;;  %v2898_v19 = vrot.slane %v2896_v18, 4  ;;  %v3796_v21 = vor.u32 %v3795_v24, %v3792_v34  ;;  %v3809_v47 = vshll.u32 %v5872_v2, 16 }
 0x234   : > { %v4499_v16 = vpop.f32.mrf.mxu1  ;;  %v3469_v41 = vadd.f32 %v3389_v0, %v3154_v25  ;;  %v3806_v4 = vor.u32 %v3805_v7, %v3801_v10  ;;  %v4417_v36 = vpack.c.b16 %v4395_v26, %v4394_v1  ;;  %v2897_v62 = vsel %vm6784_vm5, %v5642_v35, %v2896_v18  ;;  %v8482_v7 = vld [vmem:[#allocation37_spill] sm:$0xff] }
 0x235   : > { %v2900_v26 = vsel %vm6784_vm5, %v2898_v19, %v2899_v28  ;;  %v4321_v18 = vrot.slane %v4319_v3, 4  ;;  %v4322_v34 = vrot.slane %v5872_v2, 5  ;;  %v2973_v1 = vunpack.c.l.b16 %v2897_v62 }
 0x236   : > { %v4151_v0 = vadd.f32 %v4071_v53, %v3469_v41 }
 0x237   : > { %v4323_v2 = vsel %vm6784_vm5, %v4321_v18, %v4322_v34 }
 0x238   : > { %v3076_v13 = vpop.f32.mrf.mxu2  ;;  %v7968_v53 = vadd.f32 %v7932_v31, %v4151_v0  ;;  %v3807_v31 = vrot.slane %v3806_v4, 4 }
 0x239   : > { %v3155_v5 = vadd.f32 %v3076_v13, %v8481_v20  ;;  %v3991_v13 = vpack.c.b16 %v3969_v49, %v3968_v57 }
 0x23b   : > { %v3391_v40 = vpop.f32.mrf.mxu3  ;;  %v4076_v27 = vpop.f32.mrf.mxu0 }
 0x23c   : > { %v3470_v25 = vadd.f32 %v3391_v40, %v3155_v5  ;;  %v7964_v20 = vpop.f32.mrf.mxu1  ;;  %v5946_v5 = vld [vmem:[%s6529_s29 + $0x90] sm:$0xe]  ;;  %v2974_v40 = vunpack.c.l.b16 %v2900_v26 }
 0x23d   : > { %3118 = vmatmul.bf16.gmra.mxu2 %v2994_v52  ;;  %v5962_v57 = vrot.slane %v5946_v5, 9  ;;  %v5627_v26 = vld [vmem:[%s6529_s29 + $0x90] sm:$0xe] }
 0x23e   : > { %v4152_v42 = vadd.f32 %v4073_v38, %v3470_v25  ;;  %v3797_v38 = vrot.slane %v3796_v21, 4  ;;  %4115 = vmatmul.bf16.gmra.mxu0 %v3991_v13  ;;  %v5873_v25 = vld [vmem:[%s6529_s29 + $0x9c] sm:$0xf]  ;;  %v2995_v13 = vpack.c.b16 %v2974_v40, %v2973_v1  ;;  %v6118_v40 = vld [vmem:[%s6529_s29 + $0x90] sm:$0xff] }
 0x23f   : > { %4541 = vmatmul.bf16.gmra.mxu1 %v4417_v36  ;;  %v4320_v35 = vsel %vm6784_vm5, %v5962_v57, %v4319_v3  ;;  %v3814_v22 = vshrl.u32 %v5873_v25, 16  ;;  %v3817_v28 = vshll.u32 %v5873_v25, 16 }
 0x240   : > { %v7970_v41 = vadd.f32 %v4499_v16, %v4152_v42  ;;  %3433 = vmatmul.bf16.gmra.mxu3 %v6117_v15  ;;  %v3079_v60 = vpop.f32.mrf.mxu2  ;;  %v3811_v16 = vrot.slane %v3809_v47, 5  ;;  %v3802_v19 = vsel %vm6558_vm2, %v3797_v38, %v3801_v10  ;;  %v7993_v15 = vld [vmem:[%s6529_s29 + $0xa0] sm:$0xf]  ;;  %v4396_v3 = vunpack.c.l.b16 %v4320_v35  ;;  %v6385_v38 = vld [vmem:[%s6529_s29 + $0x94] sm:$0xf] }
 0x241   : > { %v3156_v49 = vadd.f32 %v3079_v60, %v8482_v7  ;;  %v3823_v10 = vshll.u32 %v7993_v15, 16  ;;  %v3827_v47 = vshrl.u32 %v7993_v15, 16  ;;  %v3970_v36 = vunpack.c.l.b16 %v3802_v19 }
 0x242   : > { %v6151_v52 = vpack.c.bf16 %v7970_v41, %v7968_v53  ;;  %v3812_v0 = vsel %vm6558_vm2, %v3807_v31, %v3811_v16  ;;  %v4397_v60 = vunpack.c.l.b16 %v4323_v2  ;;  %v2903_v31 = vrot.slane %v6385_v38, 5 }
 0x243   : > { %v3394_v24 = vpop.f32.mrf.mxu3  ;;  %v4078_v21 = vpop.f32.mrf.mxu0  ;;  %v3971_v5 = vunpack.c.l.b16 %v3812_v0  ;;  %v3816_v16 = vrot.slane %v3814_v22, 4  ;;  %v3819_v18 = vrot.slane %v3817_v28, 5  ;;  %v3825_v34 = vrot.slane %v3823_v10, 5 }
 0x244   : > { %6152 = vst [vmem:[%s7979_s23] sm:$0xff] %v6151_v52   ;;  %v4504_v4 = vpop.f32.mrf.mxu1  ;;  %v3471_v42 = vadd.f32 %v3394_v24, %v3156_v49  ;;  %v8483_v52 = vld [vmem:[#allocation38_spill] sm:$0xff]  ;;  %v3829_v7 = vrot.slane %v3827_v47, 4  ;;  %v5643_v0 = vrot.slane %v5627_v26, 9  ;;  %v4418_v35 = vpack.c.b16 %v4397_v60, %v4396_v3  ;;  %v5947_v47 = vld [vmem:[%s6529_s29 + $0x9c] sm:$0xe] }
 0x245   : > { %v5875_v24 = vld [vmem:[%s6529_s29 + $0xa4] sm:$0x1]  ;;  %v3992_v19 = vpack.c.b16 %v3971_v5, %v3970_v36  ;;  %v2905_v2 = vrot.slane %v2903_v31, 4  ;;  %v4326_v38 = vrot.slane %v7993_v15, 5 }
 0x246   : > { %v4153_v49 = vadd.f32 %v4076_v27, %v3471_v42  ;;  %v3830_v28 = vor.u32 %v3829_v7, %v3825_v34  ;;  %v3833_v10 = vshll.u32 %v5875_v24, 16  ;;  %v2904_v12 = vsel %vm6784_vm5, %v5643_v0, %v2903_v31  ;;  %v5876_v7 = vld [vmem:[%s6529_s29 + $0xa8] sm:$0xf] }
 0x247   : > { %v4328_v36 = vrot.slane %v4326_v38, 4  ;;  %v4329_v5 = vrot.slane %v5875_v24, 5 }
 0x248   : > { %v3081_v62 = vpop.f32.mrf.mxu2  ;;  %v8012_v27 = vadd.f32 %v7964_v20, %v4153_v49  ;;  %v3831_v3 = vrot.slane %v3830_v28, 4  ;;  %v3835_v60 = vrot.slane %v3833_v10, 5 }
 0x249   : > { %v3157_v57 = vadd.f32 %v3081_v62, %v8483_v52  ;;  %v3820_v62 = vor.u32 %v3819_v18, %v3816_v16  ;;  %v2975_v16 = vunpack.c.l.b16 %v2904_v12  ;;  %v4330_v18 = vsel %vm6784_vm5, %v4328_v36, %v4329_v5  ;;  %v6387_v12 = vld [vmem:[%s6529_s29 + $0xa0] sm:$0xf] }
 0x24a   : > { %v3836_v49 = vsel %vm6558_vm2, %v3831_v3, %v3835_v60  ;;  %v5878_v3 = vld [vmem:[%s6529_s29 + $0xb0] sm:$0x1] }
 0x24b   : > { %v3396_v25 = vpop.f32.mrf.mxu3  ;;  %v4081_v52 = vpop.f32.mrf.mxu0  ;;  %v3973_v10 = vunpack.c.l.b16 %v3836_v49 }
 0x24c   : > { %v3472_v1 = vadd.f32 %v3396_v25, %v3157_v57  ;;  %v8009_v63 = vpop.f32.mrf.mxu1  ;;  %v8030_v25 = vld [vmem:[%s6529_s29 + $0xac] sm:$0xf] }
 0x24d   : > { %3123 = vmatmul.bf16.gmra.mxu2 %v2995_v13  ;;  %v5963_v13 = vrot.slane %v5947_v47, 9  ;;  %v3847_v0 = vshll.u32 %v8030_v25, 16  ;;  %v5628_v47 = vld [vmem:[%s6529_s29 + $0x9c] sm:$0xe]  ;;  %v4333_v49 = vrot.slane %v8030_v25, 5 }
 0x24e   : > { %v4154_v22 = vadd.f32 %v4078_v21, %v3472_v1  ;;  %v2907_v21 = vsel %vm6784_vm5, %v2905_v2, %v2906_v29  ;;  %4120 = vmatmul.bf16.gmra.mxu0 %v3992_v19  ;;  %v3841_v1 = vshll.u32 %v5876_v7, 16 }
 0x24f   : > { %4546 = vmatmul.bf16.gmra.mxu1 %v4418_v35  ;;  %v2976_v57 = vunpack.c.l.b16 %v2907_v21  ;;  %v4327_v29 = vsel %vm6784_vm5, %v5963_v13, %v4326_v38  ;;  %v3851_v35 = vshrl.u32 %v8030_v25, 16  ;;  %v3849_v5 = vrot.slane %v3847_v0, 5 }
 0x250   : > { %v8014_v42 = vadd.f32 %v4504_v4, %v4154_v22  ;;  %3438 = vmatmul.bf16.gmra.mxu3 %v6118_v40  ;;  %v3084_v15 = vpop.f32.mrf.mxu2  ;;  %v3821_v4 = vrot.slane %v3820_v62, 4  ;;  %v4398_v22 = vunpack.c.l.b16 %v4327_v29  ;;  %v4399_v62 = vunpack.c.l.b16 %v4330_v18 }
 0x251   : > { %v3158_v31 = vadd.f32 %v3084_v15, %v7430_v56  ;;  %v3838_v56 = vshrl.u32 %v5876_v7, 16  ;;  %v2996_v38 = vpack.c.b16 %v2976_v57, %v2975_v16  ;;  %v2910_v15 = vrot.slane %v6387_v12, 5  ;;  %v6388_v7 = vld [vmem:[%s6529_s29 + $0xa4] sm:$0x1] }
 0x252   : > { %v6156_v20 = vpack.c.bf16 %v8014_v42, %v8012_v27  ;;  %v3826_v24 = vsel %vm6558_vm2, %v3821_v4, %v3825_v34  ;;  %v3843_v36 = vrot.slane %v3841_v1, 5  ;;  %v4419_v16 = vpack.c.b16 %v4399_v62, %v4398_v22 }
 0x253   : > { %v3399_v26 = vpop.f32.mrf.mxu3  ;;  %v4083_v40 = vpop.f32.mrf.mxu0  ;;  %v3972_v34 = vunpack.c.l.b16 %v3826_v24  ;;  %v3840_v21 = vrot.slane %v3838_v56, 4  ;;  %v5644_v57 = vrot.slane %v5628_v47, 9  ;;  %v2912_v18 = vrot.slane %v2910_v15, 4 }
 0x254   : > { %6308 = vst [vmem:[%s7979_s23 + $0x8] sm:$0xff] %v6156_v20   ;;  %v4509_v19 = vpop.f32.mrf.mxu1  ;;  %v3473_v2 = vadd.f32 %v3399_v26, %v3158_v31  ;;  %v3853_v20 = vrot.slane %v3851_v35, 4  ;;  %v6119_v31 = vld [vmem:[%s6529_s29 + $0x9c] sm:$0xff]  ;;  %v2913_v24 = vrot.slane %v6388_v7, 5  ;;  %v3857_v0 = vshll.u32 %v5878_v3, 16 }
 0x255   : > { %v3993_v29 = vpack.c.b16 %v3973_v10, %v3972_v34  ;;  %v5948_v35 = vld [vmem:[%s6529_s29 + $0xa8] sm:$0xe]  ;;  %v2911_v22 = vsel %vm6784_vm5, %v5644_v57, %v2910_v15  ;;  %v4335_v62 = vrot.slane %v4333_v49, 4  ;;  %v4336_v34 = vrot.slane %v5878_v3, 5  ;;  %v5879_v3 = vld [vmem:[%s6529_s29 + $0xb4] sm:$0xf] }
 0x256   : > { %v4155_v60 = vadd.f32 %v4081_v52, %v3473_v2  ;;  %v3854_v1 = vor.u32 %v3853_v20, %v3849_v5  ;;  %v3859_v47 = vrot.slane %v3857_v0, 5 }
 0x258   : > { %v3086_v28 = vpop.f32.mrf.mxu2  ;;  %v8049_v52 = vadd.f32 %v8009_v63, %v4155_v60  ;;  %v3855_v10 = vrot.slane %v3854_v1, 4  ;;  %v8067_v60 = vld [vmem:[%s6529_s29 + $0xb8] sm:$0xf] }
 0x259   : > { %v3159_v13 = vadd.f32 %v3086_v28, %v7440_v51  ;;  %v3844_v51 = vor.u32 %v3843_v36, %v3840_v21  ;;  %v3875_v7 = vshrl.u32 %v8067_v60, 16 }
 0x25b   : > { %v3401_v4 = vpop.f32.mrf.mxu3  ;;  %v4086_v28 = vpop.f32.mrf.mxu0 }
 0x25c   : > { %v3474_v26 = vadd.f32 %v3401_v4, %v3159_v13  ;;  %v8046_v12 = vpop.f32.mrf.mxu1  ;;  %v2977_v13 = vunpack.c.l.b16 %v2911_v22  ;;  %v4337_v4 = vsel %vm6784_vm5, %v4335_v62, %v4336_v34  ;;  %v6389_v22 = vld [vmem:[%s6529_s29 + $0xac] sm:$0xf] }
 0x25d   : > { %3128 = vmatmul.bf16.gmra.mxu2 %v2996_v38  ;;  %v5964_v38 = vrot.slane %v5948_v35, 9  ;;  %v5629_v35 = vld [vmem:[%s6529_s29 + $0xa8] sm:$0xe] }
 0x25e   : > { %v4156_v56 = vadd.f32 %v4083_v40, %v3474_v26  ;;  %v2914_v40 = vsel %vm6784_vm5, %v2912_v18, %v2913_v24  ;;  %4125 = vmatmul.bf16.gmra.mxu0 %v3993_v29  ;;  %v3871_v18 = vshll.u32 %v8067_v60, 16 }
 0x25f   : > { %4551 = vmatmul.bf16.gmra.mxu1 %v4419_v16  ;;  %v2978_v36 = vunpack.c.l.b16 %v2914_v40  ;;  %v4334_v20 = vsel %vm6784_vm5, %v5964_v38, %v4333_v49  ;;  %v3865_v16 = vshll.u32 %v5879_v3, 16 }
 0x260   : > { %v8051_v2 = vadd.f32 %v4509_v19, %v4156_v56  ;;  %3443 = vmatmul.bf16.gmra.mxu3 %v6119_v31  ;;  %v3089_v25 = vpop.f32.mrf.mxu2  ;;  %v3845_v19 = vrot.slane %v3844_v51, 4  ;;  %v3860_v31 = vsel %vm6558_vm2, %v3855_v10, %v3859_v47  ;;  %v4400_v56 = vunpack.c.l.b16 %v4334_v20  ;;  %v5881_v10 = vld [vmem:[%s6529_s29 + $0xbc] sm:$0x1] }
 0x261   : > { %v3160_v15 = vadd.f32 %v3089_v25, %v7445_v6  ;;  %v3862_v6 = vshrl.u32 %v5879_v3, 16  ;;  %v2997_v49 = vpack.c.b16 %v2978_v36, %v2977_v13  ;;  %v4401_v51 = vunpack.c.l.b16 %v4337_v4  ;;  %v6390_v3 = vld [vmem:[%s6529_s29 + $0xb0] sm:$0x1] }
 0x262   : > { %v6161_v63 = vpack.c.bf16 %v8051_v2, %v8049_v52  ;;  %v3850_v26 = vsel %vm6558_vm2, %v3845_v19, %v3849_v5  ;;  %v3975_v0 = vunpack.c.l.b16 %v3860_v31  ;;  %v2917_v25 = vrot.slane %v6389_v22, 5 }
 0x263   : > { %v3404_v21 = vpop.f32.mrf.mxu3  ;;  %v4088_v57 = vpop.f32.mrf.mxu0  ;;  %v3974_v5 = vunpack.c.l.b16 %v3850_v26  ;;  %v3864_v40 = vrot.slane %v3862_v6, 4  ;;  %v3867_v62 = vrot.slane %v3865_v16, 5  ;;  %v3873_v34 = vrot.slane %v3871_v18, 5 }
 0x264   : > { %6309 = vst [vmem:[%s7979_s23 + $0x10] sm:$0xff] %v6161_v63   ;;  %v4514_v29 = vpop.f32.mrf.mxu1  ;;  %v3475_v24 = vadd.f32 %v3404_v21, %v3160_v15  ;;  %v3877_v63 = vrot.slane %v3875_v7, 4  ;;  %v6120_v15 = vld [vmem:[%s6529_s29 + $0xa8] sm:$0xff]  ;;  %v4420_v13 = vpack.c.b16 %v4401_v51, %v4400_v56  ;;  %v5645_v36 = vrot.slane %v5629_v35, 9  ;;  %v5949_v7 = vld [vmem:[%s6529_s29 + $0xb4] sm:$0xe] }
 0x265   : > { %v3994_v20 = vpack.c.b16 %v3975_v0, %v3974_v5  ;;  %v2919_v4 = vrot.slane %v2917_v25, 4  ;;  %v2920_v26 = vrot.slane %v6390_v3, 5  ;;  %v4340_v31 = vrot.slane %v8067_v60, 5 }
 0x266   : > { %v4157_v47 = vadd.f32 %v4086_v28, %v3475_v24  ;;  %v3878_v16 = vor.u32 %v3877_v63, %v3873_v34  ;;  %v3881_v18 = vshll.u32 %v5881_v10, 16  ;;  %v2918_v56 = vsel %vm6784_vm5, %v5645_v36, %v2917_v25 }
 0x267   : > { %v4342_v51 = vrot.slane %v4340_v31, 4  ;;  %v4343_v5 = vrot.slane %v5881_v10, 5  ;;  %v5882_v10 = vld [vmem:[%s6529_s29 + $0xc0] sm:$0xf] }
 0x268   : > { %v3091_v1 = vpop.f32.mrf.mxu2  ;;  %v8086_v28 = vadd.f32 %v8046_v12, %v4157_v47  ;;  %v3879_v0 = vrot.slane %v3878_v16, 4  ;;  %v3883_v35 = vrot.slane %v3881_v18, 5  ;;  %v8104_v47 = vld [vmem:[%s6529_s29 + $0xc4] sm:$0xf] }
 0x269   : > { %v3161_v38 = vadd.f32 %v3091_v1, %v7449_v50  ;;  %v3868_v50 = vor.u32 %v3867_v62, %v3864_v40  ;;  %v3899_v3 = vshrl.u32 %v8104_v47, 16 }
 0x26b   : > { %v3406_v19 = vpop.f32.mrf.mxu3  ;;  %v4091_v1 = vpop.f32.mrf.mxu0 }
 0x26c   : > { %v3476_v21 = vadd.f32 %v3406_v19, %v3161_v38  ;;  %v8083_v22 = vpop.f32.mrf.mxu1  ;;  %v2979_v38 = vunpack.c.l.b16 %v2918_v56  ;;  %v4344_v19 = vsel %vm6784_vm5, %v4342_v51, %v4343_v5  ;;  %v6391_v56 = vld [vmem:[%s6529_s29 + $0xb8] sm:$0xf]  ;;  %v5884_v51 = vld [vmem:[%s6529_s29 + $0xc8] sm:$0x1] }
 0x26d   : > { %3133 = vmatmul.bf16.gmra.mxu2 %v2997_v49  ;;  %v5965_v49 = vrot.slane %v5949_v7, 9  ;;  %v5630_v7 = vld [vmem:[%s6529_s29 + $0xb4] sm:$0xe] }
 0x26e   : > { %v4158_v6 = vadd.f32 %v4088_v57, %v3476_v21  ;;  %v2921_v57 = vsel %vm6784_vm5, %v2919_v4, %v2920_v26  ;;  %4130 = vmatmul.bf16.gmra.mxu0 %v3994_v20  ;;  %v3895_v4 = vshll.u32 %v8104_v47, 16 }
 0x26f   : > { %4556 = vmatmul.bf16.gmra.mxu1 %v4420_v13  ;;  %v2980_v62 = vunpack.c.l.b16 %v2921_v57  ;;  %v4341_v63 = vsel %vm6784_vm5, %v5965_v49, %v4340_v31  ;;  %v3889_v13 = vshll.u32 %v5882_v10, 16 }
 0x270   : > { %v8088_v24 = vadd.f32 %v4514_v29, %v4158_v6  ;;  %3448 = vmatmul.bf16.gmra.mxu3 %v6120_v15  ;;  %v3094_v60 = vpop.f32.mrf.mxu2  ;;  %v3869_v29 = vrot.slane %v3868_v50, 4  ;;  %v3884_v15 = vsel %vm6558_vm2, %v3879_v0, %v3883_v35  ;;  %v4402_v6 = vunpack.c.l.b16 %v4341_v63 }
 0x271   : > { %v3162_v25 = vadd.f32 %v3094_v60, %v7454_v61  ;;  %v3886_v61 = vshrl.u32 %v5882_v10, 16  ;;  %v2998_v31 = vpack.c.b16 %v2980_v62, %v2979_v38  ;;  %v4403_v50 = vunpack.c.l.b16 %v4344_v19  ;;  %v6392_v19 = vld [vmem:[%s6529_s29 + $0xbc] sm:$0x1] }
 0x272   : > { %v6166_v12 = vpack.c.bf16 %v8088_v24, %v8086_v28  ;;  %v3874_v21 = vsel %vm6558_vm2, %v3869_v29, %v3873_v34  ;;  %v3977_v18 = vunpack.c.l.b16 %v3884_v15  ;;  %v2924_v60 = vrot.slane %v6391_v56, 5 }
 0x273   : > { %v3409_v40 = vpop.f32.mrf.mxu3  ;;  %v4093_v36 = vpop.f32.mrf.mxu0  ;;  %v3976_v34 = vunpack.c.l.b16 %v3874_v21  ;;  %v3888_v57 = vrot.slane %v3886_v61, 4  ;;  %v3891_v5 = vrot.slane %v3889_v13, 5  ;;  %v3901_v29 = vrot.slane %v3899_v3, 4 }
 0x274   : > { %6310 = vst [vmem:[%s7979_s23 + $0x18] sm:$0xff] %v6166_v12   ;;  %v4519_v20 = vpop.f32.mrf.mxu1  ;;  %v3477_v26 = vadd.f32 %v3409_v40, %v3162_v25  ;;  %v3897_v12 = vrot.slane %v3895_v4, 5  ;;  %v6121_v25 = vld [vmem:[%s6529_s29 + $0xb4] sm:$0xff]  ;;  %v4421_v38 = vpack.c.b16 %v4403_v50, %v4402_v6  ;;  %v5646_v62 = vrot.slane %v5630_v7, 9  ;;  %v5950_v4 = vld [vmem:[%s6529_s29 + $0xc0] sm:$0xe] }
 0x275   : > { %v2926_v63 = vrot.slane %v2924_v60, 4  ;;  %v2927_v10 = vrot.slane %v6392_v19, 5  ;;  %v3905_v21 = vshll.u32 %v5884_v51, 16  ;;  %v4347_v15 = vrot.slane %v8104_v47, 5 }
 0x276   : > { %v4159_v35 = vadd.f32 %v4091_v1, %v3477_v26  ;;  %v3902_v13 = vor.u32 %v3901_v29, %v3897_v12  ;;  %v2925_v6 = vsel %vm6784_vm5, %v5646_v62, %v2924_v60  ;;  %v5966_v50 = vrot.slane %v5950_v4, 9  ;;  %v5885_v29 = vld [vmem:[%s6529_s29 + $0xcc] sm:$0xf] }
 0x277   : > { %v4350_v7 = vrot.slane %v5884_v51, 5  ;;  %v3910_v62 = vshrl.u32 %v5885_v29, 16 }
 0x278   : > { %v3096_v16 = vpop.f32.mrf.mxu2  ;;  %v8123_v1 = vadd.f32 %v8083_v22, %v4159_v35 }
 0x279   : > { %v3163_v49 = vadd.f32 %v3096_v16, %v7476_v55  ;;  %v3995_v55 = vpack.c.b16 %v3977_v18, %v3976_v34  ;;  %v3892_v16 = vor.u32 %v3891_v5, %v3888_v57  ;;  %v4349_v34 = vrot.slane %v4347_v15, 4 }
 0x27a   : > { %v3903_v18 = vrot.slane %v3902_v13, 4 }
 0x27b   : > { %v3411_v0 = vpop.f32.mrf.mxu3  ;;  %v4096_v3 = vpop.f32.mrf.mxu0  ;;  %v4351_v51 = vsel %vm6784_vm5, %v4349_v34, %v4350_v7  ;;  %v3912_v34 = vrot.slane %v3910_v62, 4 }
 0x27c   : > { %v3478_v40 = vadd.f32 %v3411_v0, %v3163_v49  ;;  %v8120_v56 = vpop.f32.mrf.mxu1  ;;  %v2981_v49 = vunpack.c.l.b16 %v2925_v6  ;;  %v8137_v0 = vld [vmem:[%s6529_s29 + $0xd0] sm:$0xf]  ;;  %v5631_v6 = vld [vmem:[%s6529_s29 + $0xc0] sm:$0xe] }
 0x27d   : > { %3138 = vmatmul.bf16.gmra.mxu2 %v2998_v31  ;;  %v3907_v31 = vrot.slane %v3905_v21, 5  ;;  %v3919_v19 = vshll.u32 %v8137_v0, 16 }
 0x27e   : > { %v4160_v61 = vadd.f32 %v4093_v36, %v3478_v40  ;;  %v2928_v36 = vsel %vm6784_vm5, %v2926_v63, %v2927_v10  ;;  %4135 = vmatmul.bf16.gmra.mxu0 %v3995_v55  ;;  %v3913_v63 = vshll.u32 %v5885_v29, 16 }
 0x27f   : > { %4561 = vmatmul.bf16.gmra.mxu1 %v4421_v38  ;;  %v2982_v5 = vunpack.c.l.b16 %v2928_v36  ;;  %v3908_v40 = vsel %vm6558_vm2, %v3903_v18, %v3907_v31 }
 0x280   : > { %v8125_v26 = vadd.f32 %v4519_v20, %v4160_v61  ;;  %3453 = vmatmul.bf16.gmra.mxu3 %v6121_v25  ;;  %v3099_v47 = vpop.f32.mrf.mxu2  ;;  %v3893_v20 = vrot.slane %v3892_v16, 4  ;;  %v4348_v25 = vsel %vm6784_vm5, %v5966_v50, %v4347_v15  ;;  %v3979_v55 = vunpack.c.l.b16 %v3908_v40  ;;  %v5887_v50 = vld [vmem:[%s6529_s29 + $0xd4] sm:$0x1] }
 0x281   : > { %v3164_v60 = vadd.f32 %v3099_v47, %v7516_v33  ;;  %v4404_v15 = vunpack.c.l.b16 %v4348_v25  ;;  %v4405_v16 = vunpack.c.l.b16 %v4351_v51  ;;  %v2999_v4 = vpack.c.b16 %v2982_v5, %v2981_v49  ;;  %v6393_v47 = vld [vmem:[%s6529_s29 + $0xc4] sm:$0xf]  ;;  %v6394_v49 = vld [vmem:[%s6529_s29 + $0xc8] sm:$0x1] }
 0x282   : > { %v6171_v22 = vpack.c.bf16 %v8125_v26, %v8123_v1  ;;  %v3898_v35 = vsel %vm6558_vm2, %v3893_v20, %v3897_v12  ;;  %v3923_v12 = vshrl.u32 %v8137_v0, 16  ;;  %v2931_v36 = vrot.slane %v6393_v47, 5 }
 0x283   : > { %v3414_v57 = vpop.f32.mrf.mxu3  ;;  %v4098_v33 = vpop.f32.mrf.mxu0  ;;  %v3978_v61 = vunpack.c.l.b16 %v3898_v35  ;;  %v3921_v20 = vrot.slane %v3919_v19, 5  ;;  %v4422_v35 = vpack.c.b16 %v4405_v16, %v4404_v15  ;;  %v5647_v40 = vrot.slane %v5631_v6, 9 }
 0x284   : > { %6311 = vst [vmem:[%s7979_s23 + $0x20] sm:$0xff] %v6171_v22   ;;  %v4524_v38 = vpop.f32.mrf.mxu1  ;;  %v3479_v10 = vadd.f32 %v3414_v57, %v3164_v60  ;;  %v3915_v22 = vrot.slane %v3913_v63, 5  ;;  %v3925_v18 = vrot.slane %v3923_v12, 4  ;;  %v6122_v60 = vld [vmem:[%s6529_s29 + $0xc0] sm:$0xff]  ;;  %v2934_v5 = vrot.slane %v6394_v49, 5 }
 0x285   : > { %v3996_v29 = vpack.c.b16 %v3979_v55, %v3978_v61  ;;  %v3929_v51 = vshll.u32 %v5887_v50, 16  ;;  %v5951_v63 = vld [vmem:[%s6529_s29 + $0xcc] sm:$0xe]  ;;  %v4354_v19 = vrot.slane %v8137_v0, 5 }
 0x286   : > { %v4161_v7 = vadd.f32 %v4096_v3, %v3479_v10  ;;  %v3916_v58 = vor.u32 %v3915_v22, %v3912_v34  ;;  %v3926_v62 = vor.u32 %v3925_v18, %v3921_v20  ;;  %v2932_v10 = vsel %vm6784_vm5, %v5647_v40, %v2931_v36 }
 0x287   : > { %v3931_v0 = vrot.slane %v3929_v51, 5  ;;  %v5967_v15 = vrot.slane %v5951_v63, 9 }
 0x288   : > { %v3101_v21 = vpop.f32.mrf.mxu2  ;;  %v8158_v3 = vadd.f32 %v8120_v56, %v4161_v7  ;;  %v3917_v16 = vrot.slane %v3916_v58, 4 }
 0x289   : > { %v3165_v13 = vadd.f32 %v3101_v21, %v7573_v37  ;;  %v2933_v37 = vrot.slane %v2931_v36, 4  ;;  %v4355_v34 = vsel %vm6784_vm5, %v5967_v15, %v4354_v19 }
 0x28a   : > { %v3922_v7 = vsel %vm6558_vm2, %v3917_v16, %v3921_v20  ;;  %v6123_v20 = vld [vmem:[%s6529_s29 + $0xcc] sm:$0xff]  ;;  %s5151_s29 = sshll.u32 %s8493_s19, 2 }
 0x28b   : > { %v3416_v31 = vpop.f32.mrf.mxu3  ;;  %v4101_v21 = vpop.f32.mrf.mxu0  ;;  %v2935_v55 = vsel %vm6784_vm5, %v2933_v37, %v2934_v5  ;;  %v3980_v40 = vunpack.c.l.b16 %v3922_v7  ;;  %s247_s25 = scalar_lea.vmem %s8383_s5, %s5151_s29 }
 0x28c   : > { %v3480_v57 = vadd.f32 %v3416_v31, %v3165_v13  ;;  %v4527_v47 = vpop.f32.mrf.mxu1  ;;  %v3927_v13 = vrot.slane %v3926_v62, 4  ;;  %v2983_v31 = vunpack.c.l.b16 %v2932_v10  ;;  %v2984_v36 = vunpack.c.l.b16 %v2935_v55 }
 0x28d   : > { %3143 = vmatmul.bf16.gmra.mxu2 %v2999_v4  ;;  %v4357_v4 = vrot.slane %v5887_v50, 5 }
 0x28e   : > { %v4162_v25 = vadd.f32 %v4098_v33, %v3480_v57  ;;  %4140 = vmatmul.bf16.gmra.mxu0 %v3996_v29  ;;  %v3932_v58 = vsel %vm6558_vm2, %v3927_v13, %v3931_v0  ;;  %v4406_v29 = vunpack.c.l.b16 %v4355_v34 }
 0x28f   : > { %4566 = vmatmul.bf16.gmra.mxu1 %v4422_v35 }
 0x290   : > { %v8160_v12 = vadd.f32 %v4524_v38, %v4162_v25  ;;  %3458 = vmatmul.bf16.gmra.mxu3 %v6122_v60  ;;  %v3104_v33 = vpop.f32.mrf.mxu2  ;;  %v4356_v38 = vrot.slane %v4354_v19, 4  ;;  %v3981_v25 = vunpack.c.l.b16 %v3932_v58 }
 0x291   : > { %v3166_v6 = vadd.f32 %v3104_v33, %v7629_v59  ;;  %v3000_v59 = vpack.c.b16 %v2984_v36, %v2983_v31 }
 0x292   : > { %v6176_v61 = vpack.c.bf16 %v8160_v12, %v8158_v3  ;;  %v4358_v50 = vsel %vm6784_vm5, %v4356_v38, %v4357_v4  ;;  %v3997_v8 = vpack.c.b16 %v3981_v25, %v3980_v40 }
 0x293   : > { %v3419_v56 = vpop.f32.mrf.mxu3  ;;  %v4103_v22 = vpop.f32.mrf.mxu0  ;;  %v4407_v37 = vunpack.c.l.b16 %v4358_v50 }
 0x294   : > { %6312 = vst [vmem:[%s7979_s23 + $0x28] sm:$0xff] %v6176_v61   ;;  %v4529_v18 = vpop.f32.mrf.mxu1  ;;  %v3481_v57 = vadd.f32 %v3419_v56, %v3166_v6 }
 0x295   : > { %v4423_v63 = vpack.c.b16 %v4407_v37, %v4406_v29 }
 0x296   : > { %v4163_v5 = vadd.f32 %v4101_v21, %v3481_v57 }
 0x298   : > { %v3106_v60 = vpop.f32.mrf.mxu2  ;;  %v8180_v33 = vadd.f32 %v4527_v47, %v4163_v5 }
 0x299   : > { %v3167_v35 = vadd.f32 %v3106_v60, %v7647_v11 }
 0x29b   : > { %v3421_v49 = vpop.f32.mrf.mxu3  ;;  %v4106_v17 = vpop.f32.mrf.mxu0 }
 0x29c   : > { %v3482_v51 = vadd.f32 %v3421_v49, %v3167_v35  ;;  %v4532_v19 = vpop.f32.mrf.mxu1 }
 0x29d   : > { %3148 = vmatmul.bf16.gmra.mxu2 %v3000_v59 }
 0x29e   : > { %v4164_v62 = vadd.f32 %v4103_v22, %v3482_v51  ;;  %4145 = vmatmul.bf16.gmra.mxu0 %v3997_v8 }
 0x29f   : > { %4571 = vmatmul.bf16.gmra.mxu1 %v4423_v63 }
 0x2a0   : > { %v8182_v10 = vadd.f32 %v4529_v18, %v4164_v62  ;;  %3463 = vmatmul.bf16.gmra.mxu3 %v6123_v20  ;;  %v3109_v11 = vpop.f32.mrf.mxu2 }
 0x2a1   : > { %v3168_v55 = vadd.f32 %v3109_v11, %v7663_v39 }
 0x2a2   : > { %v6181_v61 = vpack.c.bf16 %v8182_v10, %v8180_v33 }
 0x2a3   : > { %v3424_v21 = vpop.f32.mrf.mxu3  ;;  %v4108_v0 = vpop.f32.mrf.mxu0 }
 0x2a4   : > { %6313 = vst [vmem:[%s7979_s23 + $0x30] sm:$0xff] %v6181_v61   ;;  %v4534_v15 = vpop.f32.mrf.mxu1  ;;  %v3483_v56 = vadd.f32 %v3424_v21, %v3168_v55 }
 0x2a6   : > { %v4165_v38 = vadd.f32 %v4106_v17, %v3483_v56 }
 0x2a8   : > { %v3111_v16 = vpop.f32.mrf.mxu2  ;;  %v8189_v34 = vadd.f32 %v4532_v19, %v4165_v38 }
 0x2a9   : > { %v3169_v47 = vadd.f32 %v3111_v16, %v7684_v14 }
 0x2ab   : > { %v3426_v13 = vpop.f32.mrf.mxu3  ;;  %v4111_v31 = vpop.f32.mrf.mxu0 }
 0x2ac   : > { %v3484_v4 = vadd.f32 %v3426_v13, %v3169_v47  ;;  %v4537_v36 = vpop.f32.mrf.mxu1 }
 0x2ae   : > { %v4166_v6 = vadd.f32 %v4108_v0, %v3484_v4 }
 0x2b0   : > { %v8191_v22 = vadd.f32 %v4534_v15, %v4166_v6  ;;  %v3114_v18 = vpop.f32.mrf.mxu2 }
 0x2b1   : > { %v3170_v58 = vadd.f32 %v3114_v18, %v7698_v54 }
 0x2b2   : > { %v6186_v39 = vpack.c.bf16 %v8191_v22, %v8189_v34 }
 0x2b3   : > { %v3429_v7 = vpop.f32.mrf.mxu3  ;;  %v4113_v50 = vpop.f32.mrf.mxu0 }
 0x2b4   : > { %6314 = vst [vmem:[%s7979_s23 + $0x38] sm:$0xff] %v6186_v39   ;;  %v4539_v14 = vpop.f32.mrf.mxu1  ;;  %v3485_v57 = vadd.f32 %v3429_v7, %v3170_v58 }
 0x2b6   : > { %v4167_v35 = vadd.f32 %v4111_v31, %v3485_v57 }
 0x2b8   : > { %v3116_v60 = vpop.f32.mrf.mxu2  ;;  %v8198_v5 = vadd.f32 %v4537_v36, %v4167_v35 }
 0x2b9   : > { %v3171_v59 = vadd.f32 %v3116_v60, %v7716_v30 }
 0x2bb   : > { %v3431_v29 = vpop.f32.mrf.mxu3  ;;  %v4116_v37 = vpop.f32.mrf.mxu0 }
 0x2bc   : > { %v3486_v40 = vadd.f32 %v3431_v29, %v3171_v59  ;;  %v4542_v49 = vpop.f32.mrf.mxu1 }
 0x2be   : > { %v4168_v25 = vadd.f32 %v4113_v50, %v3486_v40  ;;  %v4737_v50 = vadd.f32 %v7970_v41, %v7968_v53 }
 0x2c0   : > { %v8200_v51 = vadd.f32 %v4539_v14, %v4168_v25  ;;  %v3119_v20 = vpop.f32.mrf.mxu2  ;;  %v4738_v59 = vadd.f32 %v4737_v50, %v8012_v27 }
 0x2c1   : > { %v3172_v8 = vadd.f32 %v3119_v20, %v7731_v43 }
 0x2c2   : > { %v6191_v54 = vpack.c.bf16 %v8200_v51, %v8198_v5  ;;  %v4739_v40 = vadd.f32 %v4738_v59, %v8014_v42 }
 0x2c3   : > { %v3434_v62 = vpop.f32.mrf.mxu3  ;;  %v4118_v63 = vpop.f32.mrf.mxu0 }
 0x2c4   : > { %6315 = vst [vmem:[%s7979_s23 + $0x40] sm:$0xff] %v6191_v54   ;;  %v4544_v30 = vpop.f32.mrf.mxu1  ;;  %v3487_v17 = vadd.f32 %v3434_v62, %v3172_v8 }
 0x2c6   : > { %v4169_v21 = vadd.f32 %v4116_v37, %v3487_v17  ;;  %v4740_v37 = vadd.f32 %v4739_v40, %v8049_v52 }
 0x2c8   : > { %v3121_v19 = vpop.f32.mrf.mxu2  ;;  %v8207_v16 = vadd.f32 %v4542_v49, %v4169_v21  ;;  %v4741_v20 = vadd.f32 %v4740_v37, %v8051_v2 }
 0x2c9   : > { %v3173_v11 = vadd.f32 %v3121_v19, %v7752_v48 }
 0x2ca   : > { %v4742_v8 = vadd.f32 %v4741_v20, %v8086_v28 }
 0x2cb   : > { %v3436_v61 = vpop.f32.mrf.mxu3  ;;  %v4121_v15 = vpop.f32.mrf.mxu0 }
 0x2cc   : > { %v3488_v55 = vadd.f32 %v3436_v61, %v3173_v11  ;;  %v4547_v56 = vpop.f32.mrf.mxu1  ;;  %v4743_v17 = vadd.f32 %v4742_v8, %v8088_v24 }
 0x2ce   : > { %v4170_v0 = vadd.f32 %v4118_v63, %v3488_v55  ;;  %v4744_v61 = vadd.f32 %v4743_v17, %v8123_v1 }
 0x2d0   : > { %v8209_v47 = vadd.f32 %v4544_v30, %v4170_v0  ;;  %v3124_v13 = vpop.f32.mrf.mxu2 }
 0x2d1   : > { %v3174_v4 = vadd.f32 %v3124_v13, %v7769_v46 }
 0x2d2   : > { %v6196_v43 = vpack.c.bf16 %v8209_v47, %v8207_v16 }
 0x2d3   : > { %v3439_v38 = vpop.f32.mrf.mxu3  ;;  %v4123_v6 = vpop.f32.mrf.mxu0 }
 0x2d4   : > { %6316 = vst [vmem:[%s7979_s23 + $0x48] sm:$0xff] %v6196_v43   ;;  %v4549_v48 = vpop.f32.mrf.mxu1  ;;  %v3489_v31 = vadd.f32 %v3439_v38, %v3174_v4 }
 0x2d6   : > { %v4171_v7 = vadd.f32 %v4121_v15, %v3489_v31 }
 0x2d8   : > { %v3126_v36 = vpop.f32.mrf.mxu2  ;;  %v8219_v29 = vadd.f32 %v4547_v56, %v4171_v7 }
 0x2d9   : > { %v3175_v18 = vadd.f32 %v3126_v36, %v7787_v32 }
 0x2db   : > { %v3441_v39 = vpop.f32.mrf.mxu3  ;;  %v4126_v57 = vpop.f32.mrf.mxu0 }
 0x2dc   : > { %v3490_v58 = vadd.f32 %v3441_v39, %v3175_v18  ;;  %v4552_v60 = vpop.f32.mrf.mxu1 }
 0x2de   : > { %v4172_v14 = vadd.f32 %v4123_v6, %v3490_v58 }
 0x2e0   : > { %v8221_v46 = vadd.f32 %v4549_v48, %v4172_v14  ;;  %v3129_v35 = vpop.f32.mrf.mxu2 }
 0x2e1   : > { %v3176_v49 = vadd.f32 %v3129_v35, %v7801_v44  ;;  %v4745_v44 = vadd.f32 %v4744_v61, %v8125_v26 }
 0x2e2   : > { %v6201_v32 = vpack.c.bf16 %v8221_v46, %v8219_v29 }
 0x2e3   : > { %v3444_v25 = vpop.f32.mrf.mxu3  ;;  %v4128_v54 = vpop.f32.mrf.mxu0  ;;  %v4746_v13 = vadd.f32 %v4745_v44, %v8158_v3 }
 0x2e4   : > { %6317 = vst [vmem:[%s7979_s23 + $0x50] sm:$0xff] %v6201_v32   ;;  %v4554_v62 = vpop.f32.mrf.mxu1  ;;  %v3491_v63 = vadd.f32 %v3444_v25, %v3176_v49 }
 0x2e6   : > { %v4173_v21 = vadd.f32 %v4126_v57, %v3491_v63 }
 0x2e8   : > { %v3131_v30 = vpop.f32.mrf.mxu2  ;;  %v8236_v43 = vadd.f32 %v4552_v60, %v4173_v21 }
 0x2e9   : > { %v3177_v19 = vadd.f32 %v3131_v30, %v7822_v23  ;;  %v4747_v23 = vadd.f32 %v4746_v13, %v8160_v12  ;;  %v8484_v30 = vld [vmem:[#allocation28_spill] sm:$0xff] }
 0x2eb   : > { %v3446_v11 = vpop.f32.mrf.mxu3  ;;  %v4131_v15 = vpop.f32.mrf.mxu0  ;;  %v4748_v31 = vadd.f32 %v4747_v23, %v8180_v33 }
 0x2ec   : > { %v3492_v55 = vadd.f32 %v3446_v11, %v3177_v19  ;;  %v4557_v56 = vpop.f32.mrf.mxu1 }
 0x2ed   : > { %v4749_v18 = vadd.f32 %v4748_v31, %v8182_v10 }
 0x2ee   : > { %v4174_v0 = vadd.f32 %v4128_v54, %v3492_v55 }
 0x2ef   : > { %v4750_v58 = vadd.f32 %v4749_v18, %v8189_v34 }
 0x2f0   : > { %v8238_v38 = vadd.f32 %v4554_v62, %v4174_v0  ;;  %v3134_v4 = vpop.f32.mrf.mxu2 }
 0x2f1   : > { %v3178_v36 = vadd.f32 %v3134_v4, %v7831_v45  ;;  %v4751_v57 = vadd.f32 %v4750_v58, %v8191_v22  ;;  %v8485_v4 = vld [vmem:[#allocation31_spill] sm:$0xff] }
 0x2f2   : > { %v6206_v6 = vpack.c.bf16 %v8238_v38, %v8236_v43 }
 0x2f3   : > { %v3449_v48 = vpop.f32.mrf.mxu3  ;;  %v4133_v39 = vpop.f32.mrf.mxu0  ;;  %v4752_v35 = vadd.f32 %v4751_v57, %v8198_v5 }
 0x2f4   : > { %6318 = vst [vmem:[%s7979_s23 + $0x58] sm:$0xff] %v6206_v6   ;;  %v4559_v7 = vpop.f32.mrf.mxu1  ;;  %v3493_v50 = vadd.f32 %v3449_v48, %v3178_v36 }
 0x2f5   : > { %v4753_v45 = vadd.f32 %v4752_v35, %v8200_v51  ;;  %v8486_v35 = vld [vmem:[#allocation3_spill] sm:$0xff] }
 0x2f6   : > { %v4175_v40 = vadd.f32 %v4131_v15, %v3493_v50 }
 0x2f7   : > { %v4754_v20 = vadd.f32 %v4753_v45, %v8207_v16 }
 0x2f8   : > { %v3136_v14 = vpop.f32.mrf.mxu2  ;;  %v8253_v54 = vadd.f32 %v4557_v56, %v4175_v40 }
 0x2f9   : > { %v3179_v60 = vadd.f32 %v3136_v14, %v7847_v9  ;;  %v4755_v9 = vadd.f32 %v4754_v20, %v8209_v47 }
 0x2fb   : > { %v3451_v59 = vpop.f32.mrf.mxu3  ;;  %v4136_v37 = vpop.f32.mrf.mxu0  ;;  %v4756_v11 = vadd.f32 %v4755_v9, %v8219_v29  ;;  %v8487_v9 = vld [vmem:[#allocation18_spill] sm:$0xff] }
 0x2fc   : > { %v3494_v32 = vadd.f32 %v3451_v59, %v3179_v60  ;;  %v4562_v49 = vpop.f32.mrf.mxu1 }
 0x2fd   : > { %v4757_v21 = vadd.f32 %v4756_v11, %v8221_v46 }
 0x2fe   : > { %v4176_v25 = vadd.f32 %v4133_v39, %v3494_v32 }
 0x2ff   : > { %v4758_v0 = vadd.f32 %v4757_v21, %v8236_v43 }
 0x300   : > { %v8255_v62 = vadd.f32 %v4559_v7, %v4176_v25  ;;  %v3139_v8 = vpop.f32.mrf.mxu2 }
 0x301   : > { %v3180_v17 = vadd.f32 %v3139_v8, %v8484_v30  ;;  %v4759_v13 = vadd.f32 %v4758_v0, %v8238_v38  ;;  %v8488_v0 = vld [vmem:[#allocation5_spill] sm:$0xff] }
 0x302   : > { %v6211_v63 = vpack.c.bf16 %v8255_v62, %v8253_v54 }
 0x303   : > { %v3454_v19 = vpop.f32.mrf.mxu3  ;;  %v4138_v55 = vpop.f32.mrf.mxu0  ;;  %v4760_v48 = vadd.f32 %v4759_v13, %v8253_v54 }
 0x304   : > { %6319 = vst [vmem:[%s7979_s23 + $0x60] sm:$0xff] %v6211_v63   ;;  %v3495_v61 = vadd.f32 %v3454_v19, %v3180_v17  ;;  %v4564_v44 = vpop.f32.mrf.mxu1 }
 0x305   : > { %v4761_v18 = vadd.f32 %v4760_v48, %v8255_v62 }
 0x306   : > { %v4177_v15 = vadd.f32 %v4136_v37, %v3495_v61 }
 0x308   : > { %v3141_v56 = vpop.f32.mrf.mxu2  ;;  %v8268_v31 = vadd.f32 %v4562_v49, %v4177_v15 }
 0x309   : > { %v3181_v23 = vadd.f32 %v3141_v56, %v8485_v4 }
 0x30a   : > { %v4762_v58 = vadd.f32 %v4761_v18, %v8268_v31 }
 0x30b   : > { %v3456_v6 = vpop.f32.mrf.mxu3  ;;  %v4141_v7 = vpop.f32.mrf.mxu0 }
 0x30c   : > { %v3496_v36 = vadd.f32 %v3456_v6, %v3181_v23  ;;  %v4567_v14 = vpop.f32.mrf.mxu1 }
 0x30e   : > { %v4178_v39 = vadd.f32 %v4138_v55, %v3496_v36 }
 0x310   : > { %v8272_v50 = vadd.f32 %v4564_v44, %v4178_v39  ;;  %v3144_v57 = vpop.f32.mrf.mxu2  ;;  %v8489_v39 = vld [vmem:[#allocation7_spill] sm:$0xff] }
 0x311   : > { %v3182_v40 = vadd.f32 %v3144_v57, %v8486_v35 }
 0x312   : > { %v6216_v60 = vpack.c.bf16 %v8272_v50, %v8268_v31  ;;  %v4763_v59 = vadd.f32 %v4762_v58, %v8272_v50 }
 0x313   : > { %v3459_v32 = vpop.f32.mrf.mxu3  ;;  %v4143_v49 = vpop.f32.mrf.mxu0 }
 0x314   : > { %6320 = vst [vmem:[%s7979_s23 + $0x68] sm:$0xff] %v6216_v60   ;;  %v3497_v45 = vadd.f32 %v3459_v32, %v3182_v40  ;;  %v4569_v30 = vpop.f32.mrf.mxu1 }
 0x316   : > { %v4179_v25 = vadd.f32 %v4141_v7, %v3497_v45 }
 0x318   : > { %v8279_v37 = vadd.f32 %v4567_v14, %v4179_v25  ;;  %v3146_v20 = vpop.f32.mrf.mxu2 }
 0x319   : > { %v3183_v63 = vadd.f32 %v3146_v20, %v8487_v9 }
 0x31a   : > { %v4764_v8 = vadd.f32 %v4763_v59, %v8279_v37 }
 0x31b   : > { %v3461_v17 = vpop.f32.mrf.mxu3  ;;  %v4146_v56 = vpop.f32.mrf.mxu0 }
 0x31c   : > { %v3498_v19 = vadd.f32 %v3461_v17, %v3183_v63  ;;  %v4572_v23 = vpop.f32.mrf.mxu1 }
 0x31e   : > { %v4180_v11 = vadd.f32 %v4143_v49, %v3498_v19 }
 0x320   : > { %v8283_v61 = vadd.f32 %v4569_v30, %v4180_v11  ;;  %v3149_v21 = vpop.f32.mrf.mxu2 }
 0x321   : > { %v3184_v15 = vadd.f32 %v3149_v21, %v8488_v0 }
 0x322   : > { %v6221_v55 = vpack.c.bf16 %v8283_v61, %v8279_v37  ;;  %v4765_v44 = vadd.f32 %v4764_v8, %v8283_v61 }
 0x323   : > { %v3464_v13 = vpop.f32.mrf.mxu3  ;;  %v4148_v57 = vpop.f32.mrf.mxu0 }
 0x324   : > { %6321 = vst [vmem:[%s7979_s23 + $0x70] sm:$0xff] %v6221_v55   ;;  %v3499_v4 = vadd.f32 %v3464_v13, %v3184_v15  ;;  %v4574_v59 = vpop.f32.mrf.mxu1 }
 0x326   : > { %v4181_v6 = vadd.f32 %v4146_v56, %v3499_v4 }
 0x328   : > { %v8290_v48 = vadd.f32 %v4572_v23, %v4181_v6  ;;  %v3151_v36 = vpop.f32.mrf.mxu2 }
 0x329   : > { %v3185_v7 = vadd.f32 %v3151_v36, %v8489_v39 }
 0x32a   : > { %v4766_v18 = vadd.f32 %v4765_v44, %v8290_v48 }
 0x32b   : > { %v3466_v58 = vpop.f32.mrf.mxu3 }
 0x32c   : > { %v3500_v14 = vadd.f32 %v3466_v58, %v3185_v7 }
 0x32e   : > { %v4182_v60 = vadd.f32 %v4148_v57, %v3500_v14 }
 0x330   : > { %v8294_v35 = vadd.f32 %v4574_v59, %v4182_v60 }
 0x332   : > { %v6226_v40 = vpack.c.bf16 %v8294_v35, %v8290_v48  ;;  %v4767_v32 = vadd.f32 %v4766_v18, %v8294_v35 }
 0x334   : > { %6322 = vst [vmem:[%s7979_s23 + $0x78] sm:$0xff] %v6226_v40   ;;  %v4768_v45 = vrot.slane %v4767_v32, 4 }
 0x336   : > { %v4769_v25 = vadd.f32 %v4768_v45, %v4767_v32 }
 0x338   : > { %v4770_v49 = vrot.slane %v4769_v25, 2 }
 0x33a   : > { %v4771_v20 = vadd.f32 %v4770_v49, %v4769_v25 }
 0x33c   : > { %v4772_v8 = vrot.slane %v4771_v20, 1 }
 0x33e   : > { %v4773_v9 = vadd.f32 %v4772_v8, %v4771_v20 }
 0x340   : > { %v8300_v63 = vmul.f32 0.00390625, %v4773_v9 }
 0x342   : > { %v4775_v30 = vsub.f32 %v7968_v53, %v8300_v63  ;;  %v4776_v17 = vsub.f32 %v7970_v41, %v8300_v63  ;;  %v4777_v19 = vsub.f32 %v8012_v27, %v8300_v63  ;;  %v4778_v55 = vsub.f32 %v8014_v42, %v8300_v63 }
 0x343   : > { %v4779_v44 = vsub.f32 %v8049_v52, %v8300_v63  ;;  %v4780_v56 = vsub.f32 %v8051_v2, %v8300_v63  ;;  %v4781_v41 = vsub.f32 %v8086_v28, %v8300_v63  ;;  %v4782_v23 = vsub.f32 %v8088_v24, %v8300_v63 }
 0x344   : > { %v4807_v11 = vmul.f32 %v4775_v30, %v4775_v30  ;;  %v4808_v21 = vmul.f32 %v4776_v17, %v4776_v17  ;;  %v4809_v0 = vmul.f32 %v4777_v19, %v4777_v19  ;;  %v4810_v53 = vmul.f32 %v4778_v55, %v4778_v55 }
 0x345   : > { %v4811_v4 = vmul.f32 %v4779_v44, %v4779_v44  ;;  %v4812_v6 = vmul.f32 %v4780_v56, %v4780_v56  ;;  %v4783_v52 = vsub.f32 %v8123_v1, %v8300_v63  ;;  %v4813_v36 = vmul.f32 %v4781_v41, %v4781_v41 }
 0x346   : > { %v4839_v15 = vadd.f32 %v4808_v21, %v4807_v11  ;;  %v4784_v2 = vsub.f32 %v8125_v26, %v8300_v63  ;;  %v4814_v39 = vmul.f32 %v4782_v23, %v4782_v23  ;;  %v4785_v28 = vsub.f32 %v8158_v3, %v8300_v63 }
 0x347   : > { %v4815_v58 = vmul.f32 %v4783_v52, %v4783_v52  ;;  %v4786_v24 = vsub.f32 %v8160_v12, %v8300_v63  ;;  %v4787_v1 = vsub.f32 %v8180_v33, %v8300_v63  ;;  %v4788_v26 = vsub.f32 %v8182_v10, %v8300_v63 }
 0x348   : > { %v4840_v13 = vadd.f32 %v4839_v15, %v4809_v0  ;;  %v4816_v57 = vmul.f32 %v4784_v2, %v4784_v2  ;;  %v4817_v59 = vmul.f32 %v4785_v28, %v4785_v28  ;;  %v4789_v3 = vsub.f32 %v8189_v34, %v8300_v63 }
 0x349   : > { %v4818_v32 = vmul.f32 %v4786_v24, %v4786_v24  ;;  %v4819_v25 = vmul.f32 %v4787_v1, %v4787_v1  ;;  %v4790_v12 = vsub.f32 %v8191_v22, %v8300_v63  ;;  %v4820_v20 = vmul.f32 %v4788_v26, %v4788_v26 }
 0x34a   : > { %v4841_v27 = vadd.f32 %v4840_v13, %v4810_v53  ;;  %v4791_v33 = vsub.f32 %v8198_v5, %v8300_v63  ;;  %v4821_v9 = vmul.f32 %v4789_v3, %v4789_v3  ;;  %v4792_v10 = vsub.f32 %v8200_v51, %v8300_v63 }
 0x34b   : > { %v4822_v17 = vmul.f32 %v4790_v12, %v4790_v12  ;;  %v4793_v34 = vsub.f32 %v8207_v16, %v8300_v63  ;;  %v4794_v22 = vsub.f32 %v8209_v47, %v8300_v63  ;;  %v4795_v5 = vsub.f32 %v8219_v29, %v8300_v63 }
 0x34c   : > { %v4842_v42 = vadd.f32 %v4841_v27, %v4811_v4  ;;  %v4823_v11 = vmul.f32 %v4791_v33, %v4791_v33  ;;  %v4824_v55 = vmul.f32 %v4792_v10, %v4792_v10  ;;  %v4796_v51 = vsub.f32 %v8221_v46, %v8300_v63 }
 0x34d   : > { %v4825_v0 = vmul.f32 %v4793_v34, %v4793_v34  ;;  %v4826_v56 = vmul.f32 %v4794_v22, %v4794_v22  ;;  %v4797_v16 = vsub.f32 %v8236_v43, %v8300_v63  ;;  %v4827_v13 = vmul.f32 %v4795_v5, %v4795_v5 }
 0x34e   : > { %v4843_v18 = vadd.f32 %v4842_v42, %v4812_v6  ;;  %v4798_v47 = vsub.f32 %v8238_v38, %v8300_v63  ;;  %v4828_v4 = vmul.f32 %v4796_v51, %v4796_v51  ;;  %v4799_v29 = vsub.f32 %v8253_v54, %v8300_v63 }
 0x34f   : > { %v4829_v23 = vmul.f32 %v4797_v16, %v4797_v16  ;;  %v4800_v46 = vsub.f32 %v8255_v62, %v8300_v63  ;;  %v4801_v43 = vsub.f32 %v8268_v31, %v8300_v63  ;;  %v4802_v38 = vsub.f32 %v8272_v50, %v8300_v63 }
 0x350   : > { %v4844_v7 = vadd.f32 %v4843_v18, %v4813_v36  ;;  %v4830_v42 = vmul.f32 %v4798_v47, %v4798_v47  ;;  %v4831_v36 = vmul.f32 %v4799_v29, %v4799_v29  ;;  %v4803_v54 = vsub.f32 %v8279_v37, %v8300_v63 }
 0x351   : > { %v4832_v2 = vmul.f32 %v4800_v46, %v4800_v46  ;;  %v4804_v62 = vsub.f32 %v8283_v61, %v8300_v63  ;;  %v4805_v31 = vsub.f32 %v8290_v48, %v8300_v63  ;;  %v4806_v50 = vsub.f32 %v8294_v35, %v8300_v63 }
 0x352   : > { %v4845_v14 = vadd.f32 %v4844_v7, %v4814_v39  ;;  %v4833_v7 = vmul.f32 %v4801_v43, %v4801_v43  ;;  %v4835_v24 = vmul.f32 %v4803_v54, %v4803_v54 }
 0x353   : > { %v4838_v61 = vmul.f32 %v4806_v50, %v4806_v50 }
 0x354   : > { %v4846_v60 = vadd.f32 %v4845_v14, %v4815_v58  ;;  %v4834_v58 = vmul.f32 %v4802_v38, %v4802_v38 }
 0x356   : > { %v4847_v40 = vadd.f32 %v4846_v60, %v4816_v57  ;;  %v8490_v60 = vld [vmem:[#allocation16_spill] sm:$0xff] }
 0x357   : > { %v5009_v1 = vrot.slane %v8490_v60, 4 }
 0x358   : > { %v4848_v45 = vadd.f32 %v4847_v40, %v4817_v59  ;;  %v4836_v59 = vmul.f32 %v4804_v62, %v4804_v62  ;;  %v4837_v40 = vmul.f32 %v4805_v31, %v4805_v31 }
 0x35a   : > { %v4849_v49 = vadd.f32 %v4848_v45, %v4818_v32  ;;  %v5010_v32 = vadd.f32 %v5009_v1, %v8490_v60 }
 0x35c   : > { %v4850_v8 = vadd.f32 %v4849_v49, %v4819_v25  ;;  %v5011_v25 = vrot.slane %v5010_v32, 2 }
 0x35e   : > { %v4851_v30 = vadd.f32 %v4850_v8, %v4820_v20  ;;  %v5012_v12 = vadd.f32 %v5011_v25, %v5010_v32 }
 0x360   : > { %v4852_v19 = vadd.f32 %v4851_v30, %v4821_v9  ;;  %v5013_v33 = vrot.slane %v5012_v12, 1 }
 0x362   : > { %v4853_v21 = vadd.f32 %v4852_v19, %v4822_v17  ;;  %v5014_v30 = vadd.f32 %v5013_v33, %v5012_v12  ;;  %v8491_v17 = vld [vmem:[#allocation39_spill] sm:$0xff] }
 0x364   : > { %v4854_v44 = vadd.f32 %v4853_v21, %v4823_v11 }
 0x366   : > { %v4855_v15 = vadd.f32 %v4854_v44, %v4824_v55 }
 0x368   : > { %v4856_v53 = vadd.f32 %v4855_v15, %v4825_v0 }
 0x36a   : > { %v4857_v41 = vadd.f32 %v4856_v53, %v4826_v56 }
 0x36c   : > { %v4858_v27 = vadd.f32 %v4857_v41, %v4827_v13 }
 0x36e   : > { %v4859_v6 = vadd.f32 %v4858_v27, %v4828_v4 }
 0x370   : > { %v4860_v52 = vadd.f32 %v4859_v6, %v4829_v23 }
 0x372   : > { %v4861_v18 = vadd.f32 %v4860_v52, %v4830_v42 }
 0x374   : > { %v4862_v39 = vadd.f32 %v4861_v18, %v4831_v36 }
 0x376   : > { %v4863_v28 = vadd.f32 %v4862_v39, %v4832_v2 }
 0x378   : > { %v4864_v14 = vadd.f32 %v4863_v28, %v4833_v7 }
 0x37a   : > { %v4865_v57 = vadd.f32 %v4864_v14, %v4834_v58 }
 0x37c   : > { %v4866_v37 = vadd.f32 %v4865_v57, %v4835_v24 }
 0x37e   : > { %v4867_v26 = vadd.f32 %v4866_v37, %v4836_v59 }
 0x380   : > { %v4868_v45 = vadd.f32 %v4867_v26, %v4837_v40 }
 0x382   : > { %v4869_v3 = vadd.f32 %v4868_v45, %v4838_v61 }
 0x384   : > { %v4870_v49 = vrot.slane %v4869_v3, 4 }
 0x386   : > { %v4871_v48 = vadd.f32 %v4870_v49, %v4869_v3 }
 0x388   : > { %v4872_v20 = vrot.slane %v4871_v48, 2 }
 0x38a   : > { %v4873_v8 = vadd.f32 %v4872_v20, %v4871_v48 }
 0x38c   : > { %v4874_v9 = vrot.slane %v4873_v8, 1 }
 0x38e   : > { %v4875_v35 = vadd.f32 %v4874_v9, %v4873_v8 }
 0x390   : > { %v5016_v10 = vsel %vm5015_vm6, %v8300_v63, %v4875_v35 }
 0x391   : > { %v5018_v19 = vsel %vm5017_vm7, %v5016_v10, %v8491_v17 }
 0x392   : > { %v5020_v34 = vsel %vm2081_vm3, %v5018_v19, %v5014_v30 }
 0x393   : > { %5021 = vst [vmem:[%s247_s25] sm:$0xf] %v5020_v34 }
 0x394 PF: > { %s16_s18 = sadd.s32 1, %s6401_s18  }
 0x395   : > { %p13_p4 = scmp.ge.s32.totalorder %s16_s18, 4  }
 0x397   :  { %15 = sbr.rel (!%p13_p4) target bundleno = 1 (0x1), region = 95 }

</bundles_post_ra>
